<compile_context>
chip_gen: v5e
topology: v5e:2x2
jax: 0.10.0
libtpu: 0.0.40
codegen_flags: <defaults>
</compile_context>

<pallas_src>
import functools

import jax
import jax.numpy as jnp
from jax import lax
from jax.experimental import pallas as pl
from jax.experimental.pallas import tpu as pltpu

EPS = 1e-5                            # PyTorch InstanceNorm3d default (affine=False)
VMEM_LIMIT_BYTES = 48 * 1024 * 1024   # safe on v5e/v6e/v7x


def _round_up(v, m):
    return (v + m - 1) // m * m


# ----------------------------------------------------------------------------
# Kernel 1: (optional producer norm+ReLU) -> 3x3x3 conv -> bias
#           + running InstanceNorm statistics, written to a padded canvas.
# ----------------------------------------------------------------------------
def _conv_in_kernel(x0, x1, x2, hwm, wt, b, m_in, r_in,
                    yout, s_out, q_out, *, apply_act, D, H, W):
    # x0/x1/x2: (1, 1, Cs, Hp*Wp)  padded-depth rows d, d+1, d+2 of the source
    # hwm:      (1, Hp*Wp)         1.0 at interior (non padding) positions
    # wt:       (Cout, 27*Cs)      bf16 flattened conv weights (transposed)
    # b:        (Cout, 1)          conv bias (f32)
    # m_in/r_in:(1, Cs, 1, 1)      producer per-channel mean / rstd (conv-2 only)
    # yout:     (1, 1, Cout, Hp*Wp) padded canvas row d+1 of this conv's output
    # s_out/q_out: (1, Cout, 1, 1) accumulators -> finalized to mean / rstd
    d = pl.program_id(1)
    Hp, Wp = H + 2, W + 2
    HWp = Hp * Wp
    L = (H - 1) * Wp + W          # output columns computed per depth slice
    left = Wp + 1                 # flat offset of output (h=0, w=0) in the canvas

    rows = [x0[0, 0, :, :], x1[0, 0, :, :], x2[0, 0, :, :]]   # (Cs, HWp) f32

    if apply_act:
        # Fused InstanceNorm + ReLU of the *producer* plus its zero padding:
        # padding / garbage positions are forced back to exactly 0.
        m = m_in[0, :, :, 0]                                   # (Cs, 1)
        r = r_in[0, :, :, 0]
        hw_ok = hwm[...] > 0.5                                 # (1, HWp) bool
        masked = []
        for kd in range(3):
            dep_ok = jnp.logical_and(d + kd >= 1, d + kd <= D)  # scalar bool
            ok = jnp.logical_and(dep_ok, hw_ok)                  # (1, HWp)
            act = jnp.maximum((rows[kd] - m) * r, 0.0)
            masked.append(jnp.where(ok, act, 0.0))
        rows = masked

    cs = rows[0].shape[0]

    # Build the transposed patch matrix (27*Cs, L) with static slices (im2col
    # entirely in VMEM / vregs; nothing extra touches HBM).
    slabs = []
    for kd in range(3):
        rk = rows[kd]
        for kh in range(3):
            for kw in range(3):
                off = kh * Wp + kw
                slabs.append(rk[:, off:off + L])
    pt = jnp.concatenate(slabs, axis=0).astype(jnp.bfloat16)     # (27*Cs, L)

    # One MXU GEMM, f32 accumulation; lane dim = spatial (lane dense).
    y = jnp.dot(wt[...], pt, preferred_element_type=jnp.float32)  # (Cout, L)
    y = y + b[...]

    # One-pass InstanceNorm statistics over the valid output columns only.
    vm = hwm[:, left:left + L]                                    # (1, L)
    ym = y * vm

    @pl.when(d == 0)
    def _init():
        s_out[...] = jnp.zeros(s_out.shape, s_out.dtype)
        q_out[...] = jnp.zeros(q_out.shape, q_out.dtype)

    s_out[0, :, :, 0] = s_out[0, :, :, 0] + jnp.sum(ym, axis=1, keepdims=True)
    q_out[0, :, :, 0] = q_out[0, :, :, 0] + jnp.sum(ym * ym, axis=1, keepdims=True)

    # Write this depth slice into the padded output canvas row (lane dense).
    cout = y.shape[0]
    yout[0, 0, :, 0:left] = jnp.zeros((cout, left), jnp.float32)
    yout[0, 0, :, left:left + L] = y
    yout[0, 0, :, left + L:HWp] = jnp.zeros((cout, HWp - left - L), jnp.float32)

    @pl.when(d == D - 1)
    def _finalize():
        inv = 1.0 / float(D * H * W)
        s = s_out[0, :, :, 0]
        q = q_out[0, :, :, 0]
        mean = s * inv
        var = q * inv - mean * mean
        s_out[0, :, :, 0] = mean
        q_out[0, :, :, 0] = lax.rsqrt(var + EPS)


def conv3d_in_stats(canvas, hwmask, wt, bias, mean_in, rstd_in, *, H, W, apply_act):
    # canvas: (N, D+2, Cs, (H+2)*(W+2)) padded source activations
    # returns: (padded output canvas, per-channel mean, per-channel rstd)
    N, Dp, Cs, HWp = canvas.shape
    D = Dp - 2
    Cout = wt.shape[0]
    kernel = functools.partial(_conv_in_kernel, apply_act=apply_act, D=D, H=H, W=W)
    return pl.pallas_call(
        kernel,
        out_shape=(
            jax.ShapeDtypeStruct((N, Dp, Cout, HWp), jnp.float32),
            jax.ShapeDtypeStruct((N, Cout, 1, 1), jnp.float32),
            jax.ShapeDtypeStruct((N, Cout, 1, 1), jnp.float32),
        ),
        grid=(N, D),
        in_specs=[
            pl.BlockSpec((1, 1, Cs, HWp), lambda n, d: (n, d, 0, 0)),
            pl.BlockSpec((1, 1, Cs, HWp), lambda n, d: (n, d + 1, 0, 0)),
            pl.BlockSpec((1, 1, Cs, HWp), lambda n, d: (n, d + 2, 0, 0)),
            pl.BlockSpec((1, HWp), lambda n, d: (0, 0)),
            pl.BlockSpec(wt.shape, lambda n, d: (0, 0)),
            pl.BlockSpec(bias.shape, lambda n, d: (0, 0)),
            pl.BlockSpec((1, Cs, 1, 1), lambda n, d: (n, 0, 0, 0)),
            pl.BlockSpec((1, Cs, 1, 1), lambda n, d: (n, 0, 0, 0)),
        ],
        out_specs=(
            pl.BlockSpec((1, 1, Cout, HWp), lambda n, d: (n, d + 1, 0, 0)),
            pl.BlockSpec((1, Cout, 1, 1), lambda n, d: (n, 0, 0, 0)),
            pl.BlockSpec((1, Cout, 1, 1), lambda n, d: (n, 0, 0, 0)),
        ),
        compiler_params=pltpu.CompilerParams(
            dimension_semantics=("parallel", "arbitrary"),
            vmem_limit_bytes=VMEM_LIMIT_BYTES),
    )(canvas, canvas, canvas, hwmask, wt, bias, mean_in, rstd_in)


# ----------------------------------------------------------------------------
# Kernel 2: InstanceNorm + ReLU of conv-2, fused with the 2x2x2 max pool.
# ----------------------------------------------------------------------------
def _finalize_kernel(ya, yb, m_ref, r_ref, skip_ref, down_ref, *, H, W):
    Hp, Wp = H + 2, W + 2
    a = ya[0, 0, :, :]                                  # (C, Hp*Wp)
    b = yb[0, 0, :, :]
    m = m_ref[0, :, :, 0]                               # (C, 1)
    r = r_ref[0, :, :, 0]
    na = jnp.maximum((a - m) * r, 0.0)
    nb = jnp.maximum((b - m) * r, 0.0)
    c = na.shape[0]
    na3 = na.reshape(c, Hp, Wp)[:, 1:H + 1, 1:W + 1]    # (C, H, W) interior only
    nb3 = nb.reshape(c, Hp, Wp)[:, 1:H + 1, 1:W + 1]
    skip_ref[0, :, 0] = na3
    skip_ref[0, :, 1] = nb3
    # Fused MaxPool3d(kernel=2, stride=2) on the two depth slices.
    mz = jnp.maximum(na3, nb3)
    mz = jnp.max(mz.reshape(c, H, W // 2, 2), axis=3)
    mz = jnp.max(mz.reshape(c, H // 2, 2, W // 2), axis=2)
    down_ref[0, :, 0] = mz


def norm_relu_pool(ycanvas, mean, rstd, *, H, W):
    N, Dp, C, HWp = ycanvas.shape
    D = Dp - 2
    D2, H2, W2 = D // 2, H // 2, W // 2
    kernel = functools.partial(_finalize_kernel, H=H, W=W)
    return pl.pallas_call(
        kernel,
        out_shape=(
            jax.ShapeDtypeStruct((N, C, D, H, W), jnp.float32),
            jax.ShapeDtypeStruct((N, C, D2, H2, W2), jnp.float32),
        ),
        grid=(N, D2),
        in_specs=[
            pl.BlockSpec((1, 1, C, HWp), lambda n, t: (n, 2 * t + 1, 0, 0)),
            pl.BlockSpec((1, 1, C, HWp), lambda n, t: (n, 2 * t + 2, 0, 0)),
            pl.BlockSpec((1, C, 1, 1), lambda n, t: (n, 0, 0, 0)),
            pl.BlockSpec((1, C, 1, 1), lambda n, t: (n, 0, 0, 0)),
        ],
        out_specs=(
            pl.BlockSpec((1, C, 2, H, W), lambda n, t: (n, 0, t, 0, 0)),
            pl.BlockSpec((1, C, 1, H2, W2), lambda n, t: (n, 0, t, 0, 0)),
        ),
        compiler_params=pltpu.CompilerParams(
            dimension_semantics=("parallel", "parallel"),
            vmem_limit_bytes=VMEM_LIMIT_BYTES),
    )(ycanvas, ycanvas, mean, rstd)


# ----------------------------------------------------------------------------
# Parameter / operand preparation and the full forward pass.
# ----------------------------------------------------------------------------
def init_params(key, in_channels, out_channels):
    k1, k2, k3, k4 = jax.random.split(key, 4)
    scale = 0.1
    return {
        "w1": scale * jax.random.normal(k1, (3, 3, 3, in_channels, out_channels), jnp.float32),
        "b1": scale * jax.random.normal(k2, (out_channels,), jnp.float32),
        "w2": scale * jax.random.normal(k3, (3, 3, 3, out_channels, out_channels), jnp.float32),
        "b2": scale * jax.random.normal(k4, (out_channels,), jnp.float32),
    }


def _prep_weight(w, cin_pad):
    # (3,3,3,Cin,Cout) -> (Cout, 27*cin_pad) bf16, input channels zero padded.
    cin, cout = w.shape[3], w.shape[4]
    wp = jnp.pad(w, ((0, 0), (0, 0), (0, 0), (0, cin_pad - cin), (0, 0)))
    return wp.reshape(27 * cin_pad, cout).T.astype(jnp.bfloat16)


@jax.jit
def encoder_block_forward(x, params):
    # x: (N, Cin, D, H, W)  (PyTorch NCDHW layout)
    N, Cin, D, H, W = x.shape
    assert D % 2 == 0 and H % 2 == 0 and W % 2 == 0, "even spatial dims required (MaxPool3d(2,2))"
    C1 = params["w1"].shape[-1]
    cin_p = _round_up(Cin, 8)
    Hp, Wp, Dp = H + 2, W + 2, D + 2

    # Conv-1 input canvas (true zero padding), layout (N, Dp, C, Hp*Wp).
    xt = jnp.transpose(x, (0, 2, 1, 3, 4))                                  # (N, D, Cin, H, W)
    xp = jnp.pad(xt, ((0, 0), (1, 1), (0, cin_p - Cin), (1, 1), (1, 1)))
    x_canvas = xp.reshape(N, Dp, cin_p, Hp * Wp)

    # Interior mask of a padded (Hp, Wp) slice (used for stats + fused padding).
    hwmask = (jnp.zeros((Hp, Wp), jnp.float32)
              .at[1:H + 1, 1:W + 1].set(1.0)
              .reshape(1, Hp * Wp))

    w1t = _prep_weight(params["w1"], cin_p)          # (C1, 27*cin_p) bf16
    w2t = _prep_weight(params["w2"], C1)             # (C1, 27*C1)    bf16
    b1 = params["b1"].reshape(C1, 1).astype(jnp.float32)
    b2 = params["b2"].reshape(C1, 1).astype(jnp.float32)

    zeros_m = jnp.zeros((N, cin_p, 1, 1), jnp.float32)
    ones_r = jnp.ones((N, cin_p, 1, 1), jnp.float32)

    # conv-1 (no producer activation), conv-2 (fused norm+ReLU of conv-1).
    y1c, mean1, rstd1 = conv3d_in_stats(x_canvas, hwmask, w1t, b1, zeros_m, ones_r,
                                        H=H, W=W, apply_act=False)
    y2c, mean2, rstd2 = conv3d_in_stats(y1c, hwmask, w2t, b2, mean1, rstd1,
                                        H=H, W=W, apply_act=True)
    # conv-2 norm+ReLU fused with MaxPool3d(2, 2); outputs already NCDHW.
    skip, down = norm_relu_pool(y2c, mean2, rstd2, H=H, W=W)
    return skip, down


# ----------------------------------------------------------------------------
# Pure-JAX reference (mirrors the kernel's bf16 MXU operands, f32 accumulate).
# ----------------------------------------------------------------------------
def _ref_conv_in(x, w, b):
    y = lax.conv_general_dilated(
        x.astype(jnp.bfloat16), w.astype(jnp.bfloat16),
        window_strides=(1, 1, 1), padding=((1, 1), (1, 1), (1, 1)),
        dimension_numbers=("NCDHW", "DHWIO", "NCDHW"),
        preferred_element_type=jnp.float32)
    y = y + b.reshape(1, -1, 1, 1, 1)
    mean = jnp.mean(y, axis=(2, 3, 4), keepdims=True)
    var = jnp.mean((y - mean) ** 2, axis=(2, 3, 4), keepdims=True)
    return jnp.maximum((y - mean) * lax.rsqrt(var + EPS), 0.0)


def _ref_forward(x, params):
    h1 = _ref_conv_in(x, params["w1"], params["b1"])
    skip = _ref_conv_in(h1, params["w2"], params["b2"])
    down = lax.reduce_window(skip, -jnp.inf, lax.max,
                             (1, 1, 2, 2, 2), (1, 1, 2, 2, 2), "VALID")
    return skip, down


if __name__ == "__main__":
    N, CIN, COUT, D, H, W = 2, 4, 8, 16, 16, 16
    key = jax.random.PRNGKey(0)
    kx, kp = jax.random.split(key)
    x = jax.random.normal(kx, (N, CIN, D, H, W), jnp.float32)
    params = init_params(kp, CIN, COUT)

    skip, down = encoder_block_forward(x, params)
    jax.block_until_ready((skip, down))

    assert skip.shape == (N, COUT, D, H, W), skip.shape
    assert down.shape == (N, COUT, D // 2, H // 2, W // 2), down.shape

    ref_skip, ref_down = _ref_forward(x, params)
    err_s = float(jnp.max(jnp.abs(skip - ref_skip)))
    err_d = float(jnp.max(jnp.abs(down - ref_down)))
    # bf16 MXU operands (kernel and reference) bound the achievable agreement;
    # 1e-2 abs is ~an order of magnitude above the expected worst-case error.
    assert err_s < 1e-2 and err_d < 1e-2, (err_s, err_d)

    print("KERNEL_OK")
</pallas_src>

<mosaic_0001>
module attributes {stable_mosaic.version = 11 : i64} {
  func.func @_conv_in_kernel(%arg0: i32, %arg1: i32, %arg2: memref<1x1x8x324xf32, #tpu.memory_space<vmem>>, %arg3: memref<1x1x8x324xf32, #tpu.memory_space<vmem>>, %arg4: memref<1x1x8x324xf32, #tpu.memory_space<vmem>>, %arg5: memref<1x324xf32, #tpu.memory_space<vmem>>, %arg6: memref<8x216xbf16, #tpu.memory_space<vmem>>, %arg7: memref<8x1xf32, #tpu.memory_space<vmem>>, %arg8: memref<1x8x1x1xf32, #tpu.memory_space<vmem>>, %arg9: memref<1x8x1x1xf32, #tpu.memory_space<vmem>>, %arg10: memref<1x1x8x324xf32, #tpu.memory_space<vmem>>, %arg11: memref<1x8x1x1xf32, #tpu.memory_space<vmem>>, %arg12: memref<1x8x1x1xf32, #tpu.memory_space<vmem>>) attributes {dimension_semantics = [#tpu.dimension_semantics<parallel>, #tpu.dimension_semantics<arbitrary>], iteration_bounds = array<i64: 2, 16>, scalar_prefetch = 0 : i64, scratch_operands = 0 : i64, tpu.core_type = #tpu.core_type<tc>, window_params = [{transform_indices = @transform_0, window_bounds = array<i64: 1, 1, 8, 324>}, {transform_indices = @transform_1, window_bounds = array<i64: 1, 1, 8, 324>}, {transform_indices = @transform_2, window_bounds = array<i64: 1, 1, 8, 324>}, {pipeline_mode = #tpu.pipeline_mode<synchronous>, transform_indices = @transform_3, window_bounds = array<i64: 1, 324>}, {pipeline_mode = #tpu.pipeline_mode<synchronous>, transform_indices = @transform_4, window_bounds = array<i64: 8, 216>}, {pipeline_mode = #tpu.pipeline_mode<synchronous>, transform_indices = @transform_5, window_bounds = array<i64: 8, 1>}, {transform_indices = @transform_6, window_bounds = array<i64: 1, 8, 1, 1>}, {transform_indices = @transform_7, window_bounds = array<i64: 1, 8, 1, 1>}, {transform_indices = @transform_8, window_bounds = array<i64: 1, 1, 8, 324>}, {transform_indices = @transform_9, window_bounds = array<i64: 1, 8, 1, 1>}, {transform_indices = @transform_10, window_bounds = array<i64: 1, 8, 1, 1>}]} {
    %c0 = arith.constant 0 : index
    %c0_0 = arith.constant 0 : index
    %c0_1 = arith.constant 0 : index
    %c0_2 = arith.constant 0 : index
    %0 = vector.load %arg2[%c0, %c0_0, %c0_1, %c0_2] : memref<1x1x8x324xf32, #tpu.memory_space<vmem>>, vector<1x1x8x324xf32>
    %1 = vector.shape_cast %0 : vector<1x1x8x324xf32> to vector<8x324xf32>
    %c0_3 = arith.constant 0 : index
    %c0_4 = arith.constant 0 : index
    %c0_5 = arith.constant 0 : index
    %c0_6 = arith.constant 0 : index
    %2 = vector.load %arg3[%c0_3, %c0_4, %c0_5, %c0_6] : memref<1x1x8x324xf32, #tpu.memory_space<vmem>>, vector<1x1x8x324xf32>
    %3 = vector.shape_cast %2 : vector<1x1x8x324xf32> to vector<8x324xf32>
    %c0_7 = arith.constant 0 : index
    %c0_8 = arith.constant 0 : index
    %c0_9 = arith.constant 0 : index
    %c0_10 = arith.constant 0 : index
    %4 = vector.load %arg4[%c0_7, %c0_8, %c0_9, %c0_10] : memref<1x1x8x324xf32, #tpu.memory_space<vmem>>, vector<1x1x8x324xf32>
    %5 = vector.shape_cast %4 : vector<1x1x8x324xf32> to vector<8x324xf32>
    %6 = vector.extract_strided_slice %1 {offsets = [0, 0], sizes = [8, 286], strides = [1, 1]} : vector<8x324xf32> to vector<8x286xf32>
    %7 = vector.extract_strided_slice %1 {offsets = [0, 1], sizes = [8, 286], strides = [1, 1]} : vector<8x324xf32> to vector<8x286xf32>
    %8 = vector.extract_strided_slice %1 {offsets = [0, 2], sizes = [8, 286], strides = [1, 1]} : vector<8x324xf32> to vector<8x286xf32>
    %9 = vector.extract_strided_slice %1 {offsets = [0, 18], sizes = [8, 286], strides = [1, 1]} : vector<8x324xf32> to vector<8x286xf32>
    %10 = vector.extract_strided_slice %1 {offsets = [0, 19], sizes = [8, 286], strides = [1, 1]} : vector<8x324xf32> to vector<8x286xf32>
    %11 = vector.extract_strided_slice %1 {offsets = [0, 20], sizes = [8, 286], strides = [1, 1]} : vector<8x324xf32> to vector<8x286xf32>
    %12 = vector.extract_strided_slice %1 {offsets = [0, 36], sizes = [8, 286], strides = [1, 1]} : vector<8x324xf32> to vector<8x286xf32>
    %13 = vector.extract_strided_slice %1 {offsets = [0, 37], sizes = [8, 286], strides = [1, 1]} : vector<8x324xf32> to vector<8x286xf32>
    %14 = vector.extract_strided_slice %1 {offsets = [0, 38], sizes = [8, 286], strides = [1, 1]} : vector<8x324xf32> to vector<8x286xf32>
    %15 = vector.extract_strided_slice %3 {offsets = [0, 0], sizes = [8, 286], strides = [1, 1]} : vector<8x324xf32> to vector<8x286xf32>
    %16 = vector.extract_strided_slice %3 {offsets = [0, 1], sizes = [8, 286], strides = [1, 1]} : vector<8x324xf32> to vector<8x286xf32>
    %17 = vector.extract_strided_slice %3 {offsets = [0, 2], sizes = [8, 286], strides = [1, 1]} : vector<8x324xf32> to vector<8x286xf32>
    %18 = vector.extract_strided_slice %3 {offsets = [0, 18], sizes = [8, 286], strides = [1, 1]} : vector<8x324xf32> to vector<8x286xf32>
    %19 = vector.extract_strided_slice %3 {offsets = [0, 19], sizes = [8, 286], strides = [1, 1]} : vector<8x324xf32> to vector<8x286xf32>
    %20 = vector.extract_strided_slice %3 {offsets = [0, 20], sizes = [8, 286], strides = [1, 1]} : vector<8x324xf32> to vector<8x286xf32>
    %21 = vector.extract_strided_slice %3 {offsets = [0, 36], sizes = [8, 286], strides = [1, 1]} : vector<8x324xf32> to vector<8x286xf32>
    %22 = vector.extract_strided_slice %3 {offsets = [0, 37], sizes = [8, 286], strides = [1, 1]} : vector<8x324xf32> to vector<8x286xf32>
    %23 = vector.extract_strided_slice %3 {offsets = [0, 38], sizes = [8, 286], strides = [1, 1]} : vector<8x324xf32> to vector<8x286xf32>
    %24 = vector.extract_strided_slice %5 {offsets = [0, 0], sizes = [8, 286], strides = [1, 1]} : vector<8x324xf32> to vector<8x286xf32>
    %25 = vector.extract_strided_slice %5 {offsets = [0, 1], sizes = [8, 286], strides = [1, 1]} : vector<8x324xf32> to vector<8x286xf32>
    %26 = vector.extract_strided_slice %5 {offsets = [0, 2], sizes = [8, 286], strides = [1, 1]} : vector<8x324xf32> to vector<8x286xf32>
    %27 = vector.extract_strided_slice %5 {offsets = [0, 18], sizes = [8, 286], strides = [1, 1]} : vector<8x324xf32> to vector<8x286xf32>
    %28 = vector.extract_strided_slice %5 {offsets = [0, 19], sizes = [8, 286], strides = [1, 1]} : vector<8x324xf32> to vector<8x286xf32>
    %29 = vector.extract_strided_slice %5 {offsets = [0, 20], sizes = [8, 286], strides = [1, 1]} : vector<8x324xf32> to vector<8x286xf32>
    %30 = vector.extract_strided_slice %5 {offsets = [0, 36], sizes = [8, 286], strides = [1, 1]} : vector<8x324xf32> to vector<8x286xf32>
    %31 = vector.extract_strided_slice %5 {offsets = [0, 37], sizes = [8, 286], strides = [1, 1]} : vector<8x324xf32> to vector<8x286xf32>
    %32 = vector.extract_strided_slice %5 {offsets = [0, 38], sizes = [8, 286], strides = [1, 1]} : vector<8x324xf32> to vector<8x286xf32>
    %33 = tpu.concatenate %6, %7, %8, %9, %10, %11, %12, %13, %14, %15, %16, %17, %18, %19, %20, %21 in 0 : vector<8x286xf32>, vector<8x286xf32>, vector<8x286xf32>, vector<8x286xf32>, vector<8x286xf32>, vector<8x286xf32>, vector<8x286xf32>, vector<8x286xf32>, vector<8x286xf32>, vector<8x286xf32>, vector<8x286xf32>, vector<8x286xf32>, vector<8x286xf32>, vector<8x286xf32>, vector<8x286xf32>, vector<8x286xf32> -> vector<128x286xf32>
    %34 = tpu.concatenate %22, %23, %24, %25, %26, %27, %28, %29, %30, %31, %32 in 0 : vector<8x286xf32>, vector<8x286xf32>, vector<8x286xf32>, vector<8x286xf32>, vector<8x286xf32>, vector<8x286xf32>, vector<8x286xf32>, vector<8x286xf32>, vector<8x286xf32>, vector<8x286xf32>, vector<8x286xf32> -> vector<88x286xf32>
    %35 = tpu.concatenate %33, %34 in 0 : vector<128x286xf32>, vector<88x286xf32> -> vector<216x286xf32>
    %36 = arith.truncf %35 : vector<216x286xf32> to vector<216x286xbf16>
    %c0_11 = arith.constant 0 : index
    %c0_12 = arith.constant 0 : index
    %37 = vector.load %arg6[%c0_11, %c0_12] : memref<8x216xbf16, #tpu.memory_space<vmem>>, vector<8x216xbf16>
    %cst = arith.constant dense<0.000000e+00> : vector<8x286xf32>
    %38 = tpu.matmul %37, %36, %cst {dimension_numbers = #tpu.dot_dimension_numbers<[1], [0], [0], [1], [0, 0, 1, 1], [], []>} : vector<8x216xbf16>, vector<216x286xbf16>, vector<8x286xf32> -> vector<8x286xf32>
    %c0_13 = arith.constant 0 : index
    %c0_14 = arith.constant 0 : index
    %39 = vector.load %arg7[%c0_13, %c0_14] : memref<8x1xf32, #tpu.memory_space<vmem>>, vector<8x1xf32>
    %40 = vector.broadcast %39 : vector<8x1xf32> to vector<8x286xf32>
    %41 = arith.addf %38, %40 : vector<8x286xf32>
    %c0_15 = arith.constant 0 : index
    %c19 = arith.constant 19 : index
    %42 = vector.load %arg5[%c0_15, %c19] : memref<1x324xf32, #tpu.memory_space<vmem>>, vector<1x286xf32>
    %43 = vector.broadcast %42 : vector<1x286xf32> to vector<8x286xf32>
    %44 = arith.mulf %41, %43 : vector<8x286xf32>
    %c0_i32 = arith.constant 0 : i32
    %45 = arith.cmpi eq, %arg1, %c0_i32 : i32
    %46 = arith.extui %45 : i1 to i32
    %c0_i32_16 = arith.constant 0 : i32
    %47 = arith.cmpi ne, %46, %c0_i32_16 : i32
    scf.if %47 {
      %cst_49 = arith.constant 0.000000e+00 : f32
      %79 = vector.broadcast %cst_49 : f32 to vector<1x8x1x1xf32>
      %c0_50 = arith.constant 0 : index
      %c0_51 = arith.constant 0 : index
      %c0_52 = arith.constant 0 : index
      %c0_53 = arith.constant 0 : index
      %80 = vector.load %arg11[%c0_50, %c0_51, %c0_52, %c0_53] : memref<1x8x1x1xf32, #tpu.memory_space<vmem>>, vector<1x8x1x1xf32>
      tpu.vector_store %arg11[%c0_50, %c0_51, %c0_52, %c0_53], %79 {strides = array<i32>} : memref<1x8x1x1xf32, #tpu.memory_space<vmem>>, vector<1x8x1x1xf32>,
      %cst_54 = arith.constant 0.000000e+00 : f32
      %81 = vector.broadcast %cst_54 : f32 to vector<1x8x1x1xf32>
      %c0_55 = arith.constant 0 : index
      %c0_56 = arith.constant 0 : index
      %c0_57 = arith.constant 0 : index
      %c0_58 = arith.constant 0 : index
      %82 = vector.load %arg12[%c0_55, %c0_56, %c0_57, %c0_58] : memref<1x8x1x1xf32, #tpu.memory_space<vmem>>, vector<1x8x1x1xf32>
      tpu.vector_store %arg12[%c0_55, %c0_56, %c0_57, %c0_58], %81 {strides = array<i32>} : memref<1x8x1x1xf32, #tpu.memory_space<vmem>>, vector<1x8x1x1xf32>,
    } else {
    }
    %c0_17 = arith.constant 0 : index
    %c0_18 = arith.constant 0 : index
    %c0_19 = arith.constant 0 : index
    %c0_20 = arith.constant 0 : index
    %48 = vector.load %arg11[%c0_17, %c0_18, %c0_19, %c0_20] : memref<1x8x1x1xf32, #tpu.memory_space<vmem>>, vector<1x8x1x1xf32>
    %49 = vector.shape_cast %48 : vector<1x8x1x1xf32> to vector<8x1xf32>
    %cst_21 = arith.constant dense<0.000000e+00> : vector<8xf32>
    %50 = vector.multi_reduction <add>, %44, %cst_21 [1] : vector<8x286xf32> to vector<8xf32>
    %51 = vector.shape_cast %50 : vector<8xf32> to vector<8x1xf32>
    %52 = arith.addf %49, %51 : vector<8x1xf32>
    %c0_22 = arith.constant 0 : index
    %c0_23 = arith.constant 0 : index
    %c0_24 = arith.constant 0 : index
    %c0_25 = arith.constant 0 : index
    %53 = vector.load %arg11[%c0_22, %c0_23, %c0_24, %c0_25] : memref<1x8x1x1xf32, #tpu.memory_space<vmem>>, vector<1x8x1x1xf32>
    %54 = vector.shape_cast %53 : vector<1x8x1x1xf32> to vector<8x1xf32>
    %55 = vector.shape_cast %52 : vector<8x1xf32> to vector<1x8x1x1xf32>
    tpu.vector_store %arg11[%c0_22, %c0_23, %c0_24, %c0_25], %55 {strides = array<i32>} : memref<1x8x1x1xf32, #tpu.memory_space<vmem>>, vector<1x8x1x1xf32>,
    %c0_26 = arith.constant 0 : index
    %c0_27 = arith.constant 0 : index
    %c0_28 = arith.constant 0 : index
    %c0_29 = arith.constant 0 : index
    %56 = vector.load %arg12[%c0_26, %c0_27, %c0_28, %c0_29] : memref<1x8x1x1xf32, #tpu.memory_space<vmem>>, vector<1x8x1x1xf32>
    %57 = vector.shape_cast %56 : vector<1x8x1x1xf32> to vector<8x1xf32>
    %58 = arith.mulf %44, %44 : vector<8x286xf32>
    %cst_30 = arith.constant dense<0.000000e+00> : vector<8xf32>
    %59 = vector.multi_reduction <add>, %58, %cst_30 [1] : vector<8x286xf32> to vector<8xf32>
    %60 = vector.shape_cast %59 : vector<8xf32> to vector<8x1xf32>
    %61 = arith.addf %57, %60 : vector<8x1xf32>
    %c0_31 = arith.constant 0 : index
    %c0_32 = arith.constant 0 : index
    %c0_33 = arith.constant 0 : index
    %c0_34 = arith.constant 0 : index
    %62 = vector.load %arg12[%c0_31, %c0_32, %c0_33, %c0_34] : memref<1x8x1x1xf32, #tpu.memory_space<vmem>>, vector<1x8x1x1xf32>
    %63 = vector.shape_cast %62 : vector<1x8x1x1xf32> to vector<8x1xf32>
    %64 = vector.shape_cast %61 : vector<8x1xf32> to vector<1x8x1x1xf32>
    tpu.vector_store %arg12[%c0_31, %c0_32, %c0_33, %c0_34], %64 {strides = array<i32>} : memref<1x8x1x1xf32, #tpu.memory_space<vmem>>, vector<1x8x1x1xf32>,
    %cst_35 = arith.constant 0.000000e+00 : f32
    %65 = vector.broadcast %cst_35 : f32 to vector<8x19xf32>
    %c0_36 = arith.constant 0 : index
    %c0_37 = arith.constant 0 : index
    %c0_38 = arith.constant 0 : index
    %c0_39 = arith.constant 0 : index
    %66 = vector.load %arg10[%c0_36, %c0_37, %c0_38, %c0_39] : memref<1x1x8x324xf32, #tpu.memory_space<vmem>>, vector<1x1x8x19xf32>
    %67 = vector.shape_cast %66 : vector<1x1x8x19xf32> to vector<8x19xf32>
    %68 = vector.shape_cast %65 : vector<8x19xf32> to vector<1x1x8x19xf32>
    tpu.vector_store %arg10[%c0_36, %c0_37, %c0_38, %c0_39], %68 {strides = array<i32>} : memref<1x1x8x324xf32, #tpu.memory_space<vmem>>, vector<1x1x8x19xf32>,
    %c0_40 = arith.constant 0 : index
    %c0_41 = arith.constant 0 : index
    %c0_42 = arith.constant 0 : index
    %c19_43 = arith.constant 19 : index
    %69 = vector.load %arg10[%c0_40, %c0_41, %c0_42, %c19_43] : memref<1x1x8x324xf32, #tpu.memory_space<vmem>>, vector<1x1x8x286xf32>
    %70 = vector.shape_cast %69 : vector<1x1x8x286xf32> to vector<8x286xf32>
    %71 = vector.shape_cast %41 : vector<8x286xf32> to vector<1x1x8x286xf32>
    tpu.vector_store %arg10[%c0_40, %c0_41, %c0_42, %c19_43], %71 {strides = array<i32>} : memref<1x1x8x324xf32, #tpu.memory_space<vmem>>, vector<1x1x8x286xf32>,
    %cst_44 = arith.constant 0.000000e+00 : f32
    %72 = vector.broadcast %cst_44 : f32 to vector<8x19xf32>
    %c0_45 = arith.constant 0 : index
    %c0_46 = arith.constant 0 : index
    %c0_47 = arith.constant 0 : index
    %c305 = arith.constant 305 : index
    %73 = vector.load %arg10[%c0_45, %c0_46, %c0_47, %c305] : memref<1x1x8x324xf32, #tpu.memory_space<vmem>>, vector<1x1x8x19xf32>
    %74 = vector.shape_cast %73 : vector<1x1x8x19xf32> to vector<8x19xf32>
    %75 = vector.shape_cast %72 : vector<8x19xf32> to vector<1x1x8x19xf32>
    tpu.vector_store %arg10[%c0_45, %c0_46, %c0_47, %c305], %75 {strides = array<i32>} : memref<1x1x8x324xf32, #tpu.memory_space<vmem>>, vector<1x1x8x19xf32>,
    %c15_i32 = arith.constant 15 : i32
    %76 = arith.cmpi eq, %arg1, %c15_i32 : i32
    %77 = arith.extui %76 : i1 to i32
    %c0_i32_48 = arith.constant 0 : i32
    %78 = arith.cmpi ne, %77, %c0_i32_48 : i32
    scf.if %78 {
      %c0_49 = arith.constant 0 : index
      %c0_50 = arith.constant 0 : index
      %c0_51 = arith.constant 0 : index
      %c0_52 = arith.constant 0 : index
      %79 = vector.load %arg11[%c0_49, %c0_50, %c0_51, %c0_52] : memref<1x8x1x1xf32, #tpu.memory_space<vmem>>, vector<1x8x1x1xf32>
      %80 = vector.shape_cast %79 : vector<1x8x1x1xf32> to vector<8x1xf32>
      %c0_53 = arith.constant 0 : index
      %c0_54 = arith.constant 0 : index
      %c0_55 = arith.constant 0 : index
      %c0_56 = arith.constant 0 : index
      %81 = vector.load %arg12[%c0_53, %c0_54, %c0_55, %c0_56] : memref<1x8x1x1xf32, #tpu.memory_space<vmem>>, vector<1x8x1x1xf32>
      %82 = vector.shape_cast %81 : vector<1x8x1x1xf32> to vector<8x1xf32>
      %cst_57 = arith.constant 2.44140625E-4 : f32
      %83 = vector.broadcast %cst_57 : f32 to vector<8x1xf32>
      %84 = arith.mulf %80, %83 : vector<8x1xf32>
      %cst_58 = arith.constant 2.44140625E-4 : f32
      %85 = vector.broadcast %cst_58 : f32 to vector<8x1xf32>
      %86 = arith.mulf %82, %85 : vector<8x1xf32>
      %87 = arith.mulf %84, %84 : vector<8x1xf32>
      %88 = arith.subf %86, %87 : vector<8x1xf32>
      %c0_59 = arith.constant 0 : index
      %c0_60 = arith.constant 0 : index
      %c0_61 = arith.constant 0 : index
      %c0_62 = arith.constant 0 : index
      %89 = vector.load %arg11[%c0_59, %c0_60, %c0_61, %c0_62] : memref<1x8x1x1xf32, #tpu.memory_space<vmem>>, vector<1x8x1x1xf32>
      %90 = vector.shape_cast %89 : vector<1x8x1x1xf32> to vector<8x1xf32>
      %91 = vector.shape_cast %84 : vector<8x1xf32> to vector<1x8x1x1xf32>
      tpu.vector_store %arg11[%c0_59, %c0_60, %c0_61, %c0_62], %91 {strides = array<i32>} : memref<1x8x1x1xf32, #tpu.memory_space<vmem>>, vector<1x8x1x1xf32>,
      %cst_63 = arith.constant 9.99999974E-6 : f32
      %92 = vector.broadcast %cst_63 : f32 to vector<8x1xf32>
      %93 = arith.addf %88, %92 : vector<8x1xf32>
      %94 = math.rsqrt %93 : vector<8x1xf32>
      %c0_64 = arith.constant 0 : index
      %c0_65 = arith.constant 0 : index
      %c0_66 = arith.constant 0 : index
      %c0_67 = arith.constant 0 : index
      %95 = vector.load %arg12[%c0_64, %c0_65, %c0_66, %c0_67] : memref<1x8x1x1xf32, #tpu.memory_space<vmem>>, vector<1x8x1x1xf32>
      %96 = vector.shape_cast %95 : vector<1x8x1x1xf32> to vector<8x1xf32>
      %97 = vector.shape_cast %94 : vector<8x1xf32> to vector<1x8x1x1xf32>
      tpu.vector_store %arg12[%c0_64, %c0_65, %c0_66, %c0_67], %97 {strides = array<i32>} : memref<1x8x1x1xf32, #tpu.memory_space<vmem>>, vector<1x8x1x1xf32>,
    } else {
    }
    return
  }
  func.func @transform_0(%arg0: i32, %arg1: i32) -> (i32, i32, i32, i32) {
    %c0_i32 = arith.constant 0 : i32
    %c0_i32_0 = arith.constant 0 : i32
    %c0_i32_1 = arith.constant 0 : i32
    return %arg0, %arg1, %c0_i32, %c0_i32_0 : i32, i32, i32, i32
  }
  func.func @transform_1(%arg0: i32, %arg1: i32) -> (i32, i32, i32, i32) {
    %c1_i32 = arith.constant 1 : i32
    %0 = arith.addi %arg1, %c1_i32 : i32
    %c0_i32 = arith.constant 0 : i32
    %c0_i32_0 = arith.constant 0 : i32
    %c0_i32_1 = arith.constant 0 : i32
    return %arg0, %0, %c0_i32, %c0_i32_0 : i32, i32, i32, i32
  }
  func.func @transform_2(%arg0: i32, %arg1: i32) -> (i32, i32, i32, i32) {
    %c2_i32 = arith.constant 2 : i32
    %0 = arith.addi %arg1, %c2_i32 : i32
    %c0_i32 = arith.constant 0 : i32
    %c0_i32_0 = arith.constant 0 : i32
    %c0_i32_1 = arith.constant 0 : i32
    return %arg0, %0, %c0_i32, %c0_i32_0 : i32, i32, i32, i32
  }
  func.func @transform_3(%arg0: i32, %arg1: i32) -> (i32, i32) {
    %c0_i32 = arith.constant 0 : i32
    %c0_i32_0 = arith.constant 0 : i32
    %c0_i32_1 = arith.constant 0 : i32
    return %c0_i32, %c0_i32_0 : i32, i32
  }
  func.func @transform_4(%arg0: i32, %arg1: i32) -> (i32, i32) {
    %c0_i32 = arith.constant 0 : i32
    %c0_i32_0 = arith.constant 0 : i32
    %c0_i32_1 = arith.constant 0 : i32
    return %c0_i32, %c0_i32_0 : i32, i32
  }
  func.func @transform_5(%arg0: i32, %arg1: i32) -> (i32, i32) {
    %c0_i32 = arith.constant 0 : i32
    %c0_i32_0 = arith.constant 0 : i32
    %c0_i32_1 = arith.constant 0 : i32
    return %c0_i32, %c0_i32_0 : i32, i32
  }
  func.func @transform_6(%arg0: i32, %arg1: i32) -> (i32, i32, i32, i32) {
    %c0_i32 = arith.constant 0 : i32
    %c0_i32_0 = arith.constant 0 : i32
    %c0_i32_1 = arith.constant 0 : i32
    %c0_i32_2 = arith.constant 0 : i32
    return %arg0, %c0_i32, %c0_i32_0, %c0_i32_1 : i32, i32, i32, i32
  }
  func.func @transform_7(%arg0: i32, %arg1: i32) -> (i32, i32, i32, i32) {
    %c0_i32 = arith.constant 0 : i32
    %c0_i32_0 = arith.constant 0 : i32
    %c0_i32_1 = arith.constant 0 : i32
    %c0_i32_2 = arith.constant 0 : i32
    return %arg0, %c0_i32, %c0_i32_0, %c0_i32_1 : i32, i32, i32, i32
  }
  func.func @transform_8(%arg0: i32, %arg1: i32) -> (i32, i32, i32, i32) {
    %c1_i32 = arith.constant 1 : i32
    %0 = arith.addi %arg1, %c1_i32 : i32
    %c0_i32 = arith.constant 0 : i32
    %c0_i32_0 = arith.constant 0 : i32
    %c0_i32_1 = arith.constant 0 : i32
    return %arg0, %0, %c0_i32, %c0_i32_0 : i32, i32, i32, i32
  }
  func.func @transform_9(%arg0: i32, %arg1: i32) -> (i32, i32, i32, i32) {
    %c0_i32 = arith.constant 0 : i32
    %c0_i32_0 = arith.constant 0 : i32
    %c0_i32_1 = arith.constant 0 : i32
    %c0_i32_2 = arith.constant 0 : i32
    return %arg0, %c0_i32, %c0_i32_0, %c0_i32_1 : i32, i32, i32, i32
  }
  func.func @transform_10(%arg0: i32, %arg1: i32) -> (i32, i32, i32, i32) {
    %c0_i32 = arith.constant 0 : i32
    %c0_i32_0 = arith.constant 0 : i32
    %c0_i32_1 = arith.constant 0 : i32
    %c0_i32_2 = arith.constant 0 : i32
    return %arg0, %c0_i32, %c0_i32_0, %c0_i32_1 : i32, i32, i32, i32
  }
}

module attributes {stable_mosaic.version = 11 : i64} {
  func.func @_conv_in_kernel(%arg0: i32, %arg1: i32, %arg2: memref<1x1x8x324xf32, #tpu.memory_space<vmem>>, %arg3: memref<1x1x8x324xf32, #tpu.memory_space<vmem>>, %arg4: memref<1x1x8x324xf32, #tpu.memory_space<vmem>>, %arg5: memref<1x324xf32, #tpu.memory_space<vmem>>, %arg6: memref<8x216xbf16, #tpu.memory_space<vmem>>, %arg7: memref<8x1xf32, #tpu.memory_space<vmem>>, %arg8: memref<1x8x1x1xf32, #tpu.memory_space<vmem>>, %arg9: memref<1x8x1x1xf32, #tpu.memory_space<vmem>>, %arg10: memref<1x1x8x324xf32, #tpu.memory_space<vmem>>, %arg11: memref<1x8x1x1xf32, #tpu.memory_space<vmem>>, %arg12: memref<1x8x1x1xf32, #tpu.memory_space<vmem>>) attributes {dimension_semantics = [#tpu.dimension_semantics<parallel>, #tpu.dimension_semantics<arbitrary>], iteration_bounds = array<i64: 2, 16>, scalar_prefetch = 0 : i64, scratch_operands = 0 : i64, tpu.core_type = #tpu.core_type<tc>, window_params = [{transform_indices = @transform_0, window_bounds = array<i64: 1, 1, 8, 324>}, {transform_indices = @transform_1, window_bounds = array<i64: 1, 1, 8, 324>}, {transform_indices = @transform_2, window_bounds = array<i64: 1, 1, 8, 324>}, {pipeline_mode = #tpu.pipeline_mode<synchronous>, transform_indices = @transform_3, window_bounds = array<i64: 1, 324>}, {pipeline_mode = #tpu.pipeline_mode<synchronous>, transform_indices = @transform_4, window_bounds = array<i64: 8, 216>}, {pipeline_mode = #tpu.pipeline_mode<synchronous>, transform_indices = @transform_5, window_bounds = array<i64: 8, 1>}, {transform_indices = @transform_6, window_bounds = array<i64: 1, 8, 1, 1>}, {transform_indices = @transform_7, window_bounds = array<i64: 1, 8, 1, 1>}, {transform_indices = @transform_8, window_bounds = array<i64: 1, 1, 8, 324>}, {transform_indices = @transform_9, window_bounds = array<i64: 1, 8, 1, 1>}, {transform_indices = @transform_10, window_bounds = array<i64: 1, 8, 1, 1>}]} {
    %c0 = arith.constant 0 : index
    %c0_0 = arith.constant 0 : index
    %c0_1 = arith.constant 0 : index
    %c0_2 = arith.constant 0 : index
    %0 = vector.load %arg2[%c0, %c0_0, %c0_1, %c0_2] : memref<1x1x8x324xf32, #tpu.memory_space<vmem>>, vector<1x1x8x324xf32>
    %1 = vector.shape_cast %0 : vector<1x1x8x324xf32> to vector<8x324xf32>
    %c0_3 = arith.constant 0 : index
    %c0_4 = arith.constant 0 : index
    %c0_5 = arith.constant 0 : index
    %c0_6 = arith.constant 0 : index
    %2 = vector.load %arg3[%c0_3, %c0_4, %c0_5, %c0_6] : memref<1x1x8x324xf32, #tpu.memory_space<vmem>>, vector<1x1x8x324xf32>
    %3 = vector.shape_cast %2 : vector<1x1x8x324xf32> to vector<8x324xf32>
    %c0_7 = arith.constant 0 : index
    %c0_8 = arith.constant 0 : index
    %c0_9 = arith.constant 0 : index
    %c0_10 = arith.constant 0 : index
    %4 = vector.load %arg4[%c0_7, %c0_8, %c0_9, %c0_10] : memref<1x1x8x324xf32, #tpu.memory_space<vmem>>, vector<1x1x8x324xf32>
    %5 = vector.shape_cast %4 : vector<1x1x8x324xf32> to vector<8x324xf32>
    %c0_11 = arith.constant 0 : index
    %c0_12 = arith.constant 0 : index
    %c0_13 = arith.constant 0 : index
    %c0_14 = arith.constant 0 : index
    %6 = vector.load %arg8[%c0_11, %c0_12, %c0_13, %c0_14] : memref<1x8x1x1xf32, #tpu.memory_space<vmem>>, vector<1x8x1x1xf32>
    %7 = vector.shape_cast %6 : vector<1x8x1x1xf32> to vector<8x1xf32>
    %c0_15 = arith.constant 0 : index
    %c0_16 = arith.constant 0 : index
    %c0_17 = arith.constant 0 : index
    %c0_18 = arith.constant 0 : index
    %8 = vector.load %arg9[%c0_15, %c0_16, %c0_17, %c0_18] : memref<1x8x1x1xf32, #tpu.memory_space<vmem>>, vector<1x8x1x1xf32>
    %9 = vector.shape_cast %8 : vector<1x8x1x1xf32> to vector<8x1xf32>
    %c0_19 = arith.constant 0 : index
    %c0_20 = arith.constant 0 : index
    %10 = vector.load %arg5[%c0_19, %c0_20] : memref<1x324xf32, #tpu.memory_space<vmem>>, vector<1x324xf32>
    %cst = arith.constant 5.000000e-01 : f32
    %11 = vector.broadcast %cst : f32 to vector<1x324xf32>
    %12 = arith.cmpf ogt, %10, %11 : vector<1x324xf32>
    %c0_i32 = arith.constant 0 : i32
    %13 = arith.addi %arg1, %c0_i32 : i32
    %c1_i32 = arith.constant 1 : i32
    %14 = arith.cmpi sge, %13, %c1_i32 : i32
    %c0_i32_21 = arith.constant 0 : i32
    %15 = arith.addi %arg1, %c0_i32_21 : i32
    %c16_i32 = arith.constant 16 : i32
    %16 = arith.cmpi sle, %15, %c16_i32 : i32
    %17 = arith.andi %14, %16 : i1
    %18 = vector.broadcast %17 : i1 to vector<1x324xi1>
    %19 = arith.andi %18, %12 : vector<1x324xi1>
    %20 = vector.broadcast %7 : vector<8x1xf32> to vector<8x324xf32>
    %21 = arith.subf %1, %20 : vector<8x324xf32>
    %22 = vector.broadcast %9 : vector<8x1xf32> to vector<8x324xf32>
    %23 = arith.mulf %21, %22 : vector<8x324xf32>
    %cst_22 = arith.constant 0.000000e+00 : f32
    %24 = vector.broadcast %cst_22 : f32 to vector<8x324xf32>
    %25 = arith.maximumf %23, %24 : vector<8x324xf32>
    %cst_23 = arith.constant 0.000000e+00 : f32
    %26 = vector.shape_cast %19 : vector<1x324xi1> to vector<1x324xi1>
    %27 = vector.broadcast %26 : vector<1x324xi1> to vector<8x324xi1>
    %28 = vector.broadcast %cst_23 : f32 to vector<8x324xf32>
    %29 = arith.select %27, %25, %28 : vector<8x324xi1>, vector<8x324xf32>
    %c1_i32_24 = arith.constant 1 : i32
    %30 = arith.addi %arg1, %c1_i32_24 : i32
    %c1_i32_25 = arith.constant 1 : i32
    %31 = arith.cmpi sge, %30, %c1_i32_25 : i32
    %c1_i32_26 = arith.constant 1 : i32
    %32 = arith.addi %arg1, %c1_i32_26 : i32
    %c16_i32_27 = arith.constant 16 : i32
    %33 = arith.cmpi sle, %32, %c16_i32_27 : i32
    %34 = arith.andi %31, %33 : i1
    %35 = vector.broadcast %34 : i1 to vector<1x324xi1>
    %36 = arith.andi %35, %12 : vector<1x324xi1>
    %37 = vector.broadcast %7 : vector<8x1xf32> to vector<8x324xf32>
    %38 = arith.subf %3, %37 : vector<8x324xf32>
    %39 = vector.broadcast %9 : vector<8x1xf32> to vector<8x324xf32>
    %40 = arith.mulf %38, %39 : vector<8x324xf32>
    %cst_28 = arith.constant 0.000000e+00 : f32
    %41 = vector.broadcast %cst_28 : f32 to vector<8x324xf32>
    %42 = arith.maximumf %40, %41 : vector<8x324xf32>
    %cst_29 = arith.constant 0.000000e+00 : f32
    %43 = vector.shape_cast %36 : vector<1x324xi1> to vector<1x324xi1>
    %44 = vector.broadcast %43 : vector<1x324xi1> to vector<8x324xi1>
    %45 = vector.broadcast %cst_29 : f32 to vector<8x324xf32>
    %46 = arith.select %44, %42, %45 : vector<8x324xi1>, vector<8x324xf32>
    %c2_i32 = arith.constant 2 : i32
    %47 = arith.addi %arg1, %c2_i32 : i32
    %c1_i32_30 = arith.constant 1 : i32
    %48 = arith.cmpi sge, %47, %c1_i32_30 : i32
    %c2_i32_31 = arith.constant 2 : i32
    %49 = arith.addi %arg1, %c2_i32_31 : i32
    %c16_i32_32 = arith.constant 16 : i32
    %50 = arith.cmpi sle, %49, %c16_i32_32 : i32
    %51 = arith.andi %48, %50 : i1
    %52 = vector.broadcast %51 : i1 to vector<1x324xi1>
    %53 = arith.andi %52, %12 : vector<1x324xi1>
    %54 = vector.broadcast %7 : vector<8x1xf32> to vector<8x324xf32>
    %55 = arith.subf %5, %54 : vector<8x324xf32>
    %56 = vector.broadcast %9 : vector<8x1xf32> to vector<8x324xf32>
    %57 = arith.mulf %55, %56 : vector<8x324xf32>
    %cst_33 = arith.constant 0.000000e+00 : f32
    %58 = vector.broadcast %cst_33 : f32 to vector<8x324xf32>
    %59 = arith.maximumf %57, %58 : vector<8x324xf32>
    %cst_34 = arith.constant 0.000000e+00 : f32
    %60 = vector.shape_cast %53 : vector<1x324xi1> to vector<1x324xi1>
    %61 = vector.broadcast %60 : vector<1x324xi1> to vector<8x324xi1>
    %62 = vector.broadcast %cst_34 : f32 to vector<8x324xf32>
    %63 = arith.select %61, %59, %62 : vector<8x324xi1>, vector<8x324xf32>
    %64 = vector.extract_strided_slice %29 {offsets = [0, 0], sizes = [8, 286], strides = [1, 1]} : vector<8x324xf32> to vector<8x286xf32>
    %65 = vector.extract_strided_slice %29 {offsets = [0, 1], sizes = [8, 286], strides = [1, 1]} : vector<8x324xf32> to vector<8x286xf32>
    %66 = vector.extract_strided_slice %29 {offsets = [0, 2], sizes = [8, 286], strides = [1, 1]} : vector<8x324xf32> to vector<8x286xf32>
    %67 = vector.extract_strided_slice %29 {offsets = [0, 18], sizes = [8, 286], strides = [1, 1]} : vector<8x324xf32> to vector<8x286xf32>
    %68 = vector.extract_strided_slice %29 {offsets = [0, 19], sizes = [8, 286], strides = [1, 1]} : vector<8x324xf32> to vector<8x286xf32>
    %69 = vector.extract_strided_slice %29 {offsets = [0, 20], sizes = [8, 286], strides = [1, 1]} : vector<8x324xf32> to vector<8x286xf32>
    %70 = vector.extract_strided_slice %29 {offsets = [0, 36], sizes = [8, 286], strides = [1, 1]} : vector<8x324xf32> to vector<8x286xf32>
    %71 = vector.extract_strided_slice %29 {offsets = [0, 37], sizes = [8, 286], strides = [1, 1]} : vector<8x324xf32> to vector<8x286xf32>
    %72 = vector.extract_strided_slice %29 {offsets = [0, 38], sizes = [8, 286], strides = [1, 1]} : vector<8x324xf32> to vector<8x286xf32>
    %73 = vector.extract_strided_slice %46 {offsets = [0, 0], sizes = [8, 286], strides = [1, 1]} : vector<8x324xf32> to vector<8x286xf32>
    %74 = vector.extract_strided_slice %46 {offsets = [0, 1], sizes = [8, 286], strides = [1, 1]} : vector<8x324xf32> to vector<8x286xf32>
    %75 = vector.extract_strided_slice %46 {offsets = [0, 2], sizes = [8, 286], strides = [1, 1]} : vector<8x324xf32> to vector<8x286xf32>
    %76 = vector.extract_strided_slice %46 {offsets = [0, 18], sizes = [8, 286], strides = [1, 1]} : vector<8x324xf32> to vector<8x286xf32>
    %77 = vector.extract_strided_slice %46 {offsets = [0, 19], sizes = [8, 286], strides = [1, 1]} : vector<8x324xf32> to vector<8x286xf32>
    %78 = vector.extract_strided_slice %46 {offsets = [0, 20], sizes = [8, 286], strides = [1, 1]} : vector<8x324xf32> to vector<8x286xf32>
    %79 = vector.extract_strided_slice %46 {offsets = [0, 36], sizes = [8, 286], strides = [1, 1]} : vector<8x324xf32> to vector<8x286xf32>
    %80 = vector.extract_strided_slice %46 {offsets = [0, 37], sizes = [8, 286], strides = [1, 1]} : vector<8x324xf32> to vector<8x286xf32>
    %81 = vector.extract_strided_slice %46 {offsets = [0, 38], sizes = [8, 286], strides = [1, 1]} : vector<8x324xf32> to vector<8x286xf32>
    %82 = vector.extract_strided_slice %63 {offsets = [0, 0], sizes = [8, 286], strides = [1, 1]} : vector<8x324xf32> to vector<8x286xf32>
    %83 = vector.extract_strided_slice %63 {offsets = [0, 1], sizes = [8, 286], strides = [1, 1]} : vector<8x324xf32> to vector<8x286xf32>
    %84 = vector.extract_strided_slice %63 {offsets = [0, 2], sizes = [8, 286], strides = [1, 1]} : vector<8x324xf32> to vector<8x286xf32>
    %85 = vector.extract_strided_slice %63 {offsets = [0, 18], sizes = [8, 286], strides = [1, 1]} : vector<8x324xf32> to vector<8x286xf32>
    %86 = vector.extract_strided_slice %63 {offsets = [0, 19], sizes = [8, 286], strides = [1, 1]} : vector<8x324xf32> to vector<8x286xf32>
    %87 = vector.extract_strided_slice %63 {offsets = [0, 20], sizes = [8, 286], strides = [1, 1]} : vector<8x324xf32> to vector<8x286xf32>
    %88 = vector.extract_strided_slice %63 {offsets = [0, 36], sizes = [8, 286], strides = [1, 1]} : vector<8x324xf32> to vector<8x286xf32>
    %89 = vector.extract_strided_slice %63 {offsets = [0, 37], sizes = [8, 286], strides = [1, 1]} : vector<8x324xf32> to vector<8x286xf32>
    %90 = vector.extract_strided_slice %63 {offsets = [0, 38], sizes = [8, 286], strides = [1, 1]} : vector<8x324xf32> to vector<8x286xf32>
    %91 = tpu.concatenate %64, %65, %66, %67, %68, %69, %70, %71, %72, %73, %74, %75, %76, %77, %78, %79 in 0 : vector<8x286xf32>, vector<8x286xf32>, vector<8x286xf32>, vector<8x286xf32>, vector<8x286xf32>, vector<8x286xf32>, vector<8x286xf32>, vector<8x286xf32>, vector<8x286xf32>, vector<8x286xf32>, vector<8x286xf32>, vector<8x286xf32>, vector<8x286xf32>, vector<8x286xf32>, vector<8x286xf32>, vector<8x286xf32> -> vector<128x286xf32>
    %92 = tpu.concatenate %80, %81, %82, %83, %84, %85, %86, %87, %88, %89, %90 in 0 : vector<8x286xf32>, vector<8x286xf32>, vector<8x286xf32>, vector<8x286xf32>, vector<8x286xf32>, vector<8x286xf32>, vector<8x286xf32>, vector<8x286xf32>, vector<8x286xf32>, vector<8x286xf32>, vector<8x286xf32> -> vector<88x286xf32>
    %93 = tpu.concatenate %91, %92 in 0 : vector<128x286xf32>, vector<88x286xf32> -> vector<216x286xf32>
    %94 = arith.truncf %93 : vector<216x286xf32> to vector<216x286xbf16>
    %c0_35 = arith.constant 0 : index
    %c0_36 = arith.constant 0 : index
    %95 = vector.load %arg6[%c0_35, %c0_36] : memref<8x216xbf16, #tpu.memory_space<vmem>>, vector<8x216xbf16>
    %cst_37 = arith.constant dense<0.000000e+00> : vector<8x286xf32>
    %96 = tpu.matmul %95, %94, %cst_37 {dimension_numbers = #tpu.dot_dimension_numbers<[1], [0], [0], [1], [0, 0, 1, 1], [], []>} : vector<8x216xbf16>, vector<216x286xbf16>, vector<8x286xf32> -> vector<8x286xf32>
    %c0_38 = arith.constant 0 : index
    %c0_39 = arith.constant 0 : index
    %97 = vector.load %arg7[%c0_38, %c0_39] : memref<8x1xf32, #tpu.memory_space<vmem>>, vector<8x1xf32>
    %98 = vector.broadcast %97 : vector<8x1xf32> to vector<8x286xf32>
    %99 = arith.addf %96, %98 : vector<8x286xf32>
    %c0_40 = arith.constant 0 : index
    %c19 = arith.constant 19 : index
    %100 = vector.load %arg5[%c0_40, %c19] : memref<1x324xf32, #tpu.memory_space<vmem>>, vector<1x286xf32>
    %101 = vector.broadcast %100 : vector<1x286xf32> to vector<8x286xf32>
    %102 = arith.mulf %99, %101 : vector<8x286xf32>
    %c0_i32_41 = arith.constant 0 : i32
    %103 = arith.cmpi eq, %arg1, %c0_i32_41 : i32
    %104 = arith.extui %103 : i1 to i32
    %c0_i32_42 = arith.constant 0 : i32
    %105 = arith.cmpi ne, %104, %c0_i32_42 : i32
    scf.if %105 {
      %cst_75 = arith.constant 0.000000e+00 : f32
      %137 = vector.broadcast %cst_75 : f32 to vector<1x8x1x1xf32>
      %c0_76 = arith.constant 0 : index
      %c0_77 = arith.constant 0 : index
      %c0_78 = arith.constant 0 : index
      %c0_79 = arith.constant 0 : index
      %138 = vector.load %arg11[%c0_76, %c0_77, %c0_78, %c0_79] : memref<1x8x1x1xf32, #tpu.memory_space<vmem>>, vector<1x8x1x1xf32>
      tpu.vector_store %arg11[%c0_76, %c0_77, %c0_78, %c0_79], %137 {strides = array<i32>} : memref<1x8x1x1xf32, #tpu.memory_space<vmem>>, vector<1x8x1x1xf32>,
      %cst_80 = arith.constant 0.000000e+00 : f32
      %139 = vector.broadcast %cst_80 : f32 to vector<1x8x1x1xf32>
      %c0_81 = arith.constant 0 : index
      %c0_82 = arith.constant 0 : index
      %c0_83 = arith.constant 0 : index
      %c0_84 = arith.constant 0 : index
      %140 = vector.load %arg12[%c0_81, %c0_82, %c0_83, %c0_84] : memref<1x8x1x1xf32, #tpu.memory_space<vmem>>, vector<1x8x1x1xf32>
      tpu.vector_store %arg12[%c0_81, %c0_82, %c0_83, %c0_84], %139 {strides = array<i32>} : memref<1x8x1x1xf32, #tpu.memory_space<vmem>>, vector<1x8x1x1xf32>,
    } else {
    }
    %c0_43 = arith.constant 0 : index
    %c0_44 = arith.constant 0 : index
    %c0_45 = arith.constant 0 : index
    %c0_46 = arith.constant 0 : index
    %106 = vector.load %arg11[%c0_43, %c0_44, %c0_45, %c0_46] : memref<1x8x1x1xf32, #tpu.memory_space<vmem>>, vector<1x8x1x1xf32>
    %107 = vector.shape_cast %106 : vector<1x8x1x1xf32> to vector<8x1xf32>
    %cst_47 = arith.constant dense<0.000000e+00> : vector<8xf32>
    %108 = vector.multi_reduction <add>, %102, %cst_47 [1] : vector<8x286xf32> to vector<8xf32>
    %109 = vector.shape_cast %108 : vector<8xf32> to vector<8x1xf32>
    %110 = arith.addf %107, %109 : vector<8x1xf32>
    %c0_48 = arith.constant 0 : index
    %c0_49 = arith.constant 0 : index
    %c0_50 = arith.constant 0 : index
    %c0_51 = arith.constant 0 : index
    %111 = vector.load %arg11[%c0_48, %c0_49, %c0_50, %c0_51] : memref<1x8x1x1xf32, #tpu.memory_space<vmem>>, vector<1x8x1x1xf32>
    %112 = vector.shape_cast %111 : vector<1x8x1x1xf32> to vector<8x1xf32>
    %113 = vector.shape_cast %110 : vector<8x1xf32> to vector<1x8x1x1xf32>
    tpu.vector_store %arg11[%c0_48, %c0_49, %c0_50, %c0_51], %113 {strides = array<i32>} : memref<1x8x1x1xf32, #tpu.memory_space<vmem>>, vector<1x8x1x1xf32>,
    %c0_52 = arith.constant 0 : index
    %c0_53 = arith.constant 0 : index
    %c0_54 = arith.constant 0 : index
    %c0_55 = arith.constant 0 : index
    %114 = vector.load %arg12[%c0_52, %c0_53, %c0_54, %c0_55] : memref<1x8x1x1xf32, #tpu.memory_space<vmem>>, vector<1x8x1x1xf32>
    %115 = vector.shape_cast %114 : vector<1x8x1x1xf32> to vector<8x1xf32>
    %116 = arith.mulf %102, %102 : vector<8x286xf32>
    %cst_56 = arith.constant dense<0.000000e+00> : vector<8xf32>
    %117 = vector.multi_reduction <add>, %116, %cst_56 [1] : vector<8x286xf32> to vector<8xf32>
    %118 = vector.shape_cast %117 : vector<8xf32> to vector<8x1xf32>
    %119 = arith.addf %115, %118 : vector<8x1xf32>
    %c0_57 = arith.constant 0 : index
    %c0_58 = arith.constant 0 : index
    %c0_59 = arith.constant 0 : index
    %c0_60 = arith.constant 0 : index
    %120 = vector.load %arg12[%c0_57, %c0_58, %c0_59, %c0_60] : memref<1x8x1x1xf32, #tpu.memory_space<vmem>>, vector<1x8x1x1xf32>
    %121 = vector.shape_cast %120 : vector<1x8x1x1xf32> to vector<8x1xf32>
    %122 = vector.shape_cast %119 : vector<8x1xf32> to vector<1x8x1x1xf32>
    tpu.vector_store %arg12[%c0_57, %c0_58, %c0_59, %c0_60], %122 {strides = array<i32>} : memref<1x8x1x1xf32, #tpu.memory_space<vmem>>, vector<1x8x1x1xf32>,
    %cst_61 = arith.constant 0.000000e+00 : f32
    %123 = vector.broadcast %cst_61 : f32 to vector<8x19xf32>
    %c0_62 = arith.constant 0 : index
    %c0_63 = arith.constant 0 : index
    %c0_64 = arith.constant 0 : index
    %c0_65 = arith.constant 0 : index
    %124 = vector.load %arg10[%c0_62, %c0_63, %c0_64, %c0_65] : memref<1x1x8x324xf32, #tpu.memory_space<vmem>>, vector<1x1x8x19xf32>
    %125 = vector.shape_cast %124 : vector<1x1x8x19xf32> to vector<8x19xf32>
    %126 = vector.shape_cast %123 : vector<8x19xf32> to vector<1x1x8x19xf32>
    tpu.vector_store %arg10[%c0_62, %c0_63, %c0_64, %c0_65], %126 {strides = array<i32>} : memref<1x1x8x324xf32, #tpu.memory_space<vmem>>, vector<1x1x8x19xf32>,
    %c0_66 = arith.constant 0 : index
    %c0_67 = arith.constant 0 : index
    %c0_68 = arith.constant 0 : index
    %c19_69 = arith.constant 19 : index
    %127 = vector.load %arg10[%c0_66, %c0_67, %c0_68, %c19_69] : memref<1x1x8x324xf32, #tpu.memory_space<vmem>>, vector<1x1x8x286xf32>
    %128 = vector.shape_cast %127 : vector<1x1x8x286xf32> to vector<8x286xf32>
    %129 = vector.shape_cast %99 : vector<8x286xf32> to vector<1x1x8x286xf32>
    tpu.vector_store %arg10[%c0_66, %c0_67, %c0_68, %c19_69], %129 {strides = array<i32>} : memref<1x1x8x324xf32, #tpu.memory_space<vmem>>, vector<1x1x8x286xf32>,
    %cst_70 = arith.constant 0.000000e+00 : f32
    %130 = vector.broadcast %cst_70 : f32 to vector<8x19xf32>
    %c0_71 = arith.constant 0 : index
    %c0_72 = arith.constant 0 : index
    %c0_73 = arith.constant 0 : index
    %c305 = arith.constant 305 : index
    %131 = vector.load %arg10[%c0_71, %c0_72, %c0_73, %c305] : memref<1x1x8x324xf32, #tpu.memory_space<vmem>>, vector<1x1x8x19xf32>
    %132 = vector.shape_cast %131 : vector<1x1x8x19xf32> to vector<8x19xf32>
    %133 = vector.shape_cast %130 : vector<8x19xf32> to vector<1x1x8x19xf32>
    tpu.vector_store %arg10[%c0_71, %c0_72, %c0_73, %c305], %133 {strides = array<i32>} : memref<1x1x8x324xf32, #tpu.memory_space<vmem>>, vector<1x1x8x19xf32>,
    %c15_i32 = arith.constant 15 : i32
    %134 = arith.cmpi eq, %arg1, %c15_i32 : i32
    %135 = arith.extui %134 : i1 to i32
    %c0_i32_74 = arith.constant 0 : i32
    %136 = arith.cmpi ne, %135, %c0_i32_74 : i32
    scf.if %136 {
      %c0_75 = arith.constant 0 : index
      %c0_76 = arith.constant 0 : index
      %c0_77 = arith.constant 0 : index
      %c0_78 = arith.constant 0 : index
      %137 = vector.load %arg11[%c0_75, %c0_76, %c0_77, %c0_78] : memref<1x8x1x1xf32, #tpu.memory_space<vmem>>, vector<1x8x1x1xf32>
      %138 = vector.shape_cast %137 : vector<1x8x1x1xf32> to vector<8x1xf32>
      %c0_79 = arith.constant 0 : index
      %c0_80 = arith.constant 0 : index
      %c0_81 = arith.constant 0 : index
      %c0_82 = arith.constant 0 : index
      %139 = vector.load %arg12[%c0_79, %c0_80, %c0_81, %c0_82] : memref<1x8x1x1xf32, #tpu.memory_space<vmem>>, vector<1x8x1x1xf32>
      %140 = vector.shape_cast %139 : vector<1x8x1x1xf32> to vector<8x1xf32>
      %cst_83 = arith.constant 2.44140625E-4 : f32
      %141 = vector.broadcast %cst_83 : f32 to vector<8x1xf32>
      %142 = arith.mulf %138, %141 : vector<8x1xf32>
      %cst_84 = arith.constant 2.44140625E-4 : f32
      %143 = vector.broadcast %cst_84 : f32 to vector<8x1xf32>
      %144 = arith.mulf %140, %143 : vector<8x1xf32>
      %145 = arith.mulf %142, %142 : vector<8x1xf32>
      %146 = arith.subf %144, %145 : vector<8x1xf32>
      %c0_85 = arith.constant 0 : index
      %c0_86 = arith.constant 0 : index
      %c0_87 = arith.constant 0 : index
      %c0_88 = arith.constant 0 : index
      %147 = vector.load %arg11[%c0_85, %c0_86, %c0_87, %c0_88] : memref<1x8x1x1xf32, #tpu.memory_space<vmem>>, vector<1x8x1x1xf32>
      %148 = vector.shape_cast %147 : vector<1x8x1x1xf32> to vector<8x1xf32>
      %149 = vector.shape_cast %142 : vector<8x1xf32> to vector<1x8x1x1xf32>
      tpu.vector_store %arg11[%c0_85, %c0_86, %c0_87, %c0_88], %149 {strides = array<i32>} : memref<1x8x1x1xf32, #tpu.memory_space<vmem>>, vector<1x8x1x1xf32>,
      %cst_89 = arith.constant 9.99999974E-6 : f32
      %150 = vector.broadcast %cst_89 : f32 to vector<8x1xf32>
      %151 = arith.addf %146, %150 : vector<8x1xf32>
      %152 = math.rsqrt %151 : vector<8x1xf32>
      %c0_90 = arith.constant 0 : index
      %c0_91 = arith.constant 0 : index
      %c0_92 = arith.constant 0 : index
      %c0_93 = arith.constant 0 : index
      %153 = vector.load %arg12[%c0_90, %c0_91, %c0_92, %c0_93] : memref<1x8x1x1xf32, #tpu.memory_space<vmem>>, vector<1x8x1x1xf32>
      %154 = vector.shape_cast %153 : vector<1x8x1x1xf32> to vector<8x1xf32>
      %155 = vector.shape_cast %152 : vector<8x1xf32> to vector<1x8x1x1xf32>
      tpu.vector_store %arg12[%c0_90, %c0_91, %c0_92, %c0_93], %155 {strides = array<i32>} : memref<1x8x1x1xf32, #tpu.memory_space<vmem>>, vector<1x8x1x1xf32>,
    } else {
    }
    return
  }
  func.func @transform_0(%arg0: i32, %arg1: i32) -> (i32, i32, i32, i32) {
    %c0_i32 = arith.constant 0 : i32
    %c0_i32_0 = arith.constant 0 : i32
    %c0_i32_1 = arith.constant 0 : i32
    return %arg0, %arg1, %c0_i32, %c0_i32_0 : i32, i32, i32, i32
  }
  func.func @transform_1(%arg0: i32, %arg1: i32) -> (i32, i32, i32, i32) {
    %c1_i32 = arith.constant 1 : i32
    %0 = arith.addi %arg1, %c1_i32 : i32
    %c0_i32 = arith.constant 0 : i32
    %c0_i32_0 = arith.constant 0 : i32
    %c0_i32_1 = arith.constant 0 : i32
    return %arg0, %0, %c0_i32, %c0_i32_0 : i32, i32, i32, i32
  }
  func.func @transform_2(%arg0: i32, %arg1: i32) -> (i32, i32, i32, i32) {
    %c2_i32 = arith.constant 2 : i32
    %0 = arith.addi %arg1, %c2_i32 : i32
    %c0_i32 = arith.constant 0 : i32
    %c0_i32_0 = arith.constant 0 : i32
    %c0_i32_1 = arith.constant 0 : i32
    return %arg0, %0, %c0_i32, %c0_i32_0 : i32, i32, i32, i32
  }
  func.func @transform_3(%arg0: i32, %arg1: i32) -> (i32, i32) {
    %c0_i32 = arith.constant 0 : i32
    %c0_i32_0 = arith.constant 0 : i32
    %c0_i32_1 = arith.constant 0 : i32
    return %c0_i32, %c0_i32_0 : i32, i32
  }
  func.func @transform_4(%arg0: i32, %arg1: i32) -> (i32, i32) {
    %c0_i32 = arith.constant 0 : i32
    %c0_i32_0 = arith.constant 0 : i32
    %c0_i32_1 = arith.constant 0 : i32
    return %c0_i32, %c0_i32_0 : i32, i32
  }
  func.func @transform_5(%arg0: i32, %arg1: i32) -> (i32, i32) {
    %c0_i32 = arith.constant 0 : i32
    %c0_i32_0 = arith.constant 0 : i32
    %c0_i32_1 = arith.constant 0 : i32
    return %c0_i32, %c0_i32_0 : i32, i32
  }
  func.func @transform_6(%arg0: i32, %arg1: i32) -> (i32, i32, i32, i32) {
    %c0_i32 = arith.constant 0 : i32
    %c0_i32_0 = arith.constant 0 : i32
    %c0_i32_1 = arith.constant 0 : i32
    %c0_i32_2 = arith.constant 0 : i32
    return %arg0, %c0_i32, %c0_i32_0, %c0_i32_1 : i32, i32, i32, i32
  }
  func.func @transform_7(%arg0: i32, %arg1: i32) -> (i32, i32, i32, i32) {
    %c0_i32 = arith.constant 0 : i32
    %c0_i32_0 = arith.constant 0 : i32
    %c0_i32_1 = arith.constant 0 : i32
    %c0_i32_2 = arith.constant 0 : i32
    return %arg0, %c0_i32, %c0_i32_0, %c0_i32_1 : i32, i32, i32, i32
  }
  func.func @transform_8(%arg0: i32, %arg1: i32) -> (i32, i32, i32, i32) {
    %c1_i32 = arith.constant 1 : i32
    %0 = arith.addi %arg1, %c1_i32 : i32
    %c0_i32 = arith.constant 0 : i32
    %c0_i32_0 = arith.constant 0 : i32
    %c0_i32_1 = arith.constant 0 : i32
    return %arg0, %0, %c0_i32, %c0_i32_0 : i32, i32, i32, i32
  }
  func.func @transform_9(%arg0: i32, %arg1: i32) -> (i32, i32, i32, i32) {
    %c0_i32 = arith.constant 0 : i32
    %c0_i32_0 = arith.constant 0 : i32
    %c0_i32_1 = arith.constant 0 : i32
    %c0_i32_2 = arith.constant 0 : i32
    return %arg0, %c0_i32, %c0_i32_0, %c0_i32_1 : i32, i32, i32, i32
  }
  func.func @transform_10(%arg0: i32, %arg1: i32) -> (i32, i32, i32, i32) {
    %c0_i32 = arith.constant 0 : i32
    %c0_i32_0 = arith.constant 0 : i32
    %c0_i32_1 = arith.constant 0 : i32
    %c0_i32_2 = arith.constant 0 : i32
    return %arg0, %c0_i32, %c0_i32_0, %c0_i32_1 : i32, i32, i32, i32
  }
}

module attributes {stable_mosaic.version = 11 : i64} {
  func.func @_finalize_kernel(%arg0: i32, %arg1: i32, %arg2: memref<1x1x8x324xf32, #tpu.memory_space<vmem>>, %arg3: memref<1x1x8x324xf32, #tpu.memory_space<vmem>>, %arg4: memref<1x8x1x1xf32, #tpu.memory_space<vmem>>, %arg5: memref<1x8x1x1xf32, #tpu.memory_space<vmem>>, %arg6: memref<1x8x2x16x16xf32, #tpu.memory_space<vmem>>, %arg7: memref<1x8x1x8x8xf32, #tpu.memory_space<vmem>>) attributes {dimension_semantics = [#tpu.dimension_semantics<parallel>, #tpu.dimension_semantics<parallel>], iteration_bounds = array<i64: 2, 8>, scalar_prefetch = 0 : i64, scratch_operands = 0 : i64, tpu.core_type = #tpu.core_type<tc>, window_params = [{transform_indices = @transform_0, window_bounds = array<i64: 1, 1, 8, 324>}, {transform_indices = @transform_1, window_bounds = array<i64: 1, 1, 8, 324>}, {transform_indices = @transform_2, window_bounds = array<i64: 1, 8, 1, 1>}, {transform_indices = @transform_3, window_bounds = array<i64: 1, 8, 1, 1>}, {transform_indices = @transform_4, window_bounds = array<i64: 1, 8, 2, 16, 16>}, {transform_indices = @transform_5, window_bounds = array<i64: 1, 8, 1, 8, 8>}]} {
    %c0 = arith.constant 0 : index
    %c0_0 = arith.constant 0 : index
    %c0_1 = arith.constant 0 : index
    %c0_2 = arith.constant 0 : index
    %0 = vector.load %arg2[%c0, %c0_0, %c0_1, %c0_2] : memref<1x1x8x324xf32, #tpu.memory_space<vmem>>, vector<1x1x8x324xf32>
    %1 = vector.shape_cast %0 : vector<1x1x8x324xf32> to vector<8x324xf32>
    %c0_3 = arith.constant 0 : index
    %c0_4 = arith.constant 0 : index
    %c0_5 = arith.constant 0 : index
    %c0_6 = arith.constant 0 : index
    %2 = vector.load %arg3[%c0_3, %c0_4, %c0_5, %c0_6] : memref<1x1x8x324xf32, #tpu.memory_space<vmem>>, vector<1x1x8x324xf32>
    %3 = vector.shape_cast %2 : vector<1x1x8x324xf32> to vector<8x324xf32>
    %c0_7 = arith.constant 0 : index
    %c0_8 = arith.constant 0 : index
    %c0_9 = arith.constant 0 : index
    %c0_10 = arith.constant 0 : index
    %4 = vector.load %arg4[%c0_7, %c0_8, %c0_9, %c0_10] : memref<1x8x1x1xf32, #tpu.memory_space<vmem>>, vector<1x8x1x1xf32>
    %5 = vector.shape_cast %4 : vector<1x8x1x1xf32> to vector<8x1xf32>
    %c0_11 = arith.constant 0 : index
    %c0_12 = arith.constant 0 : index
    %c0_13 = arith.constant 0 : index
    %c0_14 = arith.constant 0 : index
    %6 = vector.load %arg5[%c0_11, %c0_12, %c0_13, %c0_14] : memref<1x8x1x1xf32, #tpu.memory_space<vmem>>, vector<1x8x1x1xf32>
    %7 = vector.shape_cast %6 : vector<1x8x1x1xf32> to vector<8x1xf32>
    %8 = vector.broadcast %5 : vector<8x1xf32> to vector<8x324xf32>
    %9 = arith.subf %1, %8 : vector<8x324xf32>
    %10 = vector.broadcast %7 : vector<8x1xf32> to vector<8x324xf32>
    %11 = arith.mulf %9, %10 : vector<8x324xf32>
    %cst = arith.constant 0.000000e+00 : f32
    %12 = vector.broadcast %cst : f32 to vector<8x324xf32>
    %13 = arith.maximumf %11, %12 : vector<8x324xf32>
    %14 = vector.broadcast %5 : vector<8x1xf32> to vector<8x324xf32>
    %15 = arith.subf %3, %14 : vector<8x324xf32>
    %16 = vector.broadcast %7 : vector<8x1xf32> to vector<8x324xf32>
    %17 = arith.mulf %15, %16 : vector<8x324xf32>
    %cst_15 = arith.constant 0.000000e+00 : f32
    %18 = vector.broadcast %cst_15 : f32 to vector<8x324xf32>
    %19 = arith.maximumf %17, %18 : vector<8x324xf32>
    %20 = vector.shape_cast %13 : vector<8x324xf32> to vector<8x18x18xf32>
    %21 = vector.extract_strided_slice %20 {offsets = [0, 1, 1], sizes = [8, 16, 16], strides = [1, 1, 1]} : vector<8x18x18xf32> to vector<8x16x16xf32>
    %22 = vector.shape_cast %19 : vector<8x324xf32> to vector<8x18x18xf32>
    %23 = vector.extract_strided_slice %22 {offsets = [0, 1, 1], sizes = [8, 16, 16], strides = [1, 1, 1]} : vector<8x18x18xf32> to vector<8x16x16xf32>
    %c0_16 = arith.constant 0 : index
    %c0_17 = arith.constant 0 : index
    %c0_18 = arith.constant 0 : index
    %c0_19 = arith.constant 0 : index
    %c0_20 = arith.constant 0 : index
    %24 = vector.load %arg6[%c0_16, %c0_17, %c0_18, %c0_19, %c0_20] : memref<1x8x2x16x16xf32, #tpu.memory_space<vmem>>, vector<1x8x1x16x16xf32>
    %25 = vector.shape_cast %24 : vector<1x8x1x16x16xf32> to vector<8x16x16xf32>
    %26 = vector.shape_cast %21 : vector<8x16x16xf32> to vector<1x8x1x16x16xf32>
    tpu.vector_store %arg6[%c0_16, %c0_17, %c0_18, %c0_19, %c0_20], %26 {strides = array<i32>} : memref<1x8x2x16x16xf32, #tpu.memory_space<vmem>>, vector<1x8x1x16x16xf32>,
    %c0_21 = arith.constant 0 : index
    %c0_22 = arith.constant 0 : index
    %c1 = arith.constant 1 : index
    %c0_23 = arith.constant 0 : index
    %c0_24 = arith.constant 0 : index
    %27 = vector.load %arg6[%c0_21, %c0_22, %c1, %c0_23, %c0_24] : memref<1x8x2x16x16xf32, #tpu.memory_space<vmem>>, vector<1x8x1x16x16xf32>
    %28 = vector.shape_cast %27 : vector<1x8x1x16x16xf32> to vector<8x16x16xf32>
    %29 = vector.shape_cast %23 : vector<8x16x16xf32> to vector<1x8x1x16x16xf32>
    tpu.vector_store %arg6[%c0_21, %c0_22, %c1, %c0_23, %c0_24], %29 {strides = array<i32>} : memref<1x8x2x16x16xf32, #tpu.memory_space<vmem>>, vector<1x8x1x16x16xf32>,
    %30 = arith.maximumf %21, %23 : vector<8x16x16xf32>
    %31 = vector.shape_cast %30 : vector<8x16x16xf32> to vector<8x16x8x2xf32>
    %cst_25 = arith.constant dense<0xFF800000> : vector<8x16x8xf32>
    %32 = vector.multi_reduction <maximumf>, %31, %cst_25 [3] : vector<8x16x8x2xf32> to vector<8x16x8xf32>
    %33 = vector.shape_cast %32 : vector<8x16x8xf32> to vector<8x8x2x8xf32>
    %cst_26 = arith.constant dense<0xFF800000> : vector<8x8x8xf32>
    %34 = vector.multi_reduction <maximumf>, %33, %cst_26 [2] : vector<8x8x2x8xf32> to vector<8x8x8xf32>
    %c0_27 = arith.constant 0 : index
    %c0_28 = arith.constant 0 : index
    %c0_29 = arith.constant 0 : index
    %c0_30 = arith.constant 0 : index
    %c0_31 = arith.constant 0 : index
    %35 = vector.load %arg7[%c0_27, %c0_28, %c0_29, %c0_30, %c0_31] : memref<1x8x1x8x8xf32, #tpu.memory_space<vmem>>, vector<1x8x1x8x8xf32>
    %36 = vector.shape_cast %35 : vector<1x8x1x8x8xf32> to vector<8x8x8xf32>
    %37 = vector.shape_cast %34 : vector<8x8x8xf32> to vector<1x8x1x8x8xf32>
    tpu.vector_store %arg7[%c0_27, %c0_28, %c0_29, %c0_30, %c0_31], %37 {strides = array<i32>} : memref<1x8x1x8x8xf32, #tpu.memory_space<vmem>>, vector<1x8x1x8x8xf32>,
    return
  }
  func.func @transform_0(%arg0: i32, %arg1: i32) -> (i32, i32, i32, i32) {
    %c2_i32 = arith.constant 2 : i32
    %0 = arith.muli %c2_i32, %arg1 : i32
    %c1_i32 = arith.constant 1 : i32
    %1 = arith.addi %0, %c1_i32 : i32
    %c0_i32 = arith.constant 0 : i32
    %c0_i32_0 = arith.constant 0 : i32
    %c0_i32_1 = arith.constant 0 : i32
    return %arg0, %1, %c0_i32, %c0_i32_0 : i32, i32, i32, i32
  }
  func.func @transform_1(%arg0: i32, %arg1: i32) -> (i32, i32, i32, i32) {
    %c2_i32 = arith.constant 2 : i32
    %0 = arith.muli %c2_i32, %arg1 : i32
    %c2_i32_0 = arith.constant 2 : i32
    %1 = arith.addi %0, %c2_i32_0 : i32
    %c0_i32 = arith.constant 0 : i32
    %c0_i32_1 = arith.constant 0 : i32
    %c0_i32_2 = arith.constant 0 : i32
    return %arg0, %1, %c0_i32, %c0_i32_1 : i32, i32, i32, i32
  }
  func.func @transform_2(%arg0: i32, %arg1: i32) -> (i32, i32, i32, i32) {
    %c0_i32 = arith.constant 0 : i32
    %c0_i32_0 = arith.constant 0 : i32
    %c0_i32_1 = arith.constant 0 : i32
    %c0_i32_2 = arith.constant 0 : i32
    return %arg0, %c0_i32, %c0_i32_0, %c0_i32_1 : i32, i32, i32, i32
  }
  func.func @transform_3(%arg0: i32, %arg1: i32) -> (i32, i32, i32, i32) {
    %c0_i32 = arith.constant 0 : i32
    %c0_i32_0 = arith.constant 0 : i32
    %c0_i32_1 = arith.constant 0 : i32
    %c0_i32_2 = arith.constant 0 : i32
    return %arg0, %c0_i32, %c0_i32_0, %c0_i32_1 : i32, i32, i32, i32
  }
  func.func @transform_4(%arg0: i32, %arg1: i32) -> (i32, i32, i32, i32, i32) {
    %c0_i32 = arith.constant 0 : i32
    %c0_i32_0 = arith.constant 0 : i32
    %c0_i32_1 = arith.constant 0 : i32
    %c0_i32_2 = arith.constant 0 : i32
    return %arg0, %c0_i32, %arg1, %c0_i32_0, %c0_i32_1 : i32, i32, i32, i32, i32
  }
  func.func @transform_5(%arg0: i32, %arg1: i32) -> (i32, i32, i32, i32, i32) {
    %c0_i32 = arith.constant 0 : i32
    %c0_i32_0 = arith.constant 0 : i32
    %c0_i32_1 = arith.constant 0 : i32
    %c0_i32_2 = arith.constant 0 : i32
    return %arg0, %c0_i32, %arg1, %c0_i32_0, %c0_i32_1 : i32, i32, i32, i32, i32
  }
}

</mosaic_0001>

<bundles_post_ra>
// kernel: encoder_block_forward.3
= control target key start
LH: loop header
LB: loop body
LE: loop exit
PB: predicated region body
PF: predicated region fallthrough
CT: control target
= control target key end

     0   :  { %s2031_s13 = smov 0   ;;  %s2033_s14 = smov 0   ;;  %s2772_s0 = inlined_call_operand.vmem [shape: f32[2,18,8,324], index: 0, kind: input, shape index: {}, may-alias: {0,1,2}]   ;;  %s2773_s1 = inlined_call_operand.vmem [shape: f32[2,18,8,324], index: 1, kind: input, shape index: {}, may-alias: {0,1,2}]   ;;  %s2774_s2 = inlined_call_operand.vmem [shape: f32[2,18,8,324], index: 2, kind: input, shape index: {}, may-alias: {0,1,2}]   ;;  %s2775_s3 = inlined_call_operand.vmem [shape: f32[1,324], index: 3, kind: input, shape index: {}]   ;;  %s2776_s4 = inlined_call_operand.vmem [shape: bf16[8,216], index: 4, kind: input, shape index: {}]   ;;  %s2777_s5 = inlined_call_operand.vmem [shape: f32[8,1], index: 5, kind: input, shape index: {}]   ;;  %s2778_s6 = inlined_call_operand.vmem [shape: f32[2,8,1,1], index: 6, kind: input, shape index: {}]   ;;  %s2779_s7 = inlined_call_operand.vmem [shape: f32[2,8,1,1], index: 7, kind: input, shape index: {}]   ;;  %s2780_s8 = inlined_call_operand.vmem [shape: f32[2,18,8,324], index: 8, kind: output, shape index: {0}]   ;;  %s2781_s9 = inlined_call_operand.vmem [shape: f32[2,8,1,1], index: 9, kind: output, shape index: {1}]   ;;  %s2782_s10 = inlined_call_operand.vmem [shape: f32[2,8,1,1], index: 10, kind: output, shape index: {2}]  }
   0x1   :  { %2792 = sst [smem:[#allocation2_spill]] %s2772_s0  ;;  %s2035_s15 = smov 0  }
   0x2   :  { %s2037_s16 = smov 0   ;;  %s2039_s6 = smov 0  }
   0x3 LB: > { %s30_s7 = sadd.s32 1, %s1948_s15  ;;  %s33_s17 = sadd.s32 1, %s1952_s16  ;;  %s1956_s6 = sphi %s2039_s6, %s21_s6   ;;  %s1952_s16 = sphi %s2037_s16, %s2818_s16   ;;  %s1948_s15 = sphi %s2035_s15, %s2817_s15   ;;  %s1944_s14 = sphi %s2033_s14, %s2816_s14   ;;  %s1940_s13 = sphi %s2031_s13, %s2815_s13  }
   0x4   : > { %p31_p0 = scmp.ge.s32.totalorder %s30_s7, 16  ;;  %p1604_p1 = scmp.ge.s32.totalorder %s1956_s6, 1 }
   0x5   : > { %p397_p2 = scmp.lt.s32.totalorder %s1956_s6, 33 }
   0x6   : > { %s2820_s7 = smov (%p31_p0, %s30_s7), 0  ;;  %s2822_s17 = smov (!%p31_p0, %s33_s17), %s1952_s16 }
   0x7   : > { %p398_p3 = pnand %p1604_p1, %p397_p2  ;;  %p35_p4 = scmp.ge.s32.totalorder %s2822_s17, 2 }
   0x8   : > { %p480_p5 = scmp.lt.s32.totalorder (!%p398_p3), %s1944_s14, 1  ;;  %p482_p6 = scmp.lt.s32.totalorder (!%p398_p3), %s1940_s13, 17 }
   0x9   : > { %s2824_s17 = smov (%p35_p4, %s2822_s17), 0  ;;  %401 = sbr.rel (%p398_p3) target bundleno = 723 (0x2d3), region = 52 }
   0xa   : > { %s489_s29 = sadd.s32 (!%p398_p3), 1, %s1940_s13  ;;  %s2793_s0 = sld [smem:[#allocation2_spill]] (!%p398_p3) }
   0xb   : > { %p492_p7 = scmp.lt.s32.totalorder (!%p398_p3), %s489_s29, 17  ;;  %s2785_s22 = smov (!%p398_p3), 126  }
   0xc   : > { %s1960_s23 = smov (!%p398_p3), 127   ;;  %s2795_s11 = smov (!%p398_p3), 126  }
   0xd   : > { %p1614_p9 = scmp.ne.s32.totalorder (!%p398_p3), %s1940_s13, 0 }
   0xe   : > { %s2826_s14 = smov (!%p480_p5, %s1944_s14), 1  ;;  %s2828_s29 = smov (!%p492_p7, %s489_s29), 17  ;;  %vm581_vm0 = vcmask 900096   ;;  %vm605_vm1 = vcmask 883712   ;;  %vm569_vm2 = vcmask 1031168   ;;  %vm557_vm3 = vcmask 1039360  }
   0xf   : > { %s483_s18 = scalar_select %p482_p6, %s1940_s13, 17  ;;  %vm593_vm4 = vcmask 891904   ;;  %vm779_vm5 = vcmask 7168   ;;  %vm761_vm6 = vcmask 146432   ;;  %vm770_vm7 = vcmask 138240  }
  0x10   : > { %s2065_s19 = smul.u32 54, %s2826_s14  ;;  %s1609_s20 = sshll.u32 %s2826_s14, 3  ;;  %vm743_vm8 = vcmask 285696   ;;  %vm752_vm9 = vcmask 154624   ;;  %vm725_vm10 = vcmask 302080   ;;  %vm734_vm11 = vcmask 293888  }
  0x11   : > { %s1618_s21 = smul.u32 3, %s483_s18  ;;  %s2070_s24 = scalar_lea.vmem %s2781_s9, %s1609_s20  ;;  %vm617_vm12 = vcmask 752640   ;;  %vm641_vm13 = vcmask 736256   ;;  %vm629_vm14 = vcmask 744448   ;;  %vm970_vm15 = vcmask 1043456  }
  0x12   : > { %s2075_s27 = scalar_lea.vmem %s2782_s10, %s1609_s20  ;;  %s500_s18 = sadd.s32 2, %s1940_s13 }
  0x13   : > { %s486_s28 = sadd.s32 %s2065_s19, %s1618_s21  ;;  %p503_p8 = scmp.lt.s32.totalorder %s500_s18, 17 }
  0x14   : > { %s1605_s30 = sshll.u32 %s486_s28, 3  ;;  %s1620_s20 = smul.u32 3, %s2828_s29 }
  0x15   : > { %s488_s14 = scalar_lea.vmem %s2793_s0, %s1605_s30  ;;  %s2783_s21 = smov 110  }
  0x16   : > { %v2083_v0 = vld [vmem:[%s488_s14] sm:$0xff]  ;;  %v2085_v1 = vld [vmem:[%s488_s14 + $0x8] sm:$0xff]  ;;  %s2830_s18 = smov (!%p503_p8, %s500_s18), 17  ;;  %s496_s25 = sadd.s32 %s1620_s20, %s2065_s19  ;;  %v2093_v3 = vld [vmem:[%s488_s14 + $0x10] sm:$0xff] }
  0x17   : > { %v1690_v2 = vpack.i.bf16 %v2085_v1, %v2083_v0  ;;  %s1606_s26 = sshll.u32 %s496_s25, 3  ;;  %s1621_s28 = smul.u32 3, %s2830_s18  ;;  %v1815_v27 = vpack.i.bf16 %v2093_v3, %v2085_v1 }
  0x18   : > { %s2098_s12 = scalar_lea.vmem %s2773_s1, %s1606_s26  ;;  %s2794_s30 = smov 110  }
  0x19   : > { %1691 = vrot.lane.b32.xlu2 %v1690_v2, %s2783_s21  ;;  %1686 = vrot.lane.b32.xlu1 %v1690_v2, %s2785_s22  ;;  %s2103_s21 = scalar_lea.vmem %s2780_s8, %s1606_s26  ;;  %v2106_v4 = vld [vmem:[%s2098_s12 + $0x8] sm:$0xff]  ;;  %s507_s22 = sadd.s32 %s1621_s28, %s2065_s19  ;;  %v2130_v12 = vld [vmem:[%s2098_s12 + $0x10] sm:$0xff] }
  0x1a   : > { %1681 = vrot.lane.b32.xlu0 %v1690_v2, %s1960_s23  ;;  %v1710_v5 = vpack.i.bf16 %v2106_v4, %v2093_v3  ;;  %s1607_s14 = sshll.u32 %s507_s22, 3  ;;  %s1961_s0 = smov 108   ;;  %v1775_v13 = vpack.i.bf16 %v2130_v12, %v2106_v4  ;;  %v2137_v14 = vld [vmem:[%s2098_s12] sm:$0xff] }
  0x1b   : > { %s509_s25 = scalar_lea.vmem %s2774_s2, %s1607_s14  ;;  %s1962_s19 = smov 109   ;;  %v1785_v15 = vpack.i.bf16 %v2137_v14, %v2130_v12  ;;  %v1805_v17 = vpack.i.bf16 %v2093_v3, %v2137_v14 }
  0x1c   : > { %v546_v6 = vld [vmem:[%s509_s25 + $0x8] sm:$0xff]  ;;  %v2120_v8 = vld [vmem:[%s509_s25] sm:$0xff]  ;;  %v547_v9 = vld [vmem:[%s509_s25 + $0x10] sm:$0xff]  ;;  %s1963_s22 = smov 92   ;;  %s1964_s26 = smov 18  }
  0x1d   : > { %v1695_v7 = vpack.i.bf16 %v546_v6, %v2093_v3  ;;  %v1735_v10 = vpack.i.bf16 %v2120_v8, %v547_v9  ;;  %v1745_v11 = vpack.i.bf16 %v546_v6, %v2120_v8  ;;  %s1965_s28 = smov 1   ;;  %s1966_s29 = smov 17   ;;  %v1780_v16 = vpack.i.bf16 %v547_v9, %v546_v6 }
  0x1e   : > { %s1967_s14 = smov 19   ;;  %s1968_s20 = smov 35  }
  0x1f   : > { %s1969_s18 = smov 37   ;;  %s1970_s25 = smov 36  }
  0x21   : > { %1711 = vrot.lane.b32.xlu2 %v1710_v5, %s2794_s30  ;;  %1706 = vrot.lane.b32.xlu1 %v1710_v5, %s2795_s11 }
  0x22   : > { %1696 = vrot.lane.b32.xlu0 %v1695_v7, %s1960_s23 }
  0x29   : > { %1721 = vrot.lane.b32.xlu2 %v1690_v2, %s1961_s0  ;;  %1716 = vrot.lane.b32.xlu1 %v1710_v5, %s1962_s19 }
  0x2a   : > { %1701 = vrot.lane.b32.xlu0 %v1690_v2, %s1962_s19 }
  0x31   : > { %1736 = vrot.lane.b32.xlu2 %v1735_v10, %s1960_s23  ;;  %1731 = vrot.lane.b32.xlu1 %v1690_v2, %s1963_s22 }
  0x32   : > { %1726 = vrot.lane.b32.xlu0 %v1710_v5, %s1961_s0 }
  0x39   : > { %1746 = vrot.lane.b32.xlu2 %v1745_v11, %s1964_s26  ;;  %777 = vrot.lane.b32.xlu1 %v547_v9, %s1965_s28 }
  0x3a   : > { %1741 = vrot.lane.b32.xlu0 %v1745_v11, %s1965_s28 }
  0x41   : > { %768 = vrot.lane.b32.xlu2 %v547_v9, %s1966_s29  ;;  %1751 = vrot.lane.b32.xlu1 %v1745_v11, %s1966_s29 }
  0x42   : > { %759 = vrot.lane.b32.xlu0 %v547_v9, %s1964_s26  ;;  %s1971_s26 = smov 91  }
  0x49   : > { %1761 = vrot.lane.b32.xlu2 %v1745_v11, %s1967_s14  ;;  %741 = vrot.lane.b32.xlu1 %v547_v9, %s1968_s20 }
  0x4a   : > { %1756 = vrot.lane.b32.xlu0 %v1745_v11, %s1968_s20 }
  0x51   : > { %723 = vrot.lane.b32.xlu2 %v547_v9, %s1969_s18  ;;  %1766 = vrot.lane.b32.xlu1 %v1745_v11, %s1969_s18 }
  0x52   : > { %750 = vrot.lane.b32.xlu0 %v547_v9, %s1967_s14 }
  0x59   : > { %1776 = vrot.lane.b32.xlu2 %v1775_v13, %s1960_s23  ;;  %732 = vrot.lane.b32.xlu1 %v547_v9, %s1970_s25 }
  0x5a   : > { %1771 = vrot.lane.b32.xlu0 %v1745_v11, %s1970_s25 }
  0x61   : > { %1786 = vrot.lane.b32.xlu2 %v1785_v15, %s1961_s0  ;;  %1796 = vrot.lane.b32.xlu1 %v1785_v15, %s2794_s30 }
  0x62   : > { %650 = vrot.lane.b32.xlu0 %v2137_v14, %s1960_s23  ;;  %s1972_s23 = smov 90  }
  0x69   : > { %1801 = vrot.lane.b32.xlu2 %v1785_v15, %s1962_s19  ;;  %1811 = vrot.lane.b32.xlu1 %v1785_v15, %s2795_s11 }
  0x6a   : > { %1781 = vrot.lane.b32.xlu0 %v1780_v16, %s1971_s26 }
  0x71   : > { %1806 = vrot.lane.b32.xlu2 %v1805_v17, %s1963_s22 }
  0x72   : > { %1791 = vrot.lane.b32.xlu0 %v1775_v13, %s1963_s22 }
  0x73   : > { %v1692_v18 = vpop.permute.xlu2 %1691 }
  0x74   : > { %v1694_v19 = vunpack.i.h.bf16 %v1692_v18  ;;  %v1693_v28 = vunpack.i.l.bf16 %v1692_v18 }
  0x76   : > { %v2172_v35 = vsel %vm581_vm0, %v1693_v28, %v1694_v19 }
  0x79   : > { %1816 = vrot.lane.b32.xlu2 %v1815_v27, %s1972_s23 }
  0x7b   : > { %v2152_v20 = vpop.permute.xlu2 %1711 }
  0x7c   : > { %v1713_v21 = vunpack.i.l.bf16 %v2152_v20 }
  0x7e   : > { %v2156_v22 = vsel %vm581_vm0, %v1694_v19, %v1713_v21 }
  0x83   : > { %v1722_v23 = vpop.permute.xlu2 %1721 }
  0x84   : > { %v1724_v24 = vunpack.i.h.bf16 %v1722_v23  ;;  %v1723_v25 = vunpack.i.l.bf16 %v1722_v23 }
  0x86   : > { %v2159_v26 = vsel %vm605_vm1, %v1723_v25, %v1724_v24 }
  0x8b   : > { %v2164_v29 = vpop.permute.xlu2 %1736  ;;  %v1687_v30 = vpop.permute.xlu1 %1686 }
  0x8c   : > { %v1689_v31 = vunpack.i.h.bf16 %v1687_v30  ;;  %v1688_v32 = vunpack.i.l.bf16 %v1687_v30  ;;  %v2166_v33 = vpop.permute.xlu0 %1681  ;;  %v1738_v62 = vunpack.i.l.bf16 %v2164_v29  ;;  %v1739_v17 = vunpack.i.h.bf16 %v2164_v29 }
  0x8d   : > { %v2789_v41 = vunpack.i.h.bf16 %v2166_v33 }
  0x8e   : > { %v2169_v34 = vsel %vm569_vm2, %v1688_v32, %v1689_v31 }
  0x93   : > { %v2176_v37 = vpop.permute.xlu2 %1746  ;;  %v2178_v38 = vpop.permute.xlu1 %1706 }
  0x94   : > { %v1708_v39 = vunpack.i.l.bf16 %v2178_v38  ;;  %v2181_v40 = vpop.permute.xlu0 %1696  ;;  %v1749_v18 = vunpack.i.h.bf16 %v2176_v37  ;;  %v1748_v19 = vunpack.i.l.bf16 %v2176_v37 }
  0x95   : > { %v2787_v42 = vunpack.i.l.bf16 %v2181_v40  ;;  %v1699_v63 = vunpack.i.h.bf16 %v2181_v40 }
  0x96   : > { %v2186_v43 = vsel %vm569_vm2, %v1689_v31, %v1708_v39  ;;  %v2190_v45 = vpack.c.bf16 %v1713_v21, %v1708_v39  ;;  %v762_v28 = vsel %vm761_vm6, %v1748_v19, %v1749_v18 }
  0x97   : > { %v2197_v46 = vsel %vm557_vm3, %v2789_v41, %v2787_v42  ;;  %v789_v10 = vsel %vm557_vm3, %v1699_v63, %v1738_v62  ;;  %v788_v29 = vsel %vm557_vm3, %v1739_v17, %v1699_v63 }
  0x98   : > { %v1825_v16 = vpack.i.bf16 %v1738_v62, %v789_v10  ;;  %v1835_v32 = vpack.i.bf16 %v762_v28, %v788_v29 }
  0x9b   : > { %v769_v47 = vpop.permute.xlu2 %768  ;;  %v2199_v48 = vpop.permute.xlu1 %1716 }
  0x9c   : > { %v1718_v49 = vunpack.i.l.bf16 %v2199_v48  ;;  %v1702_v50 = vpop.permute.xlu0 %1701 }
  0x9d   : > { %v1704_v51 = vunpack.i.h.bf16 %v1702_v50  ;;  %v1703_v52 = vunpack.i.l.bf16 %v1702_v50 }
  0x9f   : > { %v2203_v53 = vsel %vm593_vm4, %v1704_v51, %v1718_v49  ;;  %v2206_v54 = vsel %vm593_vm4, %v1703_v52, %v1704_v51 }
  0xa3   : > { %v2210_v56 = vpop.permute.xlu2 %1761  ;;  %v2212_v57 = vpop.permute.xlu1 %1731 }
  0xa4   : > { %v1763_v58 = vunpack.i.l.bf16 %v2210_v56  ;;  %v2215_v59 = vpop.permute.xlu0 %1726 }
  0xa5   : > { %v1728_v61 = vunpack.i.l.bf16 %v2215_v59 }
  0xa6   : > { %v1820_v60 = vpack.i.bf16 %v2106_v4, %v1763_v58 }
  0xa7   : > { %v2223_v2 = vsel %vm605_vm1, %v1724_v24, %v1728_v61  ;;  %v2225_v5 = vpack.c.bf16 %v1728_v61, %v1718_v49 }
  0xa8   : > { %1821 = vrot.lane.b32.xlu1 %v1820_v60, %s1971_s26 }
  0xab   : > { %v2229_v7 = vpop.permute.xlu2 %723  ;;  %v778_v9 = vpop.permute.xlu1 %777 }
  0xac   : > { %v1742_v11 = vpop.permute.xlu0 %1741 }
  0xad   : > { %v1744_v13 = vunpack.i.h.bf16 %v1742_v11  ;;  %v1743_v15 = vunpack.i.l.bf16 %v1742_v11 }
  0xaf   : > { %v780_v21 = vsel %vm779_vm5, %v1743_v15, %v1744_v13  ;;  %v781_v23 = vsel %vm779_vm5, %v1744_v13, %v778_v9 }
  0xb0   : > { %1826 = vrot.lane.b32.xlu1 %v1825_v16, %s1971_s26  ;;  %v1830_v24 = vpack.i.bf16 %v781_v23, %v780_v21 }
  0xb2   : > { %1831 = vrot.lane.b32.xlu2 %v1830_v24, %s1971_s26 }
  0xb3   : > { %v2237_v25 = vpop.permute.xlu2 %1776  ;;  %v1752_v27 = vpop.permute.xlu1 %1751 }
  0xb4   : > { %v1754_v30 = vunpack.i.h.bf16 %v1752_v27  ;;  %v760_v31 = vpop.permute.xlu0 %759  ;;  %v1753_v39 = vunpack.i.l.bf16 %v1752_v27  ;;  %v1779_v24 = vunpack.i.h.bf16 %v2237_v25 }
  0xb5   : > { %v763_v60 = vsel %vm761_vm6, %v1749_v18, %v760_v31 }
  0xb6   : > { %v772_v37 = vsel %vm770_vm7, %v1754_v30, %v769_v47  ;;  %v771_v50 = vsel %vm770_vm7, %v1753_v39, %v1754_v30  ;;  %v1734_v30 = vunpack.i.h.bf16 %v2212_v57 }
  0xb7   : > { %v1845_v49 = vpack.i.bf16 %v1743_v15, %v772_v37  ;;  %v1840_v62 = vpack.i.bf16 %v771_v50, %v763_v60  ;;  %v1764_v15 = vunpack.i.h.bf16 %v2210_v56 }
  0xb8   : > { %1836 = vrot.lane.b32.xlu1 %v1835_v32, %s1971_s26 }
  0xb9   : > { %v753_v23 = vsel %vm752_vm9, %v1763_v58, %v1764_v15 }
  0xba   : > { %1846 = vrot.lane.b32.xlu2 %v1845_v49, %s1971_s26 }
  0xbb   : > { %v2243_v51 = vpop.permute.xlu2 %1786  ;;  %v742_v52 = vpop.permute.xlu1 %741 }
  0xbc   : > { %v2246_v61 = vpop.permute.xlu0 %1756 }
  0xbd   : > { %v1759_v63 = vunpack.i.h.bf16 %v2246_v61  ;;  %v1758_v47 = vunpack.i.l.bf16 %v2246_v61 }
  0xbf   : > { %v744_v9 = vsel %vm743_vm8, %v1758_v47, %v1759_v63  ;;  %v745_v18 = vsel %vm743_vm8, %v1759_v63, %v742_v52 }
  0xc0   : > { %1841 = vrot.lane.b32.xlu1 %v1840_v62, %s1971_s26  ;;  %v1850_v10 = vpack.i.bf16 %v744_v9, %v2120_v8  ;;  %v1855_v8 = vpack.i.bf16 %v753_v23, %v745_v18 }
  0xc2   : > { %1851 = vrot.lane.b32.xlu0 %v1850_v10, %s1971_s26  ;;  %v1719_v10 = vunpack.i.h.bf16 %v2199_v48 }
  0xc3   : > { %v2253_v11 = vpop.permute.xlu2 %1801  ;;  %v1767_v13 = vpop.permute.xlu1 %1766 }
  0xc4   : > { %v751_v16 = vpop.permute.xlu0 %750  ;;  %v1769_v27 = vunpack.i.h.bf16 %v1767_v13  ;;  %v1768_v28 = vunpack.i.l.bf16 %v1767_v13  ;;  %v1804_v61 = vunpack.i.h.bf16 %v2253_v11  ;;  %v1803_v9 = vunpack.i.l.bf16 %v2253_v11 }
  0xc5   : > { %v754_v17 = vsel %vm752_vm9, %v1764_v15, %v751_v16  ;;  %v1714_v13 = vunpack.i.h.bf16 %v2152_v20 }
  0xc6   : > { %v1860_v21 = vpack.i.bf16 %v1748_v19, %v754_v17  ;;  %v1885_v19 = vpack.i.bf16 %v1768_v28, %v1779_v24  ;;  %v726_v58 = vsel %vm725_vm10, %v1768_v28, %v1769_v27  ;;  %v727_v50 = vsel %vm725_vm10, %v1769_v27, %v2229_v7 }
  0xc7   : > { %v1865_v62 = vpack.i.bf16 %v726_v58, %v1753_v39  ;;  %v689_v18 = vsel %vm593_vm4, %v1804_v61, %v1719_v10  ;;  %v690_v48 = vsel %vm593_vm4, %v1719_v10, %v1803_v9  ;;  %v1895_v10 = vpack.i.bf16 %v2137_v14, %v2093_v3 }
  0xc8   : > { %1861 = vrot.lane.b32.xlu1 %v1860_v21, %s1971_s26 }
  0xca   : > { %1856 = vrot.lane.b32.xlu0 %v1855_v8, %s1971_s26  ;;  %v1778_v8 = vunpack.i.l.bf16 %v2237_v25 }
  0xcb   : > { %v2261_v29 = vpop.permute.xlu2 %1806  ;;  %v733_v56 = vpop.permute.xlu1 %732 }
  0xcc   : > { %v2788_v31 = vunpack.i.h.bf16 %v2261_v29  ;;  %v1772_v32 = vpop.permute.xlu0 %1771 }
  0xcd   : > { %v1774_v37 = vunpack.i.h.bf16 %v1772_v32  ;;  %v1773_v49 = vunpack.i.l.bf16 %v1772_v32  ;;  %v657_v32 = vsel %vm557_vm3, %v1778_v8, %v1779_v24 }
  0xce   : > { %v2271_v52 = vsel %vm617_vm12, %v1734_v30, %v2788_v31 }
  0xcf   : > { %v735_v60 = vsel %vm734_vm11, %v1773_v49, %v1774_v37  ;;  %v736_v21 = vsel %vm734_vm11, %v1774_v37, %v733_v56  ;;  %v1890_v23 = vpack.i.bf16 %v2085_v1, %v1773_v49  ;;  %v1880_v37 = vpack.i.bf16 %v657_v32, %v2130_v12 }
  0xd0   : > { %1886 = vrot.lane.b32.xlu1 %v1885_v19, %s1971_s26  ;;  %v1870_v63 = vpack.i.bf16 %v735_v60, %v727_v50  ;;  %v1875_v20 = vpack.i.bf16 %v1758_v47, %v736_v21  ;;  %v1789_v47 = vunpack.i.h.bf16 %v2243_v51  ;;  %v1788_v50 = vunpack.i.l.bf16 %v2243_v51 }
  0xd1   : > { %v1808_v60 = vunpack.i.l.bf16 %v2261_v29 }
  0xd2   : > { %1866 = vrot.lane.b32.xlu0 %v1865_v62, %s1971_s26  ;;  %1871 = vrot.lane.b32.xlu2 %v1870_v63, %s1971_s26  ;;  %v1729_v62 = vunpack.i.h.bf16 %v2215_v59 }
  0xd3   : > { %v1797_v7 = vpop.permute.xlu1 %1796 }
  0xd4   : > { %v1799_v15 = vunpack.i.h.bf16 %v1797_v7  ;;  %v1798_v16 = vunpack.i.l.bf16 %v1797_v7  ;;  %v651_v17 = vpop.permute.xlu0 %650  ;;  %v700_v7 = vsel %vm605_vm1, %v1789_v47, %v1729_v62 }
  0xd5   : > { %v656_v25 = vsel %vm557_vm3, %v651_v17, %v1778_v8 }
  0xd6   : > { %v678_v39 = vsel %vm581_vm0, %v1799_v15, %v1714_v13  ;;  %v679_v11 = vsel %vm581_vm0, %v1714_v13, %v1798_v16  ;;  %v701_v15 = vsel %vm605_vm1, %v1729_v62, %v1788_v50  ;;  %vm966_vm0 = vcmask 719872  }
  0xd7   : > { %v929_v27 = vpack.c.bf16 %v689_v18, %v678_v39  ;;  %v930_v28 = vpack.c.bf16 %v690_v48, %v679_v11  ;;  %v1709_v39 = vunpack.i.h.bf16 %v2178_v38 }
  0xd8   : > { %635 = vrot.lane.b32.xlu1 %v2083_v0, %s1972_s23 }
  0xda   : > { %1876 = vrot.lane.b32.xlu0 %v1875_v20, %s1971_s26  ;;  %1891 = vrot.lane.b32.xlu2 %v1890_v23, %s1971_s26  ;;  %v2325_v20 = vpack.c.bf16 %v1803_v9, %v1798_v16 }
  0xdb   : > { %v1812_v56 = vpop.permute.xlu1 %1811 }
  0xdc   : > { %v1813_v19 = vunpack.i.l.bf16 %v1812_v56  ;;  %v2293_v58 = vpop.permute.xlu0 %1781  ;;  %v1814_v21 = vunpack.i.h.bf16 %v1812_v56  ;;  %v2327_v56 = vpop.permute.xlu2 %1816 }
  0xdd   : > { %v2790_v38 = vunpack.i.h.bf16 %v2327_v56 }
  0xde   : > { %v2296_v49 = vpack.c.bf16 %v1813_v19, %v1779_v24  ;;  %v667_v11 = vsel %vm569_vm2, %v1814_v21, %v1709_v39  ;;  %v668_v48 = vsel %vm569_vm2, %v1709_v39, %v1813_v19  ;;  %v1784_v19 = vunpack.i.h.bf16 %v2293_v58 }
  0xdf   : > { %v926_v23 = vpack.c.bf16 %v667_v11, %v656_v25  ;;  %v927_v8 = vpack.c.bf16 %v668_v48, %v657_v32 }
  0xe2   : > { %1881 = vrot.lane.b32.xlu0 %v1880_v37, %s1971_s26  ;;  %796 = vrot.lane.b32.xlu2 %v656_v25, %s1971_s26  ;;  %v1818_v37 = vunpack.i.l.bf16 %v2327_v56 }
  0xe4   : > { %v2304_v61 = vpop.permute.xlu0 %1791 }
  0xe5   : > { %v1794_v63 = vunpack.i.h.bf16 %v2304_v61  ;;  %v1793_v24 = vunpack.i.l.bf16 %v2304_v61 }
  0xe7   : > { %v711_v13 = vsel %vm617_vm12, %v1808_v60, %v1793_v24  ;;  %v712_v17 = vsel %vm617_vm12, %v1793_v24, %v1794_v63  ;;  %v1783_v60 = vunpack.i.l.bf16 %v2293_v58  ;;  %v934_v58 = vpack.c.bf16 %v1794_v63, %v1788_v50 }
  0xe8   : > { %v932_v59 = vpack.c.bf16 %v711_v13, %v700_v7  ;;  %v933_v18 = vpack.c.bf16 %v712_v17, %v701_v15 }
  0xe9   : > { %v875_v15 = vsel %vm629_vm14, %v1783_v60, %v1784_v19 }
  0xea   : > { %1896 = vrot.lane.b32.xlu0 %v1895_v10, %s1971_s26  ;;  %980 = vmatpush.bf16.msra.mxu0 %v932_v59 }
  0xeb   : > { %1006 = vmatpush.bf16.msra.mxu2 %v933_v18 }
  0xee   : > { %981 = vmatpush.bf16.msra.mxu0 %v929_v27  ;;  %v643_v27 = vsel %vm641_vm13, %v1818_v37, %v2790_v38 }
  0xef   : > { %1007 = vmatpush.bf16.msra.mxu2 %v930_v28  ;;  %v924_v28 = vpack.c.bf16 %v2106_v4, %v643_v27 }
  0xf2   : > { %623 = vrot.lane.b32.xlu0 %v2083_v0, %s1971_s26  ;;  %982 = vmatpush.bf16.msra.mxu0 %v926_v23 }
  0xf3   : > { %1008 = vmatpush.bf16.msra.mxu2 %v927_v8 }
  0xf7   : > { %1009 = vmatpush.bf16.msra.mxu2 %v924_v28 }
 0x10c   : > { %v2339_v9 = vpop.permute.xlu2 %1831 }
 0x10d   : > { %v1834_v62 = vunpack.i.h.bf16 %v2339_v9  ;;  %v1833_v24 = vunpack.i.l.bf16 %v2339_v9  ;;  %v1733_v9 = vunpack.i.l.bf16 %v2212_v57 }
 0x10f   : > { %v873_v13 = vsel %vm629_vm14, %v1833_v24, %v1834_v62  ;;  %v618_v63 = vsel %vm617_vm12, %v1733_v9, %v1734_v30 }
 0x110   : > { %v948_v18 = vpack.c.bf16 %v875_v15, %v873_v13 }
 0x114   : > { %v2357_v11 = vpop.permute.xlu2 %1846 }
 0x115   : > { %v1848_v8 = vunpack.i.l.bf16 %v2357_v11 }
 0x11a   : > { %v2331_v47 = vpop.permute.xlu1 %1821 }
 0x122   : > { %v1827_v16 = vpop.permute.xlu1 %1826 }
 0x123   : > { %v2342_v32 = vunpack.i.h.bf16 %v1827_v16  ;;  %v1828_v25 = vunpack.i.l.bf16 %v1827_v16 }
 0x125   : > { %v877_v10 = vsel %vm629_vm14, %v1828_v25, %v2342_v32 }
 0x126   : > { %v951_v4 = vpack.c.bf16 %v877_v10, %v877_v10  ;;  %v1849_v10 = vunpack.i.h.bf16 %v2357_v11  ;;  %v2796_v11 = vpack.c.bf16 %v2223_v2, %v2203_v53  ;;  %v2798_v53 = vpack.c.bf16 %v2156_v22, %v2186_v43 }
 0x127   : > { %v1683_v2 = vunpack.i.l.bf16 %v2166_v33 }
 0x128   : > { %v975_v7 = vsel %vm970_vm15, %v951_v4, 0 }
 0x129   : > { %1021 = vmatpush.bf16.msra.mxu3 %v975_v7 }
 0x12a   : > { %v1837_v17 = vpop.permute.xlu1 %1836 }
 0x12b   : > { %v1838_v59 = vunpack.i.l.bf16 %v1837_v17  ;;  %v1839_v27 = vunpack.i.h.bf16 %v1837_v17 }
 0x12d   : > { %1022 = vmatpush.bf16.msra.mxu3 %v948_v18  ;;  %v876_v21 = vsel %vm629_vm14, %v1838_v59, %v1828_v25  ;;  %v872_v59 = vsel %vm629_vm14, %v1849_v10, %v1833_v24 }
 0x12e   : > { %v950_v39 = vpack.c.bf16 %v876_v21, %v876_v21 }
 0x130   : > { %v972_v48 = vsel %vm970_vm15, %v950_v39, 0 }
 0x131   : > { %995 = vmatpush.bf16.msra.mxu1 %v972_v48 }
 0x132   : > { %v2360_v23 = vpop.permute.xlu1 %1841 }
 0x133   : > { %v1844_v28 = vunpack.i.h.bf16 %v2360_v23  ;;  %v1843_v16 = vunpack.i.l.bf16 %v2360_v23 }
 0x134   : > { %v1852_v4 = vpop.permute.xlu0 %1851 }
 0x135   : > { %v869_v25 = vsel %vm629_vm14, %v1839_v27, %v1843_v16  ;;  %v871_v7 = vsel %vm629_vm14, %v1844_v28, %v1848_v8  ;;  %v1853_v13 = vunpack.i.l.bf16 %v1852_v4  ;;  %v1854_v42 = vunpack.i.h.bf16 %v1852_v4 }
 0x136   : > { %v945_v15 = vpack.c.bf16 %v871_v7, %v869_v25  ;;  %v2387_v25 = vpop.permute.xlu2 %1871 }
 0x137   : > { %v874_v17 = vsel %vm629_vm14, %v1853_v13, %v1783_v60 }
 0x138   : > { %1023 = vmatpush.bf16.msra.mxu3 %v945_v15  ;;  %v947_v18 = vpack.c.bf16 %v874_v17, %v872_v59 }
 0x13a   : > { %996 = vmatpush.bf16.msra.mxu1 %v947_v18  ;;  %v2374_v21 = vpop.permute.xlu1 %1861 }
 0x13b   : > { %v1863_v39 = vunpack.i.l.bf16 %v2374_v21  ;;  %v1864_v4 = vunpack.i.h.bf16 %v2374_v21 }
 0x13c   : > { %v2377_v48 = vpop.permute.xlu0 %1856 }
 0x13d   : > { %v1859_v31 = vunpack.i.h.bf16 %v2377_v48  ;;  %v1858_v36 = vunpack.i.l.bf16 %v2377_v48  ;;  %v868_v59 = vsel %vm629_vm14, %v1864_v4, %v1839_v27 }
 0x13e   : > { %v2394_v38 = vpop.permute.xlu2 %1891 }
 0x13f   : > { %v865_v24 = vsel %vm629_vm14, %v1854_v42, %v1858_v36  ;;  %v867_v60 = vsel %vm629_vm14, %v1859_v31, %v1863_v39  ;;  %v943_v50 = vpack.c.bf16 %v1863_v39, %v1858_v36 }
 0x140   : > { %v942_v10 = vpack.c.bf16 %v867_v60, %v865_v24  ;;  %v1823_v60 = vunpack.i.l.bf16 %v2331_v47 }
 0x142   : > { %1024 = vmatpush.bf16.msra.mxu3 %v942_v10  ;;  %v2389_v7 = vpop.permute.xlu1 %1886  ;;  %v1874_v10 = vunpack.i.h.bf16 %v2387_v25 }
 0x143   : > { %v1889_v4 = vunpack.i.h.bf16 %v2389_v7 }
 0x144   : > { %v1867_v13 = vpop.permute.xlu0 %1866 }
 0x145   : > { %v1868_v15 = vunpack.i.l.bf16 %v1867_v13  ;;  %v1869_v55 = vunpack.i.h.bf16 %v1867_v13 }
 0x147   : > { %v870_v17 = vsel %vm629_vm14, %v1868_v15, %v1844_v28  ;;  %v1873_v28 = vunpack.i.l.bf16 %v2387_v25  ;;  %v860_v6 = vsel %vm629_vm14, %v1889_v4, %v1869_v55 }
 0x148   : > { %v944_v18 = vpack.c.bf16 %v870_v17, %v868_v59  ;;  %v1893_v59 = vunpack.i.l.bf16 %v2394_v38 }
 0x149   : > { %v861_v17 = vsel %vm629_vm14, %v1869_v55, %v1873_v28 }
 0x14a   : > { %997 = vmatpush.bf16.msra.mxu1 %v944_v18  ;;  %v636_v41 = vpop.permute.xlu1 %635 }
 0x14b   : > { %v642_v24 = vsel %vm641_vm13, %v636_v41, %v1818_v37  ;;  %v866_v37 = vsel %vm629_vm14, %v1823_v60, %v1859_v31  ;;  %v862_v31 = vsel %vm629_vm14, %v1893_v59, %v1874_v10  ;;  %v1824_v60 = vunpack.i.h.bf16 %v2331_v47 }
 0x14c   : > { %v2401_v44 = vpop.permute.xlu0 %1876  ;;  %v923_v27 = vpack.c.bf16 %v2137_v14, %v642_v24 }
 0x14d   : > { %v1879_v15 = vunpack.i.h.bf16 %v2401_v44  ;;  %v2791_v13 = vunpack.i.l.bf16 %v2401_v44  ;;  %v2797_v36 = vunpack.i.l.bf16 %v2401_v44  ;;  %v2800_v44 = vunpack.i.h.bf16 %v2327_v56 }
 0x14e   : > { %983 = vmatpush.bf16.msra.mxu0 %v923_v27 }
 0x14f   : > { %v864_v41 = vsel %vm629_vm14, %v1879_v15, %v1854_v42  ;;  %v863_v14 = vsel %vm629_vm14, %v1874_v10, %v2791_v13  ;;  %v2421_v42 = vld [vmem:[%s2776_s4] sm:$0xff]  ;;  %v938_v15 = vpack.c.bf16 %v862_v31, %v860_v6  ;;  %v1888_v13 = vunpack.i.l.bf16 %v2389_v7 }
 0x150   : > { %v941_v18 = vpack.c.bf16 %v866_v37, %v864_v41  ;;  %v939_v24 = vpack.c.bf16 %v863_v14, %v861_v17  ;;  %v962_v4 = vunpack.c.h.b16 %v2421_v42  ;;  %v952_v37 = vpack.c.bf16 %v2342_v32, %v2342_v32  ;;  %v954_v32 = vld [vmem:[%s2777_s5] sm:$0xff] }
 0x151   : > { %v940_v57 = vpack.c.bf16 %v2797_v36, %v1873_v28  ;;  %v961_v30 = vunpack.c.l.b16 %v2421_v42 }
 0x152   : > { %998 = vmatpush.bf16.msra.mxu1 %v941_v18  ;;  %1025 = vmatpush.bf16.msra.mxu3 %v939_v24  ;;  %v2439_v59 = vpack.c.b16 %v962_v4, %v962_v4  ;;  %v978_v17 = vsel %vm970_vm15, %v952_v37, 0  ;;  %v1973_v18 = vmov 0   ;;  %v1894_v24 = vunpack.i.h.bf16 %v2394_v38  ;;  %v797_v37 = vpop.permute.xlu2 %796 }
 0x153   : > { %1900 = vset.pattern.permute.xlu1 %v1973_v18  ;;  %1901 = vset.pattern.permute.xlu0 %v1973_v18  ;;  %v949_v4 = vpack.c.bf16 %v1784_v19, %v1834_v62  ;;  %v946_v19 = vpack.c.bf16 %v1848_v8, %v1843_v16  ;;  %v1058_v62 = vld [vmem:[%s2775_s3] sm:$0x7]  ;;  %v912_v8 = vpack.c.bf16 %v2197_v46, %v2085_v1 }
 0x154   : > { %v2425_v27 = vpop.permute.xlu0 %1881  ;;  %957 = vperm.xlu1 %1900, %v954_v32   ;;  %v1060_v51 = vperm.slane %v1058_v62, 0  ;;  %v925_v16 = vpack.c.bf16 %v2130_v12, %v2800_v44  ;;  %v963_v43 = vpack.c.b16 %v961_v30, %v961_v30  ;;  %v2802_v1 = vpack.c.bf16 %v2172_v35, %v2169_v34 }
 0x155   : > { %v1884_v41 = vunpack.i.h.bf16 %v2425_v27  ;;  %v1883_v55 = vunpack.i.l.bf16 %v2425_v27  ;;  %v2803_v12 = vunpack.i.h.bf16 %v2261_v29 }
 0x156   : > { %999 = vmatpush.bf16.msra.mxu1 %v938_v15  ;;  %1063 = vrot.lane.b32.xlu2 %v1060_v51, %s1962_s19 }
 0x157   : > { %v857_v10 = vsel %vm629_vm14, %v1824_v60, %v1883_v55  ;;  %v859_v6 = vsel %vm629_vm14, %v1884_v41, %v1888_v13  ;;  %v937_v22 = vpack.c.bf16 %v1888_v13, %v1883_v55 }
 0x158   : > { %v936_v47 = vpack.c.bf16 %v859_v6, %v857_v10  ;;  %v858_v6 = vsel %vm629_vm14, %v797_v37, %v1884_v41 }
 0x15a   : > { %1026 = vmatpush.bf16.msra.mxu3 %v936_v47 }
 0x15c   : > { %v1897_v14 = vpop.permute.xlu0 %1896 }
 0x15d   : > { %v1899_v31 = vunpack.i.h.bf16 %v1897_v14  ;;  %v1898_v15 = vunpack.i.l.bf16 %v1897_v14  ;;  %1612 = vmatmul.msk.bf16.vlgmr.msra.gmra.mxu3 %vm966_vm0, %v2439_v59 }
 0x15e   : > { %1047 = vmatpush.bf16.msrb.mxu3 %v978_v17 }
 0x15f   : > { %v856_v10 = vsel %vm629_vm14, %v1899_v31, %v1824_v60  ;;  %v631_v47 = vsel %vm629_vm14, %v1894_v24, %v1898_v15  ;;  %v1062_v60 = vperm.slane %v1058_v62, 2  ;;  %v922_v46 = vpack.c.bf16 %v1898_v15, %v2803_v12 }
 0x160   : > { %v935_v38 = vpack.c.bf16 %v858_v6, %v856_v10  ;;  %v921_v17 = vpack.c.bf16 %v631_v47, %v2271_v52  ;;  %v1061_v52 = vperm.slane %v1058_v62, 1 }
 0x161   : > { %1067 = vrot.lane.b32.xlu1 %v1062_v60, %s1962_s19 }
 0x162   : > { %1048 = vmatpush.bf16.msrb.mxu3 %v949_v4  ;;  %1000 = vmatpush.bf16.msra.mxu1 %v935_v38 }
 0x163   : > { %1010 = vmatpush.bf16.msra.mxu2 %v921_v17  ;;  %1065 = vrot.lane.b32.xlu0 %v1061_v52, %s1962_s19 }
 0x164   : > { %v624_v41 = vpop.permute.xlu0 %623 }
 0x165   : > { %v630_v61 = vsel %vm629_vm14, %v624_v41, %v1894_v24  ;;  %1611 = vmatmul.msk.bf16.vlgmr.msra.gmra.mxu1 %vm966_vm0, %v2439_v59 }
 0x166   : > { %1032 = vmatpush.bf16.msrb.mxu1 %v934_v58  ;;  %1049 = vmatpush.bf16.msrb.mxu3 %v946_v19  ;;  %v920_v23 = vpack.c.bf16 %v630_v61, %v618_v63 }
 0x167   : > { %1011 = vmatpush.bf16.msra.mxu2 %v2796_v11 }
 0x168   : > { %984 = vmatpush.bf16.msra.mxu0 %v920_v23 }
 0x16a   : > { %1033 = vmatpush.bf16.msrb.mxu1 %v2325_v20  ;;  %1050 = vmatpush.bf16.msrb.mxu3 %v943_v50  ;;  %v2799_v20 = vpack.c.bf16 %v2159_v26, %v2206_v54 }
 0x16b   : > { %1012 = vmatpush.bf16.msra.mxu2 %v2798_v53 }
 0x16c   : > { %985 = vmatpush.bf16.msra.mxu0 %v2799_v20 }
 0x16e   : > { %1034 = vmatpush.bf16.msrb.mxu1 %v2296_v49  ;;  %1051 = vmatpush.bf16.msrb.mxu3 %v940_v57  ;;  %v2801_v49 = vunpack.i.h.bf16 %v2166_v33  ;;  %v2804_v33 = vunpack.i.l.bf16 %v2181_v40 }
 0x16f   : > { %1013 = vmatpush.bf16.msra.mxu2 %v912_v8 }
 0x170   : > { %v558_v26 = vsel %vm557_vm3, %v1683_v2, %v2801_v49  ;;  %986 = vmatpush.bf16.msra.mxu0 %v2802_v1  ;;  %v913_v34 = vpack.c.bf16 %v2804_v33, %v2093_v3 }
 0x171   : > { %v911_v54 = vpack.c.bf16 %v558_v26, %v2083_v0 }
 0x172   : > { %1035 = vmatpush.bf16.msrb.mxu1 %v925_v16  ;;  %1052 = vmatpush.bf16.msrb.mxu3 %v937_v22 }
 0x173   : > { %1014 = vmatmul.bf16.vlgmr.msra.gmra.mxu2 %v963_v43 }
 0x174   : > { %987 = vmatpush.bf16.msra.mxu0 %v911_v54 }
 0x175   : > { %1613 = vmatmul.msk.bf16.vlgmr.msrb.gmra.mxu3 %vm966_vm0, %v2439_v59 }
 0x176   : > { %1036 = vmatpush.bf16.msrb.mxu1 %v922_v46 }
 0x177   : > { %988 = vmatmul.bf16.vlgmr.msra.gmra.mxu0 %v963_v43 }
 0x17a   : > { %1037 = vmatpush.bf16.msrb.mxu1 %v2225_v5 }
 0x17e   : > { %1038 = vmatpush.bf16.msrb.mxu1 %v2190_v45 }
 0x182   : > { %1039 = vmatpush.bf16.msrb.mxu1 %v913_v34 }
 0x185   : > { %1040 = vmatmul.bf16.vlgmr.msrb.gmra.mxu1 %v963_v43 }
 0x1b0   : > { %v1064_v48 = vpop.permute.xlu2 %1063 }
 0x1c6   : > { %v958_v0 = vpop.permute.xlu1 %957 }
 0x1d3   : > { %v1068_v25 = vpop.permute.xlu1 %1067 }
 0x1d5   : > { %v1066_v39 = vpop.permute.xlu0 %1065 }
 0x1d6   : > { %v1069_v45 = vsel %vm593_vm4, %v1064_v48, %v1066_v39  ;;  %v1070_v40 = vsel %vm593_vm4, %v1066_v39, %v1068_v25 }
 0x1e0   : > { %v1028_v35 = vpop.f32.mrf.mxu3 }
 0x1e2   : > { %v1002_v29 = vpop.f32.mrf.mxu1 }
 0x1e8   : > { %v1030_v56 = vpop.f32.mrf.mxu3 }
 0x1ea   : > { %v1004_v21 = vpop.f32.mrf.mxu1 }
 0x1f4   : > { %v989_v7 = vpop.f32.mrf.mxu0 }
 0x1f5   : > { %v990_v13 = vadd.f32 %v989_v7, %v958_v0 }
 0x1f6   : > { %v1015_v28 = vpop.f32.mrf.mxu2 }
 0x1f7   : > { %v1016_v5 = vadd.f32 %v1015_v28, %v958_v0  ;;  %v1003_v3 = vadd.f32 %v1002_v29, %v990_v13 }
 0x1f8   : > { %v1054_v42 = vpop.f32.mrf.mxu3 }
 0x1f9   : > { %v1029_v27 = vadd.f32 %v1028_v35, %v1016_v5  ;;  %v1074_v55 = vmul.f32 %v1069_v45, %v1003_v3 }
 0x1fb   : > { %v1075_v59 = vmul.f32 %v1070_v40, %v1029_v27 }
 0x1fc   : > { %v991_v32 = vpop.f32.mrf.mxu0 }
 0x1fe   : > { %v1017_v14 = vpop.f32.mrf.mxu2 }
 0x200   : > { %v1056_v18 = vpop.f32.mrf.mxu3 }
 0x202   : > { %v1041_v24 = vpop.f32.mrf.mxu1 }
 0x203   : > { %v1042_v31 = vadd.f32 %v1041_v24, %v958_v0 }
 0x205   : > { %v1055_v15 = vadd.f32 %v1054_v42, %v1042_v31 }
 0x206   : > { %1080 = sbr.rel (%p1614_p9) target bundleno = 540 (0x21c), region = 56 }
 0x207   : > { %v1076_v4 = vmul.f32 %v1068_v25, %v1055_v15 }
 0x20a   : > { %v1043_v37 = vpop.f32.mrf.mxu1 }
 0x20b   : > { %vm1081_vm1 = vcmask 0   ;;  %v1974_v10 = vmov 0.0  }
 0x20c   : > { %1082 = vst.msk [vmem:[%s2070_s24] sm:$0x1] %vm1081_vm1, %v1974_v10 }
 0x20d   : > { %1083 = vst.msk [vmem:[%s2070_s24 + $0x1] sm:$0x1] %vm1081_vm1, %v1974_v10 }
 0x20e   : > { %1084 = vst.msk [vmem:[%s2070_s24 + $0x2] sm:$0x1] %vm1081_vm1, %v1974_v10 }
 0x20f   : > { %1085 = vst.msk [vmem:[%s2070_s24 + $0x3] sm:$0x1] %vm1081_vm1, %v1974_v10 }
 0x210   : > { %1086 = vst.msk [vmem:[%s2070_s24 + $0x4] sm:$0x1] %vm1081_vm1, %v1974_v10 }
 0x211   : > { %1087 = vst.msk [vmem:[%s2070_s24 + $0x5] sm:$0x1] %vm1081_vm1, %v1974_v10 }
 0x212   : > { %1088 = vst.msk [vmem:[%s2070_s24 + $0x6] sm:$0x1] %vm1081_vm1, %v1974_v10 }
 0x213   : > { %1089 = vst.msk [vmem:[%s2070_s24 + $0x7] sm:$0x1] %vm1081_vm1, %v1974_v10 }
 0x214   : > { %1090 = vst.msk [vmem:[%s2075_s27] sm:$0x1] %vm1081_vm1, %v1974_v10 }
 0x215   : > { %1091 = vst.msk [vmem:[%s2075_s27 + $0x1] sm:$0x1] %vm1081_vm1, %v1974_v10 }
 0x216   : > { %1092 = vst.msk [vmem:[%s2075_s27 + $0x2] sm:$0x1] %vm1081_vm1, %v1974_v10 }
 0x217   : > { %1093 = vst.msk [vmem:[%s2075_s27 + $0x3] sm:$0x1] %vm1081_vm1, %v1974_v10 }
 0x218   : > { %1094 = vst.msk [vmem:[%s2075_s27 + $0x4] sm:$0x1] %vm1081_vm1, %v1974_v10 }
 0x219   : > { %1095 = vst.msk [vmem:[%s2075_s27 + $0x5] sm:$0x1] %vm1081_vm1, %v1974_v10 }
 0x21a   : > { %1096 = vst.msk [vmem:[%s2075_s27 + $0x6] sm:$0x1] %vm1081_vm1, %v1974_v10 }
 0x21b   : > { %1097 = vst.msk [vmem:[%s2075_s27 + $0x7] sm:$0x1] %vm1081_vm1, %v1974_v10 }
 0x21c PF: > { %1201 = vrot.lane.b32.xlu1 %v1029_v27, %s1967_s14  ;;  %v1106_v6 = vadd.f32 %v1075_v59, %v1074_v55  ;;  %vm1107_vm2 = vcmask 244736   ;;  %v1154_v47 = vmul.f32 %v1074_v55, %v1074_v55  ;;  %v1155_v38 = vmul.f32 %v1075_v59, %v1075_v59  ;;  %1199 = vrot.lane.b32.xlu2 %v1003_v3, %s1967_s14  ;;  %v1098_v63 = vld [vmem:[%s2070_s24] sm:$0x1]  ;;  %v1099_v11 = vld [vmem:[%s2070_s24 + $0x1] sm:$0x1]  ;;  %p1615_p10 = scmp.ne.s32.totalorder %s1940_s13, 15 }
 0x21d   : > { %v1108_v17 = vsel %vm1107_vm2, %v1076_v4, 0.0  ;;  %v1156_v9 = vmul.f32 %v1076_v4, %v1076_v4  ;;  %vm1210_vm3 = vcmask 1047704   ;;  %v1975_v41 = vmov 0.0   ;;  %v1100_v23 = vld [vmem:[%s2070_s24 + $0x2] sm:$0x1] }
 0x21e   : > { %v1109_v58 = vadd.f32 %v1108_v17, %v1106_v6  ;;  %v1157_v19 = vadd.f32 %v1155_v38, %v1154_v47  ;;  %1195 = vst.msk [vmem:[%s2103_s21] sm:$0xff] %vm752_vm9, %v1975_v41  ;;  %v1101_v36 = vld [vmem:[%s2070_s24 + $0x3] sm:$0x1]  ;;  %vm1137_vm4 = vcmask 0   ;;  %v1102_v20 = vld [vmem:[%s2070_s24 + $0x4] sm:$0x1] }
 0x21f   : > { %v1158_v62 = vsel %vm1107_vm2, %v1156_v9, 0.0  ;;  %v1103_v16 = vld [vmem:[%s2070_s24 + $0x5] sm:$0x1]  ;;  %v1104_v1 = vld [vmem:[%s2070_s24 + $0x6] sm:$0x1]  ;;  %vm1213_vm5 = vcmask 400384  }
 0x220   : > { %1110 = vadd.xlane.f32.xlu0 %v1109_v58  ;;  %v1159_v52 = vadd.f32 %v1158_v62, %v1157_v19  ;;  %v1105_v54 = vld [vmem:[%s2070_s24 + $0x7] sm:$0x1]  ;;  %v1146_v0 = vld [vmem:[%s2075_s27] sm:$0x1]  ;;  %v1147_v21 = vld [vmem:[%s2075_s27 + $0x1] sm:$0x1] }
 0x221   : > { %v1148_v13 = vld [vmem:[%s2075_s27 + $0x2] sm:$0x1]  ;;  %vm1215_vm6 = vcmask 556424   ;;  %v1149_v42 = vld [vmem:[%s2075_s27 + $0x3] sm:$0x1] }
 0x222   : > { %v1150_v3 = vld [vmem:[%s2075_s27 + $0x4] sm:$0x1]  ;;  %v1151_v59 = vld [vmem:[%s2075_s27 + $0x5] sm:$0x1]  ;;  %v1152_v18 = vld [vmem:[%s2075_s27 + $0x6] sm:$0x1] }
 0x224   : > { %1203 = vrot.lane.b32.xlu1 %v1055_v15, %s1967_s14  ;;  %v1153_v15 = vld [vmem:[%s2075_s27 + $0x7] sm:$0x1] }
 0x228   : > { %1160 = vadd.xlane.f32.xlu0 %v1159_v52 }
 0x276   : > { %v1200_v60 = vpop.permute.xlu2 %1199 }
 0x277   : > { %1211 = vst.msk [vmem:[%s2103_s21] sm:$0xff] %vm1210_vm3, %v1200_v60 }
 0x28e   : > { %v1202_v51 = vpop.permute.xlu1 %1201 }
 0x28f   : > { %v1205_v61 = vsel %vm752_vm9, %v1200_v60, %v1202_v51 }
 0x290   : > { %1212 = vst [vmem:[%s2103_s21 + $0x8] sm:$0xff] %v1205_v61 }
 0x293   : > { %v1111_v50 = vpop.xlane.xlu0 %1110 }
 0x294   : > { %v1113_v57 = vperm.slane %v1111_v50, 0  ;;  %v1114_v30 = vperm.slane %v1111_v50, 1  ;;  %v1115_v53 = vperm.slane %v1111_v50, 2  ;;  %v1116_v2 = vperm.slane %v1111_v50, 3 }
 0x295   : > { %v1117_v8 = vperm.slane %v1111_v50, 4  ;;  %v1118_v44 = vperm.slane %v1111_v50, 5  ;;  %v1119_v22 = vperm.slane %v1111_v50, 6  ;;  %v1120_v12 = vperm.slane %v1111_v50, 7 }
 0x296   : > { %v1129_v43 = vadd.f32 %v1113_v57, %v1098_v63  ;;  %v1130_v49 = vadd.f32 %v1114_v30, %v1099_v11  ;;  %v1131_v26 = vadd.f32 %v1115_v53, %v1100_v23  ;;  %v1132_v46 = vadd.f32 %v1116_v2, %v1101_v36  ;;  %v1204_v29 = vpop.permute.xlu1 %1203 }
 0x297   : > { %v1133_v33 = vadd.f32 %v1117_v8, %v1102_v20  ;;  %v1134_v34 = vadd.f32 %v1118_v44, %v1103_v16  ;;  %v1135_v35 = vadd.f32 %v1119_v22, %v1104_v1  ;;  %v1136_v56 = vadd.f32 %v1120_v12, %v1105_v54 }
 0x298   : > { %1138 = vst.msk [vmem:[%s2070_s24] sm:$0x1] %vm1137_vm4, %v1129_v43  ;;  %v1206_v28 = vsel %vm752_vm9, %v1202_v51, %v1204_v29 }
 0x299   : > { %1139 = vst.msk [vmem:[%s2070_s24 + $0x1] sm:$0x1] %vm1137_vm4, %v1130_v49 }
 0x29a   : > { %1140 = vst.msk [vmem:[%s2070_s24 + $0x2] sm:$0x1] %vm1137_vm4, %v1131_v26 }
 0x29b   : > { %1141 = vst.msk [vmem:[%s2070_s24 + $0x3] sm:$0x1] %vm1137_vm4, %v1132_v46  ;;  %v1161_v39 = vpop.xlane.xlu0 %1160 }
 0x29c   : > { %1142 = vst.msk [vmem:[%s2070_s24 + $0x4] sm:$0x1] %vm1137_vm4, %v1133_v33  ;;  %v1163_v48 = vperm.slane %v1161_v39, 0  ;;  %v1164_v25 = vperm.slane %v1161_v39, 1  ;;  %v1165_v7 = vperm.slane %v1161_v39, 2  ;;  %v1166_v5 = vperm.slane %v1161_v39, 3 }
 0x29d   : > { %1143 = vst.msk [vmem:[%s2070_s24 + $0x5] sm:$0x1] %vm1137_vm4, %v1134_v34  ;;  %v1167_v45 = vperm.slane %v1161_v39, 4  ;;  %v1168_v27 = vperm.slane %v1161_v39, 5  ;;  %v1169_v32 = vperm.slane %v1161_v39, 6  ;;  %v1170_v24 = vperm.slane %v1161_v39, 7 }
 0x29e   : > { %1144 = vst.msk [vmem:[%s2070_s24 + $0x6] sm:$0x1] %vm1137_vm4, %v1135_v35  ;;  %v1179_v40 = vadd.f32 %v1163_v48, %v1146_v0  ;;  %v1180_v55 = vadd.f32 %v1164_v25, %v1147_v21  ;;  %v1181_v14 = vadd.f32 %v1165_v7, %v1148_v13  ;;  %v1182_v31 = vadd.f32 %v1166_v5, %v1149_v42 }
 0x29f   : > { %1145 = vst.msk [vmem:[%s2070_s24 + $0x7] sm:$0x1] %vm1137_vm4, %v1136_v56  ;;  %v1183_v4 = vadd.f32 %v1167_v45, %v1150_v3  ;;  %v1184_v37 = vadd.f32 %v1168_v27, %v1151_v59  ;;  %v1185_v10 = vadd.f32 %v1169_v32, %v1152_v18  ;;  %v1186_v6 = vadd.f32 %v1170_v24, %v1153_v15 }
 0x2a0   : > { %1214 = vst.msk [vmem:[%s2103_s21 + $0x10] sm:$0xff] %vm1213_vm5, %v1206_v28 }
 0x2a1   : > { %1216 = vst.msk [vmem:[%s2103_s21 + $0x10] sm:$0xff] %vm1215_vm6, %v1975_v41 }
 0x2a2   : > { %1187 = vst.msk [vmem:[%s2075_s27] sm:$0x1] %vm1137_vm4, %v1179_v40 }
 0x2a3   : > { %1188 = vst.msk [vmem:[%s2075_s27 + $0x1] sm:$0x1] %vm1137_vm4, %v1180_v55 }
 0x2a4   : > { %1189 = vst.msk [vmem:[%s2075_s27 + $0x2] sm:$0x1] %vm1137_vm4, %v1181_v14 }
 0x2a5   : > { %1190 = vst.msk [vmem:[%s2075_s27 + $0x3] sm:$0x1] %vm1137_vm4, %v1182_v31  ;;  %1220 = sbr.rel (%p1615_p10) target bundleno = 723 (0x2d3), region = 60 }
 0x2a6   : > { %1191 = vst.msk [vmem:[%s2075_s27 + $0x4] sm:$0x1] %vm1137_vm4, %v1183_v4 }
 0x2a7   : > { %1192 = vst.msk [vmem:[%s2075_s27 + $0x5] sm:$0x1] %vm1137_vm4, %v1184_v37 }
 0x2a8   : > { %1193 = vst.msk [vmem:[%s2075_s27 + $0x6] sm:$0x1] %vm1137_vm4, %v1185_v10 }
 0x2a9   : > { %1194 = vst.msk [vmem:[%s2075_s27 + $0x7] sm:$0x1] %vm1137_vm4, %v1186_v6 }
 0x2aa   : > { %v1221_v47 = vld [vmem:[%s2070_s24] sm:$0x1]  ;;  %v1222_v38 = vld [vmem:[%s2070_s24 + $0x1] sm:$0x1]  ;;  %v1223_v17 = vld [vmem:[%s2070_s24 + $0x2] sm:$0x1] }
 0x2ab   : > { %v1237_v9 = vmul.f32 0.00024414063, %v1221_v47  ;;  %v1238_v58 = vmul.f32 0.00024414063, %v1222_v38  ;;  %v1224_v19 = vld [vmem:[%s2070_s24 + $0x3] sm:$0x1]  ;;  %v1239_v62 = vmul.f32 0.00024414063, %v1223_v17 }
 0x2ac   : > { %v1225_v52 = vld [vmem:[%s2070_s24 + $0x4] sm:$0x1]  ;;  %v1240_v60 = vmul.f32 0.00024414063, %v1224_v19  ;;  %v1226_v41 = vld [vmem:[%s2070_s24 + $0x5] sm:$0x1] }
 0x2ad   : > { %1269 = vst.msk [vmem:[%s2070_s24] sm:$0x1] %vm1137_vm4, %v1237_v9  ;;  %v1253_v51 = vmul.f32 %v1237_v9, %v1237_v9  ;;  %v1241_v61 = vmul.f32 0.00024414063, %v1225_v52  ;;  %v1227_v50 = vld [vmem:[%s2070_s24 + $0x6] sm:$0x1]  ;;  %v1254_v63 = vmul.f32 %v1238_v58, %v1238_v58  ;;  %v1255_v36 = vmul.f32 %v1239_v62, %v1239_v62 }
 0x2ae   : > { %1270 = vst.msk [vmem:[%s2070_s24 + $0x1] sm:$0x1] %vm1137_vm4, %v1238_v58  ;;  %v1228_v11 = vld [vmem:[%s2070_s24 + $0x7] sm:$0x1]  ;;  %v1229_v23 = vld [vmem:[%s2075_s27] sm:$0x1]  ;;  %v1256_v2 = vmul.f32 %v1240_v60, %v1240_v60 }
 0x2af   : > { %1271 = vst.msk [vmem:[%s2070_s24 + $0x2] sm:$0x1] %vm1137_vm4, %v1239_v62  ;;  %v1242_v57 = vmul.f32 0.00024414063, %v1226_v41  ;;  %v1245_v30 = vmul.f32 0.00024414063, %v1229_v23  ;;  %v1230_v53 = vld [vmem:[%s2075_s27 + $0x1] sm:$0x1]  ;;  %v1257_v16 = vmul.f32 %v1241_v61, %v1241_v61 }
 0x2b0   : > { %1272 = vst.msk [vmem:[%s2070_s24 + $0x3] sm:$0x1] %vm1137_vm4, %v1240_v60  ;;  %v1243_v20 = vmul.f32 0.00024414063, %v1227_v50  ;;  %v1246_v8 = vmul.f32 0.00024414063, %v1230_v53  ;;  %v1231_v44 = vld [vmem:[%s2075_s27 + $0x2] sm:$0x1] }
 0x2b1   : > { %1273 = vst.msk [vmem:[%s2070_s24 + $0x4] sm:$0x1] %vm1137_vm4, %v1241_v61  ;;  %v1244_v22 = vmul.f32 0.00024414063, %v1228_v11  ;;  %v1261_v43 = vsub.f32 %v1245_v30, %v1253_v51  ;;  %v1247_v49 = vmul.f32 0.00024414063, %v1231_v44  ;;  %v1232_v26 = vld [vmem:[%s2075_s27 + $0x3] sm:$0x1]  ;;  %v1258_v35 = vmul.f32 %v1242_v57, %v1242_v57 }
 0x2b2   : > { %1274 = vst.msk [vmem:[%s2070_s24 + $0x5] sm:$0x1] %vm1137_vm4, %v1242_v57  ;;  %v1262_v1 = vsub.f32 %v1246_v8, %v1254_v63  ;;  %v1248_v12 = vmul.f32 0.00024414063, %v1232_v26  ;;  %v1233_v46 = vld [vmem:[%s2075_s27 + $0x4] sm:$0x1]  ;;  %v1259_v39 = vmul.f32 %v1243_v20, %v1243_v20 }
 0x2b3   : > { %1275 = vst.msk [vmem:[%s2070_s24 + $0x6] sm:$0x1] %vm1137_vm4, %v1243_v20  ;;  %v2647_v54 = vadd.f32 1e-05, %v1261_v43  ;;  %v1263_v33 = vsub.f32 %v1247_v49, %v1255_v36  ;;  %v1249_v34 = vmul.f32 0.00024414063, %v1233_v46  ;;  %v1260_v28 = vmul.f32 %v1244_v22, %v1244_v22 }
 0x2b4   : > { %1276 = vst.msk [vmem:[%s2070_s24 + $0x7] sm:$0x1] %vm1137_vm4, %v1244_v22  ;;  %v2649_v29 = vadd.f32 1e-05, %v1262_v1  ;;  %v1264_v56 = vsub.f32 %v1248_v12, %v1256_v2  ;;  %v1234_v0 = vld [vmem:[%s2075_s27 + $0x5] sm:$0x1] }
 0x2b5   : > { %v1235_v21 = vld [vmem:[%s2075_s27 + $0x6] sm:$0x1]  ;;  %1902 = vrsqrt.f32 %v2647_v54  ;;  %v2654_v48 = vadd.f32 1e-05, %v1263_v33  ;;  %v1265_v25 = vsub.f32 %v1249_v34, %v1257_v16  ;;  %v1236_v7 = vld [vmem:[%s2075_s27 + $0x7] sm:$0x1]  ;;  %vm1291_vm7 = vweird.f32 %v2647_v54 }
 0x2b6   : > { %1904 = vrsqrt.f32 %v2649_v29  ;;  %v2658_v13 = vadd.f32 1e-05, %v1264_v56  ;;  %v1250_v5 = vmul.f32 0.00024414063, %v1234_v0  ;;  %v1251_v45 = vmul.f32 0.00024414063, %v1235_v21 }
 0x2b7   : > { %1906 = vrsqrt.f32 %v2654_v48  ;;  %v2661_v42 = vadd.f32 1e-05, %v1265_v25  ;;  %v1252_v3 = vmul.f32 0.00024414063, %v1236_v7  ;;  %vm1301_vm8 = vweird.f32 %v2649_v29 }
 0x2b8   : > { %1908 = vrsqrt.f32 %v2658_v13  ;;  %v1266_v40 = vsub.f32 %v1250_v5, %v1258_v35  ;;  %v1267_v27 = vsub.f32 %v1251_v45, %v1259_v39  ;;  %vm1311_vm9 = vweird.f32 %v2654_v48 }
 0x2b9   : > { %1910 = vrsqrt.f32 %v2661_v42  ;;  %v1268_v59 = vsub.f32 %v1252_v3, %v1260_v28  ;;  %vm1321_vm10 = vweird.f32 %v2658_v13  ;;  %vm1331_vm11 = vweird.f32 %v2661_v42 }
 0x2ba   : > { %v2665_v55 = vadd.f32 1e-05, %v1266_v40  ;;  %v2668_v14 = vadd.f32 1e-05, %v1267_v27 }
 0x2bb   : > { %v1903_v32 = vpop.eup %1902  ;;  %v2679_v6 = vadd.f32 1e-05, %v1268_v59 }
 0x2bc   : > { %v1905_v18 = vpop.eup %1904  ;;  %v1286_v24 = vmul.f32 %v1903_v32, %v2647_v54  ;;  %1912 = vrsqrt.f32 %v2665_v55  ;;  %vm1292_vm12 = vweird.f32 %v1903_v32  ;;  %vm1341_vm14 = vweird.f32 %v2665_v55 }
 0x2bd   : > { %v1907_v31 = vpop.eup %1906  ;;  %v1296_v15 = vmul.f32 %v1905_v18, %v2649_v29  ;;  %1914 = vrsqrt.f32 %v2668_v14  ;;  %vm1302_vm13 = vweird.f32 %v1905_v18  ;;  %vm1351_vm15 = vweird.f32 %v2668_v14  ;;  %vm2689_vm2 = vmor %vm1291_vm7, %vm1292_vm12 }
 0x2be   : > { %v1909_v4 = vpop.eup %1908  ;;  %v1287_v37 = vmul.f32 %v1903_v32, %v1286_v24  ;;  %v1306_v10 = vmul.f32 %v1907_v31, %v2654_v48  ;;  %vm1312_vm0 = vweird.f32 %v1907_v31  ;;  %1916 = vrsqrt.f32 %v2679_v6  ;;  %vm2697_vm5 = vmor %vm1301_vm8, %vm1302_vm13 }
 0x2bf   : > { %v1911_v47 = vpop.eup %1910  ;;  %v1297_v38 = vmul.f32 %v1905_v18, %v1296_v15  ;;  %v1316_v17 = vmul.f32 %v1909_v4, %v2658_v13  ;;  %vm1322_vm1 = vweird.f32 %v1909_v4  ;;  %vm2705_vm6 = vmor %vm1311_vm9, %vm1312_vm0  ;;  %vm1361_vm13 = vweird.f32 %v2679_v6 }
 0x2c0   : > { %v1288_v9 = vmul.f32 0.5, %v1287_v37  ;;  %v1307_v58 = vmul.f32 %v1907_v31, %v1306_v10  ;;  %v1326_v19 = vmul.f32 %v1911_v47, %v2661_v42  ;;  %vm1332_vm3 = vweird.f32 %v1911_v47  ;;  %vm2714_vm8 = vmor %vm1321_vm10, %vm1322_vm1 }
 0x2c1   : > { %v1298_v62 = vmul.f32 0.5, %v1297_v38  ;;  %v1317_v52 = vmul.f32 %v1909_v4, %v1316_v17  ;;  %vm2725_vm9 = vmor %vm1331_vm11, %vm1332_vm3 }
 0x2c2   : > { %v1913_v60 = vpop.eup %1912  ;;  %v1289_v41 = vsub.f32 1.5, %v1288_v9  ;;  %v1308_v51 = vmul.f32 0.5, %v1307_v58  ;;  %v1327_v61 = vmul.f32 %v1911_v47, %v1326_v19 }
 0x2c3   : > { %v1915_v50 = vpop.eup %1914  ;;  %v1299_v11 = vsub.f32 1.5, %v1298_v62  ;;  %v1318_v23 = vmul.f32 0.5, %v1317_v52  ;;  %v1336_v36 = vmul.f32 %v1913_v60, %v2665_v55  ;;  %vm1342_vm7 = vweird.f32 %v1913_v60 }
 0x2c4   : > { %v1290_v57 = vmul.f32 %v1903_v32, %v1289_v41  ;;  %v1309_v53 = vsub.f32 1.5, %v1308_v51  ;;  %v1328_v2 = vmul.f32 0.5, %v1327_v61  ;;  %v1346_v20 = vmul.f32 %v1915_v50, %v2668_v14  ;;  %v1917_v46 = vpop.eup %1916  ;;  %vm1343_vm11 = vmor %vm1341_vm14, %vm1342_vm7 }
 0x2c5   : > { %v1300_v8 = vmul.f32 %v1905_v18, %v1299_v11  ;;  %v1319_v16 = vsub.f32 1.5, %v1318_v23  ;;  %v1337_v22 = vmul.f32 %v1913_v60, %v1336_v36  ;;  %vm1352_vm10 = vweird.f32 %v1915_v50 }
 0x2c6   : > { %v1294_v43 = vsel %vm2689_vm2, %v1903_v32, %v1290_v57  ;;  %v1310_v49 = vmul.f32 %v1907_v31, %v1309_v53  ;;  %v1329_v1 = vsub.f32 1.5, %v1328_v2  ;;  %v1347_v12 = vmul.f32 %v1915_v50, %v1346_v20  ;;  %vm1353_vm12 = vmor %vm1351_vm15, %vm1352_vm10 }
 0x2c7   : > { %1365 = vst.msk [vmem:[%s2075_s27] sm:$0x1] %vm1137_vm4, %v1294_v43  ;;  %v1304_v54 = vsel %vm2697_vm5, %v1905_v18, %v1300_v8  ;;  %v1320_v33 = vmul.f32 %v1909_v4, %v1319_v16  ;;  %v1338_v35 = vmul.f32 0.5, %v1337_v22  ;;  %v1356_v21 = vmul.f32 %v1917_v46, %v2679_v6 }
 0x2c8   : > { %1366 = vst.msk [vmem:[%s2075_s27 + $0x1] sm:$0x1] %vm1137_vm4, %v1304_v54  ;;  %v1314_v29 = vsel %vm2705_vm6, %v1907_v31, %v1310_v49  ;;  %v1330_v56 = vmul.f32 %v1911_v47, %v1329_v1  ;;  %v1348_v0 = vmul.f32 0.5, %v1347_v12  ;;  %vm1362_vm0 = vweird.f32 %v1917_v46 }
 0x2c9   : > { %1367 = vst.msk [vmem:[%s2075_s27 + $0x2] sm:$0x1] %vm1137_vm4, %v1314_v29  ;;  %v1324_v39 = vsel %vm2714_vm8, %v1909_v4, %v1320_v33  ;;  %v1339_v48 = vsub.f32 1.5, %v1338_v35  ;;  %v1357_v28 = vmul.f32 %v1917_v46, %v1356_v21  ;;  %vm1363_vm14 = vmor %vm1361_vm13, %vm1362_vm0 }
 0x2ca   : > { %1368 = vst.msk [vmem:[%s2075_s27 + $0x3] sm:$0x1] %vm1137_vm4, %v1324_v39  ;;  %v1334_v25 = vsel %vm2725_vm9, %v1911_v47, %v1330_v56  ;;  %v1349_v7 = vsub.f32 1.5, %v1348_v0 }
 0x2cb   : > { %1369 = vst.msk [vmem:[%s2075_s27 + $0x4] sm:$0x1] %vm1137_vm4, %v1334_v25  ;;  %v1340_v13 = vmul.f32 %v1913_v60, %v1339_v48  ;;  %v1358_v42 = vmul.f32 0.5, %v1357_v28 }
 0x2cc   : > { %v1350_v5 = vmul.f32 %v1915_v50, %v1349_v7 }
 0x2cd   : > { %v1344_v45 = vsel %vm1343_vm11, %v1913_v60, %v1340_v13  ;;  %v1359_v3 = vsub.f32 1.5, %v1358_v42 }
 0x2ce   : > { %1370 = vst.msk [vmem:[%s2075_s27 + $0x5] sm:$0x1] %vm1137_vm4, %v1344_v45  ;;  %v1354_v40 = vsel %vm1353_vm12, %v1915_v50, %v1350_v5 }
 0x2cf   : > { %1371 = vst.msk [vmem:[%s2075_s27 + $0x6] sm:$0x1] %vm1137_vm4, %v1354_v40  ;;  %v1360_v27 = vmul.f32 %v1917_v46, %v1359_v3 }
 0x2d1   : > { %v1364_v55 = vsel %vm1363_vm14, %v1917_v46, %v1360_v27 }
 0x2d2   : > { %1372 = vst.msk [vmem:[%s2075_s27 + $0x7] sm:$0x1] %vm1137_vm4, %v1364_v55 }
 0x2d3 PF: > { %s21_s6 = sadd.s32 1, %s1956_s6   ;;  %s2815_s13 = smov %s1948_s15 }
 0x2d4   : > { %p18_p11 = scmp.ge.s32.totalorder %s21_s6, 34   ;;  %s2816_s14 = smov %s1952_s16 }
 0x2d5   : > { %s2817_s15 = smov %s2820_s7  ;;  %s2818_s16 = smov %s2824_s17 }
 0x2d6   :  { %20 = sbr.rel (!%p18_p11) target bundleno = 3 (0x3), region = 126 }

// kernel: encoder_block_forward.4
= control target key start
LH: loop header
LB: loop body
LE: loop exit
PB: predicated region body
PF: predicated region fallthrough
CT: control target
= control target key end

     0   :  { %s2396_s13 = smov 0   ;;  %s2398_s14 = smov 0   ;;  %s3427_s0 = inlined_call_operand.vmem [shape: f32[2,18,8,324], index: 0, kind: input, shape index: {}, may-alias: {0,1,2}]   ;;  %s3428_s1 = inlined_call_operand.vmem [shape: f32[2,18,8,324], index: 1, kind: input, shape index: {}, may-alias: {0,1,2}]   ;;  %s3429_s2 = inlined_call_operand.vmem [shape: f32[2,18,8,324], index: 2, kind: input, shape index: {}, may-alias: {0,1,2}]   ;;  %s3430_s3 = inlined_call_operand.vmem [shape: f32[1,324], index: 3, kind: input, shape index: {}]   ;;  %s3431_s4 = inlined_call_operand.vmem [shape: bf16[8,216], index: 4, kind: input, shape index: {}]   ;;  %s3432_s5 = inlined_call_operand.vmem [shape: f32[8,1], index: 5, kind: input, shape index: {}]   ;;  %s3433_s6 = inlined_call_operand.vmem [shape: f32[2,8,1,1], index: 6, kind: input, shape index: {}]   ;;  %s3434_s7 = inlined_call_operand.vmem [shape: f32[2,8,1,1], index: 7, kind: input, shape index: {}]   ;;  %s3435_s8 = inlined_call_operand.vmem [shape: f32[2,18,8,324], index: 8, kind: output, shape index: {0}]   ;;  %s3436_s9 = inlined_call_operand.vmem [shape: f32[2,8,1,1], index: 9, kind: output, shape index: {1}]   ;;  %s3437_s10 = inlined_call_operand.vmem [shape: f32[2,8,1,1], index: 10, kind: output, shape index: {2}]  }
   0x1   :  { %s2400_s15 = smov 0   ;;  %s2402_s16 = smov 0  }
   0x2   :  { %s2404_s17 = smov 0  }
   0x3 LB: > { %s30_s18 = sadd.s32 1, %s2312_s15  ;;  %s33_s19 = sadd.s32 1, %s2316_s16  ;;  %s2320_s17 = sphi %s2404_s17, %s21_s17   ;;  %s2316_s16 = sphi %s2402_s16, %s3541_s16   ;;  %s2312_s15 = sphi %s2400_s15, %s3540_s15   ;;  %s2308_s14 = sphi %s2398_s14, %s3539_s14   ;;  %s2304_s13 = sphi %s2396_s13, %s3538_s13  }
   0x4   : > { %p31_p0 = scmp.ge.s32.totalorder %s30_s18, 16  ;;  %p1943_p1 = scmp.ge.s32.totalorder %s2320_s17, 1 }
   0x5   : > { %p397_p2 = scmp.lt.s32.totalorder %s2320_s17, 33 }
   0x6   : > { %s3543_s18 = smov (%p31_p0, %s30_s18), 0  ;;  %s3545_s19 = smov (!%p31_p0, %s33_s19), %s2316_s16 }
   0x7   : > { %p398_p3 = pnand %p1943_p1, %p397_p2  ;;  %p35_p4 = scmp.ge.s32.totalorder %s3545_s19, 2 }
   0x9   : > { %s3547_s19 = smov (%p35_p4, %s3545_s19), 0  ;;  %401 = sbr.rel (%p398_p3) target bundleno = 914 (0x392), region = 52 }
   0xe   : > { %v2322_v0 = vmov 0   ;;  %p480_p5 = scmp.lt.s32.totalorder %s2308_s14, 1  ;;  %p566_p7 = scmp.ge.s32.totalorder %s2304_s13, 1  ;;  %v2531_v50 = vld [vmem:[%s3430_s3] sm:$0x7] }
   0xf   : > { %2045 = vset.pattern.permute.xlu2 %v2322_v0  ;;  %2044 = vset.pattern.permute.xlu1 %v2322_v0  ;;  %p567_p8 = scmp.le.s32.totalorder %s2304_s13, 16  ;;  %p482_p9 = scmp.lt.s32.totalorder %s2304_s13, 17  ;;  %vm565_vm0 = vcmp.gt.f32.partialorder %v2531_v50, 0.5 }
  0x10   : > { %2043 = vset.pattern.permute.xlu0 %v2322_v0  ;;  %s3549_s14 = smov (!%p480_p5, %s2308_s14), 1  ;;  %s3439_s27 = smov 92  }
  0x11   : > { %s1947_s20 = sshll.u32 %s3549_s14, 3  ;;  %p2511_p10 = pnand %p567_p8, %p566_p7 }
  0x12   : > { %s514_s23 = scalar_lea.vmem %s3433_s6, %s1947_s20  ;;  %s2440_s26 = scalar_lea.vmem %s3436_s9, %s1947_s20 }
  0x13   : > { %s2445_s29 = scalar_lea.vmem %s3437_s10, %s1947_s20  ;;  %v552_v1 = vld [vmem:[%s514_s23 + $0x4] sm:$0x1]  ;;  %v550_v2 = vld [vmem:[%s514_s23 + $0x2] sm:$0x1]  ;;  %v548_v3 = vld [vmem:[%s514_s23] sm:$0x1]  ;;  %s518_s12 = scalar_lea.vmem %s3434_s7, %s1947_s20 }
  0x14   : > { %600 = vperm.xlu2 %2045, %v552_v1   ;;  %588 = vperm.xlu1 %2044, %v550_v2   ;;  %v553_v4 = vld [vmem:[%s514_s23 + $0x5] sm:$0x1]  ;;  %v551_v5 = vld [vmem:[%s514_s23 + $0x3] sm:$0x1]  ;;  %v549_v6 = vld [vmem:[%s514_s23 + $0x1] sm:$0x1] }
  0x15   : > { %576 = vperm.xlu0 %2043, %v548_v3   ;;  %v556_v7 = vld [vmem:[%s518_s12] sm:$0x1]  ;;  %v555_v8 = vld [vmem:[%s514_s23 + $0x7] sm:$0x1]  ;;  %v554_v9 = vld [vmem:[%s514_s23 + $0x6] sm:$0x1] }
  0x16   : > { %v559_v10 = vld [vmem:[%s518_s12 + $0x3] sm:$0x1]  ;;  %v558_v11 = vld [vmem:[%s518_s12 + $0x2] sm:$0x1]  ;;  %v557_v12 = vld [vmem:[%s518_s12 + $0x1] sm:$0x1] }
  0x17   : > { %v562_v13 = vld [vmem:[%s518_s12 + $0x6] sm:$0x1]  ;;  %v561_v14 = vld [vmem:[%s518_s12 + $0x5] sm:$0x1]  ;;  %v560_v15 = vld [vmem:[%s518_s12 + $0x4] sm:$0x1] }
  0x18   : > { %v563_v16 = vld [vmem:[%s518_s12 + $0x7] sm:$0x1]  ;;  %s2451_s20 = sadd.s32 1, %s2304_s13  ;;  %s2456_s23 = smul.u32 54, %s3549_s14 }
  0x19   : > { %p492_p6 = scmp.lt.s32.totalorder %s2451_s20, 17  ;;  %p748_p11 = scmp.ge.s32.totalorder %s2451_s20, 1 }
  0x1a   : > { %s483_s11 = scalar_select %p482_p9, %s2304_s13, 17 }
  0x1b   : > { %s493_s21 = scalar_select %p492_p6, %s2451_s20, 17 }
  0x1c   : > { %606 = vperm.xlu2 %2045, %v553_v4   ;;  %594 = vperm.xlu1 %2044, %v551_v5   ;;  %s1952_s12 = scalar_select %p2511_p10, 0, 1 }
  0x1d   : > { %582 = vperm.xlu0 %2043, %v549_v6   ;;  %s1982_s22 = smul.u32 3, %s493_s21  ;;  %p749_p12 = scmp.le.s32.totalorder %s2451_s20, 16 }
  0x1e   : > { %s1980_s21 = smul.u32 3, %s483_s11  ;;  %v571_v51 = vstv %s1952_s12  ;;  %s2323_s20 = smov 110  }
  0x1f   : > { %s2459_s24 = sadd.s32 %s1982_s22, %s2456_s23  ;;  %vm572_vm1 = vcmp.eq.s32.totalorder %v571_v51, 1  ;;  %p750_p13 = pnand %p749_p12, %p748_p11 }
  0x20   : > { %s3438_s25 = sshll.u32 %s2459_s24, 3  ;;  %s486_s28 = sadd.s32 %s2456_s23, %s1980_s21  ;;  %vm573_vm2 = vmand %vm572_vm1, %vm565_vm0  ;;  %vm908_vm1 = vcmask 1031168  }
  0x21   : > { %s2467_s30 = scalar_lea.vmem %s3435_s8, %s3438_s25  ;;  %s1944_s14 = sshll.u32 %s486_s28, 3  ;;  %v2546_v54 = vsel %vm573_vm2, 1, %v2322_v0  ;;  %vm896_vm2 = vcmask 1039360  }
  0x22   : > { %s2543_s22 = scalar_lea.vmem %s3427_s0, %s1944_s14  ;;  %v738_v57 = vperm.slane %v2546_v54, 0  ;;  %v739_v58 = vperm.slane %v2546_v54, 1  ;;  %s2324_s25 = smov 126  }
  0x23   : > { %v539_v55 = vld [vmem:[%s2543_s22] sm:$0xff]  ;;  %v540_v56 = vld [vmem:[%s2543_s22 + $0x8] sm:$0xff]  ;;  %s2325_s12 = smov 127   ;;  %s3441_s28 = smov 108  }
  0x24   : > { %656 = vperm.xlu2 %2045, %v556_v7   ;;  %618 = vperm.xlu1 %2044, %v555_v8   ;;  %vm2557_vm3 = vcmp.eq.s32.totalorder %v738_v57, 1  ;;  %vm2561_vm4 = vcmp.eq.s32.totalorder %v739_v58, 1  ;;  %s1953_s21 = scalar_select %p750_p13, 0, 1 }
  0x25   : > { %612 = vperm.xlu0 %2043, %v554_v9   ;;  %s2328_s14 = smov 109   ;;  %s3474_s11 = sshll.u32 %s2459_s24, 3 }
  0x26   : > { %s500_s24 = sadd.s32 2, %s2304_s13  ;;  %p1976_p4 = scmp.ne.s32.totalorder %s2304_s13, 0 }
  0x27   : > { %p818_p0 = scmp.ge.s32.totalorder %s500_s24, 1  ;;  %p819_p1 = scmp.le.s32.totalorder %s500_s24, 16 }
  0x28   : > { %p503_p2 = scmp.lt.s32.totalorder %s500_s24, 17 }
  0x29   : > { %p2668_p3 = pnand %p819_p1, %p818_p0 }
  0x2a   : > { %s3551_s24 = smov (!%p503_p2, %s500_s24), 17 }
  0x2c   : > { %674 = vperm.xlu2 %2045, %v559_v10   ;;  %668 = vperm.xlu1 %2044, %v558_v11  }
  0x2d   : > { %662 = vperm.xlu0 %2043, %v557_v12  }
  0x34   : > { %692 = vperm.xlu2 %2045, %v562_v13   ;;  %686 = vperm.xlu1 %2044, %v561_v14   ;;  %v753_v13 = vstv %s1953_s21  ;;  %v541_v14 = vld [vmem:[%s2543_s22 + $0x10] sm:$0xff]  ;;  %s3486_s21 = smov 108  }
  0x35   : > { %680 = vperm.xlu0 %2043, %v560_v15   ;;  %vm754_vm5 = vcmp.eq.s32.totalorder %v753_v13, 1 }
  0x36   : > { %vm755_vm6 = vmand %vm754_vm5, %vm565_vm0  ;;  %vm944_vm5 = vcmask 883712  }
  0x37   : > { %v807_v15 = vsel %vm755_vm6, 1, %v2322_v0  ;;  %vm932_vm6 = vcmask 891904  }
  0x3d   : > { %698 = vperm.xlu0 %2043, %v563_v16  }
  0x6e   : > { %v601_v17 = vpop.permute.xlu2 %600 }
  0x6f   : > { %v2469_v18 = vperm.slane %v601_v17, 0 }
  0x71   : > { %638 = vst [vmem:[#allocation1 + $0x4] ss:$9 sm:$0xff] %v2469_v18 }
  0x76   : > { %v607_v19 = vpop.permute.xlu2 %606 }
  0x77   : > { %v2472_v20 = vperm.slane %v607_v19, 0 }
  0x79   : > { %640 = vst [vmem:[#allocation1 + $0x5] ss:$9 sm:$0xff] %v2472_v20 }
  0x7e   : > { %v657_v25 = vpop.permute.xlu2 %656 }
  0x7f   : > { %v2498_v39 = vperm.slane %v657_v25, 0  ;;  %v809_v25 = vperm.slane %v807_v15, 1 }
  0x81   : > { %vm2628_vm8 = vcmp.eq.s32.totalorder %v809_v25, 1 }
  0x86   : > { %v589_v21 = vpop.permute.xlu1 %588  ;;  %v675_v30 = vpop.permute.xlu2 %674 }
  0x87   : > { %v2475_v22 = vperm.slane %v589_v21, 0  ;;  %v577_v23 = vpop.permute.xlu0 %576  ;;  %v2504_v44 = vperm.slane %v675_v30, 0 }
  0x88   : > { %v2477_v24 = vperm.slane %v577_v23, 0  ;;  %v740_v23 = vperm.slane %v2546_v54, 2 }
  0x89   : > { %634 = vst [vmem:[#allocation1 + $0x2] ss:$9 sm:$0xff] %v2475_v22 }
  0x8a   : > { %630 = vst [vmem:[#allocation1] ss:$9 sm:$0xff] %v2477_v24  ;;  %vm2624_vm7 = vcmp.eq.s32.totalorder %v740_v23, 1 }
  0x8e   : > { %v595_v26 = vpop.permute.xlu1 %594  ;;  %v693_v35 = vpop.permute.xlu2 %692 }
  0x8f   : > { %v2481_v27 = vperm.slane %v595_v26, 0  ;;  %v583_v28 = vpop.permute.xlu0 %582  ;;  %v2495_v38 = vperm.slane %v693_v35, 0 }
  0x90   : > { %v2483_v29 = vperm.slane %v583_v28, 0  ;;  %v808_v28 = vperm.slane %v807_v15, 0 }
  0x91   : > { %636 = vst [vmem:[#allocation1 + $0x3] ss:$9 sm:$0xff] %v2481_v27 }
  0x92   : > { %632 = vst [vmem:[#allocation1 + $0x1] ss:$9 sm:$0xff] %v2483_v29  ;;  %vm2632_vm9 = vcmp.eq.s32.totalorder %v808_v28, 1 }
  0x96   : > { %v619_v31 = vpop.permute.xlu1 %618 }
  0x97   : > { %v2487_v32 = vperm.slane %v619_v31, 0  ;;  %v613_v33 = vpop.permute.xlu0 %612 }
  0x98   : > { %v2489_v34 = vperm.slane %v613_v33, 0 }
  0x99   : > { %644 = vst [vmem:[#allocation1 + $0x7] ss:$9 sm:$0xff] %v2487_v32 }
  0x9a   : > { %642 = vst [vmem:[#allocation1 + $0x6] ss:$9 sm:$0xff] %v2489_v34 }
  0x9e   : > { %v669_v36 = vpop.permute.xlu1 %668 }
  0x9f   : > { %v663_v37 = vpop.permute.xlu0 %662  ;;  %v2502_v43 = vperm.slane %v669_v36, 0 }
  0xa0   : > { %v2507_v45 = vperm.slane %v663_v37, 0 }
  0xa1   : > { %v645_v40 = vld [vmem:[#allocation1] sm:$0xff]  ;;  %v646_v41 = vld [vmem:[#allocation1 + $0x9] sm:$0xff]  ;;  %v2500_v42 = vld [vmem:[#allocation1 + $0x12] sm:$0xff] }
  0xa2   : > { %722 = vst [vmem:[#allocation1 + $0x6] ss:$9 sm:$0xff] %v2495_v38  ;;  %v651_v59 = vsub.f32 %v539_v55, %v645_v40  ;;  %v652_v60 = vsub.f32 %v540_v56, %v646_v41  ;;  %v653_v16 = vsub.f32 %v541_v14, %v2500_v42  ;;  %v810_v55 = vperm.slane %v807_v15, 2 }
  0xa3   : > { %710 = vst [vmem:[#allocation1] ss:$9 sm:$0xff] %v2498_v39 }
  0xa4   : > { %716 = vst [vmem:[#allocation1 + $0x3] ss:$9 sm:$0xff] %v2504_v44  ;;  %vm2674_vm10 = vcmp.eq.s32.totalorder %v810_v55, 1 }
  0xa5   : > { %714 = vst [vmem:[#allocation1 + $0x2] ss:$9 sm:$0xff] %v2502_v43 }
  0xa6   : > { %712 = vst [vmem:[#allocation1 + $0x1] ss:$9 sm:$0xff] %v2507_v45  ;;  %v687_v46 = vpop.permute.xlu1 %686 }
  0xa7   : > { %v2522_v47 = vperm.slane %v687_v46, 0  ;;  %v681_v48 = vpop.permute.xlu0 %680  ;;  %v3476_v46 = vmov 0 }
  0xa8   : > { %v2524_v49 = vperm.slane %v681_v48, 0  ;;  %v3477_v46 = vsel %vm2624_vm7, 4294967295, %v3476_v46 }
  0xa9   : > { %720 = vst [vmem:[#allocation1 + $0x5] ss:$9 sm:$0xff] %v2522_v47 }
  0xaa   : > { %718 = vst [vmem:[#allocation1 + $0x4] ss:$9 sm:$0xff] %v2524_v49 }
  0xab   : > { %3478 = vst [vmem:[#allocation4_spill] sm:$0xff] %v3477_v46 }
  0xaf   : > { %v699_v52 = vpop.permute.xlu0 %698 }
  0xb0   : > { %v2535_v53 = vperm.slane %v699_v52, 0 }
  0xb2   : > { %724 = vst [vmem:[#allocation1 + $0x7] ss:$9 sm:$0xff] %v2535_v53 }
  0xb9   : > { %v725_v61 = vld [vmem:[#allocation1] sm:$0xff]  ;;  %v726_v62 = vld [vmem:[#allocation1 + $0x9] sm:$0xff]  ;;  %v727_v63 = vld [vmem:[#allocation1 + $0x12] sm:$0xff] }
  0xba   : > { %756 = vst [vmem:[#allocation1] ss:$9 sm:$0xff] %v2477_v24  ;;  %v2553_v1 = vmul.f32 %v725_v61, %v651_v59  ;;  %v2555_v2 = vmul.f32 %v726_v62, %v652_v60  ;;  %v2614_v21 = vmul.f32 %v727_v63, %v653_v16 }
  0xbb   : > { %758 = vst [vmem:[#allocation1 + $0x1] ss:$9 sm:$0xff] %v2483_v29 }
  0xbc   : > { %3469 = vst [vmem:[#allocation2_spill] sm:$0xff] %v2553_v1  ;;  %v3445_v5 = vmax.f32 %v2553_v1, 0.0  ;;  %v3447_v6 = vmax.f32 %v2555_v2, 0.0  ;;  %v3444_v37 = vmax.f32 %v2614_v21, 0.0 }
  0xbd   : > { %760 = vst [vmem:[#allocation1 + $0x2] ss:$9 sm:$0xff] %v2475_v22 }
  0xbe   : > { %762 = vst [vmem:[#allocation1 + $0x3] ss:$9 sm:$0xff] %v2481_v27  ;;  %v2577_v7 = vsel %vm2557_vm3, %v3445_v5, 0.0  ;;  %v2583_v8 = vsel %vm2561_vm4, %v3447_v6, 0.0  ;;  %v2647_v56 = vsel %vm2624_vm7, %v3444_v37, 0.0 }
  0xbf   : > { %764 = vst [vmem:[#allocation1 + $0x4] ss:$9 sm:$0xff] %v2469_v18  ;;  %v2056_v9 = vpack.i.bf16 %v2583_v8, %v2577_v7  ;;  %v2171_v55 = vpack.i.bf16 %v2647_v56, %v2583_v8 }
  0xc0   : > { %766 = vst [vmem:[#allocation1 + $0x5] ss:$9 sm:$0xff] %v2472_v20 }
  0xc1   : > { %768 = vst [vmem:[#allocation1 + $0x6] ss:$9 sm:$0xff] %v2489_v34  ;;  %2057 = vrot.lane.b32.xlu2 %v2056_v9, %s2323_s20  ;;  %2052 = vrot.lane.b32.xlu0 %v2056_v9, %s2324_s25 }
  0xc2   : > { %770 = vst [vmem:[#allocation1 + $0x7] ss:$9 sm:$0xff] %v2487_v32  ;;  %2047 = vrot.lane.b32.xlu1 %v2056_v9, %s2325_s12 }
  0xc3   : > { %3475 = vst [vmem:[#allocation3_spill] sm:$0xff] %v2614_v21 }
  0xc9   : > { %v771_v10 = vld [vmem:[#allocation1] sm:$0xff]  ;;  %v772_v11 = vld [vmem:[#allocation1 + $0x9] sm:$0xff]  ;;  %v773_v12 = vld [vmem:[#allocation1 + $0x12] sm:$0xff]  ;;  %2072 = vrot.lane.b32.xlu2 %v2056_v9, %s3439_s27  ;;  %2067 = vrot.lane.b32.xlu0 %v2056_v9, %s3441_s28  ;;  %s498_s28 = scalar_lea.vmem %s3428_s1, %s3474_s11 }
  0xca   : > { %794 = vst [vmem:[#allocation1 + $0x7] ss:$9 sm:$0xff] %v2535_v53  ;;  %2062 = vrot.lane.b32.xlu1 %v2056_v9, %s2328_s14  ;;  %v543_v17 = vld [vmem:[%s498_s28 + $0x8] sm:$0xff]  ;;  %v542_v19 = vld [vmem:[%s498_s28] sm:$0xff]  ;;  %v544_v26 = vld [vmem:[%s498_s28 + $0x10] sm:$0xff]  ;;  %s1983_s28 = smul.u32 3, %s3551_s24 }
  0xcb   : > { %780 = vst [vmem:[#allocation1] ss:$9 sm:$0xff] %v2498_v39  ;;  %v778_v30 = vsub.f32 %v543_v17, %v772_v11  ;;  %v777_v31 = vsub.f32 %v542_v19, %v771_v10  ;;  %v779_v41 = vsub.f32 %v544_v26, %v773_v12  ;;  %s1954_s27 = scalar_select %p2668_p3, 0, 1  ;;  %v3521_v3 = vld [vmem:[#allocation3_spill] sm:$0xff] }
  0xcc   : > { %782 = vst [vmem:[#allocation1 + $0x1] ss:$9 sm:$0xff] %v2507_v45  ;;  %s507_s11 = sadd.s32 %s1983_s28, %s2456_s23  ;;  %s2329_s28 = smov 1  }
  0xcd   : > { %784 = vst [vmem:[#allocation1 + $0x2] ss:$9 sm:$0xff] %v2502_v43  ;;  %v823_v63 = vstv %s1954_s27  ;;  %s1946_s24 = sshll.u32 %s507_s11, 3  ;;  %s3487_s27 = smov 92  }
  0xce   : > { %786 = vst [vmem:[#allocation1 + $0x3] ss:$9 sm:$0xff] %v2504_v44  ;;  %vm824_vm11 = vcmp.eq.s32.totalorder %v823_v63, 1  ;;  %s509_s22 = scalar_lea.vmem %s3429_s2, %s1946_s24  ;;  %s2330_s11 = smov 18  }
  0xcf   : > { %788 = vst [vmem:[#allocation1 + $0x4] ss:$9 sm:$0xff] %v2524_v49  ;;  %vm825_vm12 = vmand %vm824_vm11, %vm565_vm0  ;;  %s2332_s24 = smov 35   ;;  %s2333_s23 = smov 19   ;;  %vm920_vm0 = vcmask 900096   ;;  %vm956_vm11 = vcmask 752640  }
  0xd0   : > { %790 = vst [vmem:[#allocation1 + $0x5] ss:$9 sm:$0xff] %v2522_v47 }
  0xd1   : > { %792 = vst [vmem:[#allocation1 + $0x6] ss:$9 sm:$0xff] %v2495_v38 }
  0xd8   : > { %v796_v33 = vld [vmem:[#allocation1 + $0x9] sm:$0xff]  ;;  %v795_v35 = vld [vmem:[#allocation1] sm:$0xff]  ;;  %v797_v36 = vld [vmem:[#allocation1 + $0x12] sm:$0xff] }
  0xd9   : > { %v2618_v40 = vmul.f32 %v796_v33, %v778_v30  ;;  %v2620_v42 = vmul.f32 %v795_v35, %v777_v31  ;;  %826 = vst [vmem:[#allocation1] ss:$9 sm:$0xff] %v2477_v24  ;;  %v2638_v54 = vmul.f32 %v797_v36, %v779_v41 }
  0xda   : > { %828 = vst [vmem:[#allocation1 + $0x1] ss:$9 sm:$0xff] %v2483_v29 }
  0xdb   : > { %v3449_v52 = vmax.f32 %v2618_v40, 0.0  ;;  %v3448_v24 = vmax.f32 %v2620_v42, 0.0  ;;  %830 = vst [vmem:[#allocation1 + $0x2] ss:$9 sm:$0xff] %v2475_v22  ;;  %v3446_v57 = vmax.f32 %v2638_v54, 0.0 }
  0xdc   : > { %832 = vst [vmem:[#allocation1 + $0x3] ss:$9 sm:$0xff] %v2481_v27 }
  0xdd   : > { %v2653_v29 = vsel %vm2628_vm8, %v3449_v52, 0.0  ;;  %v2659_v22 = vsel %vm2632_vm9, %v3448_v24, 0.0  ;;  %834 = vst [vmem:[#allocation1 + $0x4] ss:$9 sm:$0xff] %v2469_v18  ;;  %v2689_v58 = vsel %vm2674_vm10, %v3446_v57, 0.0 }
  0xde   : > { %v2086_v27 = vpack.i.bf16 %v2653_v29, %v2647_v56  ;;  %836 = vst [vmem:[#allocation1 + $0x5] ss:$9 sm:$0xff] %v2472_v20  ;;  %v2161_v20 = vpack.i.bf16 %v2647_v56, %v2659_v22  ;;  %v2096_v59 = vpack.i.bf16 %v2689_v58, %v2653_v29 }
  0xdf   : > { %838 = vst [vmem:[#allocation1 + $0x6] ss:$9 sm:$0xff] %v2489_v34 }
  0xe0   : > { %2087 = vrot.lane.b32.xlu2 %v2086_v27, %s2328_s14  ;;  %2082 = vrot.lane.b32.xlu0 %v2086_v27, %s2323_s20  ;;  %840 = vst [vmem:[#allocation1 + $0x7] ss:$9 sm:$0xff] %v2487_v32  ;;  %v2695_v32 = vpack.i.bf16 %v2659_v22, %v2689_v58 }
  0xe1   : > { %2077 = vrot.lane.b32.xlu1 %v2086_v27, %s2324_s25 }
  0xe7   : > { %v841_v60 = vld [vmem:[#allocation1] sm:$0xff]  ;;  %v842_v61 = vld [vmem:[#allocation1 + $0x9] sm:$0xff]  ;;  %v843_v62 = vld [vmem:[#allocation1 + $0x12] sm:$0xff] }
  0xe8   : > { %2112 = vrot.lane.b32.xlu2 %v2695_v32, %s2323_s20  ;;  %2097 = vrot.lane.b32.xlu0 %v2096_v59, %s2325_s12  ;;  %850 = vst [vmem:[#allocation1] ss:$9 sm:$0xff] %v2498_v39  ;;  %v877_v39 = vsel %vm825_vm12, 1, %v2322_v0  ;;  %s2335_s20 = smov 36   ;;  %vm1118_vm12 = vcmask 7168  }
  0xe9   : > { %2092 = vrot.lane.b32.xlu1 %v2086_v27, %s3486_s21  ;;  %852 = vst [vmem:[#allocation1 + $0x1] ss:$9 sm:$0xff] %v2507_v45  ;;  %v545_v45 = vld [vmem:[%s509_s22] sm:$0xff] }
  0xea   : > { %854 = vst [vmem:[#allocation1 + $0x2] ss:$9 sm:$0xff] %v2502_v43  ;;  %v546_v43 = vld [vmem:[%s509_s22 + $0x8] sm:$0xff]  ;;  %v847_v10 = vsub.f32 %v545_v45, %v841_v60 }
  0xeb   : > { %856 = vst [vmem:[#allocation1 + $0x3] ss:$9 sm:$0xff] %v2504_v44  ;;  %v547_v44 = vld [vmem:[%s509_s22 + $0x10] sm:$0xff]  ;;  %v848_v50 = vsub.f32 %v546_v43, %v842_v61  ;;  %s2336_s22 = smov 91  }
  0xec   : > { %858 = vst [vmem:[#allocation1 + $0x4] ss:$9 sm:$0xff] %v2524_v49  ;;  %v879_v49 = vperm.slane %v877_v39, 1  ;;  %v849_v9 = vsub.f32 %v547_v44, %v843_v62 }
  0xed   : > { %860 = vst [vmem:[#allocation1 + $0x5] ss:$9 sm:$0xff] %v2522_v47  ;;  %v878_v47 = vperm.slane %v877_v39, 0 }
  0xee   : > { %862 = vst [vmem:[#allocation1 + $0x6] ss:$9 sm:$0xff] %v2495_v38  ;;  %v880_v38 = vperm.slane %v877_v39, 2  ;;  %vm882_vm14 = vcmp.eq.s32.totalorder %v879_v49, 1 }
  0xef   : > { %864 = vst [vmem:[#allocation1 + $0x7] ss:$9 sm:$0xff] %v2535_v53  ;;  %vm881_vm13 = vcmp.eq.s32.totalorder %v878_v47, 1 }
  0xf0   : > { %2102 = vrot.lane.b32.xlu0 %v2695_v32, %s3486_s21  ;;  %vm883_vm15 = vcmp.eq.s32.totalorder %v880_v38, 1  ;;  %s2331_s21 = smov 17  }
  0xf1   : > { %989 = vrot.lane.b32.xlu1 %v2659_v22, %s2325_s12 }
  0xf6   : > { %v866_v11 = vld [vmem:[#allocation1 + $0x9] sm:$0xff]  ;;  %v867_v12 = vld [vmem:[#allocation1 + $0x12] sm:$0xff]  ;;  %v865_v53 = vld [vmem:[#allocation1] sm:$0xff] }
  0xf7   : > { %v872_v13 = vmul.f32 %v866_v11, %v848_v50  ;;  %v873_v14 = vmul.f32 %v867_v12, %v849_v9  ;;  %v871_v15 = vmul.f32 %v865_v53, %v847_v10 }
  0xf8   : > { %2117 = vrot.lane.b32.xlu0 %v2695_v32, %s2328_s14 }
  0xf9   : > { %v875_v0 = vmax.f32 %v872_v13, 0.0  ;;  %v876_v16 = vmax.f32 %v873_v14, 0.0  ;;  %2107 = vrot.lane.b32.xlu1 %v2096_v59, %s3487_s27  ;;  %v874_v17 = vmax.f32 %v871_v15, 0.0 }
  0xfb   : > { %v885_v19 = vsel %vm882_vm14, %v875_v0, 0.0  ;;  %v886_v23 = vsel %vm883_vm15, %v876_v16, 0.0  ;;  %v2725_v25 = vsel %vm881_vm13, %v874_v17, 0.0  ;;  %vm1109_vm13 = vcmask 138240  }
  0xfc   : > { %v2121_v26 = vpack.i.bf16 %v885_v19, %v2647_v56  ;;  %v2126_v28 = vpack.i.bf16 %v2725_v25, %v886_v23  ;;  %v2181_v30 = vpack.i.bf16 %v886_v23, %v885_v19  ;;  %v2131_v31 = vpack.i.bf16 %v885_v19, %v2725_v25 }
  0xfd   : > { %vm1082_vm14 = vcmask 285696   ;;  %vm3460_vm15 = vcmask 154624  }
  0xfe   : > { %2122 = vrot.lane.b32.xlu2 %v2121_v26, %s2325_s12 }
 0x100   : > { %2127 = vrot.lane.b32.xlu0 %v2126_v28, %s2325_s12  ;;  %s2334_s12 = smov 37  }
 0x101   : > { %2132 = vrot.lane.b32.xlu1 %v2131_v31, %s2329_s28 }
 0x106   : > { %1116 = vrot.lane.b32.xlu2 %v886_v23, %s2329_s28  ;;  %s2337_s28 = smov 90  }
 0x108   : > { %2137 = vrot.lane.b32.xlu0 %v2131_v31, %s2330_s11 }
 0x109   : > { %1098 = vrot.lane.b32.xlu1 %v886_v23, %s2330_s11 }
 0x10e   : > { %2142 = vrot.lane.b32.xlu2 %v2131_v31, %s2331_s21 }
 0x110   : > { %1107 = vrot.lane.b32.xlu0 %v886_v23, %s2331_s21 }
 0x111   : > { %2147 = vrot.lane.b32.xlu1 %v2131_v31, %s2332_s24 }
 0x116   : > { %1080 = vrot.lane.b32.xlu2 %v886_v23, %s2332_s24 }
 0x118   : > { %2152 = vrot.lane.b32.xlu0 %v2131_v31, %s2333_s23 }
 0x119   : > { %1089 = vrot.lane.b32.xlu1 %v886_v23, %s2333_s23 }
 0x11b   : > { %v2058_v33 = vpop.permute.xlu2 %2057 }
 0x11c   : > { %v2060_v35 = vunpack.i.h.bf16 %v2058_v33  ;;  %v2059_v36 = vunpack.i.l.bf16 %v2058_v33 }
 0x11e   : > { %2157 = vrot.lane.b32.xlu2 %v2131_v31, %s2334_s12  ;;  %v2735_v41 = vsel %vm920_vm0, %v2059_v36, %v2060_v35 }
 0x120   : > { %1062 = vrot.lane.b32.xlu0 %v886_v23, %s2334_s12 }
 0x121   : > { %2177 = vrot.lane.b32.xlu1 %v2131_v31, %s2335_s20 }
 0x123   : > { %v2747_v27 = vpop.permute.xlu2 %2072 }
 0x126   : > { %2167 = vrot.lane.b32.xlu2 %v2695_v32, %s2324_s25 }
 0x128   : > { %2162 = vrot.lane.b32.xlu0 %v2161_v20, %s3487_s27 }
 0x129   : > { %2182 = vrot.lane.b32.xlu1 %v2181_v30, %s2336_s22 }
 0x12e   : > { %1071 = vrot.lane.b32.xlu2 %v886_v23, %s2335_s20 }
 0x130   : > { %2172 = vrot.lane.b32.xlu0 %v2171_v55, %s2337_s28 }
 0x133   : > { %v2053_v59 = vpop.permute.xlu0 %2052 }
 0x134   : > { %v2055_v32 = vunpack.i.h.bf16 %v2053_v59  ;;  %v2054_v60 = vunpack.i.l.bf16 %v2053_v59  ;;  %v2048_v61 = vpop.permute.xlu1 %2047 }
 0x135   : > { %v2050_v62 = vunpack.i.h.bf16 %v2048_v61  ;;  %v2049_v20 = vunpack.i.l.bf16 %v2048_v61 }
 0x136   : > { %v2750_v63 = vsel %vm908_vm1, %v2054_v60, %v2055_v32 }
 0x137   : > { %v2755_v43 = vsel %vm896_vm2, %v2049_v20, %v2050_v62 }
 0x138   : > { %3488 = vst [vmem:[#allocation5_spill] sm:$0xff] %v2755_v43 }
 0x13a   : > { %v2757_v44 = vpop.permute.xlu2 %2087 }
 0x13b   : > { %v2068_v45 = vpop.permute.xlu0 %2067  ;;  %v2089_v50 = vunpack.i.l.bf16 %v2757_v44 }
 0x13c   : > { %v2070_v47 = vunpack.i.h.bf16 %v2068_v45  ;;  %v2069_v49 = vunpack.i.l.bf16 %v2068_v45  ;;  %v2063_v38 = vpop.permute.xlu1 %2062 }
 0x13d   : > { %v2065_v9 = vunpack.i.h.bf16 %v2063_v38  ;;  %v2064_v10 = vunpack.i.l.bf16 %v2063_v38 }
 0x13e   : > { %v2761_v11 = vsel %vm944_vm5, %v2069_v49, %v2070_v47 }
 0x13f   : > { %v2764_v12 = vsel %vm932_vm6, %v2065_v9, %v2089_v50  ;;  %v2767_v53 = vsel %vm932_vm6, %v2064_v10, %v2065_v9 }
 0x142   : > { %v2771_v14 = vpop.permute.xlu2 %2112 }
 0x152   : > { %v2773_v15 = vpop.permute.xlu0 %2082 }
 0x153   : > { %v2084_v0 = vunpack.i.l.bf16 %v2773_v15  ;;  %v2776_v16 = vpop.permute.xlu1 %2077  ;;  %v3453_v37 = vunpack.i.h.bf16 %v2773_v15 }
 0x154   : > { %v2079_v17 = vunpack.i.l.bf16 %v2776_v16 }
 0x155   : > { %v2780_v19 = vsel %vm920_vm0, %v2060_v35, %v2084_v0 }
 0x156   : > { %v2783_v23 = vsel %vm908_vm1, %v2055_v32, %v2079_v17  ;;  %v2785_v26 = vpack.c.bf16 %v2084_v0, %v2079_v17 }
 0x158   : > { %3489 = vst [vmem:[#allocation6_spill] sm:$0xff] %v2785_v26  ;;  %v2789_v30 = vpop.permute.xlu2 %2122 }
 0x159   : > { %3490 = vst [vmem:[#allocation7_spill] sm:$0xff] %v2789_v30  ;;  %v3443_v31 = vunpack.i.l.bf16 %v2789_v30 }
 0x15a   : > { %v2098_v33 = vpop.permute.xlu0 %2097 }
 0x15b   : > { %v2792_v36 = vunpack.i.h.bf16 %v2098_v33  ;;  %v2099_v55 = vunpack.i.l.bf16 %v2098_v33  ;;  %v2794_v59 = vpop.permute.xlu1 %2092  ;;  %v2799_v35 = vsel %vm896_vm2, %v2050_v62, %v3443_v31 }
 0x15c   : > { %v2094_v32 = vunpack.i.l.bf16 %v2794_v59 }
 0x15d   : > { %v996_v60 = vsel %vm896_vm2, %v2099_v55, %v2792_v36 }
 0x15e   : > { %v2186_v61 = vpack.i.bf16 %v996_v60, %v2689_v58  ;;  %v2806_v20 = vsel %vm944_vm5, %v2070_v47, %v2094_v32  ;;  %v2808_v45 = vpack.c.bf16 %v2094_v32, %v2089_v50  ;;  %v2114_v50 = vunpack.i.l.bf16 %v2771_v14 }
 0x15f   : > { %v3450_v32 = vunpack.i.h.bf16 %v2794_v59 }
 0x160   : > { %3491 = vst [vmem:[#allocation8_spill] sm:$0xff] %v2808_v45  ;;  %v1117_v38 = vpop.permute.xlu2 %1116  ;;  %2187 = vrot.lane.b32.xlu1 %v2186_v61, %s2336_s22  ;;  %v1018_v24 = vsel %vm920_vm0, %v3453_v37, %v2114_v50 }
 0x162   : > { %v2813_v62 = vpop.permute.xlu0 %2102 }
 0x163   : > { %v990_v9 = vpop.permute.xlu1 %989  ;;  %v2104_v58 = vunpack.i.l.bf16 %v2813_v62  ;;  %v2105_v1 = vunpack.i.h.bf16 %v2813_v62 }
 0x164   : > { %v2816_v10 = vsel %vm896_vm2, %v990_v9, %v2099_v55  ;;  %v3452_v55 = vunpack.i.h.bf16 %v2757_v44 }
 0x165   : > { %v1040_v5 = vsel %vm944_vm5, %v3450_v32, %v2104_v58 }
 0x168   : > { %v2818_v0 = vpop.permute.xlu2 %2142 }
 0x16a   : > { %v2821_v47 = vpop.permute.xlu0 %2117 }
 0x16b   : > { %v2119_v17 = vunpack.i.l.bf16 %v2821_v47  ;;  %v2825_v33 = vpop.permute.xlu1 %2107 }
 0x16c   : > { %v2110_v61 = vunpack.i.h.bf16 %v2825_v33  ;;  %v3451_v31 = vunpack.i.l.bf16 %v2825_v33 }
 0x16d   : > { %v2831_v9 = vpack.c.bf16 %v2119_v17, %v2114_v50  ;;  %v1029_v28 = vsel %vm932_vm6, %v3452_v55, %v2119_v17  ;;  %v3455_v50 = vunpack.i.h.bf16 %v2776_v16 }
 0x16e   : > { %v1051_v39 = vsel %vm956_vm11, %v3451_v31, %v2110_v61  ;;  %v2840_v57 = vpack.c.bf16 %v2110_v61, %v2104_v58  ;;  %v1269_v52 = vpack.c.bf16 %v1029_v28, %v1018_v24  ;;  %v3458_v24 = vunpack.i.h.bf16 %v2818_v0 }
 0x16f   : > { %v1272_v6 = vpack.c.bf16 %v1051_v39, %v1040_v5 }
 0x170   : > { %v1081_v13 = vpop.permute.xlu2 %1080 }
 0x171   : > { %1345 = vmatpush.bf16.msra.mxu2 %v1272_v6 }
 0x172   : > { %v2845_v49 = vpop.permute.xlu0 %2127 }
 0x173   : > { %v2133_v34 = vpop.permute.xlu1 %2132 }
 0x174   : > { %v2135_v32 = vunpack.i.h.bf16 %v2133_v34  ;;  %v2134_v31 = vunpack.i.l.bf16 %v2133_v34 }
 0x175   : > { %1346 = vmatpush.bf16.msra.mxu2 %v1269_v52 }
 0x176   : > { %v1119_v58 = vsel %vm1118_vm12, %v2134_v31, %v2135_v32  ;;  %v1120_v5 = vsel %vm1118_vm12, %v2135_v32, %v1117_v38  ;;  %vm1064_vm12 = vcmask 302080  }
 0x177   : > { %v2201_v39 = vpack.i.bf16 %v1120_v5, %v1119_v58 }
 0x178   : > { %v2850_v61 = vpop.permute.xlu2 %2157 }
 0x179   : > { %2202 = vrot.lane.b32.xlu0 %v2201_v39, %s2336_s22 }
 0x17a   : > { %v2853_v6 = vpop.permute.xlu0 %2137 }
 0x17b   : > { %v2855_v17 = vpop.permute.xlu1 %1098 }
 0x180   : > { %v2857_v55 = vpop.permute.xlu2 %2167 }
 0x181   : > { %v2169_v34 = vunpack.i.l.bf16 %v2857_v55 }
 0x182   : > { %v1108_v52 = vpop.permute.xlu0 %1107 }
 0x183   : > { %v1007_v28 = vsel %vm908_vm1, %v3455_v50, %v2169_v34  ;;  %v1111_v38 = vsel %vm1109_vm13, %v3458_v24, %v1108_v52  ;;  %v2868_v32 = vpop.permute.xlu1 %2147  ;;  %v2871_v58 = vpack.c.bf16 %v2169_v34, %v2792_v36  ;;  %v2140_v24 = vunpack.i.h.bf16 %v2853_v6 }
 0x184   : > { %v1266_v5 = vpack.c.bf16 %v1007_v28, %v996_v60  ;;  %v2216_v39 = vpack.i.bf16 %v2134_v31, %v1111_v38  ;;  %v2150_v37 = vunpack.i.h.bf16 %v2868_v32  ;;  %v2149_v21 = vunpack.i.l.bf16 %v2868_v32 }
 0x186   : > { %1347 = vmatpush.bf16.msra.mxu2 %v1266_v5  ;;  %2217 = vrot.lane.b32.xlu0 %v2216_v39, %s2336_s22  ;;  %v1083_v50 = vsel %vm1082_vm14, %v2149_v21, %v2150_v37  ;;  %v1084_v38 = vsel %vm1082_vm14, %v2150_v37, %v1081_v13  ;;  %v2160_v5 = vunpack.i.h.bf16 %v2850_v61  ;;  %v3462_v39 = vunpack.i.l.bf16 %v2850_v61 }
 0x187   : > { %v2221_v46 = vpack.i.bf16 %v1083_v50, %v2725_v25  ;;  %v2129_v25 = vunpack.i.l.bf16 %v2845_v49  ;;  %v2125_v50 = vunpack.i.h.bf16 %v2789_v30  ;;  %vm1073_vm14 = vcmask 293888  }
 0x188   : > { %v2139_v30 = vunpack.i.l.bf16 %v2853_v6 }
 0x189   : > { %2222 = vrot.lane.b32.xlu1 %v2221_v46, %s2336_s22  ;;  %v1128_v37 = vsel %vm896_vm2, %v2125_v50, %v2129_v25 }
 0x18a   : > { %v2879_v52 = vpop.permute.xlu0 %2152 }
 0x18b   : > { %v3457_v34 = vunpack.i.h.bf16 %v2879_v52  ;;  %v2154_v31 = vunpack.i.l.bf16 %v2879_v52  ;;  %v2883_v60 = vpop.permute.xlu1 %1089  ;;  %v3500_v48 = vunpack.i.h.bf16 %v2879_v52 }
 0x18d   : > { %v2191_v28 = vpack.i.bf16 %v2653_v29, %v2154_v31  ;;  %v1092_v32 = vsel %vm3460_vm15, %v2154_v31, %v3457_v34  ;;  %vm1100_vm15 = vcmask 146432  }
 0x18e   : > { %v2226_v46 = vpack.i.bf16 %v1092_v32, %v1084_v38  ;;  %v1065_v38 = vsel %vm1064_vm12, %v3462_v39, %v2160_v5  ;;  %v2196_v32 = vpack.i.bf16 %v2129_v25, %v1128_v37  ;;  %v1101_v6 = vsel %vm1100_vm15, %v2139_v30, %v2140_v24 }
 0x18f   : > { %2192 = vrot.lane.b32.xlu2 %v2191_v28, %s2336_s22  ;;  %v2144_v28 = vunpack.i.l.bf16 %v2818_v0  ;;  %v2120_v37 = vunpack.i.h.bf16 %v2821_v47 }
 0x191   : > { %2227 = vrot.lane.b32.xlu1 %v2226_v46, %s2336_s22  ;;  %v2241_v45 = vpack.i.bf16 %v1065_v38, %v2144_v28 }
 0x192   : > { %v1063_v29 = vpop.permute.xlu0 %1062 }
 0x193   : > { %v2178_v13 = vpop.permute.xlu1 %2177  ;;  %v1066_v26 = vsel %vm1064_vm12, %v2160_v5, %v1063_v29  ;;  %v2075_v5 = vunpack.i.h.bf16 %v2747_v27  ;;  %v1072_v29 = vpop.permute.xlu2 %1071  ;;  %vm1305_vm12 = vcmask 719872  }
 0x194   : > { %v2180_v31 = vunpack.i.h.bf16 %v2178_v13  ;;  %v2179_v34 = vunpack.i.l.bf16 %v2178_v13  ;;  %v2130_v13 = vunpack.i.h.bf16 %v2845_v49 }
 0x196   : > { %v1074_v46 = vsel %vm1073_vm14, %v2179_v34, %v2180_v31  ;;  %v1127_v49 = vsel %vm896_vm2, %v2130_v13, %v2125_v50  ;;  %v1075_v62 = vsel %vm1073_vm14, %v2180_v31, %v1072_v29  ;;  %v2115_v50 = vunpack.i.h.bf16 %v2771_v14 }
 0x197   : > { %2197 = vrot.lane.b32.xlu2 %v2196_v32, %s2336_s22  ;;  %v2246_v43 = vpack.i.bf16 %v1074_v46, %v1066_v26  ;;  %v3493_v46 = vunpack.i.l.bf16 %v2825_v33  ;;  %v2170_v31 = vunpack.i.h.bf16 %v2857_v55  ;;  %v3494_v33 = vunpack.i.h.bf16 %v2757_v44 }
 0x198   : > { %v3495_v29 = vunpack.i.h.bf16 %v2773_v15  ;;  %v1102_v55 = vsel %vm1100_vm15, %v2140_v24, %v2855_v17  ;;  %vm980_vm2 = vcmask 736256   ;;  %v3498_v24 = vmax.f32 %v2618_v40, 0.0 }
 0x199   : > { %2242 = vrot.lane.b32.xlu1 %v2241_v45, %s2336_s22  ;;  %2247 = vrot.lane.b32.xlu0 %v2246_v43, %s2336_s22  ;;  %v2206_v45 = vpack.i.bf16 %v1101_v6, %v1127_v49  ;;  %v3492_v43 = vunpack.i.h.bf16 %v2794_v59  ;;  %v2251_v59 = vpack.i.bf16 %v2583_v8, %v2179_v34  ;;  %v1028_v6 = vsel %vm932_vm6, %v2120_v37, %v3494_v33 }
 0x19a   : > { %v2908_v25 = vpop.permute.xlu0 %2162  ;;  %v1017_v14 = vsel %vm920_vm0, %v2115_v50, %v3495_v29  ;;  %vm2338_vm0 = vmmov 1   ;;  %v3502_v40 = vunpack.i.l.bf16 %v2850_v61 }
 0x19b   : > { %v3463_v38 = vunpack.i.h.bf16 %v2908_v25  ;;  %v2164_v26 = vunpack.i.l.bf16 %v2908_v25  ;;  %v1039_v32 = vsel %vm944_vm5, %v2105_v1, %v3492_v43  ;;  %v2256_v1 = vpack.i.bf16 %v2149_v21, %v1075_v62  ;;  %vm1962_vm5 = vmpackc.low %vm2628_vm8, %vm2338_vm0 }
 0x19c   : > { %v1268_v34 = vpack.c.bf16 %v1028_v6, %v1017_v14  ;;  %vm3501_vm8 = vcmask 154624   ;;  %v2236_v43 = vpack.i.bf16 %v3502_v40, %v2792_v36  ;;  %vm1955_vm15 = vmpackc.low %vm2632_vm9, %vm2338_vm0  ;;  %v3513_v18 = vunpack.i.h.bf16 %v2908_v25 }
 0x19d   : > { %v1050_v39 = vsel %vm956_vm11, %v2164_v26, %v3493_v46  ;;  %v2928_v47 = vsel %vm956_vm11, %v2075_v5, %v3463_v38  ;;  %v3497_v26 = vunpack.i.h.bf16 %v2818_v0  ;;  %v1093_v62 = vsel %vm3501_vm8, %v3500_v48, %v2883_v60  ;;  %vm1965_vm9 = vmpackc.low %vm2338_vm0, %vm2561_vm4 }
 0x19e   : > { %v1271_v13 = vpack.c.bf16 %v1050_v39, %v1039_v32  ;;  %v3496_v39 = vunpack.i.h.bf16 %v2776_v16  ;;  %vm1958_vm4 = vmpackc.low %vm2338_vm0, %vm2557_vm3 }
 0x19f   : > { %2207 = vrot.lane.b32.xlu2 %v2206_v45, %s2336_s22  ;;  %v1110_v15 = vsel %vm1109_vm13, %v2144_v28, %v3497_v26  ;;  %v3499_v28 = vpack.i.bf16 %v2659_v22, %v2647_v56  ;;  %v2231_v45 = vpack.i.bf16 %v2139_v30, %v1093_v62  ;;  %v1293_v56 = vld [vmem:[%s3432_s5] sm:$0xff]  ;;  %v2990_v30 = vpop.permute.xlu1 %2182  ;;  %vm1309_vm13 = vcmask 1043456  }
 0x1a0   : > { %1319 = vmatpush.bf16.msra.mxu0 %v1271_v13  ;;  %v1006_v37 = vsel %vm908_vm1, %v2170_v31, %v3496_v39  ;;  %v2211_v49 = vpack.i.bf16 %v1110_v15, %v1102_v55  ;;  %vm968_vm1 = vcmask 744448   ;;  %v2185_v50 = vunpack.i.h.bf16 %v2990_v30 }
 0x1a1   : > { %2257 = vrot.lane.b32.xlu1 %v2256_v1, %s2336_s22  ;;  %2252 = vrot.lane.b32.xlu0 %v2251_v59, %s2336_s22  ;;  %v1265_v16 = vpack.c.bf16 %v1006_v37, %v2816_v10  ;;  %v2184_v13 = vunpack.i.l.bf16 %v2990_v30 }
 0x1a2   : > { %v2944_v8 = vpop.permute.xlu0 %2172 }
 0x1a3   : > { %v3464_v21 = vunpack.i.h.bf16 %v2944_v8  ;;  %v2174_v44 = vunpack.i.l.bf16 %v2944_v8  ;;  %v1214_v6 = vsel %vm968_vm1, %v2184_v13, %v2185_v50 }
 0x1a4   : > { %1320 = vmatpush.bf16.msra.mxu0 %v1268_v34 }
 0x1a5   : > { %v982_v17 = vsel %vm980_vm2, %v2174_v44, %v3464_v21 }
 0x1a6   : > { %v1963_v0 = vpack.c.bf16 %v3498_v24, %v982_v17 }
 0x1a7   : > { %2212 = vrot.lane.b32.xlu2 %v2211_v49, %s2336_s22 }
 0x1a8   : > { %1321 = vmatpush.bf16.msra.mxu0 %v1265_v16  ;;  %1964 = vmatpush.bf16.msk.msra.mxu2 %vm1962_vm5, %v1963_v0 }
 0x1a9   : > { %2262 = vrot.lane.b32.xlu1 %v3499_v28, %s2336_s22  ;;  %1135 = vrot.lane.b32.xlu0 %v2816_v10, %s2336_s22 }
 0x1af   : > { %2232 = vrot.lane.b32.xlu2 %v2231_v45, %s2336_s22 }
 0x1b1   : > { %962 = vrot.lane.b32.xlu1 %v2577_v7, %s2336_s22 }
 0x1b7   : > { %2237 = vrot.lane.b32.xlu2 %v2236_v43, %s2336_s22 }
 0x1bf   : > { %974 = vrot.lane.b32.xlu2 %v2577_v7, %s2337_s28 }
 0x1c7   : > { %1296 = vperm.xlu2 %2045, %v1293_v56  }
 0x1d2   : > { %v2996_v61 = vpop.permute.xlu1 %2187 }
 0x1d3   : > { %v2189_v38 = vunpack.i.l.bf16 %v2996_v61 }
 0x1e9   : > { %v2988_v22 = vpop.permute.xlu2 %2192 }
 0x1eb   : > { %v2992_v10 = vpop.permute.xlu0 %2202 }
 0x1ec   : > { %v2205_v32 = vunpack.i.h.bf16 %v2992_v10  ;;  %v2204_v7 = vunpack.i.l.bf16 %v2992_v10 }
 0x1ee   : > { %v1212_v1 = vsel %vm968_vm1, %v2204_v7, %v2205_v32 }
 0x1ef   : > { %v1287_v55 = vpack.c.bf16 %v1214_v6, %v1212_v1 }
 0x1f1   : > { %v2198_v52 = vpop.permute.xlu2 %2197 }
 0x1f2   : > { %v2994_v60 = vunpack.i.h.bf16 %v2198_v52  ;;  %v2199_v36 = vunpack.i.l.bf16 %v2198_v52 }
 0x1f4   : > { %v1216_v46 = vsel %vm968_vm1, %v2199_v36, %v2994_v60 }
 0x1f5   : > { %v1290_v31 = vpack.c.bf16 %v1216_v46, %v1216_v46 }
 0x1f7   : > { %v1314_v59 = vsel %vm1309_vm13, %v1290_v31, 0 }
 0x1f8   : > { %1360 = vmatpush.bf16.msra.mxu3 %v1314_v59  ;;  %v3011_v29 = vpop.permute.xlu0 %2217 }
 0x1f9   : > { %v2208_v33 = vpop.permute.xlu2 %2207  ;;  %v2220_v26 = vunpack.i.h.bf16 %v3011_v29  ;;  %v2219_v16 = vunpack.i.l.bf16 %v3011_v29 }
 0x1fa   : > { %v2209_v14 = vunpack.i.l.bf16 %v2208_v33  ;;  %v2210_v28 = vunpack.i.h.bf16 %v2208_v33 }
 0x1fb   : > { %v2223_v34 = vpop.permute.xlu1 %2222  ;;  %v1211_v0 = vsel %vm968_vm1, %v2220_v26, %v2204_v7 }
 0x1fc   : > { %v2224_v39 = vunpack.i.l.bf16 %v2223_v34  ;;  %1361 = vmatpush.bf16.msra.mxu3 %v1287_v55  ;;  %v1215_v37 = vsel %vm968_vm1, %v2209_v14, %v2199_v36  ;;  %v2225_v31 = vunpack.i.h.bf16 %v2223_v34 }
 0x1fd   : > { %v1289_v15 = vpack.c.bf16 %v1215_v37, %v1215_v37 }
 0x1fe   : > { %v1213_v17 = vsel %vm968_vm1, %v2224_v39, %v2184_v13 }
 0x1ff   : > { %v1311_v49 = vsel %vm1309_vm13, %v1289_v15, 0  ;;  %v1286_v45 = vpack.c.bf16 %v1213_v17, %v1211_v0  ;;  %v2194_v0 = vunpack.i.l.bf16 %v2988_v22 }
 0x200   : > { %1334 = vmatpush.bf16.msra.mxu1 %v1311_v49 }
 0x201   : > { %v3018_v24 = vpop.permute.xlu2 %2212 }
 0x202   : > { %v2215_v48 = vunpack.i.h.bf16 %v3018_v24  ;;  %v2214_v62 = vunpack.i.l.bf16 %v3018_v24 }
 0x203   : > { %v3023_v40 = vpop.permute.xlu1 %2227 }
 0x204   : > { %1335 = vmatpush.bf16.msra.mxu1 %v1286_v45  ;;  %v1208_v43 = vsel %vm968_vm1, %v2210_v28, %v2214_v62  ;;  %v1210_v56 = vsel %vm968_vm1, %v2215_v48, %v2219_v16  ;;  %v3466_v36 = vunpack.i.l.bf16 %v3023_v40  ;;  %v2230_v59 = vunpack.i.h.bf16 %v3023_v40 }
 0x205   : > { %v1284_v52 = vpack.c.bf16 %v1210_v56, %v1208_v43  ;;  %v1285_v30 = vpack.c.bf16 %v2219_v16, %v2214_v62 }
 0x206   : > { %v1204_v14 = vsel %vm968_vm1, %v2225_v31, %v3466_v36 }
 0x207   : > { %1362 = vmatpush.bf16.msra.mxu3 %v1284_v52 }
 0x209   : > { %v3032_v7 = vpop.permute.xlu2 %2232 }
 0x20a   : > { %v2235_v46 = vunpack.i.h.bf16 %v3032_v7  ;;  %v3465_v13 = vunpack.i.l.bf16 %v3032_v7 }
 0x20b   : > { %v2243_v1 = vpop.permute.xlu1 %2242  ;;  %v3037_v33 = vpop.permute.xlu0 %2247 }
 0x20c   : > { %v2244_v6 = vunpack.i.l.bf16 %v2243_v1  ;;  %v1206_v55 = vsel %vm968_vm1, %v2230_v59, %v3465_v13  ;;  %v1207_v39 = vsel %vm968_vm1, %v2235_v46, %v2210_v28  ;;  %v2245_v49 = vunpack.i.h.bf16 %v2243_v1 }
 0x20d   : > { %v1281_v37 = vpack.c.bf16 %v1206_v55, %v1204_v14  ;;  %v2249_v17 = vunpack.i.l.bf16 %v3037_v33  ;;  %v2250_v45 = vunpack.i.h.bf16 %v3037_v33  ;;  %v2190_v1 = vunpack.i.h.bf16 %v2996_v61  ;;  %v3063_v55 = vld [vmem:[%s3431_s4] sm:$0xff]  ;;  %v3523_v61 = vld [vmem:[#allocation7_spill] sm:$0xff] }
 0x20e   : > { %v1209_v26 = vsel %vm968_vm1, %v2244_v6, %v2215_v48  ;;  %v2195_v14 = vunpack.i.h.bf16 %v2988_v22  ;;  %v1300_v16 = vunpack.c.l.b16 %v3063_v55  ;;  %v3524_v33 = vunpack.i.l.bf16 %v3523_v61 }
 0x20f   : > { %v1283_v34 = vpack.c.bf16 %v1209_v26, %v1207_v39  ;;  %1363 = vmatpush.bf16.msra.mxu3 %v1281_v37  ;;  %v1205_v37 = vsel %vm968_vm1, %v2194_v0, %v2230_v59  ;;  %v1200_v26 = vsel %vm968_vm1, %v2245_v49, %v2249_v17  ;;  %v1301_v59 = vunpack.c.h.b16 %v3063_v55 }
 0x211   : > { %1336 = vmatpush.bf16.msra.mxu1 %v1283_v34  ;;  %v3047_v15 = vpop.permute.xlu2 %2237 }
 0x212   : > { %v2240_v43 = vunpack.i.h.bf16 %v3047_v15  ;;  %v3467_v52 = vunpack.i.l.bf16 %v3047_v15 }
 0x213   : > { %v3053_v56 = vpop.permute.xlu1 %2257  ;;  %v2253_v28 = vpop.permute.xlu0 %2252 }
 0x214   : > { %v2260_v48 = vunpack.i.h.bf16 %v3053_v56  ;;  %v2259_v46 = vunpack.i.l.bf16 %v3053_v56  ;;  %v2254_v6 = vunpack.i.l.bf16 %v2253_v28  ;;  %v1199_v13 = vsel %vm968_vm1, %v2240_v43, %v2245_v49 }
 0x215   : > { %v1196_v49 = vsel %vm968_vm1, %v2195_v14, %v2189_v38 }
 0x216   : > { %v1203_v39 = vsel %vm968_vm1, %v2260_v48, %v2225_v31  ;;  %v1202_v34 = vsel %vm968_vm1, %v2250_v45, %v2259_v46  ;;  %v1201_v36 = vsel %vm968_vm1, %v2254_v6, %v2250_v45  ;;  %v1198_v31 = vsel %vm968_vm1, %v2190_v1, %v3467_v52 }
 0x217   : > { %v1280_v22 = vpack.c.bf16 %v1205_v37, %v1203_v39  ;;  %v1278_v21 = vpack.c.bf16 %v1202_v34, %v1200_v26  ;;  %v1291_v48 = vpack.c.bf16 %v2994_v60, %v2994_v60  ;;  %v3503_v45 = vmax.f32 %v2620_v42, 0.0 }
 0x218   : > { %v1277_v26 = vpack.c.bf16 %v1201_v36, %v1199_v13  ;;  %v1275_v34 = vpack.c.bf16 %v1198_v31, %v1196_v49  ;;  %v1303_v52 = vpack.c.b16 %v1301_v59, %v1301_v59  ;;  %v1288_v59 = vpack.c.bf16 %v2185_v50, %v2205_v32 }
 0x219   : > { %1337 = vmatpush.bf16.msra.mxu1 %v1280_v22  ;;  %1364 = vmatpush.bf16.msra.mxu3 %v1278_v21  ;;  %v975_v0 = vpop.permute.xlu2 %974  ;;  %v2255_v21 = vunpack.i.h.bf16 %v2253_v28  ;;  %v2074_v28 = vunpack.i.l.bf16 %v2747_v27  ;;  %v3505_v27 = vunpack.i.l.bf16 %v3023_v40  ;;  %v1279_v4 = vpack.c.bf16 %v2259_v46, %v2249_v17  ;;  %v3517_v40 = vld [vmem:[#allocation5_spill] sm:$0xff] }
 0x21a   : > { %v981_v39 = vsel %vm980_vm2, %v975_v0, %v2174_v44  ;;  %v1317_v44 = vsel %vm1309_vm13, %v1291_v48, 0 }
 0x21b   : > { %v1956_v43 = vpack.c.bf16 %v3503_v45, %v981_v39  ;;  %v2263_v6 = vpop.permute.xlu1 %2262  ;;  %v1136_v37 = vpop.permute.xlu0 %1135  ;;  %v957_v32 = vsel %vm956_vm11, %v2074_v28, %v2075_v5  ;;  %v3506_v5 = vunpack.i.l.bf16 %v3032_v7  ;;  %vm1969_vm11 = vmpackc.low %vm2674_vm10, %vm2338_vm0 }
 0x21c   : > { %v2265_v60 = vunpack.i.h.bf16 %v2263_v6  ;;  %v2264_v22 = vunpack.i.l.bf16 %v2263_v6  ;;  %v1197_v42 = vsel %vm968_vm1, %v1136_v37, %v2190_v1  ;;  %v1397_v1 = vld [vmem:[%s3430_s3] sm:$0x7]  ;;  %vm1972_vm10 = vmpackc.low %vm2338_vm0, %vm2624_vm7 }
 0x21d   : > { %1338 = vmatpush.bf16.msra.mxu1 %v1277_v26  ;;  %1365 = vmatpush.bf16.msra.mxu3 %v1275_v34  ;;  %v1401_v48 = vperm.slane %v1397_v1, 2  ;;  %v1282_v29 = vpack.c.bf16 %v3506_v5, %v3505_v27 }
 0x21e   : > { %1957 = vmatpush.bf16.msk.msra.mxu0 %vm1955_vm15, %v1956_v43  ;;  %v1195_v36 = vsel %vm968_vm1, %v2265_v60, %v2195_v14  ;;  %v970_v13 = vsel %vm968_vm1, %v2255_v21, %v2264_v22  ;;  %v1400_v14 = vperm.slane %v1397_v1, 1 }
 0x21f   : > { %v1274_v31 = vpack.c.bf16 %v1197_v42, %v1195_v36  ;;  %v1260_v51 = vpack.c.bf16 %v970_v13, %v2928_v47  ;;  %v1399_v47 = vperm.slane %v1397_v1, 0  ;;  %1406 = vrot.lane.b32.xlu2 %v1401_v48, %s2328_s14 }
 0x220   : > { %1968 = vmatmul.msk.bf16.vlgmr.msra.gmra.mxu3 %vm1305_vm12, %v1303_v52  ;;  %1404 = vrot.lane.b32.xlu1 %v1400_v14, %s2328_s14 }
 0x221   : > { %1386 = vmatpush.bf16.msrb.mxu3 %v1317_v44  ;;  %1339 = vmatpush.bf16.msra.mxu1 %v1274_v31  ;;  %v1297_v46 = vpop.permute.xlu2 %1296 }
 0x222   : > { %1349 = vmatpush.bf16.msra.mxu2 %v1260_v51  ;;  %1402 = vrot.lane.b32.xlu0 %v1399_v47, %s2328_s14 }
 0x223   : > { %v963_v0 = vpop.permute.xlu1 %962 }
 0x224   : > { %v969_v10 = vsel %vm968_vm1, %v963_v0, %v2255_v21  ;;  %1961 = vmatmul.msk.bf16.vlgmr.msra.gmra.mxu1 %vm1305_vm12, %v1303_v52 }
 0x225   : > { %1371 = vmatpush.bf16.msrb.mxu1 %v2840_v57  ;;  %1387 = vmatpush.bf16.msrb.mxu3 %v1288_v59  ;;  %v3504_v57 = vpack.c.bf16 %v2806_v20, %v2764_v12  ;;  %v1259_v50 = vpack.c.bf16 %v969_v10, %v957_v32  ;;  %v3507_v12 = vpack.c.bf16 %v2780_v19, %v2783_v23  ;;  %v3510_v19 = vunpack.i.h.bf16 %v2944_v8  ;;  %v3515_v8 = vld [vmem:[#allocation2_spill] sm:$0xff] }
 0x226   : > { %v3508_v20 = vpack.c.bf16 %v2761_v11, %v2767_v53  ;;  %v3511_v23 = vmax.f32 %v2638_v54, 0.0  ;;  %v1302_v11 = vpack.c.b16 %v1300_v16, %v1300_v16  ;;  %v1261_v53 = vpack.c.bf16 %v2264_v22, %v3513_v18 }
 0x227   : > { %1350 = vmatpush.bf16.msra.mxu2 %v3504_v57  ;;  %1323 = vmatpush.bf16.msra.mxu0 %v1259_v50  ;;  %v3514_v54 = vunpack.i.l.bf16 %v3047_v15  ;;  %v3516_v62 = vmax.f32 %v3515_v8, 0.0 }
 0x229   : > { %1372 = vmatpush.bf16.msrb.mxu1 %v2831_v9  ;;  %1388 = vmatpush.bf16.msrb.mxu3 %v1285_v30  ;;  %v3509_v9 = vmax.f32 %v2555_v2, 0.0  ;;  %v3512_v2 = vpack.c.bf16 %v2735_v41, %v2750_v63  ;;  %v1959_v7 = vpack.c.bf16 %v3517_v40, %v3516_v62  ;;  %v3518_v41 = vld [vmem:[#allocation8_spill] sm:$0xff]  ;;  %v3519_v63 = vld [vmem:[#allocation6_spill] sm:$0xff] }
 0x22b   : > { %1351 = vmatpush.bf16.msra.mxu2 %v3507_v12  ;;  %1324 = vmatpush.bf16.msra.mxu0 %v3508_v20  ;;  %v1966_v24 = vpack.c.bf16 %v2799_v35, %v3509_v9  ;;  %v1276_v35 = vpack.c.bf16 %v3514_v54, %v2189_v38  ;;  %v3522_v38 = vmax.f32 %v3521_v3, 0.0 }
 0x22d   : > { %1373 = vmatpush.bf16.msrb.mxu1 %v2871_v58  ;;  %1389 = vmatpush.bf16.msrb.mxu3 %v1282_v29  ;;  %v1970_v58 = vpack.c.bf16 %v3511_v23, %v3510_v19  ;;  %v1973_v15 = vpack.c.bf16 %v3524_v33, %v3522_v38 }
 0x22f   : > { %1967 = vmatpush.bf16.msk.msra.mxu2 %vm1965_vm9, %v1966_v24  ;;  %1325 = vmatpush.bf16.msra.mxu0 %v3512_v2 }
 0x231   : > { %1971 = vmatpush.bf16.msk.msrb.mxu1 %vm1969_vm11, %v1970_v58  ;;  %1390 = vmatpush.bf16.msrb.mxu3 %v1279_v4 }
 0x232   : > { %1353 = vmatmul.bf16.vlgmr.msra.gmra.mxu2 %v1302_v11 }
 0x233   : > { %1960 = vmatpush.bf16.msk.msra.mxu0 %vm1958_vm4, %v1959_v7 }
 0x235   : > { %1375 = vmatpush.bf16.msrb.mxu1 %v1261_v53  ;;  %1391 = vmatpush.bf16.msrb.mxu3 %v1276_v35 }
 0x236   : > { %1327 = vmatmul.bf16.vlgmr.msra.gmra.mxu0 %v1302_v11 }
 0x238   : > { %1975 = vmatmul.msk.bf16.vlgmr.msrb.gmra.mxu3 %vm1305_vm12, %v1303_v52 }
 0x239   : > { %1376 = vmatpush.bf16.msrb.mxu1 %v3518_v41 }
 0x23d   : > { %1377 = vmatpush.bf16.msrb.mxu1 %v3519_v63 }
 0x241   : > { %1974 = vmatpush.bf16.msk.msrb.mxu1 %vm1972_vm10, %v1973_v15 }
 0x244   : > { %1379 = vmatmul.bf16.vlgmr.msrb.gmra.mxu1 %v1302_v11 }
 0x279   : > { %v1407_v39 = vpop.permute.xlu2 %1406 }
 0x292   : > { %v1405_v49 = vpop.permute.xlu1 %1404 }
 0x293   : > { %v1409_v34 = vsel %vm932_vm6, %v1405_v49, %v1407_v39 }
 0x294   : > { %v1403_v45 = vpop.permute.xlu0 %1402 }
 0x295   : > { %v1408_v21 = vsel %vm932_vm6, %v1403_v45, %v1405_v49 }
 0x2a1   : > { %v1341_v17 = vpop.f32.mrf.mxu1 }
 0x2a3   : > { %v1367_v56 = vpop.f32.mrf.mxu3 }
 0x2a9   : > { %v1343_v52 = vpop.f32.mrf.mxu1 }
 0x2ab   : > { %v1369_v55 = vpop.f32.mrf.mxu3 }
 0x2b3   : > { %v1328_v43 = vpop.f32.mrf.mxu0 }
 0x2b4   : > { %v1329_v37 = vadd.f32 %v1328_v43, %v1297_v46 }
 0x2b5   : > { %v1354_v6 = vpop.f32.mrf.mxu2 }
 0x2b6   : > { %v1355_v26 = vadd.f32 %v1354_v6, %v1297_v46  ;;  %v1342_v60 = vadd.f32 %v1341_v17, %v1329_v37 }
 0x2b8   : > { %v1368_v22 = vadd.f32 %v1367_v56, %v1355_v26  ;;  %v1413_v42 = vmul.f32 %v1408_v21, %v1342_v60 }
 0x2ba   : > { %v1414_v44 = vmul.f32 %v1409_v34, %v1368_v22 }
 0x2bb   : > { %v1393_v36 = vpop.f32.mrf.mxu3  ;;  %v1330_v13 = vpop.f32.mrf.mxu0 }
 0x2bd   : > { %v1356_v31 = vpop.f32.mrf.mxu2 }
 0x2c1   : > { %v1380_v51 = vpop.f32.mrf.mxu1 }
 0x2c2   : > { %v1381_v28 = vadd.f32 %v1380_v51, %v1297_v46 }
 0x2c3   : > { %v1395_v59 = vpop.f32.mrf.mxu3 }
 0x2c4   : > { %v1394_v1 = vadd.f32 %v1393_v36, %v1381_v28 }
 0x2c5   : > { %1419 = sbr.rel (%p1976_p4) target bundleno = 731 (0x2db), region = 56 }
 0x2c6   : > { %v1415_v14 = vmul.f32 %v1407_v39, %v1394_v1 }
 0x2c9   : > { %v1382_v47 = vpop.f32.mrf.mxu1 }
 0x2ca   : > { %vm1420_vm3 = vcmask 0   ;;  %v2339_v0 = vmov 0.0  }
 0x2cb   : > { %1421 = vst.msk [vmem:[%s2440_s26] sm:$0x1] %vm1420_vm3, %v2339_v0 }
 0x2cc   : > { %1422 = vst.msk [vmem:[%s2440_s26 + $0x1] sm:$0x1] %vm1420_vm3, %v2339_v0 }
 0x2cd   : > { %1423 = vst.msk [vmem:[%s2440_s26 + $0x2] sm:$0x1] %vm1420_vm3, %v2339_v0 }
 0x2ce   : > { %1424 = vst.msk [vmem:[%s2440_s26 + $0x3] sm:$0x1] %vm1420_vm3, %v2339_v0 }
 0x2cf   : > { %1425 = vst.msk [vmem:[%s2440_s26 + $0x4] sm:$0x1] %vm1420_vm3, %v2339_v0 }
 0x2d0   : > { %1426 = vst.msk [vmem:[%s2440_s26 + $0x5] sm:$0x1] %vm1420_vm3, %v2339_v0 }
 0x2d1   : > { %1427 = vst.msk [vmem:[%s2440_s26 + $0x6] sm:$0x1] %vm1420_vm3, %v2339_v0 }
 0x2d2   : > { %1428 = vst.msk [vmem:[%s2440_s26 + $0x7] sm:$0x1] %vm1420_vm3, %v2339_v0 }
 0x2d3   : > { %1429 = vst.msk [vmem:[%s2445_s29] sm:$0x1] %vm1420_vm3, %v2339_v0 }
 0x2d4   : > { %1430 = vst.msk [vmem:[%s2445_s29 + $0x1] sm:$0x1] %vm1420_vm3, %v2339_v0 }
 0x2d5   : > { %1431 = vst.msk [vmem:[%s2445_s29 + $0x2] sm:$0x1] %vm1420_vm3, %v2339_v0 }
 0x2d6   : > { %1432 = vst.msk [vmem:[%s2445_s29 + $0x3] sm:$0x1] %vm1420_vm3, %v2339_v0 }
 0x2d7   : > { %1433 = vst.msk [vmem:[%s2445_s29 + $0x4] sm:$0x1] %vm1420_vm3, %v2339_v0 }
 0x2d8   : > { %1434 = vst.msk [vmem:[%s2445_s29 + $0x5] sm:$0x1] %vm1420_vm3, %v2339_v0 }
 0x2d9   : > { %1435 = vst.msk [vmem:[%s2445_s29 + $0x6] sm:$0x1] %vm1420_vm3, %v2339_v0 }
 0x2da   : > { %1436 = vst.msk [vmem:[%s2445_s29 + $0x7] sm:$0x1] %vm1420_vm3, %v2339_v0 }
 0x2db PF: > { %1540 = vrot.lane.b32.xlu1 %v1368_v22, %s2333_s23  ;;  %v1445_v48 = vadd.f32 %v1414_v44, %v1413_v42  ;;  %vm1446_vm7 = vcmask 244736   ;;  %v1493_v10 = vmul.f32 %v1413_v42, %v1413_v42  ;;  %v1494_v30 = vmul.f32 %v1414_v44, %v1414_v44  ;;  %1538 = vrot.lane.b32.xlu2 %v1342_v60, %s2333_s23  ;;  %v1437_v19 = vld [vmem:[%s2440_s26] sm:$0x1]  ;;  %v1438_v23 = vld [vmem:[%s2440_s26 + $0x1] sm:$0x1]  ;;  %p1977_p5 = scmp.ne.s32.totalorder %s2304_s13, 15 }
 0x2dc   : > { %v1447_v32 = vsel %vm1446_vm7, %v1415_v14, 0.0  ;;  %v1495_v57 = vmul.f32 %v1415_v14, %v1415_v14  ;;  %vm1549_vm6 = vcmask 1047704   ;;  %v2340_v12 = vmov 0.0   ;;  %v1439_v58 = vld [vmem:[%s2440_s26 + $0x2] sm:$0x1] }
 0x2dd   : > { %v1448_v50 = vadd.f32 %v1447_v32, %v1445_v48  ;;  %v1496_v27 = vadd.f32 %v1494_v30, %v1493_v10  ;;  %vm3525_vm14 = vcmask 154624   ;;  %v1440_v4 = vld [vmem:[%s2440_s26 + $0x3] sm:$0x1]  ;;  %vm1476_vm0 = vcmask 0   ;;  %v1441_v54 = vld [vmem:[%s2440_s26 + $0x4] sm:$0x1] }
 0x2de   : > { %v1497_v5 = vsel %vm1446_vm7, %v1495_v57, 0.0  ;;  %1534 = vst.msk [vmem:[%s2467_s30] sm:$0xff] %vm3525_vm14, %v2340_v12  ;;  %vm3526_vm2 = vmmov %vm3525_vm14  ;;  %v1442_v62 = vld [vmem:[%s2440_s26 + $0x5] sm:$0x1]  ;;  %v1443_v25 = vld [vmem:[%s2440_s26 + $0x6] sm:$0x1] }
 0x2df   : > { %1449 = vadd.xlane.f32.xlu0 %v1448_v50  ;;  %v1498_v29 = vadd.f32 %v1497_v5, %v1496_v27  ;;  %v1444_v61 = vld [vmem:[%s2440_s26 + $0x7] sm:$0x1]  ;;  %v1485_v52 = vld [vmem:[%s2445_s29] sm:$0x1]  ;;  %v1486_v55 = vld [vmem:[%s2445_s29 + $0x1] sm:$0x1] }
 0x2e0   : > { %vm3527_vm5 = vmmov %vm3526_vm2  ;;  %vm1552_vm8 = vcmask 400384   ;;  %v1487_v37 = vld [vmem:[%s2445_s29 + $0x2] sm:$0x1]  ;;  %vm1554_vm1 = vcmask 556424   ;;  %v1488_v34 = vld [vmem:[%s2445_s29 + $0x3] sm:$0x1] }
 0x2e1   : > { %v1489_v22 = vld [vmem:[%s2445_s29 + $0x4] sm:$0x1]  ;;  %v1490_v36 = vld [vmem:[%s2445_s29 + $0x5] sm:$0x1]  ;;  %v1491_v51 = vld [vmem:[%s2445_s29 + $0x6] sm:$0x1] }
 0x2e3   : > { %1542 = vrot.lane.b32.xlu1 %v1394_v1, %s2333_s23  ;;  %v1492_v1 = vld [vmem:[%s2445_s29 + $0x7] sm:$0x1] }
 0x2e7   : > { %1499 = vadd.xlane.f32.xlu0 %v1498_v29 }
 0x335   : > { %v1539_v16 = vpop.permute.xlu2 %1538 }
 0x336   : > { %1550 = vst.msk [vmem:[%s2467_s30] sm:$0xff] %vm1549_vm6, %v1539_v16 }
 0x34d   : > { %v1541_v20 = vpop.permute.xlu1 %1540 }
 0x34e   : > { %v1544_v9 = vsel %vm3526_vm2, %v1539_v16, %v1541_v20 }
 0x34f   : > { %1551 = vst [vmem:[%s2467_s30 + $0x8] sm:$0xff] %v1544_v9 }
 0x352   : > { %v1450_v24 = vpop.xlane.xlu0 %1449 }
 0x353   : > { %v1452_v11 = vperm.slane %v1450_v24, 0  ;;  %v1453_v2 = vperm.slane %v1450_v24, 1  ;;  %v1454_v18 = vperm.slane %v1450_v24, 2  ;;  %v1455_v53 = vperm.slane %v1450_v24, 3 }
 0x354   : > { %v1456_v35 = vperm.slane %v1450_v24, 4  ;;  %v1457_v8 = vperm.slane %v1450_v24, 5  ;;  %v1458_v40 = vperm.slane %v1450_v24, 6  ;;  %v1459_v3 = vperm.slane %v1450_v24, 7 }
 0x355   : > { %v1468_v7 = vadd.f32 %v1452_v11, %v1437_v19  ;;  %v1469_v41 = vadd.f32 %v1453_v2, %v1438_v23  ;;  %v1470_v63 = vadd.f32 %v1454_v18, %v1439_v58  ;;  %v1471_v38 = vadd.f32 %v1455_v53, %v1440_v4  ;;  %v1543_v56 = vpop.permute.xlu1 %1542 }
 0x356   : > { %v1472_v33 = vadd.f32 %v1456_v35, %v1441_v54  ;;  %v1473_v15 = vadd.f32 %v1457_v8, %v1442_v62  ;;  %v1474_v17 = vadd.f32 %v1458_v40, %v1443_v25  ;;  %v1475_v46 = vadd.f32 %v1459_v3, %v1444_v61 }
 0x357   : > { %1477 = vst.msk [vmem:[%s2440_s26] sm:$0x1] %vm1476_vm0, %v1468_v7  ;;  %v1545_v6 = vsel %vm3527_vm5, %v1541_v20, %v1543_v56 }
 0x358   : > { %1478 = vst.msk [vmem:[%s2440_s26 + $0x1] sm:$0x1] %vm1476_vm0, %v1469_v41 }
 0x359   : > { %1479 = vst.msk [vmem:[%s2440_s26 + $0x2] sm:$0x1] %vm1476_vm0, %v1470_v63 }
 0x35a   : > { %1480 = vst.msk [vmem:[%s2440_s26 + $0x3] sm:$0x1] %vm1476_vm0, %v1471_v38  ;;  %v1500_v39 = vpop.xlane.xlu0 %1499 }
 0x35b   : > { %1481 = vst.msk [vmem:[%s2440_s26 + $0x4] sm:$0x1] %vm1476_vm0, %v1472_v33  ;;  %v1502_v49 = vperm.slane %v1500_v39, 0  ;;  %v1503_v45 = vperm.slane %v1500_v39, 1  ;;  %v1504_v43 = vperm.slane %v1500_v39, 2  ;;  %v1505_v26 = vperm.slane %v1500_v39, 3 }
 0x35c   : > { %1482 = vst.msk [vmem:[%s2440_s26 + $0x5] sm:$0x1] %vm1476_vm0, %v1473_v15  ;;  %v1506_v21 = vperm.slane %v1500_v39, 4  ;;  %v1507_v44 = vperm.slane %v1500_v39, 5  ;;  %v1508_v13 = vperm.slane %v1500_v39, 6  ;;  %v1509_v28 = vperm.slane %v1500_v39, 7 }
 0x35d   : > { %1483 = vst.msk [vmem:[%s2440_s26 + $0x6] sm:$0x1] %vm1476_vm0, %v1474_v17  ;;  %v1518_v60 = vadd.f32 %v1502_v49, %v1485_v52  ;;  %v1519_v42 = vadd.f32 %v1503_v45, %v1486_v55  ;;  %v1520_v31 = vadd.f32 %v1504_v43, %v1487_v37  ;;  %v1521_v59 = vadd.f32 %v1505_v26, %v1488_v34 }
 0x35e   : > { %1484 = vst.msk [vmem:[%s2440_s26 + $0x7] sm:$0x1] %vm1476_vm0, %v1475_v46  ;;  %v1522_v14 = vadd.f32 %v1506_v21, %v1489_v22  ;;  %v1523_v47 = vadd.f32 %v1507_v44, %v1490_v36  ;;  %v1524_v0 = vadd.f32 %v1508_v13, %v1491_v51  ;;  %v1525_v48 = vadd.f32 %v1509_v28, %v1492_v1 }
 0x35f   : > { %1553 = vst.msk [vmem:[%s2467_s30 + $0x10] sm:$0xff] %vm1552_vm8, %v1545_v6 }
 0x360   : > { %1555 = vst.msk [vmem:[%s2467_s30 + $0x10] sm:$0xff] %vm1554_vm1, %v2340_v12 }
 0x361   : > { %1526 = vst.msk [vmem:[%s2445_s29] sm:$0x1] %vm1476_vm0, %v1518_v60 }
 0x362   : > { %1527 = vst.msk [vmem:[%s2445_s29 + $0x1] sm:$0x1] %vm1476_vm0, %v1519_v42 }
 0x363   : > { %1528 = vst.msk [vmem:[%s2445_s29 + $0x2] sm:$0x1] %vm1476_vm0, %v1520_v31 }
 0x364   : > { %1529 = vst.msk [vmem:[%s2445_s29 + $0x3] sm:$0x1] %vm1476_vm0, %v1521_v59  ;;  %1559 = sbr.rel (%p1977_p5) target bundleno = 914 (0x392), region = 60 }
 0x365   : > { %1530 = vst.msk [vmem:[%s2445_s29 + $0x4] sm:$0x1] %vm1476_vm0, %v1522_v14 }
 0x366   : > { %1531 = vst.msk [vmem:[%s2445_s29 + $0x5] sm:$0x1] %vm1476_vm0, %v1523_v47 }
 0x367   : > { %1532 = vst.msk [vmem:[%s2445_s29 + $0x6] sm:$0x1] %vm1476_vm0, %v1524_v0 }
 0x368   : > { %1533 = vst.msk [vmem:[%s2445_s29 + $0x7] sm:$0x1] %vm1476_vm0, %v1525_v48 }
 0x369   : > { %v1560_v10 = vld [vmem:[%s2440_s26] sm:$0x1]  ;;  %v1561_v30 = vld [vmem:[%s2440_s26 + $0x1] sm:$0x1]  ;;  %v1562_v32 = vld [vmem:[%s2440_s26 + $0x2] sm:$0x1] }
 0x36a   : > { %v1576_v57 = vmul.f32 0.00024414063, %v1560_v10  ;;  %v1577_v50 = vmul.f32 0.00024414063, %v1561_v30  ;;  %v1563_v27 = vld [vmem:[%s2440_s26 + $0x3] sm:$0x1]  ;;  %v1578_v5 = vmul.f32 0.00024414063, %v1562_v32 }
 0x36b   : > { %v1564_v29 = vld [vmem:[%s2440_s26 + $0x4] sm:$0x1]  ;;  %v1579_v16 = vmul.f32 0.00024414063, %v1563_v27  ;;  %v1565_v12 = vld [vmem:[%s2440_s26 + $0x5] sm:$0x1] }
 0x36c   : > { %1608 = vst.msk [vmem:[%s2440_s26] sm:$0x1] %vm1476_vm0, %v1576_v57  ;;  %v1592_v20 = vmul.f32 %v1576_v57, %v1576_v57  ;;  %v1580_v9 = vmul.f32 0.00024414063, %v1564_v29  ;;  %v1566_v24 = vld [vmem:[%s2440_s26 + $0x6] sm:$0x1]  ;;  %v1593_v19 = vmul.f32 %v1577_v50, %v1577_v50  ;;  %v1594_v4 = vmul.f32 %v1578_v5, %v1578_v5 }
 0x36d   : > { %1609 = vst.msk [vmem:[%s2440_s26 + $0x1] sm:$0x1] %vm1476_vm0, %v1577_v50  ;;  %v1567_v23 = vld [vmem:[%s2440_s26 + $0x7] sm:$0x1]  ;;  %v1568_v58 = vld [vmem:[%s2445_s29] sm:$0x1]  ;;  %v1595_v53 = vmul.f32 %v1579_v16, %v1579_v16 }
 0x36e   : > { %1610 = vst.msk [vmem:[%s2440_s26 + $0x2] sm:$0x1] %vm1476_vm0, %v1578_v5  ;;  %v1581_v11 = vmul.f32 0.00024414063, %v1565_v12  ;;  %v1584_v2 = vmul.f32 0.00024414063, %v1568_v58  ;;  %v1569_v18 = vld [vmem:[%s2445_s29 + $0x1] sm:$0x1]  ;;  %v1596_v62 = vmul.f32 %v1580_v9, %v1580_v9 }
 0x36f   : > { %1611 = vst.msk [vmem:[%s2440_s26 + $0x3] sm:$0x1] %vm1476_vm0, %v1579_v16  ;;  %v1582_v54 = vmul.f32 0.00024414063, %v1566_v24  ;;  %v1585_v35 = vmul.f32 0.00024414063, %v1569_v18  ;;  %v1570_v8 = vld [vmem:[%s2445_s29 + $0x2] sm:$0x1] }
 0x370   : > { %1612 = vst.msk [vmem:[%s2440_s26 + $0x4] sm:$0x1] %vm1476_vm0, %v1580_v9  ;;  %v1583_v40 = vmul.f32 0.00024414063, %v1567_v23  ;;  %v1600_v7 = vsub.f32 %v1584_v2, %v1592_v20  ;;  %v1586_v41 = vmul.f32 0.00024414063, %v1570_v8  ;;  %v1571_v63 = vld [vmem:[%s2445_s29 + $0x3] sm:$0x1]  ;;  %v1597_v17 = vmul.f32 %v1581_v11, %v1581_v11 }
 0x371   : > { %1613 = vst.msk [vmem:[%s2440_s26 + $0x5] sm:$0x1] %vm1476_vm0, %v1581_v11  ;;  %v1601_v25 = vsub.f32 %v1585_v35, %v1593_v19  ;;  %v1587_v3 = vmul.f32 0.00024414063, %v1571_v63  ;;  %v1572_v38 = vld [vmem:[%s2445_s29 + $0x4] sm:$0x1]  ;;  %v1598_v39 = vmul.f32 %v1582_v54, %v1582_v54 }
 0x372   : > { %1614 = vst.msk [vmem:[%s2440_s26 + $0x6] sm:$0x1] %vm1476_vm0, %v1582_v54  ;;  %v3302_v61 = vadd.f32 1e-05, %v1600_v7  ;;  %v1602_v33 = vsub.f32 %v1586_v41, %v1594_v4  ;;  %v1588_v15 = vmul.f32 0.00024414063, %v1572_v38  ;;  %v1599_v6 = vmul.f32 %v1583_v40, %v1583_v40 }
 0x373   : > { %1615 = vst.msk [vmem:[%s2440_s26 + $0x7] sm:$0x1] %vm1476_vm0, %v1583_v40  ;;  %v3304_v56 = vadd.f32 1e-05, %v1601_v25  ;;  %v1603_v46 = vsub.f32 %v1587_v3, %v1595_v53  ;;  %v1573_v52 = vld [vmem:[%s2445_s29 + $0x5] sm:$0x1] }
 0x374   : > { %v1574_v55 = vld [vmem:[%s2445_s29 + $0x6] sm:$0x1]  ;;  %2266 = vrsqrt.f32 %v3302_v61  ;;  %v3309_v49 = vadd.f32 1e-05, %v1602_v33  ;;  %v1604_v45 = vsub.f32 %v1588_v15, %v1596_v62  ;;  %v1575_v43 = vld [vmem:[%s2445_s29 + $0x7] sm:$0x1]  ;;  %vm1630_vm13 = vweird.f32 %v3302_v61 }
 0x375   : > { %2268 = vrsqrt.f32 %v3304_v56  ;;  %v3313_v37 = vadd.f32 1e-05, %v1603_v46  ;;  %v1589_v26 = vmul.f32 0.00024414063, %v1573_v52  ;;  %v1590_v21 = vmul.f32 0.00024414063, %v1574_v55 }
 0x376   : > { %2270 = vrsqrt.f32 %v3309_v49  ;;  %v3316_v34 = vadd.f32 1e-05, %v1604_v45  ;;  %v1591_v22 = vmul.f32 0.00024414063, %v1575_v43  ;;  %vm1640_vm15 = vweird.f32 %v3304_v56 }
 0x377   : > { %2272 = vrsqrt.f32 %v3313_v37  ;;  %v1605_v60 = vsub.f32 %v1589_v26, %v1597_v17  ;;  %v1606_v44 = vsub.f32 %v1590_v21, %v1598_v39  ;;  %vm1650_vm12 = vweird.f32 %v3309_v49 }
 0x378   : > { %2274 = vrsqrt.f32 %v3316_v34  ;;  %v1607_v36 = vsub.f32 %v1591_v22, %v1599_v6  ;;  %vm1660_vm9 = vweird.f32 %v3313_v37  ;;  %vm1670_vm11 = vweird.f32 %v3316_v34 }
 0x379   : > { %v3320_v42 = vadd.f32 1e-05, %v1605_v60  ;;  %v3323_v31 = vadd.f32 1e-05, %v1606_v44 }
 0x37a   : > { %v2267_v13 = vpop.eup %2266  ;;  %v3334_v48 = vadd.f32 1e-05, %v1607_v36 }
 0x37b   : > { %v2269_v51 = vpop.eup %2268  ;;  %v1625_v28 = vmul.f32 %v2267_v13, %v3302_v61  ;;  %2276 = vrsqrt.f32 %v3320_v42  ;;  %vm1631_vm4 = vweird.f32 %v2267_v13  ;;  %vm1680_vm3 = vweird.f32 %v3320_v42 }
 0x37c   : > { %v2271_v59 = vpop.eup %2270  ;;  %v1635_v1 = vmul.f32 %v2269_v51, %v3304_v56  ;;  %2278 = vrsqrt.f32 %v3323_v31  ;;  %vm1641_vm10 = vweird.f32 %v2269_v51  ;;  %vm1690_vm7 = vweird.f32 %v3323_v31  ;;  %vm3344_vm2 = vmor %vm1630_vm13, %vm1631_vm4 }
 0x37d   : > { %v2273_v14 = vpop.eup %2272  ;;  %v1626_v47 = vmul.f32 %v2267_v13, %v1625_v28  ;;  %v1645_v0 = vmul.f32 %v2271_v59, %v3309_v49  ;;  %vm1651_vm6 = vweird.f32 %v2271_v59  ;;  %2280 = vrsqrt.f32 %v3334_v48  ;;  %vm3352_vm8 = vmor %vm1640_vm15, %vm1641_vm10 }
 0x37e   : > { %v2275_v10 = vpop.eup %2274  ;;  %v1636_v30 = vmul.f32 %v2269_v51, %v1635_v1  ;;  %v1655_v32 = vmul.f32 %v2273_v14, %v3313_v37  ;;  %vm1661_vm14 = vweird.f32 %v2273_v14  ;;  %vm3360_vm1 = vmor %vm1650_vm12, %vm1651_vm6  ;;  %vm1700_vm10 = vweird.f32 %v3334_v48 }
 0x37f   : > { %v1627_v57 = vmul.f32 0.5, %v1626_v47  ;;  %v1646_v50 = vmul.f32 %v2271_v59, %v1645_v0  ;;  %v1665_v27 = vmul.f32 %v2275_v10, %v3316_v34  ;;  %vm1671_vm5 = vweird.f32 %v2275_v10  ;;  %vm3369_vm15 = vmor %vm1660_vm9, %vm1661_vm14 }
 0x380   : > { %v1637_v5 = vmul.f32 0.5, %v1636_v30  ;;  %v1656_v29 = vmul.f32 %v2273_v14, %v1655_v32  ;;  %vm3380_vm12 = vmor %vm1670_vm11, %vm1671_vm5 }
 0x381   : > { %v2277_v16 = vpop.eup %2276  ;;  %v1628_v12 = vsub.f32 1.5, %v1627_v57  ;;  %v1647_v20 = vmul.f32 0.5, %v1646_v50  ;;  %v1666_v9 = vmul.f32 %v2275_v10, %v1665_v27 }
 0x382   : > { %v2279_v24 = vpop.eup %2278  ;;  %v1638_v23 = vsub.f32 1.5, %v1637_v5  ;;  %v1657_v58 = vmul.f32 0.5, %v1656_v29  ;;  %v1675_v4 = vmul.f32 %v2277_v16, %v3320_v42  ;;  %vm1681_vm13 = vweird.f32 %v2277_v16 }
 0x383   : > { %v1629_v11 = vmul.f32 %v2267_v13, %v1628_v12  ;;  %v1648_v18 = vsub.f32 1.5, %v1647_v20  ;;  %v1667_v53 = vmul.f32 0.5, %v1666_v9  ;;  %v1685_v54 = vmul.f32 %v2279_v24, %v3323_v31  ;;  %v2281_v38 = vpop.eup %2280  ;;  %vm1682_vm11 = vmor %vm1680_vm3, %vm1681_vm13 }
 0x384   : > { %v1639_v35 = vmul.f32 %v2269_v51, %v1638_v23  ;;  %v1658_v62 = vsub.f32 1.5, %v1657_v58  ;;  %v1676_v40 = vmul.f32 %v2277_v16, %v1675_v4  ;;  %vm1691_vm9 = vweird.f32 %v2279_v24 }
 0x385   : > { %v1633_v7 = vsel %vm3344_vm2, %v2267_v13, %v1629_v11  ;;  %v1649_v41 = vmul.f32 %v2271_v59, %v1648_v18  ;;  %v1668_v25 = vsub.f32 1.5, %v1667_v53  ;;  %v1686_v3 = vmul.f32 %v2279_v24, %v1685_v54  ;;  %vm1692_vm4 = vmor %vm1690_vm7, %vm1691_vm9 }
 0x386   : > { %1704 = vst.msk [vmem:[%s2445_s29] sm:$0x1] %vm1476_vm0, %v1633_v7  ;;  %v1643_v61 = vsel %vm3352_vm8, %v2269_v51, %v1639_v35  ;;  %v1659_v33 = vmul.f32 %v2273_v14, %v1658_v62  ;;  %v1677_v17 = vmul.f32 0.5, %v1676_v40  ;;  %v1695_v55 = vmul.f32 %v2281_v38, %v3334_v48 }
 0x387   : > { %1705 = vst.msk [vmem:[%s2445_s29 + $0x1] sm:$0x1] %vm1476_vm0, %v1643_v61  ;;  %v1653_v56 = vsel %vm3360_vm1, %v2271_v59, %v1649_v41  ;;  %v1669_v46 = vmul.f32 %v2275_v10, %v1668_v25  ;;  %v1687_v52 = vmul.f32 0.5, %v1686_v3  ;;  %vm1701_vm6 = vweird.f32 %v2281_v38 }
 0x388   : > { %1706 = vst.msk [vmem:[%s2445_s29 + $0x2] sm:$0x1] %vm1476_vm0, %v1653_v56  ;;  %v1663_v39 = vsel %vm3369_vm15, %v2273_v14, %v1659_v33  ;;  %v1678_v49 = vsub.f32 1.5, %v1677_v17  ;;  %v1696_v6 = vmul.f32 %v2281_v38, %v1695_v55  ;;  %vm1702_vm3 = vmor %vm1700_vm10, %vm1701_vm6 }
 0x389   : > { %1707 = vst.msk [vmem:[%s2445_s29 + $0x3] sm:$0x1] %vm1476_vm0, %v1663_v39  ;;  %v1673_v45 = vsel %vm3380_vm12, %v2275_v10, %v1669_v46  ;;  %v1688_v43 = vsub.f32 1.5, %v1687_v52 }
 0x38a   : > { %1708 = vst.msk [vmem:[%s2445_s29 + $0x4] sm:$0x1] %vm1476_vm0, %v1673_v45  ;;  %v1679_v37 = vmul.f32 %v2277_v16, %v1678_v49  ;;  %v1697_v34 = vmul.f32 0.5, %v1696_v6 }
 0x38b   : > { %v1689_v26 = vmul.f32 %v2279_v24, %v1688_v43 }
 0x38c   : > { %v1683_v21 = vsel %vm1682_vm11, %v2277_v16, %v1679_v37  ;;  %v1698_v22 = vsub.f32 1.5, %v1697_v34 }
 0x38d   : > { %1709 = vst.msk [vmem:[%s2445_s29 + $0x5] sm:$0x1] %vm1476_vm0, %v1683_v21  ;;  %v1693_v60 = vsel %vm1692_vm4, %v2279_v24, %v1689_v26 }
 0x38e   : > { %1710 = vst.msk [vmem:[%s2445_s29 + $0x6] sm:$0x1] %vm1476_vm0, %v1693_v60  ;;  %v1699_v44 = vmul.f32 %v2281_v38, %v1698_v22 }
 0x390   : > { %v1703_v42 = vsel %vm1702_vm3, %v2281_v38, %v1699_v44 }
 0x391   : > { %1711 = vst.msk [vmem:[%s2445_s29 + $0x7] sm:$0x1] %vm1476_vm0, %v1703_v42 }
 0x392 PF: > { %s21_s17 = sadd.s32 1, %s2320_s17   ;;  %s3538_s13 = smov %s2312_s15 }
 0x393   : > { %p18_p6 = scmp.ge.s32.totalorder %s21_s17, 34   ;;  %s3539_s14 = smov %s2316_s16 }
 0x394   : > { %s3540_s15 = smov %s3543_s18  ;;  %s3541_s16 = smov %s3547_s19 }
 0x395   :  { %20 = sbr.rel (!%p18_p6) target bundleno = 3 (0x3), region = 168 }

// kernel: encoder_block_forward.5
= control target key start
LH: loop header
LB: loop body
LE: loop exit
PB: predicated region body
PF: predicated region fallthrough
CT: control target
= control target key end

     0   :  { %s10124_s0 = inlined_call_operand.vmem [shape: f32[2,18,8,324], index: 0, kind: input, shape index: {}, may-alias: {0,1}]   ;;  %s10125_s1 = inlined_call_operand.vmem [shape: f32[2,18,8,324], index: 1, kind: input, shape index: {}, may-alias: {0,1}]   ;;  %s10126_s2 = inlined_call_operand.vmem [shape: f32[2,8,1,1], index: 2, kind: input, shape index: {}]   ;;  %s10127_s3 = inlined_call_operand.vmem [shape: f32[2,8,1,1], index: 3, kind: input, shape index: {}]   ;;  %s10128_s4 = inlined_call_operand.hbm [shape: f32[2,8,16,16,16], index: 4, kind: output, shape index: {0}]   ;;  %s10129_s5 = inlined_call_operand.hbm [shape: f32[2,8,8,8,8], index: 5, kind: output, shape index: {1}]  }
   0x1   :  { %10226 = sst [smem:[#allocation108_spill]] %s10124_s0 }
   0x2   :  { %10227 = sst [smem:[#allocation109_spill]] %s10125_s1 }
   0x3   :  { %10228 = sst [smem:[#allocation110_spill]] %s10126_s2 }
   0x4   :  { %10229 = sst [smem:[#allocation111_spill]] %s10127_s3 }
   0x5   :  { %10230 = sst [smem:[#allocation112_spill]] %s10128_s4 }
   0x6   :  { %11 = vsyncpa [#allocation3], 0 }
   0x7   :  { %13 = vsyncpa [#allocation3 + $0x1], 0 }
   0x8   :  { %14 = vsyncpa [#allocation5], 0 }
   0x9   :  { %16 = vsyncpa [#allocation5 + $0x1], 0  ;;  %s5629_s18 = smov 0   ;;  %s5631_s19 = smov 0  }
   0xa   :  { %s5633_s20 = smov 0   ;;  %s5635_s21 = smov 0  }
   0xb   :  { %s5637_s22 = smov 0   ;;  %s5639_s23 = smov 0  }
   0xc   :  { %s5641_s24 = smov 0   ;;  %s5643_s25 = smov 0  }
   0xd LB: > { %s5285_s26 = sadd.s32 4294967295, %s5560_s25   ;;  %s5286_s27 = sadd.s32 4294967294, %s5560_s25   ;;  %s5560_s25 = sphi %s5643_s25, %s22_s25   ;;  %s5556_s24 = sphi %s5641_s24, %s10647_s24   ;;  %s5552_s23 = sphi %s5639_s23, %s10646_s23   ;;  %s5548_s22 = sphi %s5637_s22, %s10645_s22   ;;  %s5544_s21 = sphi %s5635_s21, %s10644_s21   ;;  %s5540_s20 = sphi %s5633_s20, %s10643_s20   ;;  %s5536_s19 = sphi %s5631_s19, %s10642_s19   ;;  %s5532_s18 = sphi %s5629_s18, %s10641_s18  }
   0xe   : > { %s31_s28 = sadd.s32 1, %s5552_s23  ;;  %s34_s29 = sadd.s32 1, %s5556_s24 }
   0xf   : > { %p32_p0 = scmp.ge.s32.totalorder %s31_s28, 8  ;;  %p169_p1 = scmp.ne.s32.totalorder %s5540_s20, %s5536_s19 }
  0x10   : > { %p170_p2 = scmp.eq.s32.totalorder %s5285_s26, 15  ;;  %p175_p5 = scmp.ne.s32.totalorder %s5536_s19, %s5532_s18 }
  0x11   : > { %s10649_s28 = smov (%p32_p0, %s31_s28), 0  ;;  %s10651_s29 = smov (!%p32_p0, %s34_s29), %s5556_s24 }
  0x12   : > { %s155_s30 = ssub.s32 %s5552_s23, %s10649_s28  ;;  %p5680_p3 = por %p170_p2, %p169_p1 }
  0x13   : > { %p36_p4 = scmp.ge.s32.totalorder %s10651_s29, 2  ;;  %p176_p6 = scmp.eq.s32.totalorder %s5286_s27, 15 }
  0x14   : > { %p5293_p7 = scmp.ge.s32.totalorder %s5560_s25, 1  ;;  %p268_p9 = scmp.lt.s32.totalorder %s5560_s25, 17 }
  0x15   : > { %s10653_s29 = smov (%p36_p4, %s10651_s29), 0  ;;  %p5689_p8 = por %p176_p6, %p175_p5 }
  0x16   : > { %s154_s8 = ssub.s32 %s5556_s24, %s10653_s29  ;;  %s159_s9 = sadd.s32 1, %s5540_s20 }
  0x17   : > { %s156_s10 = sor.u32 %s155_s30, %s154_s8  ;;  %p269_p10 = pnand %p5293_p7, %p268_p9 }
  0x18   : > { %p157_p11 = scmp.eq.s32.totalorder %s156_s10, 0 }
  0x19   : > { %272 = sbr.rel (%p269_p10) target bundleno = 1839 (0x72f), region = 36 }
  0x1a   : > { %s5698_s11 = scalar_select %p157_p11, %s5540_s20, %s159_s9  }
  0x1e   : > { %p328_p12 = scmp.lt.s32.totalorder %s5548_s22, 1  ;;  %v5562_v0 = vmov 0   ;;  %s10233_s2 = sld [smem:[#allocation110_spill]]  ;;  %vm660_vm0 = vcmask 1047556   ;;  %vm621_vm1 = vcmask 15360   ;;  %vm647_vm2 = vcmask 31744  }
  0x1f   : > { %5461 = vset.pattern.permute.xlu2 %v5562_v0  ;;  %5460 = vset.pattern.permute.xlu1 %v5562_v0  ;;  %s10234_s3 = sld [smem:[#allocation111_spill]]  ;;  %s5296_s30 = sshll.u32 %s5544_s21, 1  ;;  %vm1368_vm3 = vcmask 130049   ;;  %vm1372_vm4 = vcmask 122880   ;;  %vm1370_vm5 = vcmask 130048   ;;  %vm1900_vm6 = vcmask 1046528  }
  0x20   : > { %5459 = vset.pattern.permute.xlu0 %v5562_v0  ;;  %s5702_s12 = scalar_select %p328_p12, %s5548_s22, 1  ;;  %vm4975_vm7 = vcmask 1041409   ;;  %vm4977_vm8 = vcmask 1042434   ;;  %vm4979_vm9 = vcmask 1043459   ;;  %vm4981_vm10 = vcmask 1044484  }
  0x21   : > { %s327_s8 = sadd.s32 1, %s5296_s30  ;;  %s340_s14 = sadd.s32 2, %s5296_s30  ;;  %vm4983_vm11 = vcmask 1045509   ;;  %vm4985_vm12 = vcmask 1046534   ;;  %vm4987_vm13 = vcmask 1047559   ;;  %vm5046_vm14 = vcmask 64512  }
  0x22   : > { %s5300_s13 = sshll.u32 %s5702_s12, 3  ;;  %p330_p13 = scmp.lt.s32.totalorder %s327_s8, 17 }
  0x23   : > { %s5338_s9 = smul.u32 54, %s5702_s12  ;;  %p343_p0 = scmp.lt.s32.totalorder %s340_s14, 17 }
  0x24   : > { %s355_s16 = scalar_lea.vmem %s10233_s2, %s5300_s13  ;;  %s10655_s8 = smov (!%p330_p13, %s327_s8), 17 }
  0x25   : > { %v371_v1 = vld [vmem:[%s355_s16 + $0x4] sm:$0x1]  ;;  %v369_v2 = vld [vmem:[%s355_s16 + $0x2] sm:$0x1]  ;;  %v367_v3 = vld [vmem:[%s355_s16] sm:$0x1]  ;;  %s359_s27 = scalar_lea.vmem %s10234_s3, %s5300_s13 }
  0x26   : > { %409 = vperm.xlu2 %5461, %v371_v1   ;;  %397 = vperm.xlu1 %5460, %v369_v2   ;;  %v372_v4 = vld [vmem:[%s355_s16 + $0x5] sm:$0x1]  ;;  %v370_v5 = vld [vmem:[%s355_s16 + $0x3] sm:$0x1]  ;;  %v368_v6 = vld [vmem:[%s355_s16 + $0x1] sm:$0x1] }
  0x27   : > { %385 = vperm.xlu0 %5459, %v367_v3   ;;  %v375_v7 = vld [vmem:[%s359_s27] sm:$0x1]  ;;  %v374_v8 = vld [vmem:[%s355_s16 + $0x7] sm:$0x1]  ;;  %v373_v9 = vld [vmem:[%s355_s16 + $0x6] sm:$0x1] }
  0x28   : > { %v378_v10 = vld [vmem:[%s359_s27 + $0x3] sm:$0x1]  ;;  %v377_v11 = vld [vmem:[%s359_s27 + $0x2] sm:$0x1]  ;;  %v376_v12 = vld [vmem:[%s359_s27 + $0x1] sm:$0x1] }
  0x29   : > { %v381_v13 = vld [vmem:[%s359_s27 + $0x6] sm:$0x1]  ;;  %v380_v14 = vld [vmem:[%s359_s27 + $0x5] sm:$0x1]  ;;  %v379_v15 = vld [vmem:[%s359_s27 + $0x4] sm:$0x1] }
  0x2a   : > { %v382_v16 = vld [vmem:[%s359_s27 + $0x7] sm:$0x1]  ;;  %s5337_s10 = smul.u32 3, %s10655_s8  ;;  %s10235_s0 = sld [smem:[#allocation108_spill]] }
  0x2b   : > { %s10657_s14 = smov (!%p343_p0, %s340_s14), 17  ;;  %s10132_s30 = smov 74  }
  0x2c   : > { %s334_s13 = sadd.s32 %s5338_s9, %s5337_s10  ;;  %s5339_s26 = smul.u32 3, %s10657_s14 }
  0x2d   : > { %s5297_s15 = sshll.u32 %s334_s13, 3  ;;  %s5564_s8 = smov 92  }
  0x2e   : > { %415 = vperm.xlu2 %5461, %v372_v4   ;;  %403 = vperm.xlu1 %5460, %v370_v5   ;;  %s347_s27 = sadd.s32 %s5339_s26, %s5338_s9  ;;  %s5565_s9 = smov 110  }
  0x2f   : > { %391 = vperm.xlu0 %5459, %v368_v6   ;;  %s5299_s10 = sshll.u32 %s347_s27, 3  ;;  %s10236_s1 = sld [smem:[#allocation109_spill]] }
  0x30   : > { %s5777_s12 = scalar_lea.vmem %s10235_s0, %s5297_s15  ;;  %s10131_s16 = smov 20  }
  0x31   : > { %v361_v52 = vld [vmem:[%s5777_s12] sm:$0xff]  ;;  %v362_v59 = vld [vmem:[%s5777_s12 + $0x8] sm:$0xff]  ;;  %s5567_s17 = smov 38   ;;  %s5568_s26 = smov 56   ;;  %v363_v4 = vld [vmem:[%s5777_s12 + $0x10] sm:$0xff] }
  0x32   : > { %s10130_s27 = smov 112   ;;  %s10135_s13 = smov 58  }
  0x33   : > { %s5572_s14 = smov 76   ;;  %s5578_s12 = smov 114  }
  0x35   : > { %s5799_s15 = scalar_lea.vmem %s10236_s1, %s5299_s10  ;;  %s10133_s10 = smov 2  }
  0x36   : > { %465 = vperm.xlu2 %5461, %v375_v7   ;;  %427 = vperm.xlu1 %5460, %v374_v8   ;;  %v5808_v61 = vld [vmem:[%s5799_s15 + $0x10] sm:$0xff]  ;;  %v364_v7 = vld [vmem:[%s5799_s15] sm:$0xff] }
  0x37   : > { %421 = vperm.xlu0 %5459, %v373_v9  }
  0x3e   : > { %483 = vperm.xlu2 %5461, %v378_v10   ;;  %477 = vperm.xlu1 %5460, %v377_v11  }
  0x3f   : > { %471 = vperm.xlu0 %5459, %v376_v12  }
  0x46   : > { %501 = vperm.xlu2 %5461, %v381_v13   ;;  %495 = vperm.xlu1 %5460, %v380_v14   ;;  %v365_v13 = vld [vmem:[%s5799_s15 + $0x8] sm:$0xff]  ;;  %s10240_s15 = smov 112  }
  0x47   : > { %489 = vperm.xlu0 %5459, %v379_v15  }
  0x4f   : > { %507 = vperm.xlu0 %5459, %v382_v16  }
  0x80   : > { %v5711_v17 = vpop.permute.xlu2 %409 }
  0x81   : > { %v412_v18 = vperm.slane %v5711_v17, 0 }
  0x83   : > { %447 = vst [vmem:[#allocation1 + $0x4] ss:$9 sm:$0xff] %v412_v18 }
  0x88   : > { %v5716_v19 = vpop.permute.xlu2 %415 }
  0x89   : > { %v418_v20 = vperm.slane %v5716_v19, 0 }
  0x8b   : > { %449 = vst [vmem:[#allocation1 + $0x5] ss:$9 sm:$0xff] %v418_v20 }
  0x90   : > { %v5724_v25 = vpop.permute.xlu2 %465 }
  0x91   : > { %v468_v39 = vperm.slane %v5724_v25, 0 }
  0x98   : > { %v5721_v21 = vpop.permute.xlu1 %397  ;;  %v5728_v30 = vpop.permute.xlu2 %483 }
  0x99   : > { %v400_v22 = vperm.slane %v5721_v21, 0  ;;  %v386_v23 = vpop.permute.xlu0 %385  ;;  %v486_v44 = vperm.slane %v5728_v30, 0 }
  0x9a   : > { %v388_v24 = vperm.slane %v386_v23, 0 }
  0x9b   : > { %443 = vst [vmem:[#allocation1 + $0x2] ss:$9 sm:$0xff] %v400_v22 }
  0x9c   : > { %439 = vst [vmem:[#allocation1] ss:$9 sm:$0xff] %v388_v24 }
  0xa0   : > { %v404_v26 = vpop.permute.xlu1 %403  ;;  %v5741_v35 = vpop.permute.xlu2 %501 }
  0xa1   : > { %v406_v27 = vperm.slane %v404_v26, 0  ;;  %v392_v28 = vpop.permute.xlu0 %391  ;;  %v504_v38 = vperm.slane %v5741_v35, 0  ;;  %v5580_v26 = vmov 1983009808  }
  0xa2   : > { %v394_v29 = vperm.slane %v392_v28, 0 }
  0xa3   : > { %445 = vst [vmem:[#allocation1 + $0x3] ss:$9 sm:$0xff] %v406_v27 }
  0xa4   : > { %441 = vst [vmem:[#allocation1 + $0x1] ss:$9 sm:$0xff] %v394_v29 }
  0xa8   : > { %v5730_v31 = vpop.permute.xlu1 %427 }
  0xa9   : > { %v430_v32 = vperm.slane %v5730_v31, 0  ;;  %v5733_v33 = vpop.permute.xlu0 %421 }
  0xaa   : > { %v424_v34 = vperm.slane %v5733_v33, 0 }
  0xab   : > { %453 = vst [vmem:[#allocation1 + $0x7] ss:$9 sm:$0xff] %v430_v32 }
  0xac   : > { %451 = vst [vmem:[#allocation1 + $0x6] ss:$9 sm:$0xff] %v424_v34 }
  0xb0   : > { %v5743_v36 = vpop.permute.xlu1 %477 }
  0xb1   : > { %v5745_v37 = vpop.permute.xlu0 %471  ;;  %v480_v43 = vperm.slane %v5743_v36, 0 }
  0xb2   : > { %v474_v45 = vperm.slane %v5745_v37, 0 }
  0xb3   : > { %v454_v40 = vld [vmem:[#allocation1] sm:$0xff]  ;;  %v5749_v41 = vld [vmem:[#allocation1 + $0x9] sm:$0xff]  ;;  %v5751_v42 = vld [vmem:[#allocation1 + $0x12] sm:$0xff] }
  0xb4   : > { %531 = vst [vmem:[#allocation1 + $0x6] ss:$9 sm:$0xff] %v504_v38  ;;  %v460_v53 = vsub.f32 %v361_v52, %v454_v40  ;;  %v461_v60 = vsub.f32 %v362_v59, %v5749_v41  ;;  %v462_v5 = vsub.f32 %v363_v4, %v5751_v42 }
  0xb5   : > { %519 = vst [vmem:[#allocation1] ss:$9 sm:$0xff] %v468_v39 }
  0xb6   : > { %525 = vst [vmem:[#allocation1 + $0x3] ss:$9 sm:$0xff] %v486_v44 }
  0xb7   : > { %523 = vst [vmem:[#allocation1 + $0x2] ss:$9 sm:$0xff] %v480_v43 }
  0xb8   : > { %521 = vst [vmem:[#allocation1 + $0x1] ss:$9 sm:$0xff] %v474_v45  ;;  %v5766_v46 = vpop.permute.xlu1 %495 }
  0xb9   : > { %v498_v47 = vperm.slane %v5766_v46, 0  ;;  %v490_v48 = vpop.permute.xlu0 %489 }
  0xba   : > { %v492_v49 = vperm.slane %v490_v48, 0 }
  0xbb   : > { %529 = vst [vmem:[#allocation1 + $0x5] ss:$9 sm:$0xff] %v498_v47 }
  0xbc   : > { %527 = vst [vmem:[#allocation1 + $0x4] ss:$9 sm:$0xff] %v492_v49 }
  0xc1   : > { %v508_v50 = vpop.permute.xlu0 %507 }
  0xc2   : > { %v510_v51 = vperm.slane %v508_v50, 0 }
  0xc4   : > { %533 = vst [vmem:[#allocation1 + $0x7] ss:$9 sm:$0xff] %v510_v51 }
  0xcb   : > { %v534_v54 = vld [vmem:[#allocation1] sm:$0xff]  ;;  %v535_v55 = vld [vmem:[#allocation1 + $0x9] sm:$0xff]  ;;  %v536_v56 = vld [vmem:[#allocation1 + $0x12] sm:$0xff] }
  0xcc   : > { %546 = vst [vmem:[#allocation1] ss:$9 sm:$0xff] %v388_v24  ;;  %v540_v57 = vmul.f32 %v534_v54, %v460_v53  ;;  %v541_v1 = vmul.f32 %v535_v55, %v461_v60  ;;  %v542_v6 = vmul.f32 %v536_v56, %v462_v5 }
  0xcd   : > { %548 = vst [vmem:[#allocation1 + $0x1] ss:$9 sm:$0xff] %v394_v29 }
  0xce   : > { %550 = vst [vmem:[#allocation1 + $0x2] ss:$9 sm:$0xff] %v400_v22  ;;  %v5782_v58 = vmax.f32 %v540_v57, 0.0  ;;  %v544_v3 = vmax.f32 %v541_v1, 0.0  ;;  %v545_v8 = vmax.f32 %v542_v6, 0.0 }
  0xcf   : > { %552 = vst [vmem:[#allocation1 + $0x3] ss:$9 sm:$0xff] %v406_v27  ;;  %v665_v27 = vunpack.c.l.s4 %v5580_v26 }
  0xd0   : > { %554 = vst [vmem:[#allocation1 + $0x4] ss:$9 sm:$0xff] %v412_v18  ;;  %604 = vrot.lane.b32.xlu0 %v5782_v58, %s10132_s30  ;;  %601 = vrot.lane.b32.xlu2 %v5782_v58, %s5564_s8  ;;  %s5575_s30 = smov 22   ;;  %v662_v28 = vrot.slane %v5782_v58, 4 }
  0xd1   : > { %556 = vst [vmem:[#allocation1 + $0x5] ss:$9 sm:$0xff] %v418_v20  ;;  %598 = vrot.lane.b32.xlu1 %v5782_v58, %s5565_s9  ;;  %v5873_v30 = vunpack.c.0.s8 %v665_v27 }
  0xd2   : > { %558 = vst [vmem:[#allocation1 + $0x6] ss:$9 sm:$0xff] %v424_v34 }
  0xd3   : > { %560 = vst [vmem:[#allocation1 + $0x7] ss:$9 sm:$0xff] %v430_v32 }
  0xd4   : > { %10244 = vst [vmem:[#allocation10_spill] sm:$0xff] %v5873_v30 }
  0xd8   : > { %613 = vrot.lane.b32.xlu0 %v5782_v58, %s10131_s16  ;;  %610 = vrot.lane.b32.xlu2 %v5782_v58, %s5567_s17  ;;  %s5574_s16 = smov 4  }
  0xd9   : > { %607 = vrot.lane.b32.xlu1 %v5782_v58, %s5568_s26 }
  0xda   : > { %v561_v62 = vld [vmem:[#allocation1] sm:$0xff]  ;;  %v562_v63 = vld [vmem:[#allocation1 + $0x9] sm:$0xff]  ;;  %v5812_v0 = vld [vmem:[#allocation1 + $0x12] sm:$0xff] }
  0xdb   : > { %584 = vst [vmem:[#allocation1 + $0x7] ss:$9 sm:$0xff] %v510_v51  ;;  %v569_v2 = vsub.f32 %v5808_v61, %v5812_v0  ;;  %v567_v10 = vsub.f32 %v364_v7, %v561_v62  ;;  %v568_v15 = vsub.f32 %v365_v13, %v562_v63 }
  0xdc   : > { %570 = vst [vmem:[#allocation1] ss:$9 sm:$0xff] %v468_v39  ;;  %v5581_v39 = vmov 1934713408  }
  0xdd   : > { %572 = vst [vmem:[#allocation1 + $0x1] ss:$9 sm:$0xff] %v474_v45  ;;  %v713_v40 = vunpack.c.l.s4 %v5581_v39 }
  0xde   : > { %574 = vst [vmem:[#allocation1 + $0x2] ss:$9 sm:$0xff] %v480_v43 }
  0xdf   : > { %576 = vst [vmem:[#allocation1 + $0x3] ss:$9 sm:$0xff] %v486_v44 }
  0xe0   : > { %578 = vst [vmem:[#allocation1 + $0x4] ss:$9 sm:$0xff] %v492_v49  ;;  %624 = vrot.lane.b32.xlu0 %v544_v3, %s10130_s27  ;;  %619 = vrot.lane.b32.xlu2 %v544_v3, %s10133_s10  ;;  %s5573_s27 = smov 94  }
  0xe1   : > { %580 = vst [vmem:[#allocation1 + $0x5] ss:$9 sm:$0xff] %v498_v47  ;;  %617 = vrot.lane.b32.xlu1 %v5782_v58, %s10133_s10  ;;  %s10136_s10 = smov 40   ;;  %v5893_v47 = vunpack.c.0.s8 %v713_v40 }
  0xe2   : > { %582 = vst [vmem:[#allocation1 + $0x6] ss:$9 sm:$0xff] %v504_v38 }
  0xe3   : > { %10245 = vst [vmem:[#allocation11_spill] sm:$0xff] %v5893_v47 }
  0xe8   : > { %633 = vrot.lane.b32.xlu0 %v544_v3, %s10135_s13  ;;  %630 = vrot.lane.b32.xlu2 %v544_v3, %s5572_s14  ;;  %s10137_s13 = smov 96  }
  0xe9   : > { %627 = vrot.lane.b32.xlu1 %v544_v3, %s5573_s27  ;;  %v585_v9 = vld [vmem:[#allocation1] sm:$0xff]  ;;  %v586_v14 = vld [vmem:[#allocation1 + $0x9] sm:$0xff]  ;;  %v587_v18 = vld [vmem:[#allocation1 + $0x12] sm:$0xff] }
  0xea   : > { %v591_v11 = vmul.f32 %v585_v9, %v567_v10  ;;  %v592_v16 = vmul.f32 %v586_v14, %v568_v15  ;;  %v593_v19 = vmul.f32 %v587_v18, %v569_v2 }
  0xec   : > { %v5844_v12 = vmax.f32 %v591_v11, 0.0  ;;  %v595_v17 = vmax.f32 %v592_v16, 0.0  ;;  %v596_v20 = vmax.f32 %v593_v19, 0.0 }
  0xf0   : > { %643 = vrot.lane.b32.xlu0 %v544_v3, %s5574_s16  ;;  %639 = vrot.lane.b32.xlu2 %v544_v3, %s5575_s30 }
  0xf1   : > { %636 = vrot.lane.b32.xlu1 %v544_v3, %s10136_s10  ;;  %s5579_s10 = smov 78  }
  0xf8   : > { %653 = vrot.lane.b32.xlu0 %v545_v8, %s10137_s13  ;;  %650 = vrot.lane.b32.xlu2 %v545_v8, %s5578_s12  ;;  %s10237_s13 = smov 74  }
  0xf9   : > { %645 = vrot.lane.b32.xlu1 %v545_v8, %s5574_s16 }
 0x100   : > { %940 = vrot.lane.b32.xlu0 %v5844_v12, %s5564_s8  ;;  %937 = vrot.lane.b32.xlu2 %v5844_v12, %s5565_s9  ;;  %s10238_s8 = smov 2   ;;  %s10239_s9 = smov 20  }
 0x101   : > { %656 = vrot.lane.b32.xlu1 %v545_v8, %s5579_s10 }
 0x108   : > { %949 = vrot.lane.b32.xlu0 %v5844_v12, %s5567_s17  ;;  %946 = vrot.lane.b32.xlu2 %v5844_v12, %s5568_s26  ;;  %s10241_s17 = smov 40   ;;  %s10242_s26 = smov 58  }
 0x109   : > { %943 = vrot.lane.b32.xlu1 %v5844_v12, %s10237_s13  ;;  %s5583_s13 = smov 126  }
 0x110   : > { %958 = vrot.lane.b32.xlu0 %v595_v17, %s10238_s8  ;;  %956 = vrot.lane.b32.xlu2 %v5844_v12, %s10238_s8  ;;  %s5584_s8 = smov 124  }
 0x111   : > { %952 = vrot.lane.b32.xlu1 %v5844_v12, %s10239_s9  ;;  %s5585_s9 = smov 122  }
 0x118   : > { %968 = vrot.lane.b32.xlu0 %v595_v17, %s5572_s14  ;;  %965 = vrot.lane.b32.xlu2 %v595_v17, %s5573_s27  ;;  %s10243_s27 = smov 96  }
 0x119   : > { %962 = vrot.lane.b32.xlu1 %v595_v17, %s10240_s15  ;;  %s5586_s15 = smov 120  }
 0x120   : > { %977 = vrot.lane.b32.xlu0 %v595_v17, %s5575_s30  ;;  %974 = vrot.lane.b32.xlu2 %v595_v17, %s10241_s17  ;;  %s5886_s30 = sand.u32 1, %s5536_s19   ;;  %s5587_s17 = smov 118  }
 0x121   : > { %971 = vrot.lane.b32.xlu1 %v595_v17, %s10242_s26  ;;  %s5588_s26 = smov 116  }
 0x128   : > { %987 = vrot.lane.b32.xlu0 %v596_v20, %s5578_s12  ;;  %983 = vrot.lane.b32.xlu2 %v596_v20, %s5574_s16 }
 0x129   : > { %981 = vrot.lane.b32.xlu1 %v595_v17, %s5574_s16  ;;  %s5582_s16 = smov 127  }
 0x12a   : > { %v602_v21 = vpop.permute.xlu2 %601 }
 0x12b   : > { %v663_v31 = vsel %vm660_vm0, %v602_v21, %v662_v28  ;;  %v659_v45 = vrot.slane %v602_v21, 4 }
 0x12c   : > { %v5880_v38 = vperm.slane %v663_v31, %v5873_v30 }
 0x12d   : > { %v661_v59 = vsel %vm660_vm0, %v659_v45, %v5782_v58 }
 0x12e   : > { %v722_v44 = vrot.slane %v5880_v38, 4  ;;  %v667_v3 = vperm.slane %v661_v59, %v5873_v30 }
 0x130   : > { %993 = vrot.lane.b32.xlu2 %v596_v20, %s5579_s10  ;;  %s5294_s10 = sshll.u32 %s5886_s30, 8 }
 0x131   : > { %990 = vrot.lane.b32.xlu1 %v596_v20, %s10243_s27  ;;  %s6418_s14 = scalar_lea.vmem [#allocation2], %s5294_s10 }
 0x132   : > { %v611_v22 = vpop.permute.xlu2 %610 }
 0x133   : > { %v698_v48 = vrot.slane %v611_v22, 4 }
 0x13a   : > { %v620_v23 = vpop.permute.xlu2 %619 }
 0x142   : > { %v605_v24 = vpop.permute.xlu0 %604  ;;  %v5876_v33 = vpop.permute.xlu2 %630 }
 0x143   : > { %v599_v25 = vpop.permute.xlu1 %598  ;;  %v672_v35 = vrot.slane %v605_v24, 4 }
 0x144   : > { %v674_v29 = vrot.slane %v599_v25, 4 }
 0x145   : > { %v673_v42 = vsel %vm660_vm0, %v672_v35, %v599_v25  ;;  %v710_v25 = vrot.slane %v667_v3, 4 }
 0x146   : > { %v675_v36 = vsel %vm660_vm0, %v605_v24, %v674_v29  ;;  %v679_v49 = vperm.slane %v673_v42, %v5873_v30 }
 0x147   : > { %v5883_v41 = vperm.slane %v675_v36, %v5873_v30 }
 0x148   : > { %v708_v61 = vrot.slane %v679_v49, 4  ;;  %v711_v28 = vsel %vm660_vm0, %v679_v49, %v710_v25 }
 0x149   : > { %v723_v52 = vsel %vm660_vm0, %v5883_v41, %v722_v44  ;;  %v719_v36 = vperm.slane %v711_v28, %v5893_v47 }
 0x14a   : > { %v614_v32 = vpop.permute.xlu0 %613  ;;  %v5902_v55 = vpop.permute.xlu2 %639  ;;  %v5908_v60 = vperm.slane %v723_v52, %v5893_v47  ;;  %v709_v10 = vsel %vm660_vm0, %v708_v61, %v667_v3 }
 0x14b   : > { %v608_v34 = vpop.permute.xlu1 %607  ;;  %v684_v53 = vrot.slane %v614_v32, 4  ;;  %v5935_v14 = vperm.slane %v709_v10, %v5893_v47  ;;  %v762_v59 = vrot.slane %v719_v36, 4 }
 0x14c   : > { %v686_v37 = vrot.slane %v608_v34, 4  ;;  %v770_v7 = vrot.slane %v5908_v60, 4 }
 0x14d   : > { %v685_v1 = vsel %vm660_vm0, %v684_v53, %v608_v34  ;;  %v758_v20 = vrot.slane %v5935_v14, 4 }
 0x14e   : > { %v687_v43 = vsel %vm660_vm0, %v614_v32, %v686_v37  ;;  %v691_v8 = vperm.slane %v685_v1, %v5873_v30  ;;  %v772_v37 = vrot.slane %v5876_v33, 4 }
 0x14f   : > { %v5897_v50 = vperm.slane %v687_v43, %v5873_v30 }
 0x150   : > { %v734_v15 = vrot.slane %v691_v8, 4 }
 0x151   : > { %v746_v62 = vrot.slane %v5897_v50, 4 }
 0x152   : > { %v5891_v46 = vpop.permute.xlu0 %624  ;;  %v651_v16 = vpop.permute.xlu2 %650 }
 0x153   : > { %v618_v51 = vpop.permute.xlu1 %617  ;;  %v808_v26 = vrot.slane %v651_v16, 4  ;;  %v773_v44 = vsel %vm660_vm0, %v772_v37, %v5891_v46 }
 0x154   : > { %v622_v54 = vsel %vm621_vm1, %v618_v51, %v620_v23  ;;  %v779_v52 = vperm.slane %v773_v44, %v5873_v30 }
 0x155   : > { %v696_v56 = vrot.slane %v622_v54, 4  ;;  %v699_v57 = vsel %vm660_vm0, %v622_v54, %v698_v48  ;;  %v809_v31 = vsel %vm660_vm0, %v808_v26, %v5902_v55 }
 0x156   : > { %v707_v0 = vperm.slane %v699_v57, %v5873_v30  ;;  %v5967_v40 = vperm.slane %v809_v31, %v5873_v30 }
 0x157   : > { %v697_v63 = vsel %vm660_vm0, %v696_v56, %v611_v22 }
 0x158   : > { %v703_v2 = vperm.slane %v697_v63, %v5873_v30  ;;  %v747_v4 = vsel %vm660_vm0, %v707_v0, %v746_v62  ;;  %v744_v45 = vrot.slane %v707_v0, 4  ;;  %v844_v53 = vrot.slane %v5967_v40, 4 }
 0x159   : > { %v5920_v6 = vperm.slane %v747_v4, %v5893_v47  ;;  %v720_v63 = vrot.slane %v5883_v41, 4 }
 0x15a   : > { %v732_v5 = vrot.slane %v703_v2, 4  ;;  %v5917_v58 = vpop.permute.xlu0 %633  ;;  %v735_v18 = vsel %vm660_vm0, %v703_v2, %v734_v15  ;;  %v5957_v32 = vpop.permute.xlu2 %937  ;;  %v745_v56 = vsel %vm660_vm0, %v744_v45, %v5897_v50 }
 0x15b   : > { %v5924_v9 = vpop.permute.xlu1 %627  ;;  %v5929_v11 = vsel %vm660_vm0, %v5920_v6, %v770_v7  ;;  %v784_v21 = vrot.slane %v5917_v58, 4  ;;  %v743_v24 = vperm.slane %v735_v18, %v5893_v47  ;;  %v751_v4 = vperm.slane %v745_v56, %v5893_v47 }
 0x15c   : > { %1338 = vrot.lane.b32.xlu0 %v5929_v11, %s5582_s16  ;;  %v733_v13 = vsel %vm660_vm0, %v732_v5, %v691_v8  ;;  %v810_v7 = vrot.slane %v5902_v55, 4  ;;  %v721_v18 = vsel %vm660_vm0, %v720_v63, %v5880_v38  ;;  %v1010_v25 = vrot.slane %v5957_v32, 4 }
 0x15d   : > { %v5938_v17 = vperm.slane %v733_v13, %v5893_v47  ;;  %v785_v27 = vsel %vm660_vm0, %v784_v21, %v5924_v9  ;;  %v760_v29 = vrot.slane %v743_v24, 4  ;;  %v5998_v50 = vsel %vm660_vm0, %v743_v24, %v762_v59 }
 0x15e   : > { %v5960_v34 = vperm.slane %v785_v27, %v5873_v30  ;;  %v786_v13 = vrot.slane %v5924_v9, 4  ;;  %v764_v21 = vrot.slane %v751_v4, 4  ;;  %v774_v24 = vrot.slane %v5891_v46, 4 }
 0x15f   : > { %v5947_v23 = vsel %vm660_vm0, %v5938_v17, %v758_v20  ;;  %v5971_v43 = vsel %vm660_vm0, %v760_v29, %v719_v36  ;;  %v998_v20 = vrot.slane %v5844_v12, 4  ;;  %v822_v27 = vrot.slane %v779_v52, 4 }
 0x160   : > { %v820_v49 = vrot.slane %v5960_v34, 4  ;;  %v787_v29 = vsel %vm660_vm0, %v5917_v58, %v786_v13  ;;  %v775_v45 = vsel %vm660_vm0, %v5876_v33, %v774_v24 }
 0x162   : > { %v644_v19 = vpop.permute.xlu0 %643  ;;  %v821_v61 = vsel %vm660_vm0, %v820_v49, %v779_v52  ;;  %v5990_v0 = vpop.permute.xlu2 %946 }
 0x163   : > { %v5943_v22 = vpop.permute.xlu1 %636  ;;  %v827_v5 = vperm.slane %v821_v61, %v5893_v47 }
 0x164   : > { %1302 = vrot.lane.b32.xlu0 %v5947_v23, %s5582_s16  ;;  %v798_v46 = vrot.slane %v5943_v22, 4 }
 0x16a   : > { %v5962_v35 = vpop.permute.xlu0 %653 }
 0x16b   : > { %v646_v39 = vpop.permute.xlu1 %645  ;;  %v889_v8 = vperm.slane %v5962_v35, %v5873_v30 }
 0x16c   : > { %v648_v42 = vsel %vm647_vm2, %v644_v19, %v646_v39  ;;  %1308 = vrot.lane.b32.xlu0 %v5971_v43, %s5582_s16  ;;  %v811_v19 = vsel %vm660_vm0, %v651_v16, %v810_v7  ;;  %v727_v16 = vperm.slane %v721_v18, %v5893_v47 }
 0x16d   : > { %v796_v48 = vrot.slane %v648_v42, 4  ;;  %v6029_v28 = vperm.slane %v811_v19, %v5873_v30  ;;  %v906_v36 = vrot.slane %v889_v8, 4  ;;  %v799_v49 = vsel %vm660_vm0, %v648_v42, %v798_v46 }
 0x16e   : > { %v6038_v44 = vsel %vm660_vm0, %v764_v21, %v727_v16  ;;  %v783_v42 = vperm.slane %v775_v45, %v5873_v30  ;;  %v6060_v56 = vperm.slane %v799_v49, %v5873_v30  ;;  %v766_v59 = vrot.slane %v727_v16, 4 }
 0x16f   : > { %v797_v51 = vsel %vm660_vm0, %v796_v48, %v5943_v22  ;;  %v957_v48 = vpop.permute.xlu2 %956  ;;  %v870_v22 = vrot.slane %v827_v5, 4  ;;  %v856_v61 = vrot.slane %v6029_v28, 4  ;;  %v884_v21 = vrot.slane %v5962_v35, 4 }
 0x170   : > { %v803_v54 = vperm.slane %v797_v51, %v5873_v30  ;;  %v823_v51 = vsel %vm660_vm0, %v5960_v34, %v822_v27  ;;  %v834_v16 = vrot.slane %v783_v42, 4  ;;  %v768_v45 = vrot.slane %v5920_v6, 4 }
 0x172   : > { %v5985_v57 = vpop.permute.xlu0 %940  ;;  %v845_v62 = vsel %vm660_vm0, %v844_v53, %v803_v54  ;;  %v846_v37 = vrot.slane %v803_v54, 4  ;;  %v795_v53 = vperm.slane %v787_v29, %v5873_v30 }
 0x173   : > { %v5992_v1 = vpop.permute.xlu1 %656  ;;  %v851_v2 = vperm.slane %v845_v62, %v5893_v47  ;;  %v999_v38 = vsel %vm660_vm0, %v5985_v57, %v998_v20 }
 0x174   : > { %v899_v3 = vperm.slane %v5992_v1, %v5873_v30  ;;  %1314 = vrot.lane.b32.xlu0 %v5998_v50, %s5582_s16  ;;  %v6044_v58 = vperm.slane %v999_v38, %v5873_v30  ;;  %v847_v34 = vsel %vm660_vm0, %v5967_v40, %v846_v37  ;;  %v832_v40 = vrot.slane %v795_v53, 4 }
 0x175   : > { %v868_v41 = vrot.slane %v851_v2, 4  ;;  %v6056_v33 = vsel %vm660_vm0, %v851_v2, %v870_v22  ;;  %v6072_v2 = vperm.slane %v823_v51, %v5893_v47  ;;  %v6088_v19 = vperm.slane %v847_v34, %v5893_v47 }
 0x176   : > { %v904_v10 = vrot.slane %v899_v3, 4  ;;  %v907_v52 = vsel %vm660_vm0, %v899_v3, %v906_v36  ;;  %v1058_v62 = vrot.slane %v6044_v58, 4  ;;  %v1022_v3 = vrot.slane %v5990_v0, 4 }
 0x177   : > { %v6009_v15 = vsel %vm660_vm0, %v868_v41, %v827_v5  ;;  %v6069_v63 = vperm.slane %v907_v52, %v5893_v47  ;;  %v894_v5 = vrot.slane %v5992_v1, 4  ;;  %v874_v38 = vrot.slane %v6072_v2, 4  ;;  %v6110_v35 = vpop.permute.xlu2 %965 }
 0x178   : > { %1298 = vrot.lane.b32.xlu1 %v6009_v15, %s5582_s16  ;;  %v905_v55 = vsel %vm660_vm0, %v904_v10, %v889_v8  ;;  %v6078_v8 = vsel %vm660_vm0, %v751_v4, %v766_v59  ;;  %v835_v49 = vsel %vm660_vm0, %v795_v53, %v834_v16  ;;  %v885_v22 = vsel %vm660_vm0, 0.0, %v884_v21 }
 0x179   : > { %v6020_v9 = vperm.slane %v905_v55, %v5893_v47  ;;  %v857_v55 = vsel %vm660_vm0, %v856_v61, %v6060_v56  ;;  %v895_v27 = vsel %vm660_vm0, 0.0, %v894_v5  ;;  %v6115_v36 = vsel %vm660_vm0, %v6088_v19, %v874_v38 }
 0x17a   : > { %v6025_v26 = vpop.permute.xlu0 %949  ;;  %v6118_v37 = vperm.slane %v857_v55, %v5893_v47  ;;  %v996_v51 = vrot.slane %v5985_v57, 4  ;;  %v903_v52 = vperm.slane %v895_v27, %v5873_v30  ;;  %v858_v53 = vrot.slane %v6060_v56, 4 }
 0x17b   : > { %1300 = vrot.lane.b32.xlu2 %v6020_v9, %s5582_s16  ;;  %v944_v31 = vpop.permute.xlu1 %943  ;;  %v1034_v41 = vrot.slane %v6025_v26, 4  ;;  %v928_v29 = vrot.slane %v6020_v9, 4  ;;  %v6148_v5 = vsel %vm660_vm0, %v768_v45, %v5908_v60  ;;  %v893_v56 = vperm.slane %v885_v22, %v5873_v30 }
 0x17c   : > { %v1011_v39 = vsel %vm660_vm0, %v944_v31, %v1010_v25  ;;  %1320 = vrot.lane.b32.xlu0 %v6038_v44, %s5582_s16  ;;  %v1008_v1 = vrot.slane %v944_v31, 4  ;;  %v6164_v60 = vperm.slane %v835_v49, %v5893_v47 }
 0x17d   : > { %v6053_v54 = vperm.slane %v1011_v39, %v5873_v30  ;;  %v6133_v61 = vsel %vm660_vm0, 0.0, %v928_v29 }
 0x17e   : > { %v1009_v39 = vsel %vm660_vm0, %v1008_v1, %v5957_v32 }
 0x17f   : > { %v1059_v10 = vsel %vm660_vm0, %v6053_v54, %v1058_v62  ;;  %v6141_v62 = vperm.slane %v1009_v39, %v5873_v30  ;;  %v6187_v27 = vpop.permute.xlu2 %974 }
 0x180   : > { %1304 = vrot.lane.b32.xlu1 %v6056_v33, %s5582_s16  ;;  %v6108_v46 = vperm.slane %v1059_v10, %v5893_v47 }
 0x182   : > { %v959_v7 = vpop.permute.xlu0 %958 }
 0x183   : > { %v960_v13 = vsel %vm621_vm1, %v957_v48, %v959_v7  ;;  %1312 = vrot.lane.b32.xlu2 %v6069_v63, %s5582_s16  ;;  %v6085_v18 = vpop.permute.xlu1 %952  ;;  %v833_v48 = vsel %vm660_vm0, %v832_v40, %v783_v42  ;;  %v1106_v42 = vrot.slane %v6108_v46, 4 }
 0x184   : > { %v1035_v20 = vsel %vm660_vm0, %v960_v13, %v1034_v41  ;;  %v1023_v4 = vsel %vm660_vm0, %v6085_v18, %v1022_v3  ;;  %1326 = vrot.lane.b32.xlu0 %v6078_v8, %s5582_s16  ;;  %v1032_v34 = vrot.slane %v960_v13, 4  ;;  %v876_v3 = vrot.slane %v6118_v37, 4 }
 0x185   : > { %v6097_v24 = vperm.slane %v1035_v20, %v5873_v30  ;;  %v6100_v25 = vperm.slane %v1023_v4, %v5873_v30  ;;  %v756_v41 = vrot.slane %v5938_v17, 4  ;;  %v839_v40 = vperm.slane %v833_v48, %v5893_v47 }
 0x186   : > { %v997_v17 = vsel %vm660_vm0, %v996_v51, %v5844_v12  ;;  %v916_v13 = vrot.slane %v903_v52, 4  ;;  %v1033_v1 = vsel %vm660_vm0, %v1032_v34, %v6025_v26  ;;  %v930_v20 = vrot.slane %v6069_v63, 4 }
 0x187   : > { %v1082_v31 = vrot.slane %v6100_v25, 4  ;;  %v1044_v4 = vrot.slane %v6141_v62, 4  ;;  %v6173_v21 = vsel %vm660_vm0, %v876_v3, %v839_v40  ;;  %v1020_v38 = vrot.slane %v6085_v18, 4 }
 0x188   : > { %1316 = vrot.lane.b32.xlu1 %v6115_v36, %s5582_s16  ;;  %v6182_v12 = vsel %vm660_vm0, %v756_v41, %v5935_v14  ;;  %v918_v26 = vrot.slane %v893_v56, 4  ;;  %v6185_v16 = vperm.slane %v997_v17, %v5873_v30  ;;  %v6190_v29 = vperm.slane %v1033_v1, %v5873_v30 }
 0x189   : > { %v1083_v59 = vsel %vm660_vm0, %v6097_v24, %v1082_v31  ;;  %v6194_v39 = vsel %vm660_vm0, 0.0, %v930_v20  ;;  %v917_v45 = vsel %vm660_vm0, %v916_v13, %v893_v56  ;;  %v878_v22 = vrot.slane %v839_v40, 4 }
 0x18a   : > { %v969_v32 = vpop.permute.xlu0 %968  ;;  %v6136_v6 = vperm.slane %v1083_v59, %v5893_v47  ;;  %v1045_v51 = vsel %vm660_vm0, %v1044_v4, %v6185_v16  ;;  %v882_v59 = vrot.slane %v6164_v60, 4  ;;  %v1021_v34 = vsel %vm660_vm0, %v1020_v38, %v5990_v0 }
 0x18b   : > { %1306 = vrot.lane.b32.xlu2 %v6133_v61, %s5582_s16  ;;  %v963_v57 = vpop.permute.xlu1 %962  ;;  %v1108_v55 = vrot.slane %v969_v32, 4  ;;  %v919_v3 = vsel %vm660_vm0, %v903_v52, %v918_v26  ;;  %v6216_v40 = vperm.slane %v917_v45, %v5893_v47  ;;  %v6223_v52 = vperm.slane %v1045_v51, %v5893_v47 }
 0x18c   : > { %v6153_v7 = vsel %vm660_vm0, %v6136_v6, %v1106_v42  ;;  %1332 = vrot.lane.b32.xlu0 %v6148_v5, %s5582_s16  ;;  %v1110_v31 = vrot.slane %v963_v57, 4  ;;  %v879_v4 = vsel %vm660_vm0, %v6118_v37, %v878_v22 }
 0x18d   : > { %v6161_v10 = vmax.f32 %v5929_v11, %v6153_v7  ;;  %v859_v11 = vsel %vm660_vm0, %v6029_v28, %v858_v53  ;;  %v1122_v28 = vrot.slane %v6110_v35, 4  ;;  %v1109_v48 = vsel %vm660_vm0, %v1108_v55, %v963_v57 }
 0x18e   : > { %v6198_v14 = vperm.slane %v859_v11, %v5893_v47  ;;  %v1068_v57 = vrot.slane %v6190_v29, 4  ;;  %v1111_v41 = vsel %vm660_vm0, %v969_v32, %v1110_v31  ;;  %v1115_v17 = vperm.slane %v1109_v48, %v5873_v30 }
 0x18f   : > { %10246 = vst [vmem:[#allocation12_spill] sm:$0xff] %v6161_v10  ;;  %v1027_v32 = vperm.slane %v1021_v34, %v5873_v30  ;;  %v1134_v11 = vrot.slane %v6187_v27, 4  ;;  %v1119_v38 = vperm.slane %v1111_v41, %v5873_v30  ;;  %v1094_v22 = vrot.slane %v6223_v52, 4  ;;  %v984_v34 = vpop.permute.xlu2 %983 }
 0x190   : > { %1322 = vrot.lane.b32.xlu1 %v6173_v21, %s5582_s16  ;;  %v880_v13 = vrot.slane %v6198_v14, 4  ;;  %v1158_v48 = vrot.slane %v1115_v17, 4 }
 0x192   : > { %v978_v18 = vpop.permute.xlu0 %977  ;;  %v6240_v37 = vsel %vm660_vm0, %v880_v13, %v6164_v60 }
 0x193   : > { %1318 = vrot.lane.b32.xlu2 %v6194_v39, %s5582_s16  ;;  %v972_v49 = vpop.permute.xlu1 %971  ;;  %v1146_v26 = vrot.slane %v978_v18, 4 }
 0x194   : > { %v1120_v42 = vrot.slane %v972_v49, 4  ;;  %v1123_v53 = vsel %vm660_vm0, %v972_v49, %v1122_v28  ;;  %1296 = vrot.lane.b32.xlu0 %v6182_v12, %s5582_s16  ;;  %v1069_v28 = vsel %vm660_vm0, %v1068_v57, %v1027_v32 }
 0x195   : > { %v1131_v56 = vperm.slane %v1123_v53, %v5873_v30  ;;  %v6251_v45 = vperm.slane %v1069_v28, %v5893_v47 }
 0x196   : > { %v1121_v0 = vsel %vm660_vm0, %v1120_v42, %v6110_v35  ;;  %v6234_v35 = vperm.slane %v919_v3, %v5893_v47  ;;  %v1070_v42 = vrot.slane %v1027_v32, 4 }
 0x197   : > { %v1127_v1 = vperm.slane %v1121_v0, %v5873_v30  ;;  %v1168_v20 = vrot.slane %v1131_v56, 4 }
 0x198   : > { %1328 = vrot.lane.b32.xlu1 %v879_v4, %s5582_s16 }
 0x199   : > { %v1156_v31 = vrot.slane %v1127_v1, 4  ;;  %v1169_v51 = vsel %vm660_vm0, %v1168_v20, %v1119_v38  ;;  %v1159_v20 = vsel %vm660_vm0, %v1127_v1, %v1158_v48 }
 0x19a   : > { %v988_v49 = vpop.permute.xlu0 %987 }
 0x19b   : > { %v1144_v53 = vrot.slane %v988_v49, 4  ;;  %v1147_v3 = vsel %vm660_vm0, %v988_v49, %v1146_v26  ;;  %1324 = vrot.lane.b32.xlu2 %v6216_v40, %s5582_s16  ;;  %v982_v57 = vpop.permute.xlu1 %981  ;;  %v1157_v41 = vsel %vm660_vm0, %v1156_v31, %v1115_v17  ;;  %v1175_v49 = vperm.slane %v1169_v51, %v5893_v47 }
 0x19c   : > { %v1155_v0 = vperm.slane %v1147_v3, %v5873_v30  ;;  %v985_v13 = vsel %vm647_vm2, %v982_v57, %v984_v34  ;;  %1461 = vrot.lane.b32.xlu0 %v6153_v7, %s5582_s16  ;;  %v1163_v28 = vperm.slane %v1157_v41, %v5893_v47  ;;  %v1170_v3 = vrot.slane %v1119_v38, 4 }
 0x19d   : > { %v1145_v32 = vsel %vm660_vm0, %v1144_v53, %v978_v18  ;;  %v1132_v55 = vrot.slane %v985_v13, 4  ;;  %v1135_v26 = vsel %vm660_vm0, %v985_v13, %v1134_v11  ;;  %v1071_v18 = vsel %vm660_vm0, %v6190_v29, %v1070_v42 }
 0x19e   : > { %v1151_v17 = vperm.slane %v1145_v32, %v5873_v30  ;;  %v1192_v31 = vrot.slane %v1155_v0, 4  ;;  %v1143_v34 = vperm.slane %v1135_v26, %v5873_v30  ;;  %v1167_v11 = vperm.slane %v1159_v20, %v5893_v47 }
 0x19f   : > { %v1133_v1 = vsel %vm660_vm0, %v1132_v55, %v6187_v27  ;;  %v6273_v38 = vsel %vm660_vm0, %v6251_v45, %v1094_v22  ;;  %v1214_v55 = vrot.slane %v1175_v49, 4  ;;  %v1171_v29 = vsel %vm660_vm0, %v1131_v56, %v1170_v3 }
 0x1a0   : > { %v1180_v48 = vrot.slane %v1151_v17, 4  ;;  %v1139_v7 = vperm.slane %v1133_v1, %v5873_v30  ;;  %v1194_v51 = vrot.slane %v1143_v34, 4  ;;  %1334 = vrot.lane.b32.xlu1 %v6240_v37, %s5582_s16  ;;  %v1193_v53 = vsel %vm660_vm0, %v1192_v31, %v1143_v34 }
 0x1a1   : > { %v1199_v27 = vperm.slane %v1193_v53, %v5893_v47  ;;  %v1079_v57 = vperm.slane %v1071_v18, %v5893_v47  ;;  %v1206_v13 = vrot.slane %v1163_v28, 4  ;;  %v1210_v56 = vrot.slane %v1167_v11, 4 }
 0x1a2   : > { %v1182_v42 = vrot.slane %v1139_v7, 4  ;;  %v1181_v41 = vsel %vm660_vm0, %v1180_v48, %v1139_v7  ;;  %v1195_v26 = vsel %vm660_vm0, %v1155_v0, %v1194_v51  ;;  %v1179_v3 = vperm.slane %v1171_v29, %v5893_v47 }
 0x1a3   : > { %1336 = vrot.lane.b32.xlu2 %v6234_v35, %s5582_s16  ;;  %v1187_v20 = vperm.slane %v1181_v41, %v5893_v47  ;;  %v1212_v32 = vrot.slane %v1199_v27, 4  ;;  %v6283_v22 = vsel %vm660_vm0, %v1199_v27, %v1214_v55  ;;  %v883_v0 = vsel %vm660_vm0, %v6198_v14, %v882_v59 }
 0x1a4   : > { %v1183_v31 = vsel %vm660_vm0, %v1151_v17, %v1182_v42  ;;  %v6288_v34 = vmax.f32 %v879_v4, %v6283_v22  ;;  %1425 = vrot.lane.b32.xlu0 %v6273_v38, %s5582_s16  ;;  %v872_v4 = vrot.slane %v6088_v19, 4  ;;  %v1203_v51 = vperm.slane %v1195_v26, %v5893_v47  ;;  %v6350_v26 = vpop.permute.xlu2 %993 }
 0x1a5   : > { %v1204_v1 = vrot.slane %v1187_v20, 4  ;;  %v1207_v18 = vsel %vm660_vm0, %v1187_v20, %v1206_v13  ;;  %v1191_v48 = vperm.slane %v1183_v31, %v5893_v47  ;;  %v6296_v7 = vsel %vm660_vm0, %v1212_v32, %v1175_v49 }
 0x1a6   : > { %10247 = vst [vmem:[#allocation13_spill] sm:$0xff] %v6288_v34  ;;  %v6304_v17 = vmax.f32 %v6056_v33, %v1207_v18  ;;  %v10248_v53 = vrot.slane %v6185_v16, 4  ;;  %v1096_v55 = vrot.slane %v1079_v57, 4  ;;  %v6322_v19 = vmax.f32 %v6173_v21, %v6296_v7 }
 0x1a7   : > { %v1205_v49 = vsel %vm660_vm0, %v1204_v1, %v1163_v28  ;;  %v1211_v60 = vsel %vm660_vm0, %v1191_v48, %v1210_v56  ;;  %v1218_v16 = vrot.slane %v1179_v3, 4  ;;  %v1216_v29 = vrot.slane %v1203_v51, 4 }
 0x1a8   : > { %v1047_v27 = vsel %vm660_vm0, %v6141_v62, %v10248_v53  ;;  %1340 = vrot.lane.b32.xlu1 %v883_v0, %s5582_s16  ;;  %v6315_v14 = vmax.f32 %v6009_v15, %v1205_v49  ;;  %v6318_v33 = vmax.f32 %v6115_v36, %v1211_v60  ;;  %10249 = vst [vmem:[#allocation14_spill] sm:$0xff] %v6322_v19  ;;  %v10250_v62 = vrot.slane %v6216_v40, 4 }
 0x1a9   : > { %v1055_v28 = vperm.slane %v1047_v27, %v5893_v47  ;;  %v6331_v42 = vsel %vm660_vm0, %v1203_v51, %v1218_v16  ;;  %v1208_v15 = vrot.slane %v1191_v48, 4  ;;  %v873_v41 = vsel %vm660_vm0, %v872_v4, %v6072_v2 }
 0x1aa   : > { %v6327_v59 = vsel %vm660_vm0, 0.0, %v10250_v62  ;;  %v6336_v36 = vmax.f32 %v883_v0, %v6331_v42  ;;  %v6344_v13 = vsel %vm660_vm0, %v1216_v29, %v1179_v3  ;;  %v1080_v32 = vrot.slane %v6097_v24, 4  ;;  %v6362_v3 = vpop.permute.xlu1 %990 }
 0x1ab   : > { %1330 = vrot.lane.b32.xlu2 %v6327_v59, %s5582_s16  ;;  %v6339_v21 = vsel %vm660_vm0, %v1096_v55, %v1055_v28  ;;  %v6347_v20 = vsel %vm660_vm0, %v1208_v15, %v1167_v11  ;;  %v6356_v31 = vmax.f32 %v6240_v37, %v6344_v13  ;;  %v934_v2 = vrot.slane %v6234_v35, 4 }
 0x1ac   : > { %10251 = vst [vmem:[#allocation15_spill] sm:$0xff] %v6336_v36  ;;  %1431 = vrot.lane.b32.xlu0 %v6339_v21, %s5582_s16  ;;  %v6359_v56 = vmax.f32 %v873_v41, %v6347_v20  ;;  %v1235_v11 = vperm.slane %v6350_v26, %v5873_v30  ;;  %v1081_v24 = vsel %vm660_vm0, %v1080_v32, %v6100_v25  ;;  %v1098_v48 = vrot.slane %v1055_v28, 4 }
 0x1ad   : > { %10252 = vst [vmem:[#allocation16_spill] sm:$0xff] %v6356_v31  ;;  %v1225_v1 = vperm.slane %v6362_v3, %v5873_v30  ;;  %v6372_v37 = vsel %vm660_vm0, 0.0, %v934_v2  ;;  %v1056_v0 = vrot.slane %v6053_v54, 4  ;;  %v1087_v53 = vperm.slane %v1081_v24, %v5893_v47 }
 0x1ae   : > { %v1240_v4 = vrot.slane %v1235_v11, 4  ;;  %v6378_v51 = vsel %vm660_vm0, %v1079_v57, %v1098_v48  ;;  %v1104_v15 = vrot.slane %v6136_v6, 4 }
 0x1af   : > { %v1057_v27 = vsel %vm660_vm0, %v1056_v0, %v6044_v58  ;;  %v1100_v54 = vrot.slane %v1087_v53, 4  ;;  %v1242_v16 = vrot.slane %v1225_v1, 4  ;;  %v6464_v0 = vmax.f32 %v5971_v43, %v6339_v21 }
 0x1b0   : > { %1310 = vrot.lane.b32.xlu1 %v873_v41, %s5582_s16  ;;  %v1241_v25 = vsel %vm660_vm0, %v1240_v4, %v1225_v1  ;;  %v1063_v57 = vperm.slane %v1057_v27, %v5893_v47 }
 0x1b1   : > { %v1247_v55 = vperm.slane %v1241_v25, %v5893_v47  ;;  %v1243_v28 = vsel %vm660_vm0, %v1235_v11, %v1242_v16  ;;  %v6444_v11 = vmax.f32 %v5947_v23, %v6273_v38 }
 0x1b2   : > { %v6391_v62 = vsel %vm660_vm0, %v1100_v54, %v1063_v57  ;;  %v1251_v58 = vperm.slane %v1243_v28, %v5893_v47  ;;  %v6501_v28 = vmax.f32 %v5998_v50, %v6378_v51 }
 0x1b3   : > { %1342 = vrot.lane.b32.xlu2 %v6372_v37, %s5582_s16  ;;  %v6407_v41 = vmax.f32 %v6020_v9, %v1247_v55  ;;  %v1092_v9 = vrot.slane %v6251_v45, 4  ;;  %v1264_v2 = vrot.slane %v1247_v55, 4 }
 0x1b4   : > { %1437 = vrot.lane.b32.xlu0 %v6378_v51, %s5582_s16  ;;  %10253 = vst [vmem:[#allocation17_spill] sm:$0xff] %v6501_v28 }
 0x1b5   : > { %v1093_v6 = vsel %vm660_vm0, %v1092_v9, %v6223_v52  ;;  %v1265_v45 = vsel %vm660_vm0, 0.0, %v1264_v2  ;;  %v1220_v52 = vrot.slane %v6362_v3, 4 }
 0x1b6   : > { %v6481_v54 = vmax.f32 %v6182_v12, %v1093_v6  ;;  %v6516_v50 = vmax.f32 %v6133_v61, %v1265_v45 }
 0x1b8   : > { %1421 = vrot.lane.b32.xlu1 %v1205_v49, %s5582_s16  ;;  %v1102_v49 = vrot.slane %v1063_v57, 4 }
 0x1ba   : > { %v6400_v29 = vsel %vm660_vm0, %v1087_v53, %v1102_v49  ;;  %v6520_v49 = vmax.f32 %v6038_v44, %v6391_v62 }
 0x1bb   : > { %1423 = vrot.lane.b32.xlu2 %v1247_v55, %s5582_s16  ;;  %v6538_v9 = vmax.f32 %v6078_v8, %v6400_v29 }
 0x1bc   : > { %1443 = vrot.lane.b32.xlu0 %v6391_v62, %s5582_s16  ;;  %10254 = vst [vmem:[#allocation18_spill] sm:$0xff] %v6520_v49 }
 0x1bd   : > { %10255 = vst [vmem:[#allocation19_spill] sm:$0xff] %v6538_v9 }
 0x1c0   : > { %1427 = vrot.lane.b32.xlu1 %v1207_v18, %s5582_s16  ;;  %v6414_v18 = vsel %vm660_vm0, %v1104_v15, %v6108_v46  ;;  %v6426_v46 = vmax.f32 %v6069_v63, %v1251_v58  ;;  %v1230_v63 = vrot.slane %v6350_v26, 4  ;;  %v1221_v26 = vsel %vm660_vm0, 0.0, %v1220_v52 }
 0x1c1   : > { %v1229_v23 = vperm.slane %v1221_v26, %v5873_v30 }
 0x1c2   : > { %v1231_v24 = vsel %vm660_vm0, 0.0, %v1230_v63 }
 0x1c3   : > { %1435 = vrot.lane.b32.xlu2 %v1251_v58, %s5582_s16  ;;  %v1239_v48 = vperm.slane %v1231_v24, %v5873_v30  ;;  %v1254_v21 = vrot.slane %v1229_v23, 4 }
 0x1c4   : > { %1449 = vrot.lane.b32.xlu0 %v6400_v29, %s5582_s16 }
 0x1c5   : > { %v1252_v4 = vrot.slane %v1239_v48, 4  ;;  %v1255_v55 = vsel %vm660_vm0, %v1239_v48, %v1254_v21 }
 0x1c6   : > { %v6497_v12 = vperm.slane %v1255_v55, %v5893_v47 }
 0x1c8   : > { %1439 = vrot.lane.b32.xlu1 %v1211_v60, %s5582_s16 }
 0x1cb   : > { %1568 = vrot.lane.b32.xlu2 %v6407_v41, %s5583_s13 }
 0x1cc   : > { %1455 = vrot.lane.b32.xlu0 %v6414_v18, %s5582_s16 }
 0x1ce   : > { %v1339_v32 = vpop.permute.xlu0 %1338 }
 0x1cf   : > { %1392 = vst.msk [vmem:[%s6418_s14 + $0xdf] sm:$0xfe] %vm1368_vm3, %v1339_v32 }
 0x1d0   : > { %1445 = vrot.lane.b32.xlu1 %v6296_v7, %s5582_s16 }
 0x1d3   : > { %1580 = vrot.lane.b32.xlu2 %v6426_v46, %s5583_s13 }
 0x1d4   : > { %1419 = vrot.lane.b32.xlu0 %v1093_v6, %s5582_s16 }
 0x1d5   : > { %v1301_v60 = vpop.permute.xlu2 %1300 }
 0x1d6   : > { %1373 = vst.msk [vmem:[%s6418_s14 + $0xf] sm:$0x1] %vm1372_vm4, %v1301_v60  ;;  %v1303_v7 = vpop.permute.xlu0 %1302  ;;  %v1270_v60 = vrot.slane %v6497_v12, 4 }
 0x1d7   : > { %1374 = vst.msk [vmem:[%s6418_s14 + $0x1f] sm:$0xfe] %vm1368_vm3, %v1303_v7  ;;  %v6555_v7 = vmax.f32 %v6148_v5, %v6414_v18 }
 0x1d8   : > { %1451 = vrot.lane.b32.xlu1 %v6283_v22, %s5582_s16  ;;  %v1266_v22 = vrot.slane %v1251_v58, 4  ;;  %v1271_v29 = vsel %vm660_vm0, 0.0, %v1270_v60 }
 0x1d9   : > { %10256 = vst [vmem:[#allocation20_spill] sm:$0xff] %v6555_v7 }
 0x1da   : > { %v6460_v38 = vsel %vm660_vm0, 0.0, %v1266_v22 }
 0x1db   : > { %1429 = vrot.lane.b32.xlu2 %v1265_v45, %s5582_s16  ;;  %v6570_v5 = vmax.f32 %v6194_v39, %v6460_v38 }
 0x1dc   : > { %1570 = vrot.lane.b32.xlu0 %v6444_v11, %s5583_s13 }
 0x1dd   : > { %v1313_v1 = vpop.permute.xlu2 %1312 }
 0x1de   : > { %1379 = vst.msk [vmem:[%s6418_s14 + $0x4f] sm:$0x1] %vm1372_vm4, %v1313_v1  ;;  %v1309_v3 = vpop.permute.xlu0 %1308 }
 0x1df   : > { %1377 = vst.msk [vmem:[%s6418_s14 + $0x3f] sm:$0xfe] %vm1368_vm3, %v1309_v3 }
 0x1e0   : > { %1457 = vrot.lane.b32.xlu1 %v6344_v13, %s5582_s16  ;;  %v1253_v13 = vsel %vm660_vm0, %v1252_v4, %v1229_v23 }
 0x1e1   : > { %v6478_v43 = vperm.slane %v1253_v13, %v5893_v47 }
 0x1e3   : > { %1441 = vrot.lane.b32.xlu2 %v6460_v38, %s5582_s16  ;;  %v1268_v61 = vrot.slane %v6478_v43, 4  ;;  %v6586_v39 = vmax.f32 %v6216_v40, %v6478_v43 }
 0x1e4   : > { %1576 = vrot.lane.b32.xlu0 %v6464_v0, %s5583_s13 }
 0x1e5   : > { %v1307_v53 = vpop.permute.xlu2 %1306  ;;  %v1269_v62 = vsel %vm660_vm0, 0.0, %v1268_v61  ;;  %10257 = vst [vmem:[#allocation21_spill] sm:$0xff] %v6586_v39 }
 0x1e6   : > { %1376 = vst.msk [vmem:[%s6418_s14 + $0x2f] sm:$0x1] %vm1372_vm4, %v1307_v53  ;;  %v1315_v25 = vpop.permute.xlu0 %1314  ;;  %v6601_v40 = vmax.f32 %v6327_v59, %v1269_v62  ;;  %v6617_v59 = vmax.f32 %v6234_v35, %v6497_v12  ;;  %v6632_v35 = vmax.f32 %v6372_v37, %v1271_v29 }
 0x1e7   : > { %1380 = vst.msk [vmem:[%s6418_s14 + $0x5f] sm:$0xfe] %vm1368_vm3, %v1315_v25 }
 0x1e8   : > { %1463 = vrot.lane.b32.xlu1 %v6331_v42, %s5582_s16  ;;  %10258 = vst [vmem:[#allocation22_spill] sm:$0xff] %v6601_v40 }
 0x1e9   : > { %10259 = vst [vmem:[#allocation23_spill] sm:$0xff] %v6617_v59 }
 0x1ea   : > { %v1299_v27 = vpop.permute.xlu1 %1298 }
 0x1eb   : > { %1371 = vst.msk [vmem:[%s6418_s14 + $0x7] sm:$0xff] %vm1370_vm5, %v1299_v27  ;;  %1447 = vrot.lane.b32.xlu2 %v6478_v43, %s5582_s16 }
 0x1ec   : > { %1564 = vrot.lane.b32.xlu0 %v6481_v54, %s5583_s13 }
 0x1ed   : > { %v1319_v42 = vpop.permute.xlu2 %1318 }
 0x1ee   : > { %1382 = vst.msk [vmem:[%s6418_s14 + $0x6f] sm:$0x1] %vm1372_vm4, %v1319_v42  ;;  %v1321_v16 = vpop.permute.xlu0 %1320 }
 0x1ef   : > { %1383 = vst.msk [vmem:[%s6418_s14 + $0x7f] sm:$0xfe] %vm1368_vm3, %v1321_v16 }
 0x1f0   : > { %1433 = vrot.lane.b32.xlu1 %v6347_v20, %s5582_s16 }
 0x1f2   : > { %v1305_v57 = vpop.permute.xlu1 %1304 }
 0x1f3   : > { %1375 = vst.msk [vmem:[%s6418_s14 + $0x27] sm:$0xff] %vm1370_vm5, %v1305_v57  ;;  %1459 = vrot.lane.b32.xlu2 %v6497_v12, %s5582_s16 }
 0x1f4   : > { %1582 = vrot.lane.b32.xlu0 %v6501_v28, %s5583_s13 }
 0x1f5   : > { %v1325_v58 = vpop.permute.xlu2 %1324 }
 0x1f6   : > { %1385 = vst.msk [vmem:[%s6418_s14 + $0x8f] sm:$0x1] %vm1372_vm4, %v1325_v58  ;;  %v1327_v20 = vpop.permute.xlu0 %1326 }
 0x1f7   : > { %1386 = vst.msk [vmem:[%s6418_s14 + $0x9f] sm:$0xfe] %vm1368_vm3, %v1327_v20 }
 0x1f8   : > { %1566 = vrot.lane.b32.xlu1 %v6315_v14, %s5583_s13 }
 0x1fa   : > { %v1317_v51 = vpop.permute.xlu1 %1316 }
 0x1fb   : > { %1381 = vst.msk [vmem:[%s6418_s14 + $0x67] sm:$0xff] %vm1370_vm5, %v1317_v51  ;;  %1574 = vrot.lane.b32.xlu2 %v6516_v50, %s5583_s13 }
 0x1fc   : > { %1588 = vrot.lane.b32.xlu0 %v6520_v49, %s5583_s13 }
 0x1fd   : > { %v1337_v15 = vpop.permute.xlu2 %1336 }
 0x1fe   : > { %1391 = vst.msk [vmem:[%s6418_s14 + $0xcf] sm:$0x1] %vm1372_vm4, %v1337_v15  ;;  %v1333_v32 = vpop.permute.xlu0 %1332 }
 0x1ff   : > { %1389 = vst.msk [vmem:[%s6418_s14 + $0xbf] sm:$0xfe] %vm1368_vm3, %v1333_v32 }
 0x200   : > { %1572 = vrot.lane.b32.xlu1 %v6304_v17, %s5583_s13 }
 0x202   : > { %v1323_v44 = vpop.permute.xlu1 %1322 }
 0x203   : > { %1384 = vst.msk [vmem:[%s6418_s14 + $0x87] sm:$0xff] %vm1370_vm5, %v1323_v44  ;;  %1453 = vrot.lane.b32.xlu2 %v1269_v62, %s5582_s16 }
 0x204   : > { %1594 = vrot.lane.b32.xlu0 %v6538_v9, %s5583_s13 }
 0x205   : > { %v1331_v6 = vpop.permute.xlu2 %1330 }
 0x206   : > { %1388 = vst.msk [vmem:[%s6418_s14 + $0xaf] sm:$0x1] %vm1372_vm4, %v1331_v6  ;;  %v1297_v2 = vpop.permute.xlu0 %1296 }
 0x207   : > { %1369 = vst.msk [vmem:[%s6418_s14 - $0x1] sm:$0xfe] %vm1368_vm3, %v1297_v2 }
 0x208   : > { %1578 = vrot.lane.b32.xlu1 %v6359_v56, %s5583_s13 }
 0x20a   : > { %v1329_v8 = vpop.permute.xlu1 %1328 }
 0x20b   : > { %1387 = vst.msk [vmem:[%s6418_s14 + $0xa7] sm:$0xff] %vm1370_vm5, %v1329_v8  ;;  %1465 = vrot.lane.b32.xlu2 %v1271_v29, %s5582_s16 }
 0x20c   : > { %1600 = vrot.lane.b32.xlu0 %v6555_v7, %s5583_s13 }
 0x20d   : > { %v1343_v63 = vpop.permute.xlu2 %1342 }
 0x20e   : > { %1394 = vst.msk [vmem:[%s6418_s14 + $0xef] sm:$0x1] %vm1372_vm4, %v1343_v63  ;;  %v1462_v45 = vpop.permute.xlu0 %1461 }
 0x20f   : > { %5323 = vst.msk [vmem:[%s6418_s14 + $0xef] sm:$0xfe] %vm1368_vm3, %v1462_v45 }
 0x210   : > { %1584 = vrot.lane.b32.xlu1 %v6318_v33, %s5583_s13 }
 0x212   : > { %v1335_v18 = vpop.permute.xlu1 %1334 }
 0x213   : > { %1390 = vst.msk [vmem:[%s6418_s14 + $0xc7] sm:$0xff] %vm1370_vm5, %v1335_v18  ;;  %1586 = vrot.lane.b32.xlu2 %v6570_v5, %s5583_s13 }
 0x214   : > { %1606 = vrot.lane.b32.xlu0 %v6161_v10, %s5583_s13 }
 0x215   : > { %v1424_v52 = vpop.permute.xlu2 %1423 }
 0x216   : > { %5304 = vst.msk [vmem:[%s6418_s14 + $0x1f] sm:$0x1] %vm1372_vm4, %v1424_v52  ;;  %v1426_v24 = vpop.permute.xlu0 %1425 }
 0x217   : > { %5305 = vst.msk [vmem:[%s6418_s14 + $0x2f] sm:$0xfe] %vm1368_vm3, %v1426_v24 }
 0x218   : > { %1590 = vrot.lane.b32.xlu1 %v6322_v19, %s5583_s13 }
 0x21a   : > { %v1341_v1 = vpop.permute.xlu1 %1340 }
 0x21b   : > { %1393 = vst.msk [vmem:[%s6418_s14 + $0xe7] sm:$0xff] %vm1370_vm5, %v1341_v1  ;;  %1592 = vrot.lane.b32.xlu2 %v6586_v39, %s5583_s13 }
 0x21c   : > { %1612 = vrot.lane.b32.xlu0 %v6481_v54, %s5584_s8 }
 0x21d   : > { %v1436_v22 = vpop.permute.xlu2 %1435 }
 0x21e   : > { %5310 = vst.msk [vmem:[%s6418_s14 + $0x5f] sm:$0x1] %vm1372_vm4, %v1436_v22  ;;  %v1432_v26 = vpop.permute.xlu0 %1431 }
 0x21f   : > { %5308 = vst.msk [vmem:[%s6418_s14 + $0x4f] sm:$0xfe] %vm1368_vm3, %v1432_v26 }
 0x220   : > { %1596 = vrot.lane.b32.xlu1 %v6288_v34, %s5583_s13 }
 0x222   : > { %v1311_v3 = vpop.permute.xlu1 %1310 }
 0x223   : > { %1378 = vst.msk [vmem:[%s6418_s14 + $0x47] sm:$0xff] %vm1370_vm5, %v1311_v3  ;;  %1598 = vrot.lane.b32.xlu2 %v6601_v40, %s5583_s13 }
 0x224   : > { %1618 = vrot.lane.b32.xlu0 %v6444_v11, %s5584_s8 }
 0x225   : > { %v6609_v48 = vpop.permute.xlu2 %1568 }
 0x226   : > { %v1438_v23 = vpop.permute.xlu0 %1437 }
 0x227   : > { %5311 = vst.msk [vmem:[%s6418_s14 + $0x6f] sm:$0xfe] %vm1368_vm3, %v1438_v23 }
 0x228   : > { %1602 = vrot.lane.b32.xlu1 %v6356_v31, %s5583_s13 }
 0x22a   : > { %v1422_v38 = vpop.permute.xlu1 %1421 }
 0x22b   : > { %5303 = vst.msk [vmem:[%s6418_s14 + $0x17] sm:$0xff] %vm1370_vm5, %v1422_v38  ;;  %1604 = vrot.lane.b32.xlu2 %v6617_v59, %s5583_s13 }
 0x22c   : > { %1624 = vrot.lane.b32.xlu0 %v6464_v0, %s5584_s8 }
 0x22d   : > { %v6625_v4 = vpop.permute.xlu2 %1580 }
 0x22e   : > { %10260 = vst [vmem:[#allocation24_spill] sm:$0xff] %v6625_v4  ;;  %v1444_v53 = vpop.permute.xlu0 %1443 }
 0x22f   : > { %5314 = vst.msk [vmem:[%s6418_s14 + $0x8f] sm:$0xfe] %vm1368_vm3, %v1444_v53 }
 0x230   : > { %1608 = vrot.lane.b32.xlu1 %v6336_v36, %s5583_s13 }
 0x232   : > { %v1428_v13 = vpop.permute.xlu1 %1427 }
 0x233   : > { %5306 = vst.msk [vmem:[%s6418_s14 + $0x37] sm:$0xff] %vm1370_vm5, %v1428_v13  ;;  %1610 = vrot.lane.b32.xlu2 %v6632_v35, %s5583_s13 }
 0x234   : > { %1630 = vrot.lane.b32.xlu0 %v6501_v28, %s5584_s8 }
 0x235   : > { %v1430_v25 = vpop.permute.xlu2 %1429 }
 0x236   : > { %5307 = vst.msk [vmem:[%s6418_s14 + $0x3f] sm:$0x1] %vm1372_vm4, %v1430_v25  ;;  %v1450_v43 = vpop.permute.xlu0 %1449 }
 0x237   : > { %5317 = vst.msk [vmem:[%s6418_s14 + $0xaf] sm:$0xfe] %vm1368_vm3, %v1450_v43 }
 0x238   : > { %1614 = vrot.lane.b32.xlu1 %v6315_v14, %s5584_s8 }
 0x23a   : > { %v1440_v37 = vpop.permute.xlu1 %1439 }
 0x23b   : > { %5312 = vst.msk [vmem:[%s6418_s14 + $0x77] sm:$0xff] %vm1370_vm5, %v1440_v37  ;;  %1616 = vrot.lane.b32.xlu2 %v6407_v41, %s5584_s8 }
 0x23c   : > { %1636 = vrot.lane.b32.xlu0 %v6520_v49, %s5584_s8 }
 0x23d   : > { %v1442_v21 = vpop.permute.xlu2 %1441 }
 0x23e   : > { %5313 = vst.msk [vmem:[%s6418_s14 + $0x7f] sm:$0x1] %vm1372_vm4, %v1442_v21  ;;  %v1456_v27 = vpop.permute.xlu0 %1455 }
 0x23f   : > { %5320 = vst.msk [vmem:[%s6418_s14 + $0xcf] sm:$0xfe] %vm1368_vm3, %v1456_v27 }
 0x240   : > { %1620 = vrot.lane.b32.xlu1 %v6304_v17, %s5584_s8 }
 0x242   : > { %v1446_v42 = vpop.permute.xlu1 %1445 }
 0x243   : > { %5315 = vst.msk [vmem:[%s6418_s14 + $0x97] sm:$0xff] %vm1370_vm5, %v1446_v42  ;;  %1622 = vrot.lane.b32.xlu2 %v6516_v50, %s5584_s8 }
 0x244   : > { %1642 = vrot.lane.b32.xlu0 %v6538_v9, %s5584_s8 }
 0x245   : > { %v1448_v55 = vpop.permute.xlu2 %1447 }
 0x246   : > { %5316 = vst.msk [vmem:[%s6418_s14 + $0x9f] sm:$0x1] %vm1372_vm4, %v1448_v55  ;;  %v1420_v16 = vpop.permute.xlu0 %1419 }
 0x247   : > { %5302 = vst.msk [vmem:[%s6418_s14 + $0xf] sm:$0xfe] %vm1368_vm3, %v1420_v16 }
 0x248   : > { %1626 = vrot.lane.b32.xlu1 %v6359_v56, %s5584_s8 }
 0x24a   : > { %v1452_v12 = vpop.permute.xlu1 %1451 }
 0x24b   : > { %5318 = vst.msk [vmem:[%s6418_s14 + $0xb7] sm:$0xff] %vm1370_vm5, %v1452_v12  ;;  %1628 = vrot.lane.b32.xlu2 %v6426_v46, %s5584_s8 }
 0x24c   : > { %1648 = vrot.lane.b32.xlu0 %v6555_v7, %s5584_s8 }
 0x24d   : > { %v1460_v57 = vpop.permute.xlu2 %1459 }
 0x24e   : > { %5322 = vst.msk [vmem:[%s6418_s14 + $0xdf] sm:$0x1] %vm1372_vm4, %v1460_v57  ;;  %v6678_v58 = vpop.permute.xlu0 %1570 }
 0x250   : > { %1632 = vrot.lane.b32.xlu1 %v6318_v33, %s5584_s8 }
 0x252   : > { %v1458_v20 = vpop.permute.xlu1 %1457 }
 0x253   : > { %5321 = vst.msk [vmem:[%s6418_s14 + $0xd7] sm:$0xff] %vm1370_vm5, %v1458_v20  ;;  %1634 = vrot.lane.b32.xlu2 %v6570_v5, %s5584_s8 }
 0x254   : > { %1654 = vrot.lane.b32.xlu0 %v6161_v10, %s5584_s8 }
 0x255   : > { %v6688_v51 = vpop.permute.xlu2 %1574 }
 0x256   : > { %v6690_v15 = vpop.permute.xlu0 %1576 }
 0x258   : > { %1638 = vrot.lane.b32.xlu1 %v6322_v19, %s5584_s8 }
 0x25a   : > { %v1464_v61 = vpop.permute.xlu1 %1463 }
 0x25b   : > { %5324 = vst.msk [vmem:[%s6418_s14 + $0xf7] sm:$0xff] %vm1370_vm5, %v1464_v61  ;;  %1640 = vrot.lane.b32.xlu2 %v6586_v39, %s5584_s8 }
 0x25c   : > { %1660 = vrot.lane.b32.xlu0 %v6481_v54, %s5585_s9 }
 0x25d   : > { %v1454_v32 = vpop.permute.xlu2 %1453 }
 0x25e   : > { %5319 = vst.msk [vmem:[%s6418_s14 + $0xbf] sm:$0x1] %vm1372_vm4, %v1454_v32  ;;  %v6702_v44 = vpop.permute.xlu0 %1564 }
 0x260   : > { %1644 = vrot.lane.b32.xlu1 %v6288_v34, %s5584_s8 }
 0x262   : > { %v1434_v62 = vpop.permute.xlu1 %1433 }
 0x263   : > { %5309 = vst.msk [vmem:[%s6418_s14 + $0x57] sm:$0xff] %vm1370_vm5, %v1434_v62  ;;  %1646 = vrot.lane.b32.xlu2 %v6601_v40, %s5584_s8 }
 0x264   : > { %1666 = vrot.lane.b32.xlu0 %v6444_v11, %s5585_s9 }
 0x265   : > { %v1466_v6 = vpop.permute.xlu2 %1465 }
 0x266   : > { %5325 = vst.msk [vmem:[%s6418_s14 + $0xff] sm:$0x1] %vm1372_vm4, %v1466_v6  ;;  %v6714_v60 = vpop.permute.xlu0 %1582 }
 0x267   : > { %10261 = vst [vmem:[#allocation25_spill] sm:$0xff] %v6714_v60 }
 0x268   : > { %1650 = vrot.lane.b32.xlu1 %v6356_v31, %s5584_s8 }
 0x26a   : > { %v6718_v2 = vpop.permute.xlu1 %1566 }
 0x26b   : > { %1652 = vrot.lane.b32.xlu2 %v6617_v59, %s5584_s8 }
 0x26c   : > { %1672 = vrot.lane.b32.xlu0 %v6464_v0, %s5585_s9 }
 0x26d   : > { %v6724_v8 = vpop.permute.xlu2 %1586 }
 0x26e   : > { %10262 = vst [vmem:[#allocation26_spill] sm:$0xff] %v6724_v8  ;;  %v6726_v29 = vpop.permute.xlu0 %1588 }
 0x26f   : > { %10263 = vst [vmem:[#allocation27_spill] sm:$0xff] %v6726_v29 }
 0x270   : > { %1656 = vrot.lane.b32.xlu1 %v6336_v36, %s5584_s8 }
 0x272   : > { %v6730_v63 = vpop.permute.xlu1 %1572 }
 0x273   : > { %1658 = vrot.lane.b32.xlu2 %v6632_v35, %s5584_s8 }
 0x274   : > { %1678 = vrot.lane.b32.xlu0 %v6501_v28, %s5585_s9 }
 0x275   : > { %v6736_v45 = vpop.permute.xlu2 %1592 }
 0x276   : > { %10264 = vst [vmem:[#allocation28_spill] sm:$0xff] %v6736_v45  ;;  %v6738_v18 = vpop.permute.xlu0 %1594 }
 0x277   : > { %10265 = vst [vmem:[#allocation29_spill] sm:$0xff] %v6738_v18 }
 0x278   : > { %1662 = vrot.lane.b32.xlu1 %v6315_v14, %s5585_s9 }
 0x27a   : > { %v6742_v52 = vpop.permute.xlu1 %1578 }
 0x27b   : > { %1664 = vrot.lane.b32.xlu2 %v6407_v41, %s5585_s9 }
 0x27c   : > { %1684 = vrot.lane.b32.xlu0 %v6520_v49, %s5585_s9 }
 0x27d   : > { %v6748_v24 = vpop.permute.xlu2 %1598 }
 0x27e   : > { %10266 = vst [vmem:[#allocation30_spill] sm:$0xff] %v6748_v24  ;;  %v6750_v1 = vpop.permute.xlu0 %1600 }
 0x27f   : > { %10267 = vst [vmem:[#allocation31_spill] sm:$0xff] %v6750_v1 }
 0x280   : > { %1668 = vrot.lane.b32.xlu1 %v6304_v17, %s5585_s9 }
 0x282   : > { %v6754_v22 = vpop.permute.xlu1 %1584 }
 0x283   : > { %10268 = vst [vmem:[#allocation32_spill] sm:$0xff] %v6754_v22  ;;  %1670 = vrot.lane.b32.xlu2 %v6516_v50, %s5585_s9 }
 0x284   : > { %1690 = vrot.lane.b32.xlu0 %v6538_v9, %s5585_s9 }
 0x285   : > { %v6760_v26 = vpop.permute.xlu2 %1604 }
 0x286   : > { %10269 = vst [vmem:[#allocation33_spill] sm:$0xff] %v6760_v26  ;;  %v6762_v3 = vpop.permute.xlu0 %1606 }
 0x287   : > { %10270 = vst [vmem:[#allocation34_spill] sm:$0xff] %v6762_v3 }
 0x288   : > { %1674 = vrot.lane.b32.xlu1 %v6359_v56, %s5585_s9 }
 0x28a   : > { %v6766_v23 = vpop.permute.xlu1 %1590 }
 0x28b   : > { %10271 = vst [vmem:[#allocation35_spill] sm:$0xff] %v6766_v23  ;;  %1676 = vrot.lane.b32.xlu2 %v6426_v46, %s5585_s9 }
 0x28c   : > { %1696 = vrot.lane.b32.xlu0 %v6555_v7, %s5585_s9 }
 0x28d   : > { %v6772_v38 = vpop.permute.xlu2 %1610 }
 0x28e   : > { %10272 = vst [vmem:[#allocation36_spill] sm:$0xff] %v6772_v38  ;;  %v6774_v53 = vpop.permute.xlu0 %1612 }
 0x290   : > { %1680 = vrot.lane.b32.xlu1 %v6318_v33, %s5585_s9 }
 0x292   : > { %v6778_v13 = vpop.permute.xlu1 %1596 }
 0x293   : > { %10273 = vst [vmem:[#allocation37_spill] sm:$0xff] %v6778_v13  ;;  %1682 = vrot.lane.b32.xlu2 %v6570_v5, %s5585_s9 }
 0x294   : > { %1702 = vrot.lane.b32.xlu0 %v6161_v10, %s5585_s9 }
 0x295   : > { %v6784_v25 = vpop.permute.xlu2 %1616 }
 0x296   : > { %v6786_v43 = vpop.permute.xlu0 %1618 }
 0x298   : > { %1686 = vrot.lane.b32.xlu1 %v6322_v19, %s5585_s9 }
 0x29a   : > { %v6790_v37 = vpop.permute.xlu1 %1602 }
 0x29b   : > { %10274 = vst [vmem:[#allocation38_spill] sm:$0xff] %v6790_v37  ;;  %1688 = vrot.lane.b32.xlu2 %v6586_v39, %s5585_s9 }
 0x29c   : > { %1708 = vrot.lane.b32.xlu0 %v6481_v54, %s5586_s15 }
 0x29d   : > { %v6796_v21 = vpop.permute.xlu2 %1622 }
 0x29e   : > { %v6798_v27 = vpop.permute.xlu0 %1624 }
 0x29f   : > { %10275 = vst [vmem:[#allocation39_spill] sm:$0xff] %v6798_v27 }
 0x2a0   : > { %1692 = vrot.lane.b32.xlu1 %v6288_v34, %s5585_s9 }
 0x2a2   : > { %v6802_v42 = vpop.permute.xlu1 %1608 }
 0x2a3   : > { %10276 = vst [vmem:[#allocation40_spill] sm:$0xff] %v6802_v42  ;;  %1694 = vrot.lane.b32.xlu2 %v6601_v40, %s5585_s9 }
 0x2a4   : > { %1714 = vrot.lane.b32.xlu0 %v6444_v11, %s5586_s15 }
 0x2a5   : > { %v6808_v55 = vpop.permute.xlu2 %1628 }
 0x2a6   : > { %v6810_v16 = vpop.permute.xlu0 %1630 }
 0x2a7   : > { %10277 = vst [vmem:[#allocation41_spill] sm:$0xff] %v6810_v16 }
 0x2a8   : > { %1698 = vrot.lane.b32.xlu1 %v6356_v31, %s5585_s9 }
 0x2aa   : > { %v6814_v12 = vpop.permute.xlu1 %1614 }
 0x2ab   : > { %1700 = vrot.lane.b32.xlu2 %v6617_v59, %s5585_s9 }
 0x2ac   : > { %1720 = vrot.lane.b32.xlu0 %v6464_v0, %s5586_s15 }
 0x2ad   : > { %v6820_v57 = vpop.permute.xlu2 %1634 }
 0x2ae   : > { %10278 = vst [vmem:[#allocation42_spill] sm:$0xff] %v6820_v57  ;;  %v6822_v20 = vpop.permute.xlu0 %1636 }
 0x2af   : > { %10279 = vst [vmem:[#allocation43_spill] sm:$0xff] %v6822_v20 }
 0x2b0   : > { %1704 = vrot.lane.b32.xlu1 %v6336_v36, %s5585_s9 }
 0x2b2   : > { %v6826_v61 = vpop.permute.xlu1 %1620 }
 0x2b3   : > { %1706 = vrot.lane.b32.xlu2 %v6632_v35, %s5585_s9 }
 0x2b4   : > { %1726 = vrot.lane.b32.xlu0 %v6501_v28, %s5586_s15 }
 0x2b5   : > { %v6832_v32 = vpop.permute.xlu2 %1640 }
 0x2b6   : > { %10280 = vst [vmem:[#allocation44_spill] sm:$0xff] %v6832_v32  ;;  %v6834_v62 = vpop.permute.xlu0 %1642 }
 0x2b7   : > { %10281 = vst [vmem:[#allocation45_spill] sm:$0xff] %v6834_v62 }
 0x2b8   : > { %1710 = vrot.lane.b32.xlu1 %v6315_v14, %s5586_s15 }
 0x2ba   : > { %v6838_v6 = vpop.permute.xlu1 %1626 }
 0x2bb   : > { %1712 = vrot.lane.b32.xlu2 %v6407_v41, %s5586_s15 }
 0x2bc   : > { %1732 = vrot.lane.b32.xlu0 %v6520_v49, %s5586_s15 }
 0x2bd   : > { %v6844_v47 = vpop.permute.xlu2 %1646 }
 0x2be   : > { %10282 = vst [vmem:[#allocation46_spill] sm:$0xff] %v6844_v47  ;;  %v6846_v30 = vpop.permute.xlu0 %1648 }
 0x2bf   : > { %10283 = vst [vmem:[#allocation47_spill] sm:$0xff] %v6846_v30 }
 0x2c0   : > { %1716 = vrot.lane.b32.xlu1 %v6304_v17, %s5586_s15 }
 0x2c2   : > { %v6850_v3 = vpop.permute.xlu1 %1632 }
 0x2c3   : > { %10284 = vst [vmem:[#allocation48_spill] sm:$0xff] %v6850_v3  ;;  %1718 = vrot.lane.b32.xlu2 %v6516_v50, %s5586_s15 }
 0x2c4   : > { %1738 = vrot.lane.b32.xlu0 %v6538_v9, %s5586_s15 }
 0x2c5   : > { %v6856_v38 = vpop.permute.xlu2 %1652 }
 0x2c6   : > { %10285 = vst [vmem:[#allocation49_spill] sm:$0xff] %v6856_v38  ;;  %v6858_v42 = vpop.permute.xlu0 %1654 }
 0x2c7   : > { %10286 = vst [vmem:[#allocation50_spill] sm:$0xff] %v6858_v42 }
 0x2c8   : > { %1722 = vrot.lane.b32.xlu1 %v6359_v56, %s5586_s15 }
 0x2ca   : > { %v6862_v26 = vpop.permute.xlu1 %1638 }
 0x2cb   : > { %10287 = vst [vmem:[#allocation51_spill] sm:$0xff] %v6862_v26  ;;  %1724 = vrot.lane.b32.xlu2 %v6426_v46, %s5586_s15 }
 0x2cc   : > { %1744 = vrot.lane.b32.xlu0 %v6555_v7, %s5586_s15 }
 0x2cd   : > { %v6868_v1 = vpop.permute.xlu2 %1658 }
 0x2ce   : > { %10288 = vst [vmem:[#allocation52_spill] sm:$0xff] %v6868_v1  ;;  %v6870_v37 = vpop.permute.xlu0 %1660 }
 0x2d0   : > { %1728 = vrot.lane.b32.xlu1 %v6318_v33, %s5586_s15 }
 0x2d2   : > { %v6874_v38 = vpop.permute.xlu1 %1644 }
 0x2d3   : > { %10289 = vst [vmem:[#allocation53_spill] sm:$0xff] %v6874_v38  ;;  %1730 = vrot.lane.b32.xlu2 %v6570_v5, %s5586_s15 }
 0x2d4   : > { %1750 = vrot.lane.b32.xlu0 %v6161_v10, %s5586_s15 }
 0x2d5   : > { %v6880_v42 = vpop.permute.xlu2 %1664 }
 0x2d6   : > { %v6882_v30 = vpop.permute.xlu0 %1666 }
 0x2d8   : > { %1734 = vrot.lane.b32.xlu1 %v6322_v19, %s5586_s15 }
 0x2da   : > { %v6886_v1 = vpop.permute.xlu1 %1650 }
 0x2db   : > { %10290 = vst [vmem:[#allocation54_spill] sm:$0xff] %v6886_v1  ;;  %1736 = vrot.lane.b32.xlu2 %v6586_v39, %s5586_s15 }
 0x2dc   : > { %1756 = vrot.lane.b32.xlu0 %v6481_v54, %s5587_s17 }
 0x2dd   : > { %v6892_v62 = vpop.permute.xlu2 %1670 }
 0x2de   : > { %v6894_v24 = vpop.permute.xlu0 %1672 }
 0x2df   : > { %10291 = vst [vmem:[#allocation55_spill] sm:$0xff] %v6894_v24 }
 0x2e0   : > { %1740 = vrot.lane.b32.xlu1 %v6288_v34, %s5586_s15 }
 0x2e2   : > { %v6898_v47 = vpop.permute.xlu1 %1656 }
 0x2e3   : > { %10292 = vst [vmem:[#allocation56_spill] sm:$0xff] %v6898_v47  ;;  %1742 = vrot.lane.b32.xlu2 %v6601_v40, %s5586_s15 }
 0x2e4   : > { %1762 = vrot.lane.b32.xlu0 %v6444_v11, %s5587_s17 }
 0x2e5   : > { %v6904_v1 = vpop.permute.xlu2 %1676 }
 0x2e6   : > { %10293 = vst [vmem:[#allocation57_spill] sm:$0xff] %v6904_v1  ;;  %v6906_v38 = vpop.permute.xlu0 %1678 }
 0x2e7   : > { %10294 = vst [vmem:[#allocation58_spill] sm:$0xff] %v6906_v38 }
 0x2e8   : > { %1746 = vrot.lane.b32.xlu1 %v6356_v31, %s5586_s15 }
 0x2ea   : > { %v6910_v18 = vpop.permute.xlu1 %1662 }
 0x2eb   : > { %1748 = vrot.lane.b32.xlu2 %v6617_v59, %s5586_s15 }
 0x2ec   : > { %1768 = vrot.lane.b32.xlu0 %v6464_v0, %s5587_s17 }
 0x2ed   : > { %v6916_v47 = vpop.permute.xlu2 %1682 }
 0x2ee   : > { %10295 = vst [vmem:[#allocation59_spill] sm:$0xff] %v6916_v47  ;;  %v6918_v13 = vpop.permute.xlu0 %1684 }
 0x2ef   : > { %10296 = vst [vmem:[#allocation60_spill] sm:$0xff] %v6918_v13 }
 0x2f0   : > { %1752 = vrot.lane.b32.xlu1 %v6336_v36, %s5586_s15 }
 0x2f2   : > { %v6922_v32 = vpop.permute.xlu1 %1668 }
 0x2f3   : > { %1754 = vrot.lane.b32.xlu2 %v6632_v35, %s5586_s15 }
 0x2f4   : > { %1774 = vrot.lane.b32.xlu0 %v6501_v28, %s5587_s17 }
 0x2f5   : > { %v6928_v20 = vpop.permute.xlu2 %1688 }
 0x2f6   : > { %10297 = vst [vmem:[#allocation61_spill] sm:$0xff] %v6928_v20  ;;  %v6930_v26 = vpop.permute.xlu0 %1690 }
 0x2f7   : > { %10298 = vst [vmem:[#allocation62_spill] sm:$0xff] %v6930_v26 }
 0x2f8   : > { %1758 = vrot.lane.b32.xlu1 %v6315_v14, %s5587_s17 }
 0x2fa   : > { %v6934_v29 = vpop.permute.xlu1 %1674 }
 0x2fb   : > { %10299 = vst [vmem:[#allocation63_spill] sm:$0xff] %v6934_v29  ;;  %1760 = vrot.lane.b32.xlu2 %v6407_v41, %s5587_s17 }
 0x2fc   : > { %1780 = vrot.lane.b32.xlu0 %v6520_v49, %s5587_s17 }
 0x2fd   : > { %v6940_v13 = vpop.permute.xlu2 %1694 }
 0x2fe   : > { %10300 = vst [vmem:[#allocation64_spill] sm:$0xff] %v6940_v13  ;;  %v6942_v45 = vpop.permute.xlu0 %1696 }
 0x2ff   : > { %10301 = vst [vmem:[#allocation65_spill] sm:$0xff] %v6942_v45 }
 0x300   : > { %1764 = vrot.lane.b32.xlu1 %v6304_v17, %s5587_s17 }
 0x302   : > { %v6946_v20 = vpop.permute.xlu1 %1680 }
 0x303   : > { %10302 = vst [vmem:[#allocation66_spill] sm:$0xff] %v6946_v20  ;;  %1766 = vrot.lane.b32.xlu2 %v6516_v50, %s5587_s17 }
 0x304   : > { %1786 = vrot.lane.b32.xlu0 %v6538_v9, %s5587_s17 }
 0x305   : > { %v6952_v26 = vpop.permute.xlu2 %1700 }
 0x306   : > { %10303 = vst [vmem:[#allocation67_spill] sm:$0xff] %v6952_v26  ;;  %v6954_v23 = vpop.permute.xlu0 %1702 }
 0x307   : > { %10304 = vst [vmem:[#allocation68_spill] sm:$0xff] %v6954_v23 }
 0x308   : > { %1770 = vrot.lane.b32.xlu1 %v6359_v56, %s5587_s17 }
 0x30a   : > { %v6958_v13 = vpop.permute.xlu1 %1686 }
 0x30b   : > { %10305 = vst [vmem:[#allocation69_spill] sm:$0xff] %v6958_v13  ;;  %1772 = vrot.lane.b32.xlu2 %v6426_v46, %s5587_s17 }
 0x30c   : > { %1792 = vrot.lane.b32.xlu0 %v6555_v7, %s5587_s17 }
 0x30d   : > { %v6964_v45 = vpop.permute.xlu2 %1706 }
 0x30e   : > { %10306 = vst [vmem:[#allocation70_spill] sm:$0xff] %v6964_v45  ;;  %v6966_v38 = vpop.permute.xlu0 %1708 }
 0x310   : > { %1776 = vrot.lane.b32.xlu1 %v6318_v33, %s5587_s17 }
 0x312   : > { %v6970_v26 = vpop.permute.xlu1 %1692 }
 0x313   : > { %10307 = vst [vmem:[#allocation71_spill] sm:$0xff] %v6970_v26  ;;  %1778 = vrot.lane.b32.xlu2 %v6570_v5, %s5587_s17 }
 0x314   : > { %1798 = vrot.lane.b32.xlu0 %v6161_v10, %s5587_s17 }
 0x315   : > { %v6976_v23 = vpop.permute.xlu2 %1712 }
 0x316   : > { %v6978_v13 = vpop.permute.xlu0 %1714 }
 0x318   : > { %1782 = vrot.lane.b32.xlu1 %v6322_v19, %s5587_s17 }
 0x31a   : > { %v6982_v45 = vpop.permute.xlu1 %1698 }
 0x31b   : > { %10308 = vst [vmem:[#allocation72_spill] sm:$0xff] %v6982_v45  ;;  %1784 = vrot.lane.b32.xlu2 %v6586_v39, %s5587_s17 }
 0x31c   : > { %1804 = vrot.lane.b32.xlu0 %v6481_v54, %s5588_s26 }
 0x31d   : > { %v6988_v26 = vpop.permute.xlu2 %1718 }
 0x31e   : > { %v6990_v57 = vpop.permute.xlu0 %1720 }
 0x31f   : > { %10309 = vst [vmem:[#allocation73_spill] sm:$0xff] %v6990_v57 }
 0x320   : > { %1788 = vrot.lane.b32.xlu1 %v6288_v34, %s5587_s17 }
 0x322   : > { %v6994_v8 = vpop.permute.xlu1 %1704 }
 0x323   : > { %10310 = vst [vmem:[#allocation74_spill] sm:$0xff] %v6994_v8  ;;  %1790 = vrot.lane.b32.xlu2 %v6601_v40, %s5587_s17 }
 0x324   : > { %1810 = vrot.lane.b32.xlu0 %v6444_v11, %s5588_s26 }
 0x325   : > { %v7000_v45 = vpop.permute.xlu2 %1724 }
 0x326   : > { %10311 = vst [vmem:[#allocation75_spill] sm:$0xff] %v7000_v45  ;;  %v7002_v60 = vpop.permute.xlu0 %1726 }
 0x327   : > { %10312 = vst [vmem:[#allocation76_spill] sm:$0xff] %v7002_v60 }
 0x328   : > { %1794 = vrot.lane.b32.xlu1 %v6356_v31, %s5587_s17 }
 0x32a   : > { %v7006_v22 = vpop.permute.xlu1 %1710 }
 0x32b   : > { %1796 = vrot.lane.b32.xlu2 %v6617_v59, %s5587_s17 }
 0x32c   : > { %1816 = vrot.lane.b32.xlu0 %v6464_v0, %s5588_s26 }
 0x32d   : > { %v7012_v8 = vpop.permute.xlu2 %1730 }
 0x32e   : > { %10313 = vst [vmem:[#allocation77_spill] sm:$0xff] %v7012_v8  ;;  %v7014_v47 = vpop.permute.xlu0 %1732 }
 0x32f   : > { %10314 = vst [vmem:[#allocation78_spill] sm:$0xff] %v7014_v47 }
 0x330   : > { %1800 = vrot.lane.b32.xlu1 %v6336_v36, %s5587_s17 }
 0x332   : > { %v7018_v20 = vpop.permute.xlu1 %1716 }
 0x333   : > { %1802 = vrot.lane.b32.xlu2 %v6632_v35, %s5587_s17 }
 0x334   : > { %1822 = vrot.lane.b32.xlu0 %v6501_v28, %s5588_s26 }
 0x335   : > { %v7024_v60 = vpop.permute.xlu2 %1736 }
 0x336   : > { %10315 = vst [vmem:[#allocation79_spill] sm:$0xff] %v7024_v60  ;;  %v7026_v16 = vpop.permute.xlu0 %1738 }
 0x337   : > { %10316 = vst [vmem:[#allocation80_spill] sm:$0xff] %v7026_v16 }
 0x338   : > { %1806 = vrot.lane.b32.xlu1 %v6315_v14, %s5588_s26 }
 0x33a   : > { %v7030_v8 = vpop.permute.xlu1 %1722 }
 0x33b   : > { %1808 = vrot.lane.b32.xlu2 %v6407_v41, %s5588_s26 }
 0x33c   : > { %1828 = vrot.lane.b32.xlu0 %v6520_v49, %s5588_s26 }
 0x33d   : > { %v7036_v47 = vpop.permute.xlu2 %1742 }
 0x33e   : > { %10317 = vst [vmem:[#allocation81_spill] sm:$0xff] %v7036_v47  ;;  %v7038_v3 = vpop.permute.xlu0 %1744 }
 0x33f   : > { %10318 = vst [vmem:[#allocation82_spill] sm:$0xff] %v7038_v3 }
 0x340   : > { %1812 = vrot.lane.b32.xlu1 %v6304_v17, %s5588_s26 }
 0x342   : > { %v7042_v60 = vpop.permute.xlu1 %1728 }
 0x343   : > { %10319 = vst [vmem:[#allocation83_spill] sm:$0xff] %v7042_v60  ;;  %1814 = vrot.lane.b32.xlu2 %v6516_v50, %s5588_s26 }
 0x344   : > { %1834 = vrot.lane.b32.xlu0 %v6538_v9, %s5588_s26 }
 0x345   : > { %v7048_v16 = vpop.permute.xlu2 %1748 }
 0x346   : > { %10320 = vst [vmem:[#allocation84_spill] sm:$0xff] %v7048_v16  ;;  %v7050_v45 = vpop.permute.xlu0 %1750 }
 0x347   : > { %10321 = vst [vmem:[#allocation85_spill] sm:$0xff] %v7050_v45 }
 0x348   : > { %1818 = vrot.lane.b32.xlu1 %v6359_v56, %s5588_s26 }
 0x34a   : > { %v7054_v47 = vpop.permute.xlu1 %1734 }
 0x34b   : > { %10322 = vst [vmem:[#allocation86_spill] sm:$0xff] %v7054_v47  ;;  %1820 = vrot.lane.b32.xlu2 %v6426_v46, %s5588_s26 }
 0x34c   : > { %1840 = vrot.lane.b32.xlu0 %v6555_v7, %s5588_s26 }
 0x34d   : > { %v7060_v3 = vpop.permute.xlu2 %1754 }
 0x34e   : > { %10323 = vst [vmem:[#allocation87_spill] sm:$0xff] %v7060_v3  ;;  %v7062_v60 = vpop.permute.xlu0 %1756 }
 0x350   : > { %1824 = vrot.lane.b32.xlu1 %v6318_v33, %s5588_s26 }
 0x352   : > { %v7066_v16 = vpop.permute.xlu1 %1740 }
 0x353   : > { %10324 = vst [vmem:[#allocation88_spill] sm:$0xff] %v7066_v16  ;;  %1826 = vrot.lane.b32.xlu2 %v6570_v5, %s5588_s26 }
 0x354   : > { %1846 = vrot.lane.b32.xlu0 %v6161_v10, %s5588_s26 }
 0x355   : > { %v7072_v45 = vpop.permute.xlu2 %1760 }
 0x356   : > { %v7074_v47 = vpop.permute.xlu0 %1762 }
 0x358   : > { %1830 = vrot.lane.b32.xlu1 %v6322_v19, %s5588_s26 }
 0x35a   : > { %v7078_v3 = vpop.permute.xlu1 %1746 }
 0x35b   : > { %10325 = vst [vmem:[#allocation89_spill] sm:$0xff] %v7078_v3  ;;  %1832 = vrot.lane.b32.xlu2 %v6586_v39, %s5588_s26 }
 0x35c   : > { %1852 = vrot.lane.b32.xlu0 %v6481_v54, %s5578_s12 }
 0x35d   : > { %v7084_v16 = vpop.permute.xlu2 %1766 }
 0x35e   : > { %v7086_v1 = vpop.permute.xlu0 %1768 }
 0x35f   : > { %10326 = vst [vmem:[#allocation90_spill] sm:$0xff] %v7086_v1 }
 0x360   : > { %1836 = vrot.lane.b32.xlu1 %v6288_v34, %s5588_s26 }
 0x362   : > { %v7090_v24 = vpop.permute.xlu1 %1752 }
 0x363   : > { %10327 = vst [vmem:[#allocation91_spill] sm:$0xff] %v7090_v24  ;;  %1838 = vrot.lane.b32.xlu2 %v6601_v40, %s5588_s26 }
 0x364   : > { %1858 = vrot.lane.b32.xlu0 %v6444_v11, %s5578_s12 }
 0x365   : > { %v7096_v3 = vpop.permute.xlu2 %1772 }
 0x366   : > { %10328 = vst [vmem:[#allocation92_spill] sm:$0xff] %v7096_v3  ;;  %v7098_v29 = vpop.permute.xlu0 %1774 }
 0x367   : > { %10329 = vst [vmem:[#allocation93_spill] sm:$0xff] %v7098_v29 }
 0x368   : > { %1842 = vrot.lane.b32.xlu1 %v6356_v31, %s5588_s26 }
 0x36a   : > { %v7102_v27 = vpop.permute.xlu1 %1758 }
 0x36b   : > { %1844 = vrot.lane.b32.xlu2 %v6617_v59, %s5588_s26 }
 0x36c   : > { %1864 = vrot.lane.b32.xlu0 %v6464_v0, %s5578_s12 }
 0x36d   : > { %v7108_v24 = vpop.permute.xlu2 %1778 }
 0x36e   : > { %10330 = vst [vmem:[#allocation94_spill] sm:$0xff] %v7108_v24  ;;  %v7110_v1 = vpop.permute.xlu0 %1780 }
 0x36f   : > { %10331 = vst [vmem:[#allocation95_spill] sm:$0xff] %v7110_v1 }
 0x370   : > { %1848 = vrot.lane.b32.xlu1 %v6336_v36, %s5588_s26 }
 0x372   : > { %v7114_v3 = vpop.permute.xlu1 %1764 }
 0x373   : > { %1850 = vrot.lane.b32.xlu2 %v6632_v35, %s5588_s26 }
 0x374   : > { %1870 = vrot.lane.b32.xlu0 %v6501_v28, %s5578_s12 }
 0x375   : > { %v7120_v29 = vpop.permute.xlu2 %1784 }
 0x376   : > { %10332 = vst [vmem:[#allocation96_spill] sm:$0xff] %v7120_v29  ;;  %v7122_v4 = vpop.permute.xlu0 %1786 }
 0x377   : > { %10333 = vst [vmem:[#allocation97_spill] sm:$0xff] %v7122_v4 }
 0x378   : > { %1854 = vrot.lane.b32.xlu1 %v6315_v14, %s5578_s12 }
 0x37a   : > { %v7126_v24 = vpop.permute.xlu1 %1770 }
 0x37b   : > { %1856 = vrot.lane.b32.xlu2 %v6407_v41, %s5578_s12 }
 0x37c   : > { %1876 = vrot.lane.b32.xlu0 %v6520_v49, %s5578_s12 }
 0x37d   : > { %v7132_v1 = vpop.permute.xlu2 %1790 }
 0x37e   : > { %10334 = vst [vmem:[#allocation98_spill] sm:$0xff] %v7132_v1  ;;  %v7134_v57 = vpop.permute.xlu0 %1792 }
 0x37f   : > { %10335 = vst [vmem:[#allocation99_spill] sm:$0xff] %v7134_v57 }
 0x380   : > { %1860 = vrot.lane.b32.xlu1 %v6304_v17, %s5578_s12 }
 0x382   : > { %v7138_v29 = vpop.permute.xlu1 %1776 }
 0x383   : > { %1862 = vrot.lane.b32.xlu2 %v6516_v50, %s5578_s12 }
 0x384   : > { %1882 = vrot.lane.b32.xlu0 %v6538_v9, %s5578_s12 }
 0x385   : > { %v7144_v4 = vpop.permute.xlu2 %1796 }
 0x386   : > { %10336 = vst [vmem:[#allocation100_spill] sm:$0xff] %v7144_v4  ;;  %v7146_v28 = vpop.permute.xlu0 %1798 }
 0x387   : > { %10337 = vst [vmem:[#allocation101_spill] sm:$0xff] %v7146_v28 }
 0x388   : > { %1866 = vrot.lane.b32.xlu1 %v6359_v56, %s5578_s12 }
 0x38a   : > { %v7150_v1 = vpop.permute.xlu1 %1782 }
 0x38b   : > { %10338 = vst [vmem:[#allocation102_spill] sm:$0xff] %v7150_v1  ;;  %1868 = vrot.lane.b32.xlu2 %v6426_v46, %s5578_s12  ;;  %v1901_v1 = vrot.slane %v6481_v54, 1 }
 0x38c   : > { %1888 = vrot.lane.b32.xlu0 %v6555_v7, %s5578_s12  ;;  %v1902_v7 = vrot.slane %v6315_v14, 1  ;;  %v1909_v14 = vrot.slane %v6609_v48, 1  ;;  %v1916_v48 = vrot.slane %v6870_v37, 1 }
 0x38d   : > { %v7156_v57 = vpop.permute.xlu2 %1802 }
 0x38e   : > { %10339 = vst [vmem:[#allocation103_spill] sm:$0xff] %v7156_v57  ;;  %v1805_v49 = vpop.permute.xlu0 %1804 }
 0x390   : > { %1872 = vrot.lane.b32.xlu1 %v6318_v33, %s5578_s12 }
 0x392   : > { %v7160_v4 = vpop.permute.xlu1 %1788 }
 0x393   : > { %10340 = vst [vmem:[#allocation104_spill] sm:$0xff] %v7160_v4  ;;  %1874 = vrot.lane.b32.xlu2 %v6570_v5, %s5578_s12  ;;  %v1903_v4 = vsel %vm1900_vm6, %v1901_v1, %v1902_v7 }
 0x394   : > { %1894 = vrot.lane.b32.xlu0 %v6161_v10, %s5578_s12 }
 0x395   : > { %v7166_v28 = vpop.permute.xlu2 %1808 }
 0x396   : > { %v7171_v57 = vpop.permute.xlu0 %1810 }
 0x398   : > { %1878 = vrot.lane.b32.xlu1 %v6322_v19, %s5578_s12  ;;  %v1907_v19 = vrot.slane %v6718_v2, 1  ;;  %v1917_v2 = vrot.slane %v6910_v18, 1  ;;  %v1924_v18 = vrot.slane %v6976_v23, 1  ;;  %v1931_v23 = vrot.slane %v1805_v49, 1 }
 0x399   : > { %v1914_v49 = vrot.slane %v6784_v25, 1 }
 0x39a   : > { %v7173_v9 = vpop.permute.xlu1 %1794  ;;  %v1910_v1 = vsel %vm1900_vm6, %v1907_v19, %v1909_v14 }
 0x39b   : > { %10341 = vst [vmem:[#allocation105_spill] sm:$0xff] %v7173_v9  ;;  %1880 = vrot.lane.b32.xlu2 %v6586_v39, %s5578_s12 }
 0x39c   : > { %2221 = vrot.lane.b32.xlu0 %v1903_v4, %s5582_s16 }
 0x39d   : > { %v7180_v10 = vpop.permute.xlu2 %1814 }
 0x39e   : > { %v7190_v54 = vpop.permute.xlu0 %1816 }
 0x3a0   : > { %1884 = vrot.lane.b32.xlu1 %v6288_v34, %s5578_s12 }
 0x3a2   : > { %v7186_v9 = vpop.permute.xlu1 %1800 }
 0x3a3   : > { %10342 = vst [vmem:[#allocation106_spill] sm:$0xff] %v7186_v9  ;;  %1886 = vrot.lane.b32.xlu2 %v6601_v40, %s5578_s12  ;;  %v1918_v9 = vsel %vm1900_vm6, %v1916_v48, %v1917_v2  ;;  %v1922_v40 = vrot.slane %v7006_v22, 1  ;;  %v1904_v48 = vrot.slane %v6407_v41, 1 }
 0x3a4   : > { %2227 = vrot.lane.b32.xlu0 %v1910_v1, %s5582_s16 }
 0x3a5   : > { %v7194_v4 = vpop.permute.xlu2 %1820  ;;  %v1905_v22 = vsel %vm1900_vm6, %v1902_v7, %v1904_v48  ;;  %v1911_v7 = vrot.slane %v6774_v53, 1  ;;  %v1919_v53 = vrot.slane %v6880_v42, 1  ;;  %v1926_v42 = vrot.slane %v7062_v60, 1 }
 0x3a6   : > { %v7206_v1 = vpop.permute.xlu0 %1822 }
 0x3a7   : > { %10343 = vst [vmem:[#allocation107_spill] sm:$0xff] %v7206_v1 }
 0x3a8   : > { %1890 = vrot.lane.b32.xlu1 %v6356_v31, %s5578_s12 }
 0x3aa   : > { %v1807_v34 = vpop.permute.xlu1 %1806 }
 0x3ab   : > { %1892 = vrot.lane.b32.xlu2 %v6617_v59, %s5578_s12  ;;  %v1906_v59 = vrot.slane %v6702_v44, 1 }
 0x3ac   : > { %2233 = vrot.lane.b32.xlu0 %v1918_v9, %s5582_s16  ;;  %v1925_v9 = vsel %vm1900_vm6, %v1922_v40, %v1924_v18  ;;  %v1912_v18 = vrot.slane %v6814_v12, 1 }
 0x3ad   : > { %v7204_v14 = vpop.permute.xlu2 %1826  ;;  %v1908_v41 = vsel %vm1900_vm6, %v1906_v59, %v1907_v19 }
 0x3ae   : > { %v7223_v39 = vpop.permute.xlu0 %1828  ;;  %v1913_v44 = vsel %vm1900_vm6, %v1911_v7, %v1912_v18  ;;  %v1915_v59 = vsel %vm1900_vm6, %v1912_v18, %v1914_v49 }
 0x3b0   : > { %1896 = vrot.lane.b32.xlu1 %v6336_v36, %s5578_s12  ;;  %v1932_v36 = vrot.slane %v1807_v34, 1 }
 0x3b2   : > { %v7212_v37 = vpop.permute.xlu1 %1812 }
 0x3b3   : > { %1898 = vrot.lane.b32.xlu2 %v6632_v35, %s5578_s12  ;;  %s5295_s12 = sshll.u32 %s5886_s30, 6 }
 0x3b4   : > { %2239 = vrot.lane.b32.xlu0 %v1925_v9, %s5582_s16  ;;  %v1933_v9 = vsel %vm1900_vm6, %v1931_v23, %v1932_v36  ;;  %v1921_v23 = vrot.slane %v6966_v38, 1  ;;  %v1929_v38 = vrot.slane %v7072_v45, 1  ;;  %v1942_v45 = vrot.slane %v6304_v17, 1  ;;  %s9248_s27 = scalar_lea.vmem [#allocation4], %s5295_s12 }
 0x3b5   : > { %v7219_v31 = vpop.permute.xlu2 %1832 }
 0x3b6   : > { %v7239_v48 = vpop.permute.xlu0 %1834 }
 0x3b8   : > { %2223 = vrot.lane.b32.xlu1 %v1905_v22, %s5582_s16  ;;  %v1920_v22 = vsel %vm1900_vm6, %v1917_v2, %v1919_v53 }
 0x3ba   : > { %v7226_v1 = vpop.permute.xlu1 %1818 }
 0x3bb   : > { %2225 = vrot.lane.b32.xlu2 %v1908_v41, %s5582_s16  ;;  %v1923_v41 = vsel %vm1900_vm6, %v1921_v23, %v1922_v40  ;;  %v1941_v23 = vrot.slane %v6444_v11, 1 }
 0x3bc   : > { %2245 = vrot.lane.b32.xlu0 %v1933_v9, %s5582_s16  ;;  %v1927_v9 = vrot.slane %v7102_v27, 1  ;;  %v1934_v27 = vrot.slane %v7166_v28, 1 }
 0x3bd   : > { %v7234_v34 = vpop.permute.xlu2 %1838 }
 0x3be   : > { %v7256_v18 = vpop.permute.xlu0 %1840  ;;  %v1928_v2 = vsel %vm1900_vm6, %v1926_v42, %v1927_v9  ;;  %v1930_v40 = vsel %vm1900_vm6, %v1927_v9, %v1929_v38  ;;  %v1935_v60 = vsel %vm1900_vm6, %v1932_v36, %v1934_v27  ;;  %v1947_v42 = vrot.slane %v6730_v63, 1 }
 0x3bf   : > { %v1949_v36 = vrot.slane %v6688_v51, 1 }
 0x3c0   : > { %2229 = vrot.lane.b32.xlu1 %v1913_v44, %s5582_s16 }
 0x3c1   : > { %v1950_v38 = vsel %vm1900_vm6, %v1947_v42, %v1949_v36 }
 0x3c2   : > { %v7241_v19 = vpop.permute.xlu1 %1824 }
 0x3c3   : > { %2231 = vrot.lane.b32.xlu2 %v1915_v59, %s5582_s16 }
 0x3c5   : > { %v7246_v12 = vpop.permute.xlu2 %1844 }
 0x3c6   : > { %v7269_v59 = vpop.permute.xlu0 %1846 }
 0x3c8   : > { %2235 = vrot.lane.b32.xlu1 %v1920_v22, %s5582_s16 }
 0x3ca   : > { %v7251_v25 = vpop.permute.xlu1 %1830 }
 0x3cb   : > { %2237 = vrot.lane.b32.xlu2 %v1923_v41, %s5582_s16  ;;  %v1943_v41 = vsel %vm1900_vm6, %v1941_v23, %v1942_v45 }
 0x3cd   : > { %v7259_v7 = vpop.permute.xlu2 %1850 }
 0x3ce   : > { %v1853_v9 = vpop.permute.xlu0 %1852 }
 0x3cf   : > { %v1936_v27 = vrot.slane %v1853_v9, 1  ;;  %v1946_v9 = vrot.slane %v6678_v58, 1 }
 0x3d0   : > { %2241 = vrot.lane.b32.xlu1 %v1928_v2, %s5582_s16 }
 0x3d2   : > { %v7264_v44 = vpop.permute.xlu1 %1836 }
 0x3d3   : > { %2243 = vrot.lane.b32.xlu2 %v1930_v40, %s5582_s16  ;;  %v1957_v40 = vrot.slane %v6922_v32, 1  ;;  %v1944_v32 = vrot.slane %v6516_v50, 1  ;;  %v1952_v50 = vrot.slane %v6826_v61, 1 }
 0x3d5   : > { %v1857_v49 = vpop.permute.xlu2 %1856 }
 0x3d6   : > { %v7289_v17 = vpop.permute.xlu0 %1858 }
 0x3d8   : > { %2247 = vrot.lane.b32.xlu1 %v1935_v60, %s5582_s16  ;;  %v1939_v60 = vrot.slane %v1857_v49, 1 }
 0x3da   : > { %v7273_v53 = vpop.permute.xlu1 %1842 }
 0x3dd   : > { %v7276_v22 = vpop.permute.xlu2 %1862 }
 0x3e0   : > { %2253 = vrot.lane.b32.xlu1 %v1943_v41, %s5582_s16  ;;  %v1956_v41 = vrot.slane %v6882_v30, 1  ;;  %v1962_v30 = vrot.slane %v7018_v20, 1 }
 0x3e2   : > { %v7281_v28 = vpop.permute.xlu1 %1848  ;;  %v1958_v36 = vsel %vm1900_vm6, %v1956_v41, %v1957_v40 }
 0x3e5   : > { %v7285_v2 = vpop.permute.xlu2 %1868 }
 0x3e8   : > { %2259 = vrot.lane.b32.xlu1 %v1950_v38, %s5582_s16 }
 0x3ea   : > { %v1855_v11 = vpop.permute.xlu1 %1854 }
 0x3eb   : > { %v1937_v23 = vrot.slane %v1855_v11, 1  ;;  %v7304_v11 = vpop.permute.xlu0 %1864 }
 0x3ed   : > { %v1940_v63 = vsel %vm1900_vm6, %v1937_v23, %v1939_v60  ;;  %v1938_v51 = vsel %vm1900_vm6, %v1936_v27, %v1937_v23  ;;  %v7298_v38 = vpop.permute.xlu2 %1874  ;;  %v1964_v27 = vrot.slane %v6988_v26, 1  ;;  %v1948_v60 = vsel %vm1900_vm6, %v1946_v9, %v1947_v42 }
 0x3ee   : > { %2251 = vrot.lane.b32.xlu0 %v1940_v63, %s5582_s16  ;;  %2249 = vrot.lane.b32.xlu2 %v1938_v51, %s5582_s16  ;;  %v1945_v23 = vsel %vm1900_vm6, %v1942_v45, %v1944_v32  ;;  %v1951_v26 = vrot.slane %v6786_v43, 1  ;;  %v1954_v42 = vrot.slane %v6796_v21, 1  ;;  %v1972_v45 = vrot.slane %v7212_v37, 1 }
 0x3ef   : > { %v1965_v41 = vsel %vm1900_vm6, %v1962_v30, %v1964_v27  ;;  %v1971_v63 = vrot.slane %v7171_v57, 1  ;;  %v1959_v21 = vrot.slane %v6892_v62, 1  ;;  %v1961_v57 = vrot.slane %v6978_v13, 1 }
 0x3f0   : > { %2265 = vrot.lane.b32.xlu1 %v1958_v36, %s5582_s16  ;;  %v1955_v51 = vsel %vm1900_vm6, %v1952_v50, %v1954_v42  ;;  %v1953_v36 = vsel %vm1900_vm6, %v1951_v26, %v1952_v50  ;;  %v1979_v27 = vrot.slane %v7276_v22, 1  ;;  %v1967_v13 = vrot.slane %v7114_v3, 1 }
 0x3f1   : > { %v1973_v61 = vsel %vm1900_vm6, %v1971_v63, %v1972_v45  ;;  %v1987_v22 = vrot.slane %v6742_v52, 1 }
 0x3f2   : > { %v1861_v49 = vpop.permute.xlu1 %1860 }
 0x3f3   : > { %v7324_v32 = vpop.permute.xlu0 %1870  ;;  %v1977_v37 = vrot.slane %v1861_v49, 1  ;;  %v1966_v49 = vrot.slane %v7074_v47, 1 }
 0x3f5   : > { %v7314_v58 = vpop.permute.xlu2 %1880  ;;  %v1968_v42 = vsel %vm1900_vm6, %v1966_v49, %v1967_v13 }
 0x3f6   : > { %2257 = vrot.lane.b32.xlu0 %v1948_v60, %s5582_s16  ;;  %2255 = vrot.lane.b32.xlu2 %v1945_v23, %s5582_s16  ;;  %v1963_v60 = vsel %vm1900_vm6, %v1961_v57, %v1962_v30  ;;  %v1960_v23 = vsel %vm1900_vm6, %v1957_v40, %v1959_v21  ;;  %v1969_v40 = vrot.slane %v7084_v16, 1  ;;  %v1986_v30 = vrot.slane %v6690_v15, 1 }
 0x3f7   : > { %v1992_v15 = vrot.slane %v6838_v6, 1  ;;  %v1974_v16 = vrot.slane %v7180_v10, 1  ;;  %v1982_v10 = vrot.slane %v6359_v56, 1  ;;  %v1984_v6 = vrot.slane %v6426_v46, 1 }
 0x3f8   : > { %2271 = vrot.lane.b32.xlu1 %v1965_v41, %s5582_s16  ;;  %v1980_v41 = vsel %vm1900_vm6, %v1977_v37, %v1979_v27  ;;  %v1970_v26 = vsel %vm1900_vm6, %v1967_v13, %v1969_v40  ;;  %v1988_v3 = vsel %vm1900_vm6, %v1986_v30, %v1987_v22  ;;  %v10346_v40 = vld [vmem:[#allocation39_spill] sm:$0xff] }
 0x3f9   : > { %v1985_v13 = vsel %vm1900_vm6, %v1982_v10, %v1984_v6  ;;  %v1991_v30 = vrot.slane %v10346_v40, 1 }
 0x3fa   : > { %v7316_v20 = vpop.permute.xlu1 %1866 }
 0x3fb   : > { %v7342_v50 = vpop.permute.xlu0 %1876 }
 0x3fd   : > { %v7334_v9 = vpop.permute.xlu2 %1886 }
 0x3fe   : > { %2263 = vrot.lane.b32.xlu0 %v1955_v51, %s5582_s16  ;;  %2261 = vrot.lane.b32.xlu2 %v1953_v36, %s5582_s16  ;;  %v1976_v51 = vrot.slane %v7289_v17, 1  ;;  %v1994_v36 = vrot.slane %v6808_v55, 1  ;;  %v2002_v55 = vrot.slane %v7030_v8, 1 }
 0x400   : > { %2277 = vrot.lane.b32.xlu1 %v1973_v61, %s5582_s16  ;;  %v1975_v61 = vsel %vm1900_vm6, %v1972_v45, %v1974_v16  ;;  %v1978_v21 = vsel %vm1900_vm6, %v1976_v51, %v1977_v37  ;;  %v1995_v57 = vsel %vm1900_vm6, %v1992_v15, %v1994_v36  ;;  %v1981_v45 = vrot.slane %v6464_v0, 1  ;;  %v10345_v0 = vld [vmem:[#allocation24_spill] sm:$0xff] }
 0x401   : > { %v1989_v49 = vrot.slane %v10345_v0, 1  ;;  %v1993_v51 = vsel %vm1900_vm6, %v1991_v30, %v1992_v15  ;;  %v2017_v15 = vrot.slane %v7316_v20, 1  ;;  %v10351_v20 = vld [vmem:[#allocation75_spill] sm:$0xff]  ;;  %v10352_v30 = vld [vmem:[#allocation90_spill] sm:$0xff] }
 0x402   : > { %v7330_v43 = vpop.permute.xlu1 %1872  ;;  %v2004_v40 = vrot.slane %v10351_v20, 1  ;;  %v2019_v20 = vrot.slane %v7285_v2, 1  ;;  %v10358_v2 = vld [vmem:[#allocation32_spill] sm:$0xff] }
 0x403   : > { %v7360_v52 = vpop.permute.xlu0 %1882  ;;  %v1990_v16 = vsel %vm1900_vm6, %v1987_v22, %v1989_v49 }
 0x405   : > { %v7354_v63 = vpop.permute.xlu2 %1892 }
 0x406   : > { %2269 = vrot.lane.b32.xlu0 %v1963_v60, %s5582_s16  ;;  %2267 = vrot.lane.b32.xlu2 %v1960_v23, %s5582_s16  ;;  %v10344_v60 = vld [vmem:[#allocation73_spill] sm:$0xff] }
 0x407   : > { %v2001_v23 = vrot.slane %v10344_v60, 1 }
 0x408   : > { %2283 = vrot.lane.b32.xlu1 %v1980_v41, %s5582_s16  ;;  %v1983_v41 = vsel %vm1900_vm6, %v1981_v45, %v1982_v10  ;;  %v10350_v45 = vld [vmem:[#allocation57_spill] sm:$0xff] }
 0x409   : > { %v2003_v56 = vsel %vm1900_vm6, %v2001_v23, %v2002_v55  ;;  %v1999_v22 = vrot.slane %v10350_v45, 1  ;;  %v2016_v23 = vrot.slane %v7304_v11, 1  ;;  %v2006_v11 = vrot.slane %v10352_v30, 1  ;;  %v10354_v45 = vld [vmem:[#allocation41_spill] sm:$0xff] }
 0x40a   : > { %v7346_v62 = vpop.permute.xlu1 %1878 }
 0x40b   : > { %v7382_v37 = vpop.permute.xlu0 %1888 }
 0x40d   : > { %v7373_v27 = vpop.permute.xlu2 %1898 }
 0x40e   : > { %2275 = vrot.lane.b32.xlu0 %v1970_v26, %s5582_s16  ;;  %2273 = vrot.lane.b32.xlu2 %v1968_v42, %s5582_s16  ;;  %v2007_v26 = vrot.slane %v7126_v24, 1  ;;  %v10347_v42 = vld [vmem:[#allocation92_spill] sm:$0xff]  ;;  %v10349_v24 = vld [vmem:[#allocation55_spill] sm:$0xff] }
 0x40f   : > { %v1996_v6 = vrot.slane %v10349_v24, 1 }
 0x410   : > { %2289 = vrot.lane.b32.xlu1 %v1988_v3, %s5582_s16  ;;  %v2009_v3 = vrot.slane %v10347_v42, 1  ;;  %v2024_v42 = vrot.slane %v6570_v5, 1 }
 0x412   : > { %v7362_v47 = vpop.permute.xlu1 %1884 }
 0x413   : > { %v7401_v36 = vpop.permute.xlu0 %1894 }
 0x415   : > { %v7391_v46 = vpop.permute.xlu2 %2225 }
 0x416   : > { %2279 = vrot.lane.b32.xlu2 %v1975_v61, %s5582_s16  ;;  %2281 = vrot.lane.b32.xlu0 %v1978_v21, %s5582_s16  ;;  %v2010_v61 = vsel %vm1900_vm6, %v2007_v26, %v2009_v3  ;;  %v10348_v21 = vld [vmem:[#allocation63_spill] sm:$0xff]  ;;  %v2005_v3 = vsel %vm1900_vm6, %v2002_v55, %v2004_v40  ;;  %v10353_v55 = vld [vmem:[#allocation48_spill] sm:$0xff]  ;;  %v10356_v40 = vld [vmem:[#allocation17_spill] sm:$0xff] }
 0x417   : > { %v2021_v30 = vrot.slane %v10356_v40, 1 }
 0x418   : > { %2295 = vrot.lane.b32.xlu1 %v1995_v57, %s5582_s16  ;;  %v1997_v57 = vrot.slane %v10348_v21, 1 }
 0x41a   : > { %v7378_v17 = vpop.permute.xlu1 %1890 }
 0x41b   : > { %v7421_v0 = vpop.permute.xlu0 %2221 }
 0x41d   : > { %v7413_v60 = vpop.permute.xlu2 %2231 }
 0x41e   : > { %2285 = vrot.lane.b32.xlu2 %v1983_v41, %s5582_s16  ;;  %2287 = vrot.lane.b32.xlu0 %v1985_v13, %s5582_s16  ;;  %v1998_v41 = vsel %vm1900_vm6, %v1996_v6, %v1997_v57  ;;  %v2000_v13 = vsel %vm1900_vm6, %v1997_v57, %v1999_v22  ;;  %v2012_v57 = vrot.slane %v7226_v1, 1  ;;  %v2014_v6 = vrot.slane %v7194_v4, 1 }
 0x41f   : > { %v2031_v22 = vrot.slane %v10354_v45, 1  ;;  %v10359_v45 = vld [vmem:[#allocation25_spill] sm:$0xff] }
 0x420   : > { %2301 = vrot.lane.b32.xlu1 %v2003_v56, %s5582_s16  ;;  %v2018_v56 = vsel %vm1900_vm6, %v2016_v23, %v2017_v15 }
 0x422   : > { %v7393_v8 = vpop.permute.xlu1 %1896 }
 0x423   : > { %v7439_v24 = vpop.permute.xlu0 %2227 }
 0x426   : > { %2291 = vrot.lane.b32.xlu2 %v1990_v16, %s5582_s16  ;;  %2293 = vrot.lane.b32.xlu0 %v1993_v51, %s5582_s16  ;;  %v2008_v16 = vsel %vm1900_vm6, %v2006_v11, %v2007_v26  ;;  %v2022_v51 = vrot.slane %v6318_v33, 1  ;;  %v2032_v26 = vrot.slane %v10353_v55, 1  ;;  %v2011_v33 = vrot.slane %v7190_v54, 1  ;;  %v10355_v54 = vld [vmem:[#allocation66_spill] sm:$0xff] }
 0x427   : > { %v2037_v4 = vrot.slane %v10355_v54, 1 }
 0x428   : > { %2307 = vrot.lane.b32.xlu1 %v2010_v61, %s5582_s16  ;;  %v7432_v61 = vpop.permute.xlu2 %2237  ;;  %v2025_v21 = vsel %vm1900_vm6, %v2022_v51, %v2024_v42  ;;  %v2013_v23 = vsel %vm1900_vm6, %v2011_v33, %v2012_v57  ;;  %v2033_v1 = vsel %vm1900_vm6, %v2031_v22, %v2032_v26  ;;  %v10357_v42 = vld [vmem:[#allocation59_spill] sm:$0xff]  ;;  %v2027_v33 = vrot.slane %v10358_v2, 1 }
 0x429   : > { %v2026_v22 = vrot.slane %v10359_v45, 1  ;;  %v2052_v2 = vrot.slane %v7241_v19, 1 }
 0x42a   : > { %v7408_v10 = vpop.permute.xlu1 %2223 }
 0x42b   : > { %v7460_v11 = vpop.permute.xlu0 %2233  ;;  %v2028_v54 = vsel %vm1900_vm6, %v2026_v22, %v2027_v33 }
 0x42e   : > { %2297 = vrot.lane.b32.xlu2 %v1998_v41, %s5582_s16  ;;  %2299 = vrot.lane.b32.xlu0 %v2000_v13, %s5582_s16  ;;  %v2015_v41 = vsel %vm1900_vm6, %v2012_v57, %v2014_v6 }
 0x430   : > { %2313 = vrot.lane.b32.xlu1 %v2018_v56, %s5582_s16  ;;  %v7452_v13 = vpop.permute.xlu2 %2243 }
 0x432   : > { %v7424_v49 = vpop.permute.xlu1 %2229 }
 0x433   : > { %v7480_v40 = vpop.permute.xlu0 %2239 }
 0x436   : > { %2303 = vrot.lane.b32.xlu2 %v2005_v3, %s5582_s16  ;;  %2305 = vrot.lane.b32.xlu0 %v2008_v16, %s5582_s16  ;;  %v2039_v3 = vrot.slane %v10357_v42, 1  ;;  %v2020_v16 = vsel %vm1900_vm6, %v2017_v15, %v2019_v20 }
 0x438   : > { %2319 = vrot.lane.b32.xlu1 %v2025_v21, %s5582_s16  ;;  %v2023_v21 = vsel %vm1900_vm6, %v2021_v30, %v2022_v51  ;;  %v2040_v57 = vsel %vm1900_vm6, %v2037_v4, %v2039_v3  ;;  %v2047_v51 = vrot.slane %v7138_v29, 1  ;;  %v10362_v29 = vld [vmem:[#allocation42_spill] sm:$0xff] }
 0x43a   : > { %v7441_v5 = vpop.permute.xlu1 %2235 }
 0x43e   : > { %2309 = vrot.lane.b32.xlu2 %v2013_v23, %s5582_s16  ;;  %2311 = vrot.lane.b32.xlu0 %v2015_v41, %s5582_s16  ;;  %v10360_v23 = vld [vmem:[#allocation26_spill] sm:$0xff]  ;;  %v10361_v41 = vld [vmem:[#allocation93_spill] sm:$0xff] }
 0x43f   : > { %v2029_v15 = vrot.slane %v10360_v23, 1 }
 0x440   : > { %2325 = vrot.lane.b32.xlu1 %v2033_v1, %s5582_s16  ;;  %v2046_v1 = vrot.slane %v10361_v41, 1 }
 0x441   : > { %v2030_v20 = vsel %vm1900_vm6, %v2027_v33, %v2029_v15  ;;  %v2054_v33 = vrot.slane %v7204_v14, 1  ;;  %v7499_v15 = vpop.permute.xlu0 %2245  ;;  %v10366_v14 = vld [vmem:[#allocation76_spill] sm:$0xff] }
 0x442   : > { %v7455_v56 = vpop.permute.xlu1 %2241  ;;  %v2048_v30 = vsel %vm1900_vm6, %v2046_v1, %v2047_v51  ;;  %v10364_v1 = vld [vmem:[#allocation83_spill] sm:$0xff] }
 0x443   : > { %v2055_v23 = vsel %vm1900_vm6, %v2052_v2, %v2054_v33  ;;  %v2042_v19 = vrot.slane %v10364_v1, 1 }
 0x446   : > { %2315 = vrot.lane.b32.xlu2 %v2020_v16, %s5582_s16  ;;  %2317 = vrot.lane.b32.xlu0 %v2023_v21, %s5582_s16  ;;  %v2034_v16 = vrot.slane %v10362_v29, 1  ;;  %v10363_v21 = vld [vmem:[#allocation58_spill] sm:$0xff] }
 0x448   : > { %v7468_v55 = vpop.permute.xlu2 %2249  ;;  %2331 = vrot.lane.b32.xlu1 %v2040_v57, %s5582_s16  ;;  %v2036_v57 = vrot.slane %v10363_v21, 1  ;;  %v2035_v45 = vsel %vm1900_vm6, %v2032_v26, %v2034_v16  ;;  %v2041_v26 = vrot.slane %v10366_v14, 1  ;;  %v10371_v14 = vld [vmem:[#allocation35_spill] sm:$0xff] }
 0x44a   : > { %v7472_v6 = vpop.permute.xlu1 %2247  ;;  %v2038_v22 = vsel %vm1900_vm6, %v2036_v57, %v2037_v4  ;;  %v2043_v16 = vsel %vm1900_vm6, %v2041_v26, %v2042_v19  ;;  %v10369_v57 = vld [vmem:[#allocation18_spill] sm:$0xff]  ;;  %v2067_v26 = vrot.slane %v10371_v14, 1  ;;  %v2057_v14 = vrot.slane %v7330_v43, 1 }
 0x44b   : > { %v2061_v33 = vrot.slane %v10369_v57, 1  ;;  %v10374_v57 = vld [vmem:[#allocation28_spill] sm:$0xff] }
 0x44e   : > { %2321 = vrot.lane.b32.xlu2 %v2028_v54, %s5582_s16  ;;  %2323 = vrot.lane.b32.xlu0 %v2030_v20, %s5582_s16  ;;  %v10367_v20 = vld [vmem:[#allocation77_spill] sm:$0xff] }
 0x44f   : > { %v2044_v4 = vrot.slane %v10367_v20, 1  ;;  %v10372_v20 = vld [vmem:[#allocation94_spill] sm:$0xff] }
 0x450   : > { %v7485_v42 = vpop.permute.xlu2 %2255  ;;  %2337 = vrot.lane.b32.xlu1 %v2048_v30, %s5582_s16  ;;  %v10368_v30 = vld [vmem:[#allocation14_spill] sm:$0xff] }
 0x451   : > { %v2062_v29 = vrot.slane %v10368_v30, 1  ;;  %v2045_v21 = vsel %vm1900_vm6, %v2042_v19, %v2044_v4  ;;  %v2049_v19 = vrot.slane %v10372_v20, 1  ;;  %v10373_v4 = vld [vmem:[#allocation107_spill] sm:$0xff] }
 0x452   : > { %v7488_v3 = vpop.permute.xlu1 %2253  ;;  %v2051_v30 = vrot.slane %v10373_v4, 1  ;;  %v10376_v4 = vld [vmem:[#allocation69_spill] sm:$0xff] }
 0x456   : > { %2327 = vrot.lane.b32.xlu2 %v2035_v45, %s5582_s16  ;;  %2329 = vrot.lane.b32.xlu0 %v2038_v22, %s5582_s16  ;;  %v2063_v45 = vsel %vm1900_vm6, %v2061_v33, %v2062_v29  ;;  %v2053_v33 = vsel %vm1900_vm6, %v2051_v30, %v2052_v2  ;;  %v2056_v2 = vrot.slane %v7324_v32, 1  ;;  %v10377_v30 = vld [vmem:[#allocation60_spill] sm:$0xff]  ;;  %v10379_v32 = vld [vmem:[#allocation21_spill] sm:$0xff] }
 0x458   : > { %v7501_v41 = vpop.permute.xlu2 %2261  ;;  %2343 = vrot.lane.b32.xlu1 %v2055_v23, %s5582_s16 }
 0x45a   : > { %v7505_v54 = vpop.permute.xlu1 %2259 }
 0x45b   : > { %10365 = vst [vmem:[#allocation73_spill] sm:$0xff] %v7505_v54 }
 0x45e   : > { %2333 = vrot.lane.b32.xlu2 %v2043_v16, %s5582_s16  ;;  %2335 = vrot.lane.b32.xlu0 %v2045_v21, %s5582_s16  ;;  %v2069_v16 = vrot.slane %v10374_v57, 1  ;;  %v2050_v21 = vsel %vm1900_vm6, %v2047_v51, %v2049_v19  ;;  %v2077_v51 = vrot.slane %v10376_v4, 1  ;;  %v2059_v19 = vrot.slane %v7298_v38, 1 }
 0x45f   : > { %v2076_v57 = vrot.slane %v10377_v30, 1  ;;  %v2064_v38 = vrot.slane %v10379_v32, 1  ;;  %v10381_v30 = vld [vmem:[#allocation27_spill] sm:$0xff] }
 0x460   : > { %v7516_v22 = vpop.permute.xlu2 %2267  ;;  %v7518_v23 = vpop.permute.xlu0 %2251  ;;  %2349 = vrot.lane.b32.xlu1 %v2063_v45, %s5582_s16  ;;  %v2070_v45 = vsel %vm1900_vm6, %v2067_v26, %v2069_v16  ;;  %v2060_v16 = vsel %vm1900_vm6, %v2057_v14, %v2059_v19  ;;  %v2066_v19 = vrot.slane %v10381_v30, 1  ;;  %v10385_v30 = vld [vmem:[#allocation51_spill] sm:$0xff] }
 0x461   : > { %v2078_v43 = vsel %vm1900_vm6, %v2076_v57, %v2077_v51  ;;  %v2065_v57 = vsel %vm1900_vm6, %v2062_v29, %v2064_v38  ;;  %v2092_v38 = vrot.slane %v7251_v25, 1  ;;  %v10390_v25 = vld [vmem:[#allocation61_spill] sm:$0xff] }
 0x462   : > { %v7521_v1 = vpop.permute.xlu1 %2265 }
 0x463   : > { %10370 = vst [vmem:[#allocation24_spill] sm:$0xff] %v7521_v1 }
 0x466   : > { %2339 = vrot.lane.b32.xlu2 %v2050_v21, %s5582_s16  ;;  %2341 = vrot.lane.b32.xlu0 %v2053_v33, %s5582_s16  ;;  %v2058_v21 = vsel %vm1900_vm6, %v2056_v2, %v2057_v14  ;;  %v10383_v2 = vld [vmem:[#allocation79_spill] sm:$0xff] }
 0x468   : > { %v7532_v54 = vpop.permute.xlu2 %2273  ;;  %v7534_v1 = vpop.permute.xlu0 %2257  ;;  %2355 = vrot.lane.b32.xlu1 %v2070_v45, %s5582_s16 }
 0x46a   : > { %v7538_v20 = vpop.permute.xlu1 %2271 }
 0x46b   : > { %10375 = vst [vmem:[#allocation39_spill] sm:$0xff] %v7538_v20  ;;  %v10382_v20 = vld [vmem:[#allocation86_spill] sm:$0xff] }
 0x46c   : > { %v2082_v14 = vrot.slane %v10382_v20, 1  ;;  %v2072_v20 = vrot.slane %v10385_v30, 1 }
 0x46e   : > { %2347 = vrot.lane.b32.xlu0 %v2060_v16, %s5582_s16  ;;  %2345 = vrot.lane.b32.xlu2 %v2058_v21, %s5582_s16  ;;  %v2084_v16 = vrot.slane %v10383_v2, 1  ;;  %v2068_v21 = vsel %vm1900_vm6, %v2066_v19, %v2067_v26  ;;  %v10386_v2 = vld [vmem:[#allocation43_spill] sm:$0xff]  ;;  %v10387_v19 = vld [vmem:[#allocation44_spill] sm:$0xff] }
 0x46f   : > { %v2071_v26 = vrot.slane %v10386_v2, 1  ;;  %v2074_v29 = vrot.slane %v10387_v19, 1  ;;  %v10391_v19 = vld [vmem:[#allocation78_spill] sm:$0xff] }
 0x470   : > { %v7549_v33 = vpop.permute.xlu2 %2279  ;;  %v7551_v45 = vpop.permute.xlu0 %2263  ;;  %2361 = vrot.lane.b32.xlu1 %v2078_v43, %s5582_s16  ;;  %v2085_v43 = vsel %vm1900_vm6, %v2082_v14, %v2084_v16 }
 0x471   : > { %10378 = vst [vmem:[#allocation92_spill] sm:$0xff] %v7549_v33  ;;  %v2075_v16 = vsel %vm1900_vm6, %v2072_v20, %v2074_v29  ;;  %v2081_v29 = vrot.slane %v10391_v19, 1 }
 0x472   : > { %v7555_v4 = vpop.permute.xlu1 %2277 }
 0x473   : > { %10380 = vst [vmem:[#allocation63_spill] sm:$0xff] %v7555_v4 }
 0x476   : > { %2353 = vrot.lane.b32.xlu0 %v2068_v21, %s5582_s16  ;;  %2351 = vrot.lane.b32.xlu2 %v2065_v57, %s5582_s16  ;;  %v2091_v21 = vrot.slane %v7223_v39, 1  ;;  %v2073_v57 = vsel %vm1900_vm6, %v2071_v26, %v2072_v20  ;;  %v2079_v39 = vrot.slane %v10390_v25, 1  ;;  %v2097_v20 = vrot.slane %v7346_v62, 1  ;;  %v10393_v25 = vld [vmem:[#allocation102_spill] sm:$0xff] }
 0x477   : > { %v2099_v26 = vrot.slane %v7314_v58, 1  ;;  %v2087_v62 = vrot.slane %v10393_v25, 1  ;;  %v10395_v58 = vld [vmem:[#allocation37_spill] sm:$0xff] }
 0x478   : > { %v7565_v33 = vpop.permute.xlu2 %2285  ;;  %v7567_v32 = vpop.permute.xlu0 %2269  ;;  %2367 = vrot.lane.b32.xlu1 %v2085_v43, %s5582_s16  ;;  %v2093_v43 = vsel %vm1900_vm6, %v2091_v21, %v2092_v38  ;;  %v2080_v21 = vsel %vm1900_vm6, %v2077_v51, %v2079_v39  ;;  %v10397_v39 = vld [vmem:[#allocation96_spill] sm:$0xff] }
 0x479   : > { %10384 = vst [vmem:[#allocation55_spill] sm:$0xff] %v7565_v33 }
 0x47a   : > { %v7571_v4 = vpop.permute.xlu1 %2283 }
 0x47e   : > { %2359 = vrot.lane.b32.xlu0 %v2075_v16, %s5582_s16  ;;  %2357 = vrot.lane.b32.xlu2 %v2073_v57, %s5582_s16  ;;  %v2083_v16 = vsel %vm1900_vm6, %v2081_v29, %v2082_v14  ;;  %v2100_v57 = vsel %vm1900_vm6, %v2097_v20, %v2099_v26  ;;  %v2107_v14 = vrot.slane %v10395_v58, 1  ;;  %v10396_v29 = vld [vmem:[#allocation95_spill] sm:$0xff] }
 0x47f   : > { %v2086_v51 = vrot.slane %v10396_v29, 1  ;;  %v10401_v29 = vld [vmem:[#allocation53_spill] sm:$0xff] }
 0x480   : > { %v7582_v30 = vpop.permute.xlu2 %2291  ;;  %v7584_v33 = vpop.permute.xlu0 %2275  ;;  %2373 = vrot.lane.b32.xlu1 %v2093_v43, %s5582_s16 }
 0x481   : > { %10388 = vst [vmem:[#allocation57_spill] sm:$0xff] %v7582_v30 }
 0x482   : > { %v7587_v2 = vpop.permute.xlu1 %2289 }
 0x483   : > { %10389 = vst [vmem:[#allocation75_spill] sm:$0xff] %v7587_v2  ;;  %v10398_v2 = vld [vmem:[#allocation29_spill] sm:$0xff] }
 0x486   : > { %2365 = vrot.lane.b32.xlu0 %v2083_v16, %s5582_s16  ;;  %2363 = vrot.lane.b32.xlu2 %v2080_v21, %s5582_s16  ;;  %v2089_v16 = vrot.slane %v10397_v39, 1  ;;  %v2106_v21 = vrot.slane %v10398_v2, 1  ;;  %v2112_v2 = vrot.slane %v10401_v29, 1  ;;  %v2094_v39 = vrot.slane %v7219_v31, 1  ;;  %v10405_v31 = vld [vmem:[#allocation13_spill] sm:$0xff]  ;;  %v10406_v29 = vld [vmem:[#allocation22_spill] sm:$0xff] }
 0x488   : > { %v7598_v43 = vpop.permute.xlu2 %2297  ;;  %v7600_v30 = vpop.permute.xlu0 %2281  ;;  %2379 = vrot.lane.b32.xlu1 %v2100_v57, %s5582_s16  ;;  %v2090_v26 = vsel %vm1900_vm6, %v2087_v62, %v2089_v16  ;;  %v2108_v57 = vsel %vm1900_vm6, %v2106_v21, %v2107_v14 }
 0x489   : > { %10392 = vst [vmem:[#allocation90_spill] sm:$0xff] %v7598_v43  ;;  %v2088_v43 = vsel %vm1900_vm6, %v2086_v51, %v2087_v62  ;;  %v2096_v62 = vrot.slane %v7342_v50, 1  ;;  %v10402_v51 = vld [vmem:[#allocation46_spill] sm:$0xff]  ;;  %v2102_v50 = vrot.slane %v10405_v31, 1 }
 0x48a   : > { %v7604_v19 = vpop.permute.xlu1 %2295  ;;  %v2114_v16 = vrot.slane %v10402_v51, 1  ;;  %v2104_v51 = vrot.slane %v10406_v29, 1 }
 0x48b   : > { %10394 = vst [vmem:[#allocation48_spill] sm:$0xff] %v7604_v19  ;;  %v2098_v21 = vsel %vm1900_vm6, %v2096_v62, %v2097_v20 }
 0x48e   : > { %2371 = vrot.lane.b32.xlu0 %v2090_v26, %s5582_s16  ;;  %2369 = vrot.lane.b32.xlu2 %v2088_v43, %s5582_s16  ;;  %v2095_v43 = vsel %vm1900_vm6, %v2092_v38, %v2094_v39  ;;  %v2115_v26 = vsel %vm1900_vm6, %v2112_v2, %v2114_v16  ;;  %v10408_v38 = vld [vmem:[#allocation88_spill] sm:$0xff]  ;;  %v10409_v39 = vld [vmem:[#allocation19_spill] sm:$0xff] }
 0x48f   : > { %v2122_v20 = vrot.slane %v10408_v38, 1  ;;  %v2101_v62 = vrot.slane %v10409_v39, 1  ;;  %v10413_v39 = vld [vmem:[#allocation30_spill] sm:$0xff] }
 0x490   : > { %v7615_v25 = vpop.permute.xlu2 %2303  ;;  %v7617_v19 = vpop.permute.xlu0 %2287  ;;  %2385 = vrot.lane.b32.xlu1 %v2108_v57, %s5582_s16 }
 0x491   : > { %10399 = vst [vmem:[#allocation41_spill] sm:$0xff] %v7615_v25  ;;  %v2103_v16 = vsel %vm1900_vm6, %v2101_v62, %v2102_v50 }
 0x492   : > { %v7620_v58 = vpop.permute.xlu1 %2301 }
 0x493   : > { %10400 = vst [vmem:[#allocation66_spill] sm:$0xff] %v7620_v58 }
 0x496   : > { %2375 = vrot.lane.b32.xlu2 %v2095_v43, %s5582_s16  ;;  %2377 = vrot.lane.b32.xlu0 %v2098_v21, %s5582_s16  ;;  %v10410_v43 = vld [vmem:[#allocation80_spill] sm:$0xff] }
 0x497   : > { %v2121_v21 = vrot.slane %v10410_v43, 1  ;;  %v2109_v43 = vrot.slane %v10413_v39, 1 }
 0x498   : > { %v7631_v57 = vpop.permute.xlu2 %2309  ;;  %v7633_v58 = vpop.permute.xlu0 %2293  ;;  %2391 = vrot.lane.b32.xlu1 %v2115_v26, %s5582_s16 }
 0x499   : > { %10403 = vst [vmem:[#allocation17_spill] sm:$0xff] %v7631_v57  ;;  %v2105_v57 = vsel %vm1900_vm6, %v2102_v50, %v2104_v51  ;;  %v2123_v26 = vsel %vm1900_vm6, %v2121_v21, %v2122_v20  ;;  %v10416_v51 = vld [vmem:[#allocation98_spill] sm:$0xff] }
 0x49a   : > { %10404 = vst [vmem:[#allocation59_spill] sm:$0xff] %v7633_v58  ;;  %v7638_v25 = vpop.permute.xlu1 %2307  ;;  %v10415_v58 = vld [vmem:[#allocation104_spill] sm:$0xff] }
 0x49b   : > { %10407 = vst [vmem:[#allocation32_spill] sm:$0xff] %v7638_v25  ;;  %v10414_v25 = vld [vmem:[#allocation45_spill] sm:$0xff]  ;;  %v2127_v50 = vrot.slane %v10415_v58, 1 }
 0x49c   : > { %v2111_v62 = vrot.slane %v10414_v25, 1  ;;  %v10418_v25 = vld [vmem:[#allocation71_spill] sm:$0xff] }
 0x49d   : > { %v2117_v58 = vrot.slane %v10418_v25, 1 }
 0x49e   : > { %2381 = vrot.lane.b32.xlu2 %v2103_v16, %s5582_s16  ;;  %2383 = vrot.lane.b32.xlu0 %v2105_v57, %s5582_s16  ;;  %v2129_v16 = vrot.slane %v10416_v51, 1  ;;  %v2110_v57 = vsel %vm1900_vm6, %v2107_v14, %v2109_v43  ;;  %v2113_v21 = vsel %vm1900_vm6, %v2111_v62, %v2112_v2  ;;  %v10420_v51 = vld [vmem:[#allocation62_spill] sm:$0xff]  ;;  %v10421_v43 = vld [vmem:[#allocation64_spill] sm:$0xff]  ;;  %v2137_v62 = vrot.slane %v7362_v47, 1  ;;  %v10424_v47 = vld [vmem:[#allocation81_spill] sm:$0xff] }
 0x49f   : > { %v2116_v14 = vrot.slane %v10420_v51, 1  ;;  %v2119_v2 = vrot.slane %v10421_v43, 1  ;;  %v10425_v43 = vld [vmem:[#allocation97_spill] sm:$0xff] }
 0x4a0   : > { %v7648_v31 = vpop.permute.xlu2 %2315  ;;  %v7650_v29 = vpop.permute.xlu0 %2299  ;;  %2397 = vrot.lane.b32.xlu1 %v2123_v26, %s5582_s16  ;;  %v2130_v26 = vsel %vm1900_vm6, %v2127_v50, %v2129_v16 }
 0x4a1   : > { %10411 = vst [vmem:[#allocation25_spill] sm:$0xff] %v7648_v31  ;;  %v2118_v16 = vsel %vm1900_vm6, %v2116_v14, %v2117_v58  ;;  %v2126_v14 = vrot.slane %v10425_v43, 1  ;;  %v2134_v43 = vrot.slane %v7234_v34, 1  ;;  %v10434_v34 = vld [vmem:[#allocation72_spill] sm:$0xff] }
 0x4a2   : > { %10412 = vst [vmem:[#allocation26_spill] sm:$0xff] %v7650_v29  ;;  %v7653_v38 = vpop.permute.xlu1 %2313 }
 0x4a6   : > { %2387 = vrot.lane.b32.xlu2 %v2110_v57, %s5582_s16  ;;  %2389 = vrot.lane.b32.xlu0 %v2113_v21, %s5582_s16  ;;  %v2136_v57 = vrot.slane %v7360_v52, 1  ;;  %v2120_v21 = vsel %vm1900_vm6, %v2117_v58, %v2119_v2  ;;  %v2124_v52 = vrot.slane %v10424_v47, 1 }
 0x4a8   : > { %v7664_v29 = vpop.permute.xlu2 %2321  ;;  %v7666_v31 = vpop.permute.xlu0 %2305  ;;  %2403 = vrot.lane.b32.xlu1 %v2130_v26, %s5582_s16  ;;  %v2138_v26 = vsel %vm1900_vm6, %v2136_v57, %v2137_v62  ;;  %v2125_v2 = vsel %vm1900_vm6, %v2122_v20, %v2124_v52  ;;  %v10430_v20 = vld [vmem:[#allocation54_spill] sm:$0xff]  ;;  %v2131_v52 = vrot.slane %v7239_v48, 1 }
 0x4a9   : > { %10417 = vst [vmem:[#allocation93_spill] sm:$0xff] %v7664_v29  ;;  %v10426_v29 = vld [vmem:[#allocation23_spill] sm:$0xff] }
 0x4aa   : > { %v7670_v39 = vpop.permute.xlu1 %2319  ;;  %v2144_v58 = vrot.slane %v10426_v29, 1  ;;  %v2132_v29 = vrot.slane %v7264_v44, 1 }
 0x4ab   : > { %10419 = vst [vmem:[#allocation42_spill] sm:$0xff] %v7670_v39 }
 0x4ae   : > { %2393 = vrot.lane.b32.xlu2 %v2118_v16, %s5582_s16  ;;  %2395 = vrot.lane.b32.xlu0 %v2120_v21, %s5582_s16  ;;  %v2128_v16 = vsel %vm1900_vm6, %v2126_v14, %v2127_v50  ;;  %v10427_v21 = vld [vmem:[#allocation16_spill] sm:$0xff]  ;;  %v2152_v50 = vrot.slane %v10430_v20, 1  ;;  %v10431_v14 = vld [vmem:[#allocation47_spill] sm:$0xff]  ;;  %v2157_v20 = vrot.slane %v10434_v34, 1 }
 0x4af   : > { %v2142_v57 = vrot.slane %v10427_v21, 1 }
 0x4b0   : > { %v7681_v25 = vpop.permute.xlu2 %2327  ;;  %v7683_v39 = vpop.permute.xlu0 %2311  ;;  %2409 = vrot.lane.b32.xlu1 %v2138_v26, %s5582_s16 }
 0x4b1   : > { %10422 = vst [vmem:[#allocation58_spill] sm:$0xff] %v7681_v25  ;;  %v2145_v26 = vsel %vm1900_vm6, %v2142_v57, %v2144_v58  ;;  %v2133_v58 = vsel %vm1900_vm6, %v2131_v52, %v2132_v29  ;;  %v2139_v52 = vrot.slane %v7334_v9, 1  ;;  %v10437_v9 = vld [vmem:[#allocation38_spill] sm:$0xff] }
 0x4b2   : > { %v7686_v51 = vpop.permute.xlu1 %2325  ;;  %v2147_v34 = vrot.slane %v10437_v9, 1 }
 0x4b3   : > { %10423 = vst [vmem:[#allocation83_spill] sm:$0xff] %v7686_v51 }
 0x4b6   : > { %2399 = vrot.lane.b32.xlu2 %v2125_v2, %s5582_s16  ;;  %2401 = vrot.lane.b32.xlu0 %v2128_v16, %s5582_s16  ;;  %v2151_v2 = vrot.slane %v10431_v14, 1  ;;  %v2135_v16 = vsel %vm1900_vm6, %v2132_v29, %v2134_v43  ;;  %v10435_v14 = vld [vmem:[#allocation20_spill] sm:$0xff]  ;;  %v10436_v43 = vld [vmem:[#allocation67_spill] sm:$0xff] }
 0x4b7   : > { %v2141_v29 = vrot.slane %v10435_v14, 1 }
 0x4b8   : > { %v7697_v25 = vpop.permute.xlu2 %2333  ;;  %v7699_v51 = vpop.permute.xlu0 %2317  ;;  %2415 = vrot.lane.b32.xlu1 %v2145_v26, %s5582_s16  ;;  %v2153_v44 = vsel %vm1900_vm6, %v2151_v2, %v2152_v50 }
 0x4b9   : > { %10428 = vst [vmem:[#allocation76_spill] sm:$0xff] %v7699_v51  ;;  %v2143_v2 = vsel %vm1900_vm6, %v2141_v29, %v2142_v57  ;;  %v10441_v29 = vld [vmem:[#allocation105_spill] sm:$0xff] }
 0x4ba   : > { %v7703_v47 = vpop.permute.xlu1 %2331 }
 0x4bb   : > { %10429 = vst [vmem:[#allocation77_spill] sm:$0xff] %v7703_v47  ;;  %v10442_v47 = vld [vmem:[#allocation99_spill] sm:$0xff] }
 0x4be   : > { %2405 = vrot.lane.b32.xlu2 %v2133_v58, %s5582_s16  ;;  %2407 = vrot.lane.b32.xlu0 %v2135_v16, %s5582_s16  ;;  %v2159_v58 = vrot.slane %v10436_v43, 1  ;;  %v2140_v16 = vsel %vm1900_vm6, %v2137_v62, %v2139_v52  ;;  %v10439_v43 = vld [vmem:[#allocation31_spill] sm:$0xff]  ;;  %v10440_v52 = vld [vmem:[#allocation33_spill] sm:$0xff] }
 0x4bf   : > { %v2146_v62 = vrot.slane %v10439_v43, 1  ;;  %v2149_v57 = vrot.slane %v10440_v52, 1  ;;  %v10446_v52 = vld [vmem:[#allocation49_spill] sm:$0xff] }
 0x4c0   : > { %v7714_v21 = vpop.permute.xlu2 %2339  ;;  %v7716_v26 = vpop.permute.xlu0 %2323  ;;  %2421 = vrot.lane.b32.xlu1 %v2153_v44, %s5582_s16  ;;  %v2160_v44 = vsel %vm1900_vm6, %v2157_v20, %v2159_v58 }
 0x4c1   : > { %10432 = vst [vmem:[#allocation14_spill] sm:$0xff] %v7714_v21  ;;  %v2148_v58 = vsel %vm1900_vm6, %v2146_v62, %v2147_v34  ;;  %v2150_v51 = vsel %vm1900_vm6, %v2147_v34, %v2149_v57  ;;  %v2172_v34 = vrot.slane %v7273_v53, 1  ;;  %v2174_v57 = vrot.slane %v7246_v12, 1  ;;  %v10451_v12 = vld [vmem:[#allocation82_spill] sm:$0xff] }
 0x4c2   : > { %10433 = vst [vmem:[#allocation18_spill] sm:$0xff] %v7716_v26  ;;  %v7719_v48 = vpop.permute.xlu1 %2337 }
 0x4c6   : > { %2411 = vrot.lane.b32.xlu2 %v2140_v16, %s5582_s16  ;;  %2413 = vrot.lane.b32.xlu0 %v2143_v2, %s5582_s16  ;;  %v2167_v16 = vrot.slane %v10441_v29, 1  ;;  %v2166_v2 = vrot.slane %v10442_v47, 1  ;;  %v2154_v47 = vrot.slane %v10446_v52, 1  ;;  %v10447_v29 = vld [vmem:[#allocation65_spill] sm:$0xff] }
 0x4c7   : > { %v2156_v62 = vrot.slane %v10447_v29, 1  ;;  %v10449_v52 = vld [vmem:[#allocation89_spill] sm:$0xff] }
 0x4c8   : > { %v7730_v21 = vpop.permute.xlu2 %2345  ;;  %v7732_v26 = vpop.permute.xlu0 %2329  ;;  %2427 = vrot.lane.b32.xlu1 %v2160_v44, %s5582_s16  ;;  %v2168_v44 = vsel %vm1900_vm6, %v2166_v2, %v2167_v16  ;;  %v2162_v53 = vrot.slane %v10449_v52, 1 }
 0x4c9   : > { %v2158_v2 = vsel %vm1900_vm6, %v2156_v62, %v2157_v20  ;;  %v10453_v62 = vld [vmem:[#allocation15_spill] sm:$0xff] }
 0x4ca   : > { %v7736_v14 = vpop.permute.xlu1 %2343 }
 0x4cb   : > { %10438 = vst [vmem:[#allocation35_spill] sm:$0xff] %v7736_v14 }
 0x4ce   : > { %2417 = vrot.lane.b32.xlu2 %v2148_v58, %s5582_s16  ;;  %2419 = vrot.lane.b32.xlu0 %v2150_v51, %s5582_s16  ;;  %v2155_v51 = vsel %vm1900_vm6, %v2152_v50, %v2154_v47  ;;  %v2175_v58 = vsel %vm1900_vm6, %v2172_v34, %v2174_v57  ;;  %v2161_v50 = vrot.slane %v10451_v12, 1  ;;  %v10452_v47 = vld [vmem:[#allocation84_spill] sm:$0xff] }
 0x4cf   : > { %v2164_v20 = vrot.slane %v10452_v47, 1  ;;  %v10458_v47 = vld [vmem:[#allocation40_spill] sm:$0xff] }
 0x4d0   : > { %v7747_v9 = vpop.permute.xlu2 %2351  ;;  %v7749_v14 = vpop.permute.xlu0 %2335  ;;  %2433 = vrot.lane.b32.xlu1 %v2168_v44, %s5582_s16 }
 0x4d1   : > { %10443 = vst [vmem:[#allocation94_spill] sm:$0xff] %v7747_v9  ;;  %v2165_v57 = vsel %vm1900_vm6, %v2162_v53, %v2164_v20  ;;  %v10460_v20 = vld [vmem:[#allocation36_spill] sm:$0xff] }
 0x4d2   : > { %10444 = vst [vmem:[#allocation107_spill] sm:$0xff] %v7749_v14  ;;  %v7752_v43 = vpop.permute.xlu1 %2349 }
 0x4d3   : > { %10445 = vst [vmem:[#allocation28_spill] sm:$0xff] %v7752_v43  ;;  %v10454_v43 = vld [vmem:[#allocation12_spill] sm:$0xff] }
 0x4d6   : > { %2423 = vrot.lane.b32.xlu2 %v2155_v51, %s5582_s16  ;;  %2425 = vrot.lane.b32.xlu0 %v2158_v2, %s5582_s16  ;;  %v2182_v51 = vrot.slane %v10453_v62, 1  ;;  %v2163_v2 = vsel %vm1900_vm6, %v2161_v50, %v2162_v53  ;;  %v2187_v50 = vrot.slane %v10458_v47, 1  ;;  %v10459_v62 = vld [vmem:[#allocation100_spill] sm:$0xff] }
 0x4d7   : > { %v2169_v53 = vrot.slane %v10459_v62, 1  ;;  %v10464_v62 = vld [vmem:[#allocation74_spill] sm:$0xff] }
 0x4d8   : > { %v7763_v44 = vpop.permute.xlu2 %2357  ;;  %v7765_v9 = vpop.permute.xlu0 %2341  ;;  %2439 = vrot.lane.b32.xlu1 %v2175_v58, %s5582_s16 }
 0x4d9   : > { %10448 = vst [vmem:[#allocation69_spill] sm:$0xff] %v7763_v44  ;;  %v2181_v44 = vrot.slane %v10454_v43, 1  ;;  %v2171_v43 = vrot.slane %v7256_v18, 1  ;;  %v2177_v18 = vrot.slane %v7378_v17, 1 }
 0x4da   : > { %v7769_v29 = vpop.permute.xlu1 %2355 }
 0x4db   : > { %10450 = vst [vmem:[#allocation60_spill] sm:$0xff] %v7769_v29  ;;  %v2183_v58 = vsel %vm1900_vm6, %v2181_v44, %v2182_v51  ;;  %v2173_v44 = vsel %vm1900_vm6, %v2171_v43, %v2172_v34  ;;  %v2176_v34 = vrot.slane %v7382_v37, 1  ;;  %v10465_v43 = vld [vmem:[#allocation68_spill] sm:$0xff] }
 0x4de   : > { %2429 = vrot.lane.b32.xlu2 %v2163_v2, %s5582_s16  ;;  %2431 = vrot.lane.b32.xlu0 %v2165_v57, %s5582_s16  ;;  %v2189_v2 = vrot.slane %v10460_v20, 1  ;;  %v2170_v57 = vsel %vm1900_vm6, %v2167_v16, %v2169_v53  ;;  %v2197_v16 = vrot.slane %v10464_v62, 1  ;;  %v2179_v53 = vrot.slane %v7354_v63, 1  ;;  %v10469_v62 = vld [vmem:[#allocation34_spill] sm:$0xff] }
 0x4df   : > { %v2196_v20 = vrot.slane %v10465_v43, 1  ;;  %v2184_v63 = vrot.slane %v6632_v35, 1  ;;  %v10470_v43 = vld [vmem:[#allocation91_spill] sm:$0xff] }
 0x4e0   : > { %v7780_v52 = vpop.permute.xlu2 %2363  ;;  %v7782_v29 = vpop.permute.xlu0 %2347  ;;  %2445 = vrot.lane.b32.xlu1 %v2183_v58, %s5582_s16  ;;  %v2190_v58 = vsel %vm1900_vm6, %v2187_v50, %v2189_v2  ;;  %v2180_v2 = vsel %vm1900_vm6, %v2177_v18, %v2179_v53  ;;  %v2186_v53 = vrot.slane %v10469_v62, 1  ;;  %v10474_v62 = vld [vmem:[#allocation56_spill] sm:$0xff] }
 0x4e1   : > { %10455 = vst [vmem:[#allocation21_spill] sm:$0xff] %v7780_v52  ;;  %v2198_v17 = vsel %vm1900_vm6, %v2196_v20, %v2197_v16  ;;  %v2185_v20 = vsel %vm1900_vm6, %v2182_v51, %v2184_v63  ;;  %v2212_v63 = vrot.slane %v7281_v28, 1  ;;  %v10481_v28 = vld [vmem:[#allocation70_spill] sm:$0xff] }
 0x4e2   : > { %10456 = vst [vmem:[#allocation27_spill] sm:$0xff] %v7782_v29  ;;  %v7785_v12 = vpop.permute.xlu1 %2361 }
 0x4e3   : > { %10457 = vst [vmem:[#allocation86_spill] sm:$0xff] %v7785_v12 }
 0x4e6   : > { %2435 = vrot.lane.b32.xlu2 %v2170_v57, %s5582_s16  ;;  %2437 = vrot.lane.b32.xlu0 %v2173_v44, %s5582_s16  ;;  %v2178_v57 = vsel %vm1900_vm6, %v2176_v34, %v2177_v18  ;;  %v2202_v18 = vrot.slane %v10470_v43, 1  ;;  %v10471_v34 = vld [vmem:[#allocation87_spill] sm:$0xff]  ;;  %v2192_v43 = vrot.slane %v10474_v62, 1 }
 0x4e8   : > { %v7796_v52 = vpop.permute.xlu2 %2369  ;;  %v7798_v12 = vpop.permute.xlu0 %2353  ;;  %2451 = vrot.lane.b32.xlu1 %v2190_v58, %s5582_s16 }
 0x4e9   : > { %10461 = vst [vmem:[#allocation79_spill] sm:$0xff] %v7796_v52 }
 0x4ea   : > { %10462 = vst [vmem:[#allocation51_spill] sm:$0xff] %v7798_v12  ;;  %v7802_v47 = vpop.permute.xlu1 %2367 }
 0x4eb   : > { %10463 = vst [vmem:[#allocation43_spill] sm:$0xff] %v7802_v47 }
 0x4ee   : > { %2443 = vrot.lane.b32.xlu0 %v2180_v2, %s5582_s16  ;;  %2441 = vrot.lane.b32.xlu2 %v2178_v57, %s5582_s16  ;;  %v2204_v2 = vrot.slane %v10471_v34, 1  ;;  %v2188_v57 = vsel %vm1900_vm6, %v2186_v53, %v2187_v50  ;;  %v10476_v34 = vld [vmem:[#allocation50_spill] sm:$0xff]  ;;  %v10477_v53 = vld [vmem:[#allocation52_spill] sm:$0xff] }
 0x4ef   : > { %v2191_v50 = vrot.slane %v10476_v34, 1  ;;  %v2194_v51 = vrot.slane %v10477_v53, 1  ;;  %v10482_v53 = vld [vmem:[#allocation85_spill] sm:$0xff] }
 0x4f0   : > { %v7813_v44 = vpop.permute.xlu2 %2375  ;;  %v7815_v58 = vpop.permute.xlu0 %2359  ;;  %2457 = vrot.lane.b32.xlu1 %v2198_v17, %s5582_s16  ;;  %v2205_v17 = vsel %vm1900_vm6, %v2202_v18, %v2204_v2 }
 0x4f1   : > { %10466 = vst [vmem:[#allocation44_spill] sm:$0xff] %v7813_v44  ;;  %v2195_v2 = vsel %vm1900_vm6, %v2192_v43, %v2194_v51  ;;  %v2201_v51 = vrot.slane %v10482_v53, 1 }
 0x4f2   : > { %10467 = vst [vmem:[#allocation61_spill] sm:$0xff] %v7815_v58  ;;  %v7819_v37 = vpop.permute.xlu1 %2373 }
 0x4f3   : > { %10468 = vst [vmem:[#allocation78_spill] sm:$0xff] %v7819_v37  ;;  %v3089_v37 = vrot.slane %v7653_v38, 4 }
 0x4f6   : > { %2449 = vrot.lane.b32.xlu0 %v2188_v57, %s5582_s16  ;;  %2447 = vrot.lane.b32.xlu2 %v2185_v20, %s5582_s16  ;;  %v2211_v57 = vrot.slane %v7269_v59, 1  ;;  %v2193_v20 = vsel %vm1900_vm6, %v2191_v50, %v2192_v43  ;;  %v2199_v59 = vrot.slane %v10481_v28, 1  ;;  %v2217_v43 = vrot.slane %v7393_v8, 1  ;;  %v10485_v28 = vld [vmem:[#allocation106_spill] sm:$0xff] }
 0x4f7   : > { %v2219_v50 = vrot.slane %v7373_v27, 1  ;;  %v2207_v8 = vrot.slane %v10485_v28, 1  ;;  %v2619_v27 = vrot.slane %v7391_v46, 4 }
 0x4f8   : > { %v7829_v47 = vpop.permute.xlu2 %2381  ;;  %v7831_v35 = vpop.permute.xlu0 %2365  ;;  %2463 = vrot.lane.b32.xlu1 %v2205_v17, %s5582_s16  ;;  %v2213_v17 = vsel %vm1900_vm6, %v2211_v57, %v2212_v63  ;;  %v2200_v57 = vsel %vm1900_vm6, %v2197_v16, %v2199_v59  ;;  %v10488_v59 = vld [vmem:[#allocation103_spill] sm:$0xff] }
 0x4f9   : > { %10472 = vst [vmem:[#allocation102_spill] sm:$0xff] %v7829_v47 }
 0x4fa   : > { %10473 = vst [vmem:[#allocation37_spill] sm:$0xff] %v7831_v35  ;;  %v7835_v58 = vpop.permute.xlu1 %2379 }
 0x4fb   : > { %10475 = vst [vmem:[#allocation95_spill] sm:$0xff] %v7835_v58 }
 0x4fe   : > { %2455 = vrot.lane.b32.xlu0 %v2195_v2, %s5582_s16  ;;  %2453 = vrot.lane.b32.xlu2 %v2193_v20, %s5582_s16  ;;  %v2203_v2 = vsel %vm1900_vm6, %v2201_v51, %v2202_v18  ;;  %v2220_v20 = vsel %vm1900_vm6, %v2217_v43, %v2219_v50  ;;  %v10487_v18 = vld [vmem:[#allocation101_spill] sm:$0xff]  ;;  %v2209_v51 = vrot.slane %v10488_v59, 1  ;;  %v2620_v50 = vsel %vm660_vm0, %v7460_v11, %v2619_v27 }
 0x4ff   : > { %v2206_v16 = vrot.slane %v10487_v18, 1  ;;  %v10489_v18 = vld [vmem:[#allocation10_spill] sm:$0xff]  ;;  %v2631_v27 = vrot.slane %v7432_v61, 4 }
 0x500   : > { %v7846_v62 = vpop.permute.xlu2 %2387  ;;  %v7848_v47 = vpop.permute.xlu0 %2371  ;;  %2469 = vrot.lane.b32.xlu1 %v2213_v17, %s5582_s16  ;;  %v2628_v59 = vperm.slane %v2620_v50, %v10489_v18  ;;  %v2717_v50 = vrot.slane %v7413_v60, 4 }
 0x501   : > { %10478 = vst [vmem:[#allocation96_spill] sm:$0xff] %v7846_v62  ;;  %v2208_v28 = vsel %vm1900_vm6, %v2206_v16, %v2207_v8  ;;  %v2216_v16 = vrot.slane %v7401_v36, 1  ;;  %v2731_v36 = vrot.slane %v7439_v24, 4 }
 0x502   : > { %10479 = vst [vmem:[#allocation29_spill] sm:$0xff] %v7848_v47  ;;  %v7851_v34 = vpop.permute.xlu1 %2385 }
 0x503   : > { %10480 = vst [vmem:[#allocation53_spill] sm:$0xff] %v7851_v34  ;;  %v2605_v34 = vrot.slane %v7424_v49, 4 }
 0x506   : > { %2461 = vrot.lane.b32.xlu0 %v2203_v2, %s5582_s16  ;;  %2459 = vrot.lane.b32.xlu2 %v2200_v57, %s5582_s16  ;;  %v2617_v2 = vrot.slane %v7460_v11, 4  ;;  %v2607_v57 = vrot.slane %v7421_v0, 4 }
 0x508   : > { %v7862_v17 = vpop.permute.xlu2 %2393  ;;  %v7864_v62 = vpop.permute.xlu0 %2377  ;;  %2475 = vrot.lane.b32.xlu1 %v2220_v20, %s5582_s16  ;;  %v2210_v20 = vsel %vm1900_vm6, %v2207_v8, %v2209_v51  ;;  %v2618_v11 = vsel %vm660_vm0, %v2617_v2, %v7391_v46  ;;  %v2719_v51 = vrot.slane %v7408_v10, 4  ;;  %v2629_v46 = vrot.slane %v7499_v15, 4 }
 0x509   : > { %10483 = vst [vmem:[#allocation46_spill] sm:$0xff] %v7862_v17  ;;  %v2214_v17 = vrot.slane %v7259_v7, 1  ;;  %v2632_v2 = vsel %vm660_vm0, %v7499_v15, %v2631_v27  ;;  %v2641_v15 = vrot.slane %v7468_v55, 4 }
 0x50a   : > { %10484 = vst [vmem:[#allocation13_spill] sm:$0xff] %v7864_v62  ;;  %v7869_v53 = vpop.permute.xlu1 %2391  ;;  %v7918_v27 = vperm.slane %v2632_v2, %v10489_v18 }
 0x50b   : > { %10486 = vst [vmem:[#allocation22_spill] sm:$0xff] %v7869_v53  ;;  %v2608_v53 = vsel %vm660_vm0, %v7424_v49, %v2607_v57  ;;  %v2215_v7 = vsel %vm1900_vm6, %v2212_v63, %v2214_v17  ;;  %v2606_v49 = vsel %vm660_vm0, %v2605_v34, %v7421_v0  ;;  %v2729_v57 = vrot.slane %v7441_v5, 4 }
 0x50c   : > { %v2624_v63 = vperm.slane %v2618_v11, %v10489_v18  ;;  %v2665_v17 = vrot.slane %v2628_v59, 4  ;;  %v2718_v0 = vsel %vm660_vm0, %v2717_v50, %v7408_v10  ;;  %v2720_v34 = vsel %vm660_vm0, %v7413_v60, %v2719_v51 }
 0x50d   : > { %v2730_v11 = vsel %vm660_vm0, %v2729_v57, %v7439_v24  ;;  %v2218_v10 = vsel %vm1900_vm6, %v2216_v16, %v2217_v43  ;;  %v2724_v60 = vperm.slane %v2718_v0, %v10489_v18  ;;  %v2630_v51 = vsel %vm660_vm0, %v2629_v46, %v7432_v61 }
 0x50e   : > { %2467 = vrot.lane.b32.xlu0 %v2210_v20, %s5582_s16  ;;  %2465 = vrot.lane.b32.xlu2 %v2208_v28, %s5582_s16  ;;  %v2616_v20 = vperm.slane %v2608_v53, %v10489_v18  ;;  %v2643_v28 = vrot.slane %v7455_v56, 4  ;;  %v2642_v16 = vsel %vm660_vm0, %v2641_v15, %v7455_v56  ;;  %v2636_v2 = vperm.slane %v2630_v51, %v10489_v18 }
 0x50f   : > { %v2755_v56 = vrot.slane %v7452_v13, 4  ;;  %v2648_v15 = vperm.slane %v2642_v16, %v10489_v18 }
 0x510   : > { %v7890_v47 = vpop.permute.xlu2 %2399  ;;  %v7892_v8 = vpop.permute.xlu0 %2383  ;;  %v2644_v53 = vsel %vm660_vm0, %v7468_v55, %v2643_v28  ;;  %v2667_v50 = vrot.slane %v2616_v20, 4  ;;  %v2728_v55 = vperm.slane %v2720_v34, %v10489_v18  ;;  %v2691_v28 = vrot.slane %v7918_v27, 4 }
 0x511   : > { %10490 = vst [vmem:[#allocation88_spill] sm:$0xff] %v7890_v47  ;;  %v2652_v24 = vperm.slane %v2644_v53, %v10489_v18  ;;  %v2679_v58 = vrot.slane %v2636_v2, 4 }
 0x512   : > { %10491 = vst [vmem:[#allocation19_spill] sm:$0xff] %v7892_v8  ;;  %v7905_v47 = vpop.permute.xlu1 %2397  ;;  %v2612_v8 = vperm.slane %v2606_v49, %v10489_v18  ;;  %v2666_v49 = vsel %vm660_vm0, %v2665_v17, %v2616_v20  ;;  %v2743_v20 = vrot.slane %v7480_v40, 4  ;;  %v2668_v0 = vsel %vm660_vm0, %v2628_v59, %v2667_v50 }
 0x513   : > { %10492 = vst [vmem:[#allocation80_spill] sm:$0xff] %v7905_v47  ;;  %v2732_v47 = vsel %vm660_vm0, %v7441_v5, %v2731_v36  ;;  %v2736_v5 = vperm.slane %v2730_v11, %v10489_v18  ;;  %v2767_v36 = vrot.slane %v2724_v60, 4  ;;  %v2692_v53 = vsel %vm660_vm0, %v2652_v24, %v2691_v28 }
 0x514   : > { %v2655_v57 = vrot.slane %v2612_v8, 4  ;;  %v2740_v43 = vperm.slane %v2732_v47, %v10489_v18  ;;  %v10496_v47 = vld [vmem:[#allocation11_spill] sm:$0xff]  ;;  %v2753_v59 = vrot.slane %v7518_v23, 4  ;;  %v2680_v44 = vsel %vm660_vm0, %v2648_v15, %v2679_v58 }
 0x515   : > { %v7948_v34 = vperm.slane %v2666_v49, %v10496_v47  ;;  %v2765_v51 = vrot.slane %v2736_v5, 4  ;;  %v2676_v50 = vperm.slane %v2668_v0, %v10496_v47  ;;  %v2700_v16 = vperm.slane %v2692_v53, %v10496_v47 }
 0x516   : > { %2471 = vrot.lane.b32.xlu2 %v2215_v7, %s5582_s16  ;;  %2473 = vrot.lane.b32.xlu0 %v2218_v10, %s5582_s16  ;;  %v2653_v7 = vrot.slane %v2624_v63, 4  ;;  %v2779_v10 = vrot.slane %v2728_v55, 4  ;;  %v2689_v52 = vrot.slane %v2652_v24, 4  ;;  %v2754_v58 = vsel %vm660_vm0, %v2753_v59, %v7452_v13  ;;  %s5056_s16 = scalar_lea.sflag [#allocation3], %s5886_s30 }
 0x518   : > { %v7937_v61 = vpop.permute.xlu2 %2405  ;;  %v7939_v46 = vpop.permute.xlu0 %2389  ;;  %v2654_v11 = vsel %vm660_vm0, %v2653_v7, %v2612_v8  ;;  %v2780_v49 = vsel %vm660_vm0, %v2740_v43, %v2779_v10  ;;  %v2711_v8 = vrot.slane %v7948_v34, 4  ;;  %v2677_v7 = vrot.slane %v2648_v15, 4 }
 0x519   : > { %10493 = vst [vmem:[#allocation30_spill] sm:$0xff] %v7937_v61  ;;  %v2777_v61 = vrot.slane %v2740_v43, 4  ;;  %v7961_v28 = vperm.slane %v2654_v11, %v10496_v47  ;;  %v2766_v43 = vsel %vm660_vm0, %v2765_v51, %v2724_v60  ;;  %v2768_v11 = vsel %vm660_vm0, %v2736_v5, %v2767_v36 }
 0x51a   : > { %10494 = vst [vmem:[#allocation45_spill] sm:$0xff] %v7939_v46  ;;  %v7944_v17 = vpop.permute.xlu1 %2403  ;;  %v2656_v46 = vsel %vm660_vm0, %v2624_v63, %v2655_v57  ;;  %v2756_v63 = vsel %vm660_vm0, %v7518_v23, %v2755_v56  ;;  %v2744_v23 = vsel %vm660_vm0, %v7472_v6, %v2743_v20  ;;  %v7982_v24 = vperm.slane %v2780_v49, %v10496_v47 }
 0x51b   : > { %10495 = vst [vmem:[#allocation104_spill] sm:$0xff] %v7944_v17  ;;  %v2741_v17 = vrot.slane %v7472_v6, 4  ;;  %v2664_v57 = vperm.slane %v2656_v46, %v10496_v47  ;;  %v2778_v53 = vsel %vm660_vm0, %v2777_v61, %v2728_v55  ;;  %v2764_v46 = vperm.slane %v2756_v63, %v10489_v18 }
 0x51c   : > { %v2688_v60 = vperm.slane %v2680_v44, %v10496_v47  ;;  %v2713_v55 = vrot.slane %v2700_v16, 4  ;;  %v2715_v5 = vrot.slane %v2676_v50, 4  ;;  %v2678_v61 = vsel %vm660_vm0, %v2677_v7, %v2636_v2 }
 0x51d   : > { %v2742_v10 = vsel %vm660_vm0, %v2741_v17, %v7480_v40  ;;  %v7990_v40 = vperm.slane %v2766_v43, %v10496_v47  ;;  %v7993_v6 = vperm.slane %v2778_v53, %v10496_v47  ;;  %v7996_v13 = vperm.slane %v2768_v11, %v10496_v47 }
 0x51e   : > { %v2748_v20 = vperm.slane %v2742_v10, %v10489_v18  ;;  %v2752_v36 = vperm.slane %v2744_v23, %v10489_v18  ;;  %v2760_v17 = vperm.slane %v2754_v58, %v10489_v18  ;;  %v2690_v44 = vsel %vm660_vm0, %v2689_v52, %v7918_v27 }
 0x51f   : > { %v2703_v2 = vrot.slane %v7961_v28, 4  ;;  %v2707_v15 = vrot.slane %v2664_v57, 4  ;;  %v2716_v59 = vsel %vm660_vm0, %v2700_v16, %v2715_v5  ;;  %v2801_v49 = vrot.slane %v2764_v46, 4 }
 0x520   : > { %v7968_v12 = vpop.permute.xlu2 %2411  ;;  %v7970_v0 = vpop.permute.xlu0 %2395  ;;  %v2705_v7 = vrot.slane %v2688_v60, 4  ;;  %v2714_v63 = vsel %vm660_vm0, %v2713_v55, %v2676_v50  ;;  %v2684_v43 = vperm.slane %v2678_v61, %v10496_v47  ;;  %v2696_v11 = vperm.slane %v2690_v44, %v10496_v47 }
 0x521   : > { %10497 = vst [vmem:[#allocation98_spill] sm:$0xff] %v7968_v12  ;;  %v2791_v27 = vrot.slane %v2748_v20, 4  ;;  %v2803_v23 = vrot.slane %v2752_v36, 4  ;;  %v2789_v58 = vrot.slane %v2760_v17, 4  ;;  %v8017_v5 = vsel %vm621_vm1, %v2716_v59, -inf  ;;  %v10503_v59 = vld [vmem:[#allocation73_spill] sm:$0xff] }
 0x522   : > { %10498 = vst [vmem:[#allocation71_spill] sm:$0xff] %v7970_v0  ;;  %v7985_v56 = vpop.permute.xlu1 %2409  ;;  %v2831_v55 = vrot.slane %v7488_v3, 4  ;;  %v2829_v61 = vrot.slane %v7501_v41, 4  ;;  %v8023_v44 = vsel %vm621_vm1, %v2714_v63, -inf  ;;  %v2953_v52 = vrot.slane %v7516_v22, 4 }
 0x523   : > { %10499 = vst [vmem:[#allocation62_spill] sm:$0xff] %v7985_v56  ;;  %v2706_v53 = vsel %vm660_vm0, %v2705_v7, %v2664_v57  ;;  %v2802_v0 = vsel %vm660_vm0, %v2801_v49, %v2752_v36  ;;  %v2955_v12 = vrot.slane %v10503_v59, 4  ;;  %v2708_v50 = vsel %vm660_vm0, %v2688_v60, %v2707_v15  ;;  %v10504_v15 = vld [vmem:[#allocation24_spill] sm:$0xff] }
 0x524   : > { %v2709_v56 = vrot.slane %v2696_v11, 4  ;;  %v2832_v63 = vsel %vm660_vm0, %v7501_v41, %v2831_v55  ;;  %v2704_v35 = vsel %vm660_vm0, %v2684_v43, %v2703_v2  ;;  %v2790_v62 = vsel %vm660_vm0, %v2789_v58, %v2748_v20 }
 0x525   : > { %v2830_v57 = vsel %vm660_vm0, %v2829_v61, %v7488_v3  ;;  %v2956_v36 = vsel %vm660_vm0, %v7516_v22, %v2955_v12  ;;  %v4403_v60 = vsel %vm621_vm1, %v2706_v53, -inf  ;;  %v2954_v41 = vsel %vm660_vm0, %v2953_v52, %v10503_v59 }
 0x526   : > { %v2841_v2 = vrot.slane %v10504_v15, 4  ;;  %v2843_v20 = vrot.slane %v7534_v1, 4  ;;  %v8053_v3 = vperm.slane %v2832_v63, %v10489_v18  ;;  %v2796_v22 = vperm.slane %v2790_v62, %v10496_v47 }
 0x527   : > { %v2710_v12 = vsel %vm660_vm0, %v2709_v56, %v7948_v34  ;;  %v2836_v49 = vperm.slane %v2830_v57, %v10489_v18  ;;  %v8061_v7 = vperm.slane %v2956_v36, %v10489_v18  ;;  %v8071_v62 = vperm.slane %v2954_v41, %v10489_v18 }
 0x528   : > { %v8012_v51 = vpop.permute.xlu2 %2417  ;;  %v8014_v16 = vpop.permute.xlu0 %2401  ;;  %v8074_v34 = vsel %vm621_vm1, %v2704_v35, -inf  ;;  %v8077_v56 = vsel %vm621_vm1, %v2708_v50, -inf  ;;  %v10508_v58 = vrot.slane %v7982_v24, 4  ;;  %v2891_v59 = vrot.slane %v8053_v3, 4 }
 0x529   : > { %10500 = vst [vmem:[#allocation64_spill] sm:$0xff] %v8012_v51  ;;  %v2701_v51 = vrot.slane %v2684_v43, 4  ;;  %v2842_v43 = vsel %vm660_vm0, %v2841_v2, %v7534_v1  ;;  %v2844_v1 = vsel %vm660_vm0, %v10504_v15, %v2843_v20  ;;  %v2879_v61 = vrot.slane %v2836_v49, 4  ;;  %v10510_v20 = vld [vmem:[#allocation92_spill] sm:$0xff] }
 0x52a   : > { %10501 = vst [vmem:[#allocation81_spill] sm:$0xff] %v8014_v16  ;;  %v8026_v10 = vpop.permute.xlu1 %2415  ;;  %v2712_v16 = vsel %vm660_vm0, %v2696_v11, %v2711_v8  ;;  %v8044_v8 = vperm.slane %v2802_v0, %v10496_v47  ;;  %v2848_v35 = vperm.slane %v2842_v43, %v10489_v18  ;;  %v2852_v36 = vperm.slane %v2844_v1, %v10489_v18 }
 0x52b   : > { %10502 = vst [vmem:[#allocation97_spill] sm:$0xff] %v8026_v10  ;;  %v2804_v10 = vsel %vm660_vm0, %v2764_v46, %v2803_v23  ;;  %v2702_v46 = vsel %vm660_vm0, %v2701_v51, %v7961_v28  ;;  %v2792_v51 = vsel %vm660_vm0, %v2760_v17, %v2791_v27  ;;  %v8086_v17 = vsel %vm621_vm1, %v2712_v16, -inf }
 0x52c   : > { %v2812_v0 = vperm.slane %v2804_v10, %v10496_v47  ;;  %v2821_v11 = vrot.slane %v8044_v8, 4  ;;  %v4397_v52 = vsel %vm621_vm1, %v2702_v46, -inf  ;;  %v8089_v27 = vsel %vm621_vm1, %v2710_v12, -inf }
 0x52d   : > { %v2813_v23 = vrot.slane %v2796_v22, 4  ;;  %v2800_v55 = vperm.slane %v2792_v51, %v10496_v47  ;;  %v2941_v16 = vrot.slane %v7551_v45, 4  ;;  %v2867_v2 = vrot.slane %v7532_v54, 4 }
 0x52e   : > { %v2828_v50 = vsel %vm660_vm0, %v2812_v0, %v10508_v58  ;;  %v2822_v15 = vsel %vm660_vm0, %v2821_v11, %v7993_v6  ;;  %v2965_v46 = vrot.slane %v10510_v20, 4  ;;  %v2825_v43 = vrot.slane %v2812_v0, 4  ;;  %v10511_v58 = vld [vmem:[#allocation39_spill] sm:$0xff] }
 0x52f   : > { %v8109_v12 = vsel %vm621_vm1, %v2828_v50, -inf  ;;  %v2877_v51 = vrot.slane %v2848_v35, 4  ;;  %v2967_v57 = vrot.slane %v10511_v58, 4  ;;  %v2814_v1 = vsel %vm660_vm0, %v2813_v23, %v7990_v40 }
 0x530   : > { %v8065_v53 = vpop.permute.xlu2 %2423  ;;  %v8067_v28 = vpop.permute.xlu0 %2407  ;;  %v10512_v63 = vrot.slane %v7996_v13, 4  ;;  %v2942_v11 = vsel %vm660_vm0, %v2941_v16, %v7485_v42  ;;  %v2880_v23 = vsel %vm660_vm0, %v2848_v35, %v2879_v61  ;;  %v2966_v16 = vsel %vm660_vm0, %v2965_v46, %v10511_v58 }
 0x531   : > { %10505 = vst [vmem:[#allocation23_spill] sm:$0xff] %v8065_v53  ;;  %v2979_v61 = vrot.slane %v7584_v33, 4  ;;  %v8156_v46 = vperm.slane %v2880_v23, %v10496_v47  ;;  %v10517_v58 = vrot.slane %v7993_v6, 4 }
 0x532   : > { %10506 = vst [vmem:[#allocation16_spill] sm:$0xff] %v8067_v28  ;;  %4404 = vmax.xlane.f32.xlu1 %v4403_v60  ;;  %v8082_v10 = vpop.permute.xlu1 %2421  ;;  %v10509_v60 = vrot.slane %v7990_v40, 4  ;;  %v2889_v28 = vrot.slane %v2852_v36, 4  ;;  %v2968_v40 = vsel %vm660_vm0, %v10510_v20, %v2967_v57  ;;  %v10516_v57 = vrot.slane %v7485_v42, 4 }
 0x533   : > { %10507 = vst [vmem:[#allocation54_spill] sm:$0xff] %v8082_v10  ;;  %v8126_v10 = vsel %vm621_vm1, %v2822_v15, -inf  ;;  %v8153_v20 = vperm.slane %v2968_v40, %v10489_v18  ;;  %v2824_v42 = vsel %vm660_vm0, %v8044_v8, %v10517_v58  ;;  %v2892_v8 = vsel %vm660_vm0, %v2852_v36, %v2891_v59 }
 0x534   : > { %v2816_v41 = vsel %vm660_vm0, %v2796_v22, %v10509_v60  ;;  %v2820_v22 = vsel %vm660_vm0, %v2800_v55, %v10512_v63  ;;  %v2977_v60 = vrot.slane %v7571_v4, 4  ;;  %v2817_v63 = vrot.slane %v2800_v55, 4 }
 0x535   : > { %v4424_v0 = vsel %vm621_vm1, %v2816_v41, -inf  ;;  %v8139_v41 = vsel %vm621_vm1, %v2814_v1, -inf  ;;  %v8142_v15 = vsel %vm621_vm1, %v2820_v22, -inf  ;;  %v2944_v35 = vsel %vm660_vm0, %v7551_v45, %v10516_v57 }
 0x536   : > { %v2948_v55 = vperm.slane %v2942_v11, %v10489_v18  ;;  %v2878_v45 = vsel %vm660_vm0, %v2877_v51, %v2836_v49  ;;  %v2972_v1 = vperm.slane %v2966_v16, %v10489_v18  ;;  %v2952_v22 = vperm.slane %v2944_v35, %v10489_v18  ;;  %v10518_v51 = vld [vmem:[#allocation63_spill] sm:$0xff] }
 0x537   : > { %v2865_v11 = vrot.slane %v7600_v30, 4  ;;  %v2868_v16 = vsel %vm660_vm0, %v7600_v30, %v2867_v2  ;;  %v8215_v2 = vperm.slane %v2892_v8, %v10496_v47 }
 0x538   : > { %v8120_v53 = vpop.permute.xlu2 %2429  ;;  %v8122_v50 = vpop.permute.xlu0 %2413  ;;  %v2991_v49 = vrot.slane %v2948_v55, 4  ;;  %v3003_v35 = vrot.slane %v2952_v22, 4 }
 0x539   : > { %10513 = vst [vmem:[#allocation47_spill] sm:$0xff] %v8120_v53  ;;  %v2978_v53 = vsel %vm660_vm0, %v2977_v60, %v7584_v33  ;;  %v2853_v60 = vrot.slane %v10518_v51, 4 }
 0x53a   : > { %10514 = vst [vmem:[#allocation72_spill] sm:$0xff] %v8122_v50  ;;  %4416 = vmax.xlane.f32.xlu1 %v8023_v44  ;;  %v8136_v50 = vpop.permute.xlu1 %2427  ;;  %v2826_v44 = vsel %vm660_vm0, %v2825_v43, %v7982_v24  ;;  %v2984_v33 = vperm.slane %v2978_v53, %v10489_v18  ;;  %v2818_v24 = vsel %vm660_vm0, %v2817_v63, %v7996_v13  ;;  %v8179_v13 = vsel %vm621_vm1, %v2824_v42, -inf }
 0x53b   : > { %10515 = vst [vmem:[#allocation20_spill] sm:$0xff] %v8136_v50  ;;  %v2890_v43 = vsel %vm660_vm0, %v2889_v28, %v8053_v3  ;;  %v8172_v6 = vsel %vm621_vm1, %v2826_v44, -inf  ;;  %v2980_v53 = vsel %vm660_vm0, %v7571_v4, %v2979_v61  ;;  %v3027_v3 = vrot.slane %v8153_v20, 4 }
 0x53c   : > { %v8188_v59 = vsel %vm621_vm1, %v2818_v24, -inf  ;;  %v8191_v36 = vperm.slane %v2890_v43, %v10496_v47  ;;  %v8194_v4 = vperm.slane %v2878_v45, %v10496_v47  ;;  %v2854_v23 = vsel %vm660_vm0, %v2853_v60, %v7567_v32 }
 0x53d   : > { %v3013_v63 = vrot.slane %v2984_v33, 4  ;;  %v8204_v61 = vperm.slane %v2980_v53, %v10489_v18  ;;  %v2866_v44 = vsel %vm660_vm0, %v2865_v11, %v7532_v54  ;;  %v2855_v42 = vrot.slane %v7567_v32, 4 }
 0x53e   : > { %v2992_v45 = vsel %vm660_vm0, %v8071_v62, %v2991_v49  ;;  %v2860_v24 = vperm.slane %v2854_v23, %v10489_v18  ;;  %v8219_v43 = vperm.slane %v2868_v16, %v10489_v18  ;;  %v2872_v32 = vperm.slane %v2866_v44, %v10489_v18  ;;  %v10523_v16 = vld [vmem:[#allocation90_spill] sm:$0xff] }
 0x53f   : > { %4398 = vmax.xlane.f32.xlu2 %v4397_v52  ;;  %v3015_v52 = vrot.slane %v2972_v1, 4  ;;  %v3000_v49 = vperm.slane %v2992_v45, %v10496_v47  ;;  %v3004_v53 = vsel %vm660_vm0, %v8061_v7, %v3003_v35 }
 0x540   : > { %v8182_v28 = vpop.permute.xlu2 %2435  ;;  %4401 = vmax.xlane.f32.xlu0 %v8074_v34  ;;  %v8185_v40 = vpop.permute.xlu0 %2419  ;;  %v10520_v34 = vrot.slane %v8061_v7, 4  ;;  %v2913_v7 = vrot.slane %v8219_v43, 4  ;;  %v8255_v45 = vperm.slane %v3004_v53, %v10496_v47 }
 0x541   : > { %10519 = vst [vmem:[#allocation67_spill] sm:$0xff] %v8185_v40  ;;  %v3016_v30 = vsel %vm660_vm0, %v2984_v33, %v3015_v52  ;;  %v3014_v33 = vsel %vm660_vm0, %v3013_v63, %v2972_v1  ;;  %v2903_v63 = vrot.slane %v2860_v24, 4 }
 0x542   : > { %v3002_v57 = vsel %vm660_vm0, %v10520_v34, %v2952_v22  ;;  %4425 = vmax.xlane.f32.xlu1 %v4424_v0  ;;  %v8208_v58 = vpop.permute.xlu1 %2433  ;;  %v10522_v0 = vrot.slane %v8071_v62, 4  ;;  %v3024_v60 = vperm.slane %v3016_v30, %v10496_v47  ;;  %v3028_v62 = vsel %vm660_vm0, %v8204_v61, %v3027_v3  ;;  %v10526_v3 = vld [vmem:[#allocation75_spill] sm:$0xff] }
 0x543   : > { %10521 = vst [vmem:[#allocation38_spill] sm:$0xff] %v8208_v58  ;;  %v8243_v23 = vperm.slane %v3002_v57, %v10496_v47  ;;  %v3065_v34 = vrot.slane %v10523_v16, 4  ;;  %v3067_v44 = vrot.slane %v10526_v3, 4  ;;  %v8258_v57 = vperm.slane %v3028_v62, %v10496_v47  ;;  %v10538_v58 = vld [vmem:[#allocation59_spill] sm:$0xff] }
 0x544   : > { %v2990_v22 = vsel %vm660_vm0, %v10522_v0, %v2948_v55  ;;  %v2856_v55 = vsel %vm660_vm0, %v10518_v51, %v2855_v42  ;;  %v2901_v42 = vrot.slane %v2872_v32, 4  ;;  %v3041_v1 = vrot.slane %v3024_v60, 4 }
 0x545   : > { %v8239_v52 = vperm.slane %v2990_v22, %v10496_v47  ;;  %v2864_v30 = vperm.slane %v2856_v55, %v10489_v18  ;;  %v3043_v22 = vrot.slane %v3000_v49, 4  ;;  %v3068_v11 = vsel %vm660_vm0, %v10523_v16, %v3067_v44 }
 0x546   : > { %v3066_v55 = vsel %vm660_vm0, %v3065_v34, %v10526_v3  ;;  %v2902_v8 = vsel %vm660_vm0, %v2901_v42, %v2860_v24  ;;  %v3049_v16 = vrot.slane %v8258_v57, 4  ;;  %v8280_v62 = vperm.slane %v3068_v11, %v10489_v18  ;;  %v10529_v42 = vld [vmem:[#allocation57_spill] sm:$0xff] }
 0x547   : > { %4407 = vmax.xlane.f32.xlu2 %v8077_v56  ;;  %v3020_v56 = vperm.slane %v3014_v33, %v10496_v47  ;;  %v10527_v33 = vld [vmem:[#allocation55_spill] sm:$0xff]  ;;  %v3039_v53 = vrot.slane %v8239_v52, 4  ;;  %v3044_v40 = vsel %vm660_vm0, %v3024_v60, %v3043_v22  ;;  %v2915_v44 = vrot.slane %v2864_v30, 4 }
 0x548   : > { %v8247_v35 = vpop.permute.xlu2 %2441  ;;  %4413 = vmax.xlane.f32.xlu0 %v8086_v17  ;;  %v8250_v51 = vpop.permute.xlu0 %2425  ;;  %v2904_v17 = vsel %vm660_vm0, %v2872_v32, %v2903_v63  ;;  %v10528_v32 = vld [vmem:[#allocation48_spill] sm:$0xff]  ;;  %v3042_v34 = vsel %vm660_vm0, %v3041_v1, %v3000_v49  ;;  %v3167_v3 = vrot.slane %v7617_v19, 4  ;;  %v2908_v49 = vperm.slane %v2902_v8, %v10496_v47 }
 0x549   : > { %10524 = vst [vmem:[#allocation31_spill] sm:$0xff] %v8247_v35  ;;  %v3037_v54 = vrot.slane %v3020_v56, 4  ;;  %v3165_v63 = vrot.slane %v10528_v32, 4  ;;  %v2912_v50 = vperm.slane %v2904_v17, %v10496_v47  ;;  %v8299_v1 = vsel %vm621_vm1, %v3044_v40, -inf }
 0x54a   : > { %10525 = vst [vmem:[#allocation33_spill] sm:$0xff] %v8250_v51  ;;  %4434 = vmax.xlane.f32.xlu1 %v8126_v10  ;;  %v8262_v0 = vpop.permute.xlu1 %2439  ;;  %v2914_v10 = vsel %vm660_vm0, %v2913_v7, %v2864_v30  ;;  %v3025_v51 = vrot.slane %v8204_v61, 4  ;;  %v8284_v7 = vperm.slane %v3066_v55, %v10489_v18  ;;  %v3051_v17 = vrot.slane %v8255_v45, 4 }
 0x54b   : > { %v3166_v60 = vsel %vm660_vm0, %v3165_v63, %v7617_v19  ;;  %v2920_v24 = vperm.slane %v2914_v10, %v10496_v47  ;;  %v2929_v19 = vrot.slane %v2912_v50, 4  ;;  %v2916_v22 = vsel %vm660_vm0, %v8219_v43, %v2915_v44 }
 0x54c   : > { %v3050_v55 = vsel %vm660_vm0, %v3049_v16, %v8255_v45  ;;  %v8310_v10 = vperm.slane %v3166_v60, %v10489_v18  ;;  %v8314_v8 = vsel %vm621_vm1, %v3042_v34, -inf  ;;  %v3168_v43 = vsel %vm660_vm0, %v10528_v32, %v3167_v3 }
 0x54d   : > { %v10530_v45 = vrot.slane %v8191_v36, 4  ;;  %v2933_v16 = vrot.slane %v2920_v24, 4  ;;  %v2924_v34 = vperm.slane %v2916_v22, %v10496_v47  ;;  %v8329_v60 = vsel %vm621_vm1, %v3050_v55, -inf }
 0x54e   : > { %v2930_v30 = vsel %vm660_vm0, %v2929_v19, %v8156_v46  ;;  %v3040_v32 = vsel %vm660_vm0, %v3020_v56, %v3039_v53  ;;  %v10534_v53 = vrot.slane %v8156_v46, 4 }
 0x54f   : > { %4410 = vmax.xlane.f32.xlu2 %v8089_v27  ;;  %v3038_v27 = vsel %vm660_vm0, %v3037_v54, %v8239_v52  ;;  %v3026_v54 = vsel %vm660_vm0, %v3025_v51, %v8153_v20  ;;  %v2936_v63 = vsel %vm660_vm0, %v2920_v24, %v10530_v45  ;;  %v10531_v20 = vld [vmem:[#allocation41_spill] sm:$0xff]  ;;  %v8339_v24 = vperm.slane %v3168_v43, %v10489_v18  ;;  %v10532_v45 = vld [vmem:[#allocation66_spill] sm:$0xff] }
 0x550   : > { %v8292_v61 = vpop.permute.xlu2 %2447  ;;  %4422 = vmax.xlane.f32.xlu0 %v8139_v41  ;;  %v8295_v11 = vpop.permute.xlu0 %2431  ;;  %v8325_v44 = vsel %vm621_vm1, %v3038_v27, -inf  ;;  %v8336_v3 = vperm.slane %v3026_v54, %v10496_v47  ;;  %v3079_v22 = vrot.slane %v10532_v45, 4  ;;  %v4460_v55 = vsel %vm621_vm1, %v2936_v63, -inf }
 0x551   : > { %v10533_v51 = vrot.slane %v8194_v4, 4  ;;  %v2934_v56 = vsel %vm660_vm0, %v2933_v16, %v8191_v36  ;;  %v2932_v54 = vsel %vm660_vm0, %v2912_v50, %v10534_v53  ;;  %v4087_v43 = vrot.slane %v8295_v11, 4  ;;  %v10537_v16 = vld [vmem:[#allocation17_spill] sm:$0xff] }
 0x552   : > { %4443 = vmax.xlane.f32.xlu1 %v8109_v12  ;;  %v2446_v40 = vpop.permute.xlu1 %2445  ;;  %v2925_v12 = vrot.slane %v2908_v49, 4  ;;  %v3077_v46 = vrot.slane %v10537_v16, 4  ;;  %v2937_v53 = vrot.slane %v2924_v34, 4 }
 0x553   : > { %v4175_v52 = vrot.slane %v2446_v40, 4  ;;  %v2928_v19 = vsel %vm660_vm0, %v2908_v49, %v10533_v51  ;;  %v10536_v49 = vrot.slane %v8215_v2, 4 }
 0x554   : > { %v2926_v41 = vsel %vm660_vm0, %v2925_v12, %v8194_v4  ;;  %v8372_v4 = vsel %vm621_vm1, %v2934_v56, -inf  ;;  %v8375_v12 = vsel %vm621_vm1, %v2932_v54, -inf  ;;  %v4088_v56 = vsel %vm660_vm0, %v8262_v0, %v4087_v43 }
 0x555   : > { %v2940_v36 = vsel %vm660_vm0, %v2924_v34, %v10536_v49  ;;  %v3080_v49 = vsel %vm660_vm0, %v10537_v16, %v3079_v22  ;;  %v8391_v54 = vsel %vm621_vm1, %v2926_v41, -inf  ;;  %v8397_v16 = vsel %vm621_vm1, %v3040_v32, -inf }
 0x556   : > { %v8394_v22 = vsel %vm621_vm1, %v2940_v36, -inf  ;;  %v3052_v43 = vsel %vm660_vm0, %v8258_v57, %v3051_v17  ;;  %v8407_v41 = vperm.slane %v3080_v49, %v10489_v18  ;;  %v3091_v17 = vrot.slane %v7666_v31, 4 }
 0x557   : > { %4419 = vmax.xlane.f32.xlu2 %v8017_v5  ;;  %v4451_v5 = vsel %vm621_vm1, %v2930_v30, -inf  ;;  %v8369_v30 = vsel %vm621_vm1, %v2928_v19, -inf }
 0x558   : > { %v2454_v27 = vpop.permute.xlu2 %2453  ;;  %4431 = vmax.xlane.f32.xlu0 %v8142_v15  ;;  %v8355_v63 = vpop.permute.xlu0 %2437  ;;  %v3053_v15 = vrot.slane %v10538_v58, 4 }
 0x559   : > { %10535 = vst [vmem:[#allocation105_spill] sm:$0xff] %v8355_v63  ;;  %v4173_v51 = vrot.slane %v2454_v27, 4  ;;  %v8365_v50 = vsel %vm660_vm0, %v2454_v27, %v4175_v52  ;;  %v10539_v52 = vrot.slane %v10527_v33, 4 }
 0x55a   : > { %4452 = vmax.xlane.f32.xlu1 %v4451_v5  ;;  %v2452_v63 = vpop.permute.xlu1 %2451  ;;  %v10540_v5 = vrot.slane %v8243_v23, 4  ;;  %v3054_v36 = vsel %vm660_vm0, %v3053_v15, %v10527_v33  ;;  %v4085_v33 = vrot.slane %v8262_v0, 4 }
 0x55b   : > { %v3056_v34 = vsel %vm660_vm0, %v10538_v58, %v10539_v52  ;;  %v4174_v27 = vsel %vm660_vm0, %v4173_v51, %v2446_v40  ;;  %v3078_v58 = vsel %vm660_vm0, %v3077_v46, %v10532_v45  ;;  %v2938_v40 = vsel %vm660_vm0, %v2937_v53, %v8215_v2  ;;  %v10541_v45 = vld [vmem:[#allocation32_spill] sm:$0xff] }
 0x55c   : > { %v3048_v19 = vsel %vm660_vm0, %v8336_v3, %v10540_v5  ;;  %v3045_v51 = vrot.slane %v8336_v3, 4  ;;  %v3064_v32 = vperm.slane %v3056_v34, %v10489_v18  ;;  %v3203_v46 = vrot.slane %v10541_v45, 4 }
 0x55d   : > { %v8413_v52 = vsel %vm621_vm1, %v3048_v19, -inf  ;;  %v4099_v2 = vrot.slane %v8182_v28, 4  ;;  %v4096_v3 = vperm.slane %v4088_v56, %v10489_v18  ;;  %v4299_v53 = vrot.slane %v2452_v63, 4 }
 0x55e   : > { %v8420_v57 = vperm.slane %v3078_v58, %v10489_v18  ;;  %v8426_v34 = vsel %vm621_vm1, %v2938_v40, -inf  ;;  %v3060_v35 = vperm.slane %v3054_v36, %v10489_v18  ;;  %v4086_v40 = vsel %vm660_vm0, %v4085_v33, %v8295_v11 }
 0x55f   : > { %4428 = vmax.xlane.f32.xlu2 %v8188_v59  ;;  %v4147_v14 = vrot.slane %v4096_v3, 4  ;;  %v3092_v11 = vsel %vm660_vm0, %v7653_v38, %v3091_v17  ;;  %v4092_v33 = vperm.slane %v4086_v40, %v10489_v18  ;;  %v10545_v38 = vrot.slane %v8284_v7, 4 }
 0x560   : > { %v2460_v15 = vpop.permute.xlu2 %2459  ;;  %4440 = vmax.xlane.f32.xlu0 %v8172_v6  ;;  %v2444_v49 = vpop.permute.xlu0 %2443 }
 0x561   : > { %v4297_v5 = vrot.slane %v2460_v15, 4  ;;  %v4300_v19 = vsel %vm660_vm0, %v2460_v15, %v4299_v53  ;;  %v4097_v56 = vrot.slane %v2444_v49, 4  ;;  %v4100_v59 = vsel %vm660_vm0, %v2444_v49, %v4099_v2 }
 0x562   : > { %v4108_v0 = vperm.slane %v4100_v59, %v10489_v18  ;;  %4461 = vmax.xlane.f32.xlu1 %v4460_v55  ;;  %v2458_v6 = vpop.permute.xlu1 %2457  ;;  %v3115_v53 = vrot.slane %v3064_v32, 4  ;;  %v10542_v49 = vrot.slane %v8280_v62, 4  ;;  %v3090_v55 = vsel %vm660_vm0, %v3089_v37, %v7666_v31 }
 0x563   : > { %v8437_v29 = vsel %vm660_vm0, %v4297_v5, %v2452_v63  ;;  %v4098_v2 = vsel %vm660_vm0, %v4097_v56, %v8182_v28  ;;  %v3046_v28 = vsel %vm660_vm0, %v3045_v51, %v8243_v23  ;;  %v4180_v5 = vperm.slane %v4174_v27, %v10489_v18 }
 0x564   : > { %v4104_v15 = vperm.slane %v4098_v2, %v10489_v18  ;;  %v4145_v36 = vrot.slane %v4108_v0, 4  ;;  %v3114_v59 = vsel %vm660_vm0, %v10542_v49, %v3064_v32  ;;  %v8450_v63 = vsel %vm660_vm0, %v4108_v0, %v4147_v14 }
 0x565   : > { %10543 = vst [vmem:[#allocation99_spill] sm:$0xff] %v8450_v63  ;;  %v4185_v31 = vrot.slane %v2458_v6, 4  ;;  %v3102_v14 = vsel %vm660_vm0, %v10545_v38, %v3060_v35  ;;  %v8465_v37 = vsel %vm621_vm1, %v3052_v43, -inf  ;;  %v3103_v23 = vrot.slane %v3060_v35, 4  ;;  %v10548_v38 = vld [vmem:[#allocation26_spill] sm:$0xff] }
 0x566   : > { %v4133_v56 = vrot.slane %v4104_v15, 4  ;;  %v8457_v2 = vsel %vm660_vm0, %v4145_v36, %v4096_v3  ;;  %v8468_v51 = vperm.slane %v3090_v55, %v10489_v18  ;;  %v3116_v3 = vsel %vm660_vm0, %v8280_v62, %v3115_v53  ;;  %v10546_v55 = vld [vmem:[#allocation25_spill] sm:$0xff] }
 0x567   : > { %10544 = vst [vmem:[#allocation49_spill] sm:$0xff] %v8457_v2  ;;  %4437 = vmax.xlane.f32.xlu2 %v8179_v13  ;;  %v3100_v13 = vperm.slane %v3092_v11, %v10489_v18  ;;  %v8479_v43 = vperm.slane %v3114_v59, %v10496_v47  ;;  %v4223_v35 = vrot.slane %v4180_v5, 4  ;;  %v8488_v62 = vperm.slane %v3102_v14, %v10496_v47 }
 0x568   : > { %4449 = vmax.xlane.f32.xlu0 %v8369_v30  ;;  %v2450_v27 = vpop.permute.xlu0 %2449  ;;  %v8474_v17 = vsel %vm660_vm0, %v4133_v56, %v4092_v33  ;;  %v8481_v36 = vpop.permute.xlu2 %2465  ;;  %v8491_v53 = vsel %vm621_vm1, %v3046_v28, -inf  ;;  %v3201_v11 = vrot.slane %v10546_v55, 4  ;;  %v3204_v59 = vsel %vm660_vm0, %v10546_v55, %v3203_v46 }
 0x569   : > { %v4186_v0 = vsel %vm660_vm0, %v4185_v31, %v2450_v27  ;;  %v4187_v40 = vrot.slane %v2450_v27, 4  ;;  %v8498_v31 = vperm.slane %v3116_v3, %v10496_v47  ;;  %v3125_v14 = vrot.slane %v8468_v51, 4 }
 0x56a   : > { %v4192_v30 = vperm.slane %v4186_v0, %v10489_v18  ;;  %4470 = vmax.xlane.f32.xlu1 %v8325_v44  ;;  %v8485_v49 = vpop.permute.xlu1 %2463  ;;  %v10547_v44 = vrot.slane %v10529_v42, 4  ;;  %v3177_v32 = vrot.slane %v10548_v38, 4  ;;  %v3137_v58 = vrot.slane %v3100_v13, 4 }
 0x56b   : > { %v4188_v56 = vsel %vm660_vm0, %v2458_v6, %v4187_v40  ;;  %v4135_v46 = vrot.slane %v4092_v33, 4  ;;  %v3104_v6 = vsel %vm660_vm0, %v8284_v7, %v3103_v23  ;;  %v8512_v3 = vperm.slane %v3204_v59, %v10489_v18 }
 0x56c   : > { %v3180_v27 = vsel %vm660_vm0, %v10548_v38, %v10547_v44  ;;  %v4221_v0 = vrot.slane %v4192_v30, 4  ;;  %v8506_v28 = vsel %vm660_vm0, %v4192_v30, %v4223_v35  ;;  %v3189_v40 = vrot.slane %v7683_v39, 4 }
 0x56d   : > { %v4308_v55 = vperm.slane %v4300_v19, %v10489_v18  ;;  %v8520_v35 = vperm.slane %v3180_v27, %v10489_v18  ;;  %v4287_v30 = vrot.slane %v8292_v61, 4  ;;  %v4184_v33 = vperm.slane %v8365_v50, %v10489_v18 }
 0x56e   : > { %v8517_v44 = vsel %vm660_vm0, %v4221_v0, %v4180_v5  ;;  %v8527_v7 = vsel %vm660_vm0, %v4104_v15, %v4135_v46  ;;  %v3202_v23 = vsel %vm660_vm0, %v3201_v11, %v10541_v45  ;;  %v4196_v19 = vperm.slane %v4188_v56, %v10489_v18 }
 0x56f   : > { %4446 = vmax.xlane.f32.xlu2 %v8391_v54  ;;  %10549 = vst [vmem:[#allocation65_spill] sm:$0xff] %v8527_v7  ;;  %v3126_v59 = vsel %vm660_vm0, %v3125_v14, %v8420_v57  ;;  %v3151_v38 = vrot.slane %v8488_v62, 4  ;;  %v4304_v50 = vperm.slane %v8437_v29, %v10489_v18  ;;  %v3138_v27 = vsel %vm660_vm0, %v3137_v58, %v8407_v41 }
 0x570   : > { %4458 = vmax.xlane.f32.xlu0 %v8372_v4  ;;  %v2456_v5 = vpop.permute.xlu0 %2455  ;;  %v3178_v45 = vsel %vm660_vm0, %v3177_v32, %v10529_v42  ;;  %v3190_v4 = vsel %vm660_vm0, %v3189_v40, %v10531_v20  ;;  %v4345_v11 = vrot.slane %v4308_v55, 4  ;;  %v4235_v0 = vrot.slane %v4184_v33, 4  ;;  %v2472_v32 = vpop.permute.xlu2 %2471 }
 0x571   : > { %v4285_v54 = vrot.slane %v2456_v5, 4  ;;  %v4288_v15 = vsel %vm660_vm0, %v2456_v5, %v4287_v30  ;;  %v3132_v46 = vperm.slane %v3126_v59, %v10496_v47  ;;  %v10550_v58 = vrot.slane %v8407_v41, 4 }
 0x572   : > { %v4296_v56 = vperm.slane %v4288_v15, %v10489_v18  ;;  %4479 = vmax.xlane.f32.xlu1 %v8299_v1  ;;  %v2470_v14 = vpop.permute.xlu1 %2469  ;;  %v4233_v42 = vrot.slane %v4196_v19, 4  ;;  %v8558_v1 = vperm.slane %v3138_v27, %v10496_v47  ;;  %v8561_v15 = vperm.slane %v3190_v4, %v10489_v18 }
 0x573   : > { %v4286_v29 = vsel %vm660_vm0, %v4285_v54, %v8292_v61  ;;  %v3140_v30 = vsel %vm660_vm0, %v3100_v13, %v10550_v58  ;;  %v4333_v61 = vrot.slane %v4304_v50, 4  ;;  %v8564_v59 = vsel %vm660_vm0, %v4196_v19, %v4235_v0 }
 0x574   : > { %v4292_v40 = vperm.slane %v4286_v29, %v10489_v18  ;;  %v8555_v5 = vsel %vm660_vm0, %v4345_v11, %v4296_v56  ;;  %v4347_v54 = vrot.slane %v4296_v56, 4  ;;  %v8567_v41 = vperm.slane %v3202_v23, %v10489_v18 }
 0x575   : > { %v8570_v13 = vperm.slane %v3178_v45, %v10489_v18  ;;  %v3163_v11 = vrot.slane %v8498_v31, 4  ;;  %v8574_v29 = vperm.slane %v3104_v6, %v10496_v47  ;;  %v4309_v27 = vrot.slane %v2472_v32, 4 }
 0x576   : > { %v4335_v58 = vrot.slane %v4292_v40, 4  ;;  %v4197_v4 = vrot.slane %v2470_v14, 4  ;;  %v4334_v56 = vsel %vm660_vm0, %v4333_v61, %v4292_v40  ;;  %v3157_v23 = vrot.slane %v8558_v1, 4 }
 0x577   : > { %4455 = vmax.xlane.f32.xlu2 %v8375_v12  ;;  %v3149_v0 = vrot.slane %v3132_v46, 4  ;;  %v8581_v45 = vperm.slane %v3140_v30, %v10496_v47  ;;  %v4234_v63 = vsel %vm660_vm0, %v4233_v42, %v4184_v33  ;;  %v3239_v6 = vrot.slane %v8561_v15, 4 }
 0x578   : > { %4467 = vmax.xlane.f32.xlu0 %v8394_v22  ;;  %v2462_v19 = vpop.permute.xlu0 %2461  ;;  %v8587_v12 = vsel %vm660_vm0, %v4308_v55, %v4347_v54  ;;  %v10551_v22 = vrot.slane %v10531_v20, 4  ;;  %v4311_v30 = vrot.slane %v8485_v49, 4  ;;  %v10552_v33 = vrot.slane %v8420_v57, 4 }
 0x579   : > { %v4198_v7 = vsel %vm660_vm0, %v4197_v4, %v2462_v19  ;;  %v4199_v2 = vrot.slane %v2462_v19, 4  ;;  %v4310_v55 = vsel %vm660_vm0, %v4309_v27, %v8485_v49  ;;  %v3152_v4 = vsel %vm660_vm0, %v3132_v46, %v3151_v38 }
 0x57a   : > { %v3192_v61 = vsel %vm660_vm0, %v7683_v39, %v10551_v22  ;;  %4488 = vmax.xlane.f32.xlu1 %v8329_v60  ;;  %v3128_v42 = vsel %vm660_vm0, %v8468_v51, %v10552_v33  ;;  %v4336_v20 = vsel %vm660_vm0, %v4304_v50, %v4335_v58  ;;  %v3225_v39 = vrot.slane %v8520_v35, 4  ;;  %v2476_v22 = vpop.permute.xlu1 %2475 }
 0x57b   : > { %v4200_v54 = vsel %vm660_vm0, %v2470_v14, %v4199_v2  ;;  %v4312_v19 = vsel %vm660_vm0, %v2472_v32, %v4311_v30  ;;  %v3158_v60 = vsel %vm660_vm0, %v3157_v23, %v8479_v43  ;;  %v3164_v57 = vsel %vm660_vm0, %v8581_v45, %v3163_v11 }
 0x57c   : > { %v3150_v51 = vsel %vm660_vm0, %v3149_v0, %v8488_v62  ;;  %v3155_v2 = vrot.slane %v8574_v29, 4  ;;  %v10553_v49 = vrot.slane %v8310_v10, 4  ;;  %v3240_v50 = vsel %vm660_vm0, %v8567_v41, %v3239_v6 }
 0x57d   : > { %v8623_v14 = vperm.slane %v3192_v61, %v10489_v18  ;;  %v4316_v46 = vperm.slane %v4310_v55, %v10489_v18  ;;  %v4496_v32 = vsel %vm621_vm1, %v3152_v4, -inf  ;;  %v8628_v62 = vperm.slane %v3128_v42, %v10496_v47 }
 0x57e   : > { %v8618_v38 = vsel %vm660_vm0, %v8570_v13, %v10553_v49  ;;  %v4320_v11 = vperm.slane %v4312_v19, %v10489_v18  ;;  %v4321_v27 = vrot.slane %v2476_v22, 4  ;;  %v4505_v58 = vsel %vm621_vm1, %v3158_v60, -inf }
 0x57f   : > { %4464 = vmax.xlane.f32.xlu2 %v8426_v34  ;;  %v8634_v23 = vsel %vm621_vm1, %v3164_v57, -inf  ;;  %v3313_v0 = vrot.slane %v7730_v21, 4  ;;  %v4211_v6 = vrot.slane %v8481_v36, 4  ;;  %v8640_v30 = vsel %vm621_vm1, %v3150_v51, -inf }
 0x580   : > { %4476 = vmax.xlane.f32.xlu0 %v8314_v8  ;;  %v2468_v61 = vpop.permute.xlu0 %2467  ;;  %v8643_v33 = vperm.slane %v3240_v50, %v10496_v47  ;;  %v4340_v55 = vperm.slane %v4334_v56, %v10496_v47  ;;  %v4344_v4 = vperm.slane %v4336_v20, %v10496_v47  ;;  %v8650_v19 = vperm.slane %v8506_v28, %v10496_v47 }
 0x581   : > { %v4322_v34 = vsel %vm660_vm0, %v4321_v27, %v2468_v61  ;;  %v4323_v42 = vrot.slane %v2468_v61, 4  ;;  %v4359_v60 = vrot.slane %v4316_v46, 4  ;;  %v8655_v57 = vperm.slane %v8517_v44, %v10496_v47 }
 0x582   : > { %v4328_v8 = vperm.slane %v4322_v34, %v10489_v18  ;;  %4497 = vmax.xlane.f32.xlu1 %v4496_v32  ;;  %v4371_v51 = vrot.slane %v4320_v11, 4  ;;  %v8660_v56 = vperm.slane %v8564_v59, %v10496_v47  ;;  %v4352_v20 = vperm.slane %v8555_v5, %v10496_v47 }
 0x583   : > { %v4324_v49 = vsel %vm660_vm0, %v2476_v22, %v4323_v42  ;;  %v4204_v28 = vperm.slane %v4198_v7, %v10489_v18  ;;  %v4383_v61 = vrot.slane %v4340_v55, 4  ;;  %v8668_v44 = vperm.slane %v4234_v63, %v10496_v47 }
 0x584   : > { %v4332_v50 = vperm.slane %v4324_v49, %v10489_v18  ;;  %v4357_v27 = vrot.slane %v4328_v8, 4  ;;  %v4360_v32 = vsel %vm660_vm0, %v4328_v8, %v4359_v60  ;;  %v4387_v34 = vrot.slane %v4344_v4, 4 }
 0x585   : > { %v4368_v22 = vperm.slane %v4360_v32, %v10496_v47  ;;  %v4208_v59 = vperm.slane %v4200_v54, %v10489_v18  ;;  %v4247_v49 = vrot.slane %v4204_v28, 4 }
 0x586   : > { %v4369_v42 = vrot.slane %v4332_v50, 4  ;;  %v4358_v40 = vsel %vm660_vm0, %v4357_v27, %v4316_v46  ;;  %v4372_v5 = vsel %vm660_vm0, %v4332_v50, %v4371_v51  ;;  %v4356_v46 = vperm.slane %v8587_v12, %v10496_v47 }
 0x587   : > { %4473 = vmax.xlane.f32.xlu2 %v8397_v16  ;;  %v4364_v7 = vperm.slane %v4358_v40, %v10496_v47  ;;  %v8677_v60 = vperm.slane %v4372_v5, %v10496_v47  ;;  %v8680_v63 = vsel %vm660_vm0, %v4368_v22, %v4387_v34  ;;  %v4385_v8 = vrot.slane %v4368_v22, 4 }
 0x588   : > { %10554 = vst [vmem:[#allocation89_spill] sm:$0xff] %v8680_v63  ;;  %4485 = vmax.xlane.f32.xlu0 %v8413_v52  ;;  %v2474_v54 = vpop.permute.xlu0 %2473  ;;  %v4370_v32 = vsel %vm660_vm0, %v4369_v42, %v4320_v11  ;;  %v4391_v51 = vrot.slane %v4352_v20, 4  ;;  %v4259_v34 = vrot.slane %v4208_v59, 4 }
 0x589   : > { %v4209_v16 = vrot.slane %v2474_v54, 4  ;;  %v4212_v40 = vsel %vm660_vm0, %v2474_v54, %v4211_v6  ;;  %v8688_v50 = vsel %vm660_vm0, %v4364_v7, %v4383_v61  ;;  %v4376_v27 = vperm.slane %v4370_v32, %v10496_v47 }
 0x58a   : > { %v4220_v22 = vperm.slane %v4212_v40, %v10489_v18  ;;  %4506 = vmax.xlane.f32.xlu1 %v4505_v58  ;;  %v4381_v52 = vrot.slane %v4364_v7, 4  ;;  %v4393_v5 = vrot.slane %v8677_v60, 4  ;;  %v8696_v42 = vsel %vm660_vm0, %v4385_v8, %v4344_v4 }
 0x58b   : > { %v4210_v11 = vsel %vm660_vm0, %v4209_v16, %v8481_v36  ;;  %v4389_v12 = vrot.slane %v4376_v27, 4  ;;  %10555 = vst [vmem:[#allocation82_spill] sm:$0xff] %v8696_v42  ;;  %v8699_v6 = vsel %vm660_vm0, %v4376_v27, %v4391_v51  ;;  %v3301_v7 = vrot.slane %v7765_v9, 4 }
 0x58c   : > { %10556 = vst [vmem:[#allocation84_spill] sm:$0xff] %v8699_v6  ;;  %v4216_v61 = vperm.slane %v4210_v11, %v10489_v18  ;;  %v4257_v54 = vrot.slane %v4220_v22, 4  ;;  %v4260_v32 = vsel %vm660_vm0, %v4220_v22, %v4259_v34  ;;  %v8704_v58 = vsel %vm660_vm0, %v4381_v52, %v4340_v55  ;;  %v10584_v6 = vld [vmem:[#allocation51_spill] sm:$0xff] }
 0x58d   : > { %10557 = vst [vmem:[#allocation15_spill] sm:$0xff] %v8704_v58  ;;  %v4268_v40 = vperm.slane %v4260_v32, %v10496_v47  ;;  %v8709_v36 = vsel %vm660_vm0, %v4389_v12, %v4352_v20  ;;  %v8712_v4 = vsel %vm660_vm0, %v4393_v5, %v4356_v46  ;;  %v4283_v27 = vrot.slane %v8660_v56, 4 }
 0x58e   : > { %10558 = vst [vmem:[#allocation12_spill] sm:$0xff] %v8709_v36  ;;  %v4245_v8 = vrot.slane %v4216_v61, 4  ;;  %v4248_v51 = vsel %vm660_vm0, %v4216_v61, %v4247_v49  ;;  %v4258_v16 = vsel %vm660_vm0, %v4257_v54, %v4208_v59  ;;  %v4275_v34 = vrot.slane %v8650_v19, 4 }
 0x58f   : > { %10559 = vst [vmem:[#allocation40_spill] sm:$0xff] %v8712_v4  ;;  %4482 = vmax.xlane.f32.xlu2 %v8491_v53  ;;  %v4256_v55 = vperm.slane %v4248_v51, %v10496_v47  ;;  %v4281_v22 = vrot.slane %v4268_v40, 4  ;;  %v4264_v20 = vperm.slane %v4258_v16, %v10496_v47  ;;  %v4271_v5 = vrot.slane %v8655_v57, 4 }
 0x590   : > { %4494 = vmax.xlane.f32.xlu0 %v8640_v30  ;;  %v4246_v52 = vsel %vm660_vm0, %v4245_v8, %v4204_v28  ;;  %v4279_v49 = vrot.slane %v8668_v44, 4  ;;  %v8726_v59 = vsel %vm660_vm0, %v4268_v40, %v4283_v27  ;;  %v3314_v30 = vsel %vm660_vm0, %v3313_v0, %v7719_v48 }
 0x591   : > { %10560 = vst [vmem:[#allocation100_spill] sm:$0xff] %v8726_v59  ;;  %v4252_v53 = vperm.slane %v4246_v52, %v10496_v47  ;;  %v8730_v11 = vsel %vm660_vm0, %v4256_v55, %v4275_v34  ;;  %v8734_v12 = vsel %vm660_vm0, %v4281_v22, %v8660_v56  ;;  %v4273_v61 = vrot.slane %v4256_v55, 4  ;;  %v10564_v55 = vld [vmem:[#allocation93_spill] sm:$0xff] }
 0x592   : > { %v3289_v28 = vrot.slane %v7732_v26, 4  ;;  %4515 = vmax.xlane.f32.xlu1 %v8634_v23  ;;  %v3265_v54 = vrot.slane %v8643_v33, 4  ;;  %v8744_v32 = vsel %vm660_vm0, %v4264_v20, %v4279_v49  ;;  %v4395_v51 = vrot.slane %v4356_v46, 4 }
 0x593   : > { %10561 = vst [vmem:[#allocation36_spill] sm:$0xff] %v8744_v32  ;;  %v4269_v40 = vrot.slane %v4252_v53, 4  ;;  %v8748_v56 = vsel %vm660_vm0, %v4273_v61, %v8650_v19  ;;  %v8751_v8 = vsel %vm660_vm0, %v4252_v53, %v4271_v5  ;;  %v3302_v0 = vsel %vm660_vm0, %v3301_v7, %v7697_v25  ;;  %v10567_v61 = vld [vmem:[#allocation83_spill] sm:$0xff]  ;;  %v10594_v32 = vld [vmem:[#allocation94_spill] sm:$0xff] }
 0x594   : > { %10562 = vst [vmem:[#allocation74_spill] sm:$0xff] %v8751_v8  ;;  %v3156_v23 = vsel %vm660_vm0, %v8628_v62, %v3155_v2  ;;  %v8761_v16 = vperm.slane %v8618_v38, %v10496_v47  ;;  %v4277_v27 = vrot.slane %v4264_v20, 4  ;;  %v8764_v19 = vperm.slane %v3314_v30, %v10489_v18 }
 0x595   : > { %v3226_v46 = vsel %vm660_vm0, %v3225_v39, %v8339_v24  ;;  %v8772_v7 = vsel %vm660_vm0, %v4269_v40, %v8655_v57  ;;  %v8776_v2 = vsel %vm660_vm0, %v8677_v60, %v4395_v51  ;;  %v3213_v38 = vrot.slane %v8570_v13, 4 }
 0x596   : > { %10563 = vst [vmem:[#allocation68_spill] sm:$0xff] %v8776_v2  ;;  %v3290_v34 = vsel %vm660_vm0, %v3289_v28, %v10564_v55  ;;  %v3266_v22 = vsel %vm660_vm0, %v3265_v54, %v8761_v16  ;;  %v8785_v20 = vsel %vm660_vm0, %v4277_v27, %v8668_v44  ;;  %v8788_v39 = vperm.slane %v3302_v0, %v10489_v18  ;;  %v10568_v0 = vld [vmem:[#allocation76_spill] sm:$0xff]  ;;  %v10583_v2 = vld [vmem:[#allocation37_spill] sm:$0xff] }
 0x597   : > { %10565 = vst [vmem:[#allocation34_spill] sm:$0xff] %v8785_v20  ;;  %4491 = vmax.xlane.f32.xlu2 %v8465_v37  ;;  %v4502_v57 = vsel %vm621_vm1, %v3156_v23, -inf  ;;  %v3153_v60 = vrot.slane %v8628_v62, 4  ;;  %v10566_v13 = vrot.slane %v8512_v3, 4  ;;  %v3161_v5 = vrot.slane %v8581_v45, 4  ;;  %v10592_v20 = vld [vmem:[#allocation43_spill] sm:$0xff] }
 0x598   : > { %4503 = vmax.xlane.f32.xlu0 %v4502_v57  ;;  %v8799_v44 = vperm.slane %v3226_v46, %v10496_v47  ;;  %v3349_v49 = vrot.slane %v8764_v19, 4  ;;  %v3296_v53 = vperm.slane %v3290_v34, %v10489_v18  ;;  %v4523_v37 = vsel %vm621_vm1, %v3266_v22, -inf }
 0x599   : > { %v3250_v52 = vsel %vm660_vm0, %v10566_v13, %v8623_v14  ;;  %v3277_v30 = vrot.slane %v10567_v61, 4  ;;  %v3214_v28 = vsel %vm660_vm0, %v3213_v38, %v8310_v10  ;;  %v3227_v45 = vrot.slane %v8339_v24, 4 }
 0x59a   : > { %4524 = vmax.xlane.f32.xlu1 %v4523_v37  ;;  %v8806_v62 = vperm.slane %v3250_v52, %v10496_v47  ;;  %v3237_v54 = vrot.slane %v8567_v41, 4  ;;  %v3154_v40 = vsel %vm660_vm0, %v3153_v60, %v8574_v29  ;;  %v3350_v51 = vsel %vm660_vm0, %v3349_v49, %v8788_v39 }
 0x59b   : > { %v3278_v23 = vsel %vm660_vm0, %v3277_v30, %v10568_v0  ;;  %v3162_v27 = vsel %vm660_vm0, %v3161_v5, %v8498_v31  ;;  %v3271_v46 = vrot.slane %v8799_v44, 4  ;;  %v3228_v10 = vsel %vm660_vm0, %v8520_v35, %v3227_v45 }
 0x59c   : > { %v3325_v24 = vrot.slane %v3296_v53, 4  ;;  %v3220_v41 = vperm.slane %v3214_v28, %v10496_v47  ;;  %v3238_v29 = vsel %vm660_vm0, %v3237_v54, %v8561_v15  ;;  %v3303_v38 = vrot.slane %v7697_v25, 4 }
 0x59d   : > { %v4499_v34 = vsel %vm621_vm1, %v3154_v40, -inf  ;;  %v3272_v22 = vsel %vm660_vm0, %v8806_v62, %v3271_v46  ;;  %v8831_v31 = vperm.slane %v3350_v51, %v10496_v47  ;;  %v3284_v57 = vperm.slane %v3278_v23, %v10489_v18  ;;  %v10569_v23 = vld [vmem:[#allocation42_spill] sm:$0xff] }
 0x59e   : > { %v4511_v35 = vsel %vm621_vm1, %v3162_v27, -inf  ;;  %v3304_v60 = vsel %vm660_vm0, %v7765_v9, %v3303_v38  ;;  %v3244_v15 = vperm.slane %v3238_v29, %v10496_v47  ;;  %v4532_v25 = vsel %vm621_vm1, %v3272_v22, -inf  ;;  %v10570_v22 = vld [vmem:[#allocation77_spill] sm:$0xff] }
 0x59f   : > { %4500 = vmax.xlane.f32.xlu2 %v4499_v34  ;;  %v3159_v13 = vrot.slane %v8479_v43, 4  ;;  %v3326_v52 = vsel %vm660_vm0, %v3325_v24, %v3284_v57  ;;  %v8842_v5 = vperm.slane %v3228_v10, %v10496_v47  ;;  %v3291_v49 = vrot.slane %v10564_v55, 4 }
 0x5a0   : > { %4512 = vmax.xlane.f32.xlu0 %v4511_v35  ;;  %v3279_v37 = vrot.slane %v10568_v0, 4  ;;  %v3263_v30 = vrot.slane %v3220_v41, 4  ;;  %v3373_v9 = vrot.slane %v8831_v31, 4  ;;  %v3327_v28 = vrot.slane %v3284_v57, 4 }
 0x5a1   : > { %v8848_v45 = vperm.slane %v3304_v60, %v10489_v18  ;;  %v3351_v54 = vrot.slane %v8788_v39, 4  ;;  %v3160_v43 = vsel %vm660_vm0, %v8558_v1, %v3159_v13  ;;  %v3315_v40 = vrot.slane %v7719_v48, 4 }
 0x5a2   : > { %4533 = vmax.xlane.f32.xlu1 %v4532_v25  ;;  %v3264_v51 = vsel %vm660_vm0, %v3244_v15, %v3263_v30  ;;  %v8856_v55 = vperm.slane %v3326_v52, %v10496_v47  ;;  %v3267_v0 = vrot.slane %v8761_v16, 4  ;;  %v3391_v27 = vrot.slane %v10569_v23, 4  ;;  %v10572_v25 = vld [vmem:[#allocation58_spill] sm:$0xff] }
 0x5a3   : > { %v3251_v46 = vrot.slane %v8623_v14, 4  ;;  %v3328_v39 = vsel %vm660_vm0, %v3296_v53, %v3327_v28  ;;  %v3275_v24 = vrot.slane %v8842_v5, 4  ;;  %v3280_v48 = vsel %vm660_vm0, %v10567_v61, %v3279_v37  ;;  %v10571_v61 = vld [vmem:[#allocation27_spill] sm:$0xff]  ;;  %v10573_v37 = vld [vmem:[#allocation18_spill] sm:$0xff] }
 0x5a4   : > { %v3316_v1 = vsel %vm660_vm0, %v7730_v21, %v3315_v40  ;;  %v4508_v29 = vsel %vm621_vm1, %v3160_v43, -inf  ;;  %v3374_v16 = vsel %vm660_vm0, %v3373_v9, %v8856_v55  ;;  %v3363_v38 = vrot.slane %v8848_v45, 4 }
 0x5a5   : > { %v8861_v10 = vpop.xlane.xlu1 %4404  ;;  %v4520_v14 = vsel %vm621_vm1, %v3264_v51, -inf  ;;  %v3261_v34 = vrot.slane %v3244_v15, 4  ;;  %v3352_v53 = vsel %vm660_vm0, %v8764_v19, %v3351_v54  ;;  %v3401_v57 = vrot.slane %v10570_v22, 4 }
 0x5a6   : > { %v3425_v35 = vrot.slane %v10571_v61, 4  ;;  %v3269_v21 = vrot.slane %v8806_v62, 4  ;;  %v8880_v60 = vperm.slane %v3328_v39, %v10496_v47  ;;  %v3389_v13 = vrot.slane %v10572_v25, 4 }
 0x5a7   : > { %4509 = vmax.xlane.f32.xlu2 %v4508_v29  ;;  %v3392_v52 = vsel %vm660_vm0, %v10572_v25, %v3391_v27  ;;  %v8886_v15 = vperm.slane %v3316_v1, %v10489_v18  ;;  %v4541_v19 = vsel %vm621_vm1, %v3374_v16, -inf  ;;  %v3402_v30 = vsel %vm660_vm0, %v3401_v57, %v10573_v37 }
 0x5a8   : > { %4521 = vmax.xlane.f32.xlu0 %v4520_v14  ;;  %v3292_v9 = vsel %vm660_vm0, %v7732_v26, %v3291_v49  ;;  %v8894_v62 = vperm.slane %v3352_v53, %v10496_v47  ;;  %v3252_v28 = vsel %vm660_vm0, %v8512_v3, %v3251_v46  ;;  %v3288_v54 = vperm.slane %v3280_v48, %v10489_v18  ;;  %v10574_v26 = vld [vmem:[#allocation14_spill] sm:$0xff] }
 0x5a9   : > { %v3403_v43 = vrot.slane %v10573_v37, 4  ;;  %v3262_v40 = vsel %vm660_vm0, %v3261_v34, %v3220_v41  ;;  %v3364_v51 = vsel %vm660_vm0, %v8886_v15, %v3363_v38  ;;  %v8904_v27 = vperm.slane %v3392_v52, %v10489_v18 }
 0x5aa   : > { %4542 = vmax.xlane.f32.xlu1 %v4541_v19  ;;  %v3426_v49 = vsel %vm660_vm0, %v3425_v35, %v10574_v26  ;;  %v3270_v39 = vsel %vm660_vm0, %v3269_v21, %v8799_v44  ;;  %v3379_v3 = vrot.slane %v8880_v60, 4  ;;  %v3390_v46 = vsel %vm660_vm0, %v3389_v13, %v10569_v23  ;;  %v10575_v21 = vld [vmem:[#allocation35_spill] sm:$0xff] }
 0x5ab   : > { %v3408_v48 = vperm.slane %v3402_v30, %v10489_v18  ;;  %v3300_v41 = vperm.slane %v3292_v9, %v10489_v18  ;;  %v3260_v29 = vperm.slane %v3252_v28, %v10496_v47  ;;  %v3427_v16 = vrot.slane %v10574_v26, 4  ;;  %v10576_v28 = vld [vmem:[#allocation107_spill] sm:$0xff] }
 0x5ac   : > { %v4517_v38 = vsel %vm621_vm1, %v3262_v40, -inf  ;;  %v3380_v44 = vsel %vm660_vm0, %v8894_v62, %v3379_v3  ;;  %v8923_v14 = vperm.slane %v3364_v51, %v10496_v47  ;;  %v3339_v34 = vrot.slane %v3288_v54, 4 }
 0x5ad   : > { %v8915_v1 = vpop.xlane.xlu1 %4416  ;;  %v3404_v23 = vsel %vm660_vm0, %v10570_v22, %v3403_v43  ;;  %v8928_v53 = vperm.slane %v3426_v49, %v10489_v18  ;;  %v4529_v57 = vsel %vm621_vm1, %v3270_v39, -inf  ;;  %v3396_v35 = vperm.slane %v3390_v46, %v10489_v18 }
 0x5ae   : > { %v3413_v25 = vrot.slane %v10575_v21, 4  ;;  %v3428_v13 = vsel %vm660_vm0, %v10571_v61, %v3427_v16  ;;  %v3268_v52 = vsel %vm660_vm0, %v8643_v33, %v3267_v0  ;;  %v3437_v19 = vrot.slane %v3408_v48, 4 }
 0x5af   : > { %4518 = vmax.xlane.f32.xlu2 %v4517_v38  ;;  %v4550_v22 = vsel %vm621_vm1, %v3380_v44, -inf  ;;  %v3276_v37 = vsel %vm660_vm0, %v3260_v29, %v3275_v24  ;;  %v3340_v30 = vsel %vm660_vm0, %v3300_v41, %v3339_v34  ;;  %v3412_v9 = vperm.slane %v3404_v23, %v10489_v18 }
 0x5b0   : > { %4530 = vmax.xlane.f32.xlu0 %v4529_v57  ;;  %v3414_v43 = vsel %vm660_vm0, %v3413_v25, %v10576_v28  ;;  %v3415_v40 = vrot.slane %v10576_v28, 4  ;;  %v3385_v61 = vrot.slane %v8923_v14, 4  ;;  %v3337_v33 = vrot.slane %v3300_v41, 4 }
 0x5b1   : > { %v8948_v0 = vperm.slane %v3428_v13, %v10489_v18  ;;  %v3461_v24 = vrot.slane %v8928_v53, 4  ;;  %v3439_v49 = vrot.slane %v3396_v35, 4  ;;  %v3451_v39 = vrot.slane %v8904_v27, 4 }
 0x5b2   : > { %v8944_v51 = vpop.xlane.xlu2 %4398  ;;  %4551 = vmax.xlane.f32.xlu1 %v4550_v22  ;;  %v4526_v3 = vsel %vm621_vm1, %v3268_v52, -inf  ;;  %v8956_v46 = vperm.slane %v3340_v30, %v10496_v47  ;;  %v8959_v16 = vperm.slane %v3414_v43, %v10489_v18  ;;  %v4538_v41 = vsel %vm621_vm1, %v3276_v37, -inf }
 0x5b3   : > { %v8951_v26 = vpop.xlane.xlu0 %4401  ;;  %v3273_v44 = vrot.slane %v3260_v29, 4  ;;  %v3438_v34 = vsel %vm660_vm0, %v3437_v19, %v3396_v35  ;;  %v3440_v23 = vsel %vm660_vm0, %v3408_v48, %v3439_v49  ;;  %v3449_v57 = vrot.slane %v3412_v9, 4 }
 0x5b4   : > { %v3416_v25 = vsel %vm660_vm0, %v10575_v21, %v3415_v40  ;;  %v3386_v13 = vsel %vm660_vm0, %v3385_v61, %v8956_v46  ;;  %v3473_v52 = vrot.slane %v8948_v0, 4  ;;  %v3462_v22 = vsel %vm660_vm0, %v3461_v24, %v8959_v16  ;;  %v10577_v24 = vld [vmem:[#allocation69_spill] sm:$0xff] }
 0x5b5   : > { %v8961_v38 = vpop.xlane.xlu1 %4425  ;;  %v3338_v37 = vsel %vm660_vm0, %v3337_v33, %v3288_v54  ;;  %v3452_v29 = vsel %vm660_vm0, %v3412_v9, %v3451_v39  ;;  %v3377_v48 = vrot.slane %v8894_v62, 4  ;;  %v8977_v35 = vperm.slane %v3438_v34, %v10496_v47  ;;  %v10582_v34 = vld [vmem:[#allocation21_spill] sm:$0xff] }
 0x5b6   : > { %v3424_v21 = vperm.slane %v3416_v25, %v10489_v18  ;;  %v4559_v19 = vsel %vm621_vm1, %v3386_v13, -inf  ;;  %v3274_v30 = vsel %vm660_vm0, %v3273_v44, %v8842_v5  ;;  %v8984_v28 = vperm.slane %v3440_v23, %v10496_v47  ;;  %v10578_v13 = vld [vmem:[#allocation28_spill] sm:$0xff] }
 0x5b7   : > { %4527 = vmax.xlane.f32.xlu2 %v4526_v3  ;;  %v8989_v54 = vperm.slane %v3462_v22, %v10496_v47  ;;  %v8992_v62 = vperm.slane %v3338_v37, %v10496_v47  ;;  %v3450_v9 = vsel %vm660_vm0, %v3449_v57, %v8904_v27  ;;  %v8997_v40 = vperm.slane %v3452_v29, %v10496_v47  ;;  %v10579_v22 = vld [vmem:[#allocation78_spill] sm:$0xff] }
 0x5b8   : > { %4539 = vmax.xlane.f32.xlu0 %v4538_v41  ;;  %v3361_v5 = vrot.slane %v8886_v15, 4  ;;  %v3474_v33 = vsel %vm660_vm0, %v3473_v52, %v3424_v21  ;;  %v3501_v49 = vrot.slane %v10577_v24, 4  ;;  %v3378_v39 = vsel %vm660_vm0, %v3377_v48, %v8880_v60 }
 0x5b9   : > { %v3487_v3 = vrot.slane %v8977_v35, 4  ;;  %v4535_v27 = vsel %vm621_vm1, %v3274_v30, -inf  ;;  %v9013_v15 = vperm.slane %v3450_v9, %v10496_v47  ;;  %v3383_v57 = vrot.slane %v8992_v62, 4  ;;  %v10581_v30 = vld [vmem:[#allocation86_spill] sm:$0xff] }
 0x5ba   : > { %v8986_v43 = vpop.xlane.xlu2 %4407  ;;  %4560 = vmax.xlane.f32.xlu1 %v4559_v19  ;;  %v3362_v44 = vsel %vm660_vm0, %v3361_v5, %v8848_v45  ;;  %v9020_v60 = vperm.slane %v3474_v33, %v10496_v47  ;;  %v3503_v52 = vrot.slane %v10578_v13, 4  ;;  %v3525_v37 = vrot.slane %v10579_v22, 4  ;;  %v10580_v45 = vld [vmem:[#allocation13_spill] sm:$0xff] }
 0x5bb   : > { %v9000_v61 = vpop.xlane.xlu0 %4413  ;;  %v3488_v23 = vsel %vm660_vm0, %v8989_v54, %v3487_v3  ;;  %v3537_v29 = vrot.slane %v10580_v45, 4  ;;  %v4547_v48 = vsel %vm621_vm1, %v3378_v39, -inf  ;;  %v3502_v19 = vsel %vm660_vm0, %v3501_v49, %v10578_v13 }
 0x5bc   : > { %v3513_v9 = vrot.slane %v10581_v30, 4  ;;  %v3375_v5 = vrot.slane %v8856_v55, 4  ;;  %v3368_v33 = vperm.slane %v3362_v44, %v10496_v47  ;;  %v3504_v3 = vsel %vm660_vm0, %v10577_v24, %v3503_v52 }
 0x5bd   : > { %v9007_v41 = vpop.xlane.xlu1 %4434  ;;  %v3625_v25 = vrot.slane %v10582_v34, 4  ;;  %v4568_v39 = vsel %vm621_vm1, %v3488_v23, -inf  ;;  %v3515_v13 = vrot.slane %v10584_v6, 4  ;;  %v3493_v24 = vrot.slane %v9020_v60, 4 }
 0x5be   : > { %v3514_v49 = vsel %vm660_vm0, %v3513_v9, %v10584_v6  ;;  %v3376_v55 = vsel %vm660_vm0, %v8831_v31, %v3375_v5  ;;  %v3475_v44 = vrot.slane %v3424_v21, 4  ;;  %v9047_v52 = vperm.slane %v3502_v19, %v10489_v18  ;;  %v10586_v5 = vld [vmem:[#allocation60_spill] sm:$0xff] }
 0x5bf   : > { %4536 = vmax.xlane.f32.xlu2 %v4535_v27  ;;  %v3526_v27 = vsel %vm660_vm0, %v3525_v37, %v10583_v2  ;;  %v10585_v37 = vld [vmem:[#allocation79_spill] sm:$0xff]  ;;  %v3387_v9 = vrot.slane %v8956_v46, 4  ;;  %v3463_v6 = vrot.slane %v8959_v16, 4  ;;  %v3384_v21 = vsel %vm660_vm0, %v3368_v33, %v3383_v57 }
 0x5c0   : > { %4548 = vmax.xlane.f32.xlu0 %v4547_v48  ;;  %v3538_v23 = vsel %vm660_vm0, %v3537_v29, %v10585_v37  ;;  %v9059_v31 = vperm.slane %v3526_v27, %v10489_v18  ;;  %v3626_v19 = vsel %vm660_vm0, %v3625_v25, %v10586_v5  ;;  %v9065_v63 = vperm.slane %v3514_v49, %v10489_v18 }
 0x5c1   : > { %v4544_v46 = vsel %vm621_vm1, %v3376_v55, -inf  ;;  %v3476_v16 = vsel %vm660_vm0, %v8948_v0, %v3475_v44  ;;  %v9075_v27 = vperm.slane %v3538_v23, %v10489_v18  ;;  %v3494_v57 = vsel %vm660_vm0, %v3493_v24, %v9013_v15 }
 0x5c2   : > { %v9041_v48 = vpop.xlane.xlu2 %4410  ;;  %4569 = vmax.xlane.f32.xlu1 %v4568_v39  ;;  %v9056_v39 = vperm.slane %v3504_v3, %v10489_v18  ;;  %v3516_v3 = vsel %vm660_vm0, %v10581_v30, %v3515_v13  ;;  %v3381_v25 = vrot.slane %v3368_v33, 4  ;;  %v3551_v49 = vrot.slane %v9047_v52, 4 }
 0x5c3   : > { %v9051_v42 = vpop.xlane.xlu0 %4422  ;;  %v3627_v59 = vrot.slane %v10586_v5, 4  ;;  %v3539_v4 = vrot.slane %v10585_v37, 4  ;;  %v4556_v55 = vsel %vm621_vm1, %v3384_v21, -inf  ;;  %v3575_v0 = vrot.slane %v9059_v31, 4 }
 0x5c4   : > { %v3485_v30 = vrot.slane %v8989_v54, 4  ;;  %v9086_v13 = vperm.slane %v3476_v16, %v10496_v47  ;;  %v3464_v33 = vsel %vm660_vm0, %v8928_v53, %v3463_v6  ;;  %v9095_v44 = vperm.slane %v3626_v19, %v10489_v18  ;;  %v10588_v19 = vld [vmem:[#allocation95_spill] sm:$0xff] }
 0x5c5   : > { %v9067_v29 = vpop.xlane.xlu1 %4443  ;;  %v9092_v24 = vsel %vm660_vm0, %v10582_v34, %v3627_v59  ;;  %v9098_v37 = vperm.slane %v3516_v3, %v10489_v18  ;;  %v4577_v23 = vsel %vm621_vm1, %v3494_v57, -inf  ;;  %v3540_v21 = vsel %vm660_vm0, %v10580_v45, %v3539_v4  ;;  %v10587_v34 = vld [vmem:[#allocation44_spill] sm:$0xff]  ;;  %v10589_v4 = vld [vmem:[#allocation61_spill] sm:$0xff] }
 0x5c6   : > { %v3382_v53 = vsel %vm660_vm0, %v3381_v25, %v8992_v62  ;;  %v3576_v59 = vsel %vm660_vm0, %v9075_v27, %v3575_v0  ;;  %v3637_v6 = vrot.slane %v10587_v34, 4  ;;  %v3388_v3 = vsel %vm660_vm0, %v8923_v14, %v3387_v9 }
 0x5c7   : > { %4545 = vmax.xlane.f32.xlu2 %v4544_v46  ;;  %v3649_v46 = vrot.slane %v10588_v19, 4  ;;  %v3472_v57 = vperm.slane %v3464_v33, %v10496_v47  ;;  %v3613_v45 = vrot.slane %v10589_v4, 4  ;;  %v3486_v62 = vsel %vm660_vm0, %v3485_v30, %v8977_v35 }
 0x5c8   : > { %4557 = vmax.xlane.f32.xlu0 %v4556_v55  ;;  %v3527_v55 = vrot.slane %v10583_v2, 4  ;;  %v10590_v25 = vrot.slane %v8997_v40, 4  ;;  %v9126_v58 = vperm.slane %v3540_v21, %v10489_v18  ;;  %v4553_v9 = vsel %vm621_vm1, %v3382_v53, -inf }
 0x5c9   : > { %v9132_v2 = vperm.slane %v3576_v59, %v10496_v47  ;;  %v3561_v35 = vrot.slane %v9098_v37, 4  ;;  %v4909_v30 = vlaneseq  ;;  %v4562_v33 = vsel %vm621_vm1, %v3388_v3, -inf }
 0x5ca   : > { %v4420_v5 = vpop.xlane.xlu2 %4419  ;;  %4578 = vmax.xlane.f32.xlu1 %v4577_v23  ;;  %v3500_v0 = vsel %vm660_vm0, %v9086_v13, %v10590_v25  ;;  %v10591_v23 = vld [vmem:[#allocation29_spill] sm:$0xff]  ;;  %v3552_v25 = vsel %vm660_vm0, %v9065_v63, %v3551_v49  ;;  %v4565_v21 = vsel %vm621_vm1, %v3486_v62, -inf  ;;  %v10593_v53 = vrot.slane %v8984_v28, 4 }
 0x5cb   : > { %v9110_v16 = vpop.xlane.xlu0 %4431  ;;  %v3650_v54 = vsel %vm660_vm0, %v3649_v46, %v10591_v23  ;;  %v3638_v46 = vsel %vm660_vm0, %v3637_v6, %v10592_v20  ;;  %v4586_v36 = vsel %vm621_vm1, %v3500_v0, -inf  ;;  %v3614_v8 = vsel %vm660_vm0, %v3613_v45, %v10594_v32 }
 0x5cc   : > { %v3492_v59 = vsel %vm660_vm0, %v3472_v57, %v10593_v53  ;;  %v3528_v3 = vsel %vm660_vm0, %v10579_v22, %v3527_v55  ;;  %v9150_v49 = vperm.slane %v3650_v54, %v10489_v18  ;;  %v4782_v6 = vmax.f32 %v8861_v10, %v8986_v43 }
 0x5cd   : > { %v9128_v14 = vpop.xlane.xlu1 %4452  ;;  %v3585_v62 = vrot.slane %v9126_v58, 4  ;;  %v4783_v0 = vmax.f32 %v9041_v48, %v9000_v61  ;;  %v3601_v45 = vrot.slane %v9132_v2, 4  ;;  %v9161_v53 = vand.u32 127, %v4909_v30 }
 0x5ce   : > { %v4781_v22 = vmax.f32 %v8944_v51, %v8951_v26  ;;  %v4784_v54 = vmax.f32 %v8915_v1, %v4420_v5  ;;  %v4574_v10 = vsel %vm621_vm1, %v3492_v59, -inf  ;;  %v9168_v43 = vperm.slane %v3638_v46, %v10489_v18 }
 0x5cf   : > { %4554 = vmax.xlane.f32.xlu2 %v4553_v9  ;;  %v9158_v9 = vperm.slane %v3552_v25, %v10496_v47  ;;  %v9171_v61 = vperm.slane %v3614_v8, %v10489_v18  ;;  %v9174_v48 = vperm.slane %v3528_v3, %v10489_v18  ;;  %v3489_v25 = vrot.slane %v3472_v57, 4 }
 0x5d0   : > { %4566 = vmax.xlane.f32.xlu0 %v4565_v21  ;;  %v3685_v21 = vrot.slane %v9150_v49, 4  ;;  %v4912_v51 = vperm.slane %v4782_v6, %v9161_v53  ;;  %v3497_v1 = vrot.slane %v9086_v13, 4  ;;  %v4913_v26 = vperm.slane %v4783_v0, %v9161_v53 }
 0x5d1   : > { %v3602_v8 = vsel %vm660_vm0, %v3601_v45, %v9158_v9  ;;  %v3586_v57 = vsel %vm660_vm0, %v3585_v62, %v9174_v48  ;;  %v4911_v46 = vperm.slane %v4781_v22, %v9161_v53  ;;  %v4914_v59 = vperm.slane %v4784_v54, %v9161_v53 }
 0x5d2   : > { %v4429_v55 = vpop.xlane.xlu2 %4428  ;;  %4587 = vmax.xlane.f32.xlu1 %v4586_v36  ;;  %v3562_v36 = vsel %vm660_vm0, %v3561_v35, %v9056_v39  ;;  %v4785_v35 = vmax.f32 %v9051_v42, %v8961_v38  ;;  %v3490_v3 = vsel %vm660_vm0, %v3489_v25, %v8984_v28  ;;  %v3498_v0 = vsel %vm660_vm0, %v3497_v1, %v8997_v40 }
 0x5d3   : > { %v4441_v30 = vpop.xlane.xlu0 %4440  ;;  %v4786_v13 = vmax.f32 %v4429_v55, %v9110_v16  ;;  %v9196_v6 = vperm.slane %v3562_v36, %v10496_v47  ;;  %v4976_v62 = vsel %vm4975_vm7, %v4912_v51, %v4911_v46  ;;  %v10595_v16 = vrot.slane %v9065_v63, 4 }
 0x5d4   : > { %v3686_v38 = vsel %vm660_vm0, %v3685_v21, %v9168_v43  ;;  %v3573_v28 = vrot.slane %v9075_v27, 4  ;;  %v4595_v45 = vsel %vm621_vm1, %v3602_v8, -inf  ;;  %v9211_v22 = vperm.slane %v3586_v57, %v10496_v47 }
 0x5d5   : > { %v9182_v5 = vpop.xlane.xlu1 %4461  ;;  %v3550_v42 = vsel %vm660_vm0, %v10595_v16, %v9047_v52  ;;  %v4916_v40 = vperm.slane %v4786_v13, %v9161_v53  ;;  %v4788_v63 = vmax.f32 %v4441_v30, %v9067_v29  ;;  %v4915_v55 = vperm.slane %v4785_v35, %v9161_v53 }
 0x5d6   : > { %v4571_v25 = vsel %vm621_vm1, %v3490_v3, -inf  ;;  %v3607_v21 = vrot.slane %v9196_v6, 4  ;;  %v9224_v51 = vperm.slane %v3550_v42, %v10496_v47  ;;  %v9227_v29 = vperm.slane %v3686_v38, %v10496_v47 }
 0x5d7   : > { %4563 = vmax.xlane.f32.xlu2 %v4562_v33  ;;  %v4978_v33 = vsel %vm4977_vm8, %v4913_v26, %v4976_v62  ;;  %v4918_v8 = vperm.slane %v4788_v63, %v9161_v53  ;;  %v3661_v46 = vrot.slane %v9095_v44, 4  ;;  %v4583_v35 = vsel %vm621_vm1, %v3498_v0, -inf }
 0x5d8   : > { %4575 = vmax.xlane.f32.xlu0 %v4574_v10  ;;  %v4980_v54 = vsel %vm4979_vm9, %v4914_v59, %v4978_v33  ;;  %v3608_v57 = vsel %vm660_vm0, %v9211_v22, %v3607_v21  ;;  %v3639_v59 = vrot.slane %v10592_v20, 4  ;;  %v3663_v3 = vrot.slane %v9171_v61, 4 }
 0x5d9   : > { %v4982_v30 = vsel %vm4981_vm10, %v4915_v55, %v4980_v54  ;;  %v3615_v42 = vrot.slane %v10594_v32, 4  ;;  %v4604_v20 = vsel %vm621_vm1, %v3608_v57, -inf  ;;  %v3495_v0 = vrot.slane %v9013_v15, 4 }
 0x5da   : > { %v4438_v52 = vpop.xlane.xlu2 %4437  ;;  %4596 = vmax.xlane.f32.xlu1 %v4595_v45  ;;  %v4984_v26 = vsel %vm4983_vm11, %v4916_v40, %v4982_v30  ;;  %v3662_v38 = vsel %vm660_vm0, %v3661_v46, %v9171_v61  ;;  %v3599_v32 = vrot.slane %v9224_v51, 4  ;;  %v3709_v33 = vrot.slane %v9227_v29, 4 }
 0x5db   : > { %v4787_v27 = vmax.f32 %v9007_v41, %v4438_v52  ;;  %v9219_v10 = vpop.xlane.xlu0 %4449  ;;  %v3574_v41 = vsel %vm660_vm0, %v3573_v28, %v9059_v31  ;;  %v3651_v31 = vrot.slane %v10591_v23, 4  ;;  %v3640_v23 = vsel %vm660_vm0, %v10587_v34, %v3639_v59 }
 0x5dc   : > { %v3580_v16 = vperm.slane %v3574_v41, %v10496_v47  ;;  %v9264_v45 = vperm.slane %v9092_v24, %v10489_v18  ;;  %v3687_v54 = vrot.slane %v9168_v43, 4  ;;  %v3616_v15 = vsel %vm660_vm0, %v10589_v4, %v3615_v42 }
 0x5dd   : > { %v4917_v1 = vperm.slane %v4787_v27, %v9161_v53  ;;  %v9231_v36 = vpop.xlane.xlu1 %4470  ;;  %v3496_v34 = vsel %vm660_vm0, %v9020_v60, %v3495_v0  ;;  %v3652_v40 = vsel %vm660_vm0, %v10588_v19, %v3651_v31  ;;  %v9277_v52 = vperm.slane %v3662_v38, %v10496_v47  ;;  %v10598_v31 = vld [vmem:[#allocation62_spill] sm:$0xff] }
 0x5de   : > { %v3600_v63 = vsel %vm660_vm0, %v3580_v16, %v3599_v32  ;;  %v3664_v24 = vsel %vm660_vm0, %v9095_v44, %v3663_v3  ;;  %v9282_v43 = vperm.slane %v3640_v23, %v10489_v18  ;;  %v3624_v55 = vperm.slane %v3616_v15, %v10489_v18  ;;  %v10599_v23 = vld [vmem:[#allocation53_spill] sm:$0xff] }
 0x5df   : > { %v4986_v13 = vsel %vm4985_vm12, %v4917_v1, %v4984_v26  ;;  %4572 = vmax.xlane.f32.xlu2 %v4571_v25  ;;  %v4580_v60 = vsel %vm621_vm1, %v3496_v34, -inf  ;;  %v3710_v19 = vsel %vm660_vm0, %v3709_v33, %v9277_v52  ;;  %v3688_v27 = vsel %vm660_vm0, %v9150_v49, %v3687_v54  ;;  %v10596_v26 = vld [vmem:[#allocation46_spill] sm:$0xff]  ;;  %v10600_v33 = vld [vmem:[#allocation81_spill] sm:$0xff] }
 0x5e0   : > { %v4988_v62 = vsel %vm4987_vm13, %v4918_v8, %v4986_v13  ;;  %4584 = vmax.xlane.f32.xlu0 %v4583_v35  ;;  %v9293_v25 = vperm.slane %v3652_v40, %v10489_v18  ;;  %v4592_v44 = vsel %vm621_vm1, %v3600_v63, -inf  ;;  %v3597_v21 = vrot.slane %v3580_v16, 4  ;;  %v10597_v35 = vld [vmem:[#allocation45_spill] sm:$0xff] }
 0x5e1   : > { %5047 = vst.msk [vmem:[%s9248_s27] sm:$0xff] %vm5046_vm14, %v4988_v62  ;;  %v9297_v30 = vperm.slane %v3664_v24, %v10496_v47  ;;  %v3563_v1 = vrot.slane %v9056_v39, 4  ;;  %v3673_v41 = vrot.slane %v9264_v45, 4  ;;  %v3737_v8 = vrot.slane %v10596_v26, 4  ;;  %v10601_v24 = vld [vmem:[#allocation30_spill] sm:$0xff] }
 0x5e2   : > { %v9258_v28 = vpop.xlane.xlu2 %4446  ;;  %4605 = vmax.xlane.f32.xlu1 %v4604_v20  ;;  %v3605_v57 = vrot.slane %v9211_v22, 4  ;;  %v3699_v49 = vrot.slane %v9282_v43, 4  ;;  %v4613_v46 = vsel %vm621_vm1, %v3710_v19, -inf  ;;  %v9306_v59 = vperm.slane %v3688_v27, %v10496_v47  ;;  %v10602_v19 = vld [vmem:[#allocation102_spill] sm:$0xff] }
 0x5e3   : > { %v9269_v61 = vpop.xlane.xlu0 %4458  ;;  %v3674_v13 = vsel %vm660_vm0, %v3673_v41, %v3624_v55  ;;  %v3725_v3 = vrot.slane %v10597_v35, 4  ;;  %v3761_v39 = vrot.slane %v10598_v31, 4  ;;  %v3564_v16 = vsel %vm660_vm0, %v9098_v37, %v3563_v1 }
 0x5e4   : > { %v3587_v22 = vrot.slane %v9174_v48, 4  ;;  %v3598_v20 = vsel %vm660_vm0, %v3597_v21, %v9224_v51  ;;  %v3715_v0 = vrot.slane %v9297_v30, 4  ;;  %v3700_v38 = vsel %vm660_vm0, %v9293_v25, %v3699_v49 }
 0x5e5   : > { %v9284_v4 = vpop.xlane.xlu1 %4479  ;;  %v3738_v32 = vsel %vm660_vm0, %v3737_v8, %v10599_v23  ;;  %v3762_v54 = vsel %vm660_vm0, %v3761_v39, %v10600_v33  ;;  %v3763_v37 = vrot.slane %v10600_v33, 4  ;;  %v3606_v48 = vsel %vm660_vm0, %v3605_v57, %v9196_v6 }
 0x5e6   : > { %v3675_v15 = vrot.slane %v3624_v55, 4  ;;  %v3716_v51 = vsel %vm660_vm0, %v9306_v59, %v3715_v0  ;;  %v9335_v40 = vperm.slane %v3564_v16, %v10496_v47  ;;  %v3588_v63 = vsel %vm660_vm0, %v9126_v58, %v3587_v22 }
 0x5e7   : > { %4581 = vmax.xlane.f32.xlu2 %v4580_v60  ;;  %v3749_v60 = vrot.slane %v10601_v24, 4  ;;  %v3726_v27 = vsel %vm660_vm0, %v3725_v3, %v10602_v19  ;;  %v9344_v6 = vperm.slane %v3700_v38, %v10496_v47  ;;  %v3727_v55 = vrot.slane %v10602_v19, 4 }
 0x5e8   : > { %4593 = vmax.xlane.f32.xlu0 %v4592_v44  ;;  %v4589_v44 = vsel %vm621_vm1, %v3598_v20, -inf  ;;  %v9348_v21 = vperm.slane %v3738_v32, %v10489_v18  ;;  %v9351_v1 = vperm.slane %v3762_v54, %v10489_v18  ;;  %v4601_v58 = vsel %vm621_vm1, %v3606_v48, -inf  ;;  %v10603_v20 = vld [vmem:[#allocation80_spill] sm:$0xff] }
 0x5e9   : > { %v3739_v41 = vrot.slane %v10599_v23, 4  ;;  %v3764_v8 = vsel %vm660_vm0, %v10598_v31, %v3763_v37  ;;  %v3603_v57 = vrot.slane %v9158_v9, 4  ;;  %v3596_v49 = vperm.slane %v3588_v63, %v10496_v47 }
 0x5ea   : > { %v9311_v62 = vpop.xlane.xlu2 %4455  ;;  %4614 = vmax.xlane.f32.xlu1 %v4613_v46  ;;  %v3697_v46 = vrot.slane %v9293_v25, 4  ;;  %v9361_v3 = vperm.slane %v3726_v27, %v10489_v18  ;;  %v4622_v39 = vsel %vm621_vm1, %v3716_v51, -inf  ;;  %v3676_v16 = vsel %vm660_vm0, %v9264_v45, %v3675_v15 }
 0x5eb   : > { %v9316_v42 = vpop.xlane.xlu0 %4467  ;;  %v3740_v22 = vsel %vm660_vm0, %v10596_v26, %v3739_v41  ;;  %v3750_v31 = vsel %vm660_vm0, %v3749_v60, %v10603_v20  ;;  %v3611_v9 = vrot.slane %v9335_v40, 4  ;;  %v3721_v25 = vrot.slane %v9344_v6, 4 }
 0x5ec   : > { %v3773_v38 = vrot.slane %v9348_v21, 4  ;;  %v9376_v23 = vperm.slane %v3764_v8, %v10489_v18  ;;  %v3797_v45 = vrot.slane %v9351_v1, 4  ;;  %v3604_v26 = vsel %vm660_vm0, %v9132_v2, %v3603_v57 }
 0x5ed   : > { %v9330_v34 = vpop.xlane.xlu1 %4488  ;;  %v3751_v33 = vrot.slane %v10603_v20, 4  ;;  %v3612_v54 = vsel %vm660_vm0, %v3596_v49, %v3611_v9  ;;  %v9386_v37 = vperm.slane %v3676_v16, %v10496_v47  ;;  %v9389_v48 = vperm.slane %v3674_v13, %v10496_v47 }
 0x5ee   : > { %v9392_v15 = vperm.slane %v3750_v31, %v10489_v18  ;;  %v3713_v63 = vrot.slane %v9306_v59, 4  ;;  %v3774_v2 = vsel %vm660_vm0, %v3773_v38, %v9361_v3  ;;  %v3698_v60 = vsel %vm660_vm0, %v3697_v46, %v9282_v43  ;;  %v10605_v31 = vld [vmem:[#allocation22_spill] sm:$0xff] }
 0x5ef   : > { %4590 = vmax.xlane.f32.xlu2 %v4589_v44  ;;  %v9402_v19 = vperm.slane %v3740_v22, %v10489_v18  ;;  %v3752_v13 = vsel %vm660_vm0, %v10601_v24, %v3751_v33  ;;  %v4598_v27 = vsel %vm621_vm1, %v3604_v26, -inf  ;;  %v3722_v44 = vsel %vm660_vm0, %v3721_v25, %v9386_v37  ;;  %v10604_v22 = vld [vmem:[#allocation96_spill] sm:$0xff] }
 0x5f0   : > { %4602 = vmax.xlane.f32.xlu0 %v4601_v58  ;;  %v3809_v58 = vrot.slane %v9376_v23, 4  ;;  %v4610_v59 = vsel %vm621_vm1, %v3612_v54, -inf  ;;  %v3609_v41 = vrot.slane %v3596_v49, 4  ;;  %v3798_v43 = vsel %vm660_vm0, %v3797_v45, %v9392_v15  ;;  %v10606_v54 = vld [vmem:[#allocation19_spill] sm:$0xff] }
 0x5f1   : > { %v9414_v8 = vperm.slane %v3774_v2, %v10496_v47  ;;  %v3711_v24 = vrot.slane %v9277_v52, 4  ;;  %v3719_v57 = vrot.slane %v9389_v48, 4  ;;  %v9419_v46 = vperm.slane %v3752_v13, %v10489_v18 }
 0x5f2   : > { %v9370_v0 = vpop.xlane.xlu2 %4464  ;;  %4623 = vmax.xlane.f32.xlu1 %v4622_v39  ;;  %v3728_v39 = vsel %vm660_vm0, %v10597_v35, %v3727_v55  ;;  %v4631_v16 = vsel %vm621_vm1, %v3722_v44, -inf  ;;  %v3704_v49 = vperm.slane %v3698_v60, %v10496_v47  ;;  %v3851_v20 = vrot.slane %v10604_v22, 4 }
 0x5f3   : > { %v9379_v32 = vpop.xlane.xlu0 %4476  ;;  %v3837_v9 = vrot.slane %v10605_v31, 4  ;;  %v3714_v52 = vsel %vm660_vm0, %v3713_v63, %v9297_v30  ;;  %v9430_v38 = vperm.slane %v3798_v43, %v10496_v47  ;;  %v3785_v45 = vrot.slane %v9402_v19, 4  ;;  %v10607_v63 = vld [vmem:[#allocation16_spill] sm:$0xff] }
 0x5f4   : > { %v3610_v35 = vsel %vm660_vm0, %v3609_v41, %v9335_v40  ;;  %v3712_v55 = vsel %vm660_vm0, %v9227_v29, %v3711_v24  ;;  %v3810_v33 = vsel %vm660_vm0, %v3809_v58, %v9419_v46  ;;  %v3736_v30 = vperm.slane %v3728_v39, %v10489_v18 }
 0x5f5   : > { %v9394_v51 = vpop.xlane.xlu1 %4497  ;;  %v3838_v2 = vsel %vm660_vm0, %v3837_v9, %v10606_v54  ;;  %v3861_v60 = vrot.slane %v10607_v63, 4  ;;  %v3823_v13 = vrot.slane %v9414_v8, 4  ;;  %v4790_v40 = vmax.f32 %v9128_v14, %v9311_v62 }
 0x5f6   : > { %v4619_v29 = vsel %vm621_vm1, %v3714_v52, -inf  ;;  %v3720_v58 = vsel %vm660_vm0, %v3704_v49, %v3719_v57  ;;  %v3839_v41 = vrot.slane %v10606_v54, 4  ;;  %v4607_v43 = vsel %vm621_vm1, %v3610_v35, -inf }
 0x5f7   : > { %4599 = vmax.xlane.f32.xlu2 %v4598_v27  ;;  %v10608_v27 = vld [vmem:[#allocation88_spill] sm:$0xff]  ;;  %v3824_v24 = vsel %vm660_vm0, %v9430_v38, %v3823_v13  ;;  %v9458_v39 = vperm.slane %v3810_v33, %v10496_v47  ;;  %v4789_v14 = vmax.f32 %v9258_v28, %v9219_v10  ;;  %v4616_v62 = vsel %vm621_vm1, %v3712_v55, -inf  ;;  %v10609_v13 = vld [vmem:[#allocation98_spill] sm:$0xff] }
 0x5f8   : > { %4611 = vmax.xlane.f32.xlu0 %v4610_v59  ;;  %v3717_v57 = vrot.slane %v3704_v49, 4  ;;  %v3787_v9 = vrot.slane %v3736_v30, 4  ;;  %v3862_v52 = vsel %vm660_vm0, %v3861_v60, %v10608_v27  ;;  %v4628_v35 = vsel %vm621_vm1, %v3720_v58, -inf  ;;  %v10610_v55 = vld [vmem:[#allocation104_spill] sm:$0xff] }
 0x5f9   : > { %v3786_v33 = vsel %vm660_vm0, %v3785_v45, %v3736_v30  ;;  %v3873_v44 = vrot.slane %v10609_v13, 4  ;;  %v4792_v10 = vmax.f32 %v9370_v0, %v9316_v42  ;;  %v4640_v28 = vsel %vm621_vm1, %v3824_v24, -inf  ;;  %v10611_v24 = vld [vmem:[#allocation71_spill] sm:$0xff] }
 0x5fa   : > { %v4474_v25 = vpop.xlane.xlu2 %4473  ;;  %4632 = vmax.xlane.f32.xlu1 %v4631_v16  ;;  %v9461_v16 = vperm.slane %v3838_v2, %v10489_v18  ;;  %v4920_v2 = vperm.slane %v4790_v40, %v9161_v53  ;;  %v3875_v49 = vrot.slane %v10610_v55, 4  ;;  %v3829_v45 = vrot.slane %v9458_v39, 4 }
 0x5fb   : > { %v9433_v26 = vpop.xlane.xlu0 %4485  ;;  %v4793_v60 = vmax.f32 %v9231_v36, %v4474_v25  ;;  %v3811_v30 = vrot.slane %v9419_v46, 4  ;;  %v9482_v40 = vperm.slane %v3862_v52, %v10489_v18  ;;  %v4919_v42 = vperm.slane %v4789_v14, %v9161_v53 }
 0x5fc   : > { %v3718_v58 = vsel %vm660_vm0, %v3717_v57, %v9389_v48  ;;  %v3775_v36 = vrot.slane %v9361_v3, 4  ;;  %v3788_v46 = vsel %vm660_vm0, %v9402_v19, %v3787_v9  ;;  %v3874_v25 = vsel %vm660_vm0, %v3873_v44, %v10610_v55 }
 0x5fd   : > { %v9449_v59 = vpop.xlane.xlu1 %4506  ;;  %v3849_v14 = vrot.slane %v10611_v24, 4  ;;  %v4989_v52 = vsel %vm4975_vm7, %v4920_v2, %v4919_v42  ;;  %v4923_v3 = vperm.slane %v4793_v60, %v9161_v53  ;;  %v3911_v9 = vrot.slane %v9482_v40, 4 }
 0x5fe   : > { %v4794_v44 = vmax.f32 %v9379_v32, %v9284_v4  ;;  %v3812_v2 = vsel %vm660_vm0, %v9376_v23, %v3811_v30  ;;  %v3821_v55 = vrot.slane %v9430_v38, 4  ;;  %v9522_v60 = vperm.slane %v3874_v25, %v10489_v18 }
 0x5ff   : > { %4608 = vmax.xlane.f32.xlu2 %v4607_v43  ;;  %v4791_v43 = vmax.f32 %v9269_v61, %v9182_v5  ;;  %v3799_v5 = vrot.slane %v9392_v15, 4  ;;  %v9492_v61 = vperm.slane %v3786_v33, %v10496_v47  ;;  %v4625_v33 = vsel %vm621_vm1, %v3718_v58, -inf }
 0x600   : > { %4620 = vmax.xlane.f32.xlu0 %v4619_v29  ;;  %v3852_v4 = vsel %vm660_vm0, %v10611_v24, %v3851_v20  ;;  %v3850_v38 = vsel %vm660_vm0, %v3849_v14, %v10604_v22  ;;  %v4924_v20 = vperm.slane %v4794_v44, %v9161_v53  ;;  %v3912_v22 = vsel %vm660_vm0, %v9522_v60, %v3911_v9 }
 0x601   : > { %v4921_v15 = vperm.slane %v4791_v43, %v9161_v53  ;;  %v3830_v19 = vsel %vm660_vm0, %v3829_v45, %v9492_v61  ;;  %v3776_v43 = vsel %vm660_vm0, %v9348_v21, %v3775_v36  ;;  %v3876_v45 = vsel %vm660_vm0, %v10609_v13, %v3875_v49 }
 0x602   : > { %v4483_v29 = vpop.xlane.xlu2 %4482  ;;  %4641 = vmax.xlane.f32.xlu1 %v4640_v28  ;;  %v4922_v28 = vperm.slane %v4792_v10, %v9161_v53  ;;  %v4649_v32 = vsel %vm621_vm1, %v3830_v19, -inf  ;;  %v9546_v58 = vperm.slane %v3852_v4, %v10489_v18  ;;  %v3822_v36 = vsel %vm660_vm0, %v3821_v55, %v9414_v8 }
 0x603   : > { %v9485_v0 = vpop.xlane.xlu0 %4494  ;;  %v4795_v57 = vmax.f32 %v4483_v29, %v9433_v26  ;;  %v4990_v10 = vsel %vm4977_vm8, %v4921_v15, %v4989_v52  ;;  %v9517_v26 = vperm.slane %v3788_v46, %v10496_v47  ;;  %v9535_v29 = vperm.slane %v3812_v2, %v10496_v47  ;;  %v10612_v52 = vld [vmem:[#allocation31_spill] sm:$0xff] }
 0x604   : > { %v4991_v23 = vsel %vm4979_vm9, %v4922_v28, %v4990_v10  ;;  %v9552_v25 = vperm.slane %v3776_v43, %v10496_v47  ;;  %v3856_v13 = vperm.slane %v3850_v38, %v10489_v18  ;;  %v3800_v14 = vsel %vm660_vm0, %v9351_v1, %v3799_v5  ;;  %v10614_v10 = vld [vmem:[#allocation105_spill] sm:$0xff] }
 0x605   : > { %v9501_v48 = vpop.xlane.xlu1 %4515  ;;  %v3835_v46 = vrot.slane %v9517_v26, 4  ;;  %v3985_v28 = vrot.slane %v10612_v52, 4  ;;  %v4637_v9 = vsel %vm621_vm1, %v3822_v36, -inf  ;;  %v3723_v44 = vrot.slane %v9386_v37, 4 }
 0x606   : > { %v3840_v1 = vsel %vm660_vm0, %v10605_v31, %v3839_v41  ;;  %v10613_v5 = vrot.slane %v10608_v27, 4  ;;  %v3973_v55 = vrot.slane %v10614_v10, 4  ;;  %v9585_v43 = vperm.slane %v3876_v45, %v10489_v18  ;;  %v10615_v27 = vld [vmem:[#allocation38_spill] sm:$0xff] }
 0x607   : > { %4617 = vmax.xlane.f32.xlu2 %v4616_v62  ;;  %v4992_v62 = vsel %vm4981_vm10, %v4923_v3, %v4991_v23  ;;  %v3836_v15 = vsel %vm660_vm0, %v9535_v29, %v3835_v46  ;;  %v9566_v3 = vperm.slane %v3912_v22, %v10496_v47  ;;  %v3897_v37 = vrot.slane %v9546_v58, 4 }
 0x608   : > { %4629 = vmax.xlane.f32.xlu0 %v4628_v35  ;;  %v4925_v35 = vperm.slane %v4795_v57, %v9161_v53  ;;  %v3887_v57 = vrot.slane %v9461_v16, 4  ;;  %v3864_v2 = vsel %vm660_vm0, %v10607_v63, %v10613_v5  ;;  %v4658_v54 = vsel %vm621_vm1, %v3836_v15, -inf  ;;  %v10616_v63 = vld [vmem:[#allocation33_spill] sm:$0xff] }
 0x609   : > { %v3986_v41 = vsel %vm660_vm0, %v3985_v28, %v10615_v27  ;;  %v3961_v4 = vrot.slane %v10616_v63, 4  ;;  %v3937_v38 = vrot.slane %v9566_v3, 4  ;;  %v3724_v45 = vsel %vm660_vm0, %v9344_v6, %v3723_v44 }
 0x60a   : > { %v4492_v21 = vpop.xlane.xlu2 %4491  ;;  %4650 = vmax.xlane.f32.xlu1 %v4649_v32  ;;  %v3888_v31 = vsel %vm660_vm0, %v3856_v13, %v3887_v57  ;;  %v3827_v32 = vrot.slane %v9552_v25, 4  ;;  %v3921_v46 = vrot.slane %v9585_v43, 4  ;;  %v3885_v28 = vrot.slane %v3856_v13, 4 }
 0x60b   : > { %v4796_v30 = vmax.f32 %v9330_v34, %v4492_v21  ;;  %v9541_v42 = vpop.xlane.xlu0 %4503  ;;  %v4993_v34 = vsel %vm4983_vm11, %v4924_v20, %v4992_v62  ;;  %v3848_v62 = vperm.slane %v3840_v1, %v10489_v18  ;;  %v10617_v20 = vld [vmem:[#allocation47_spill] sm:$0xff]  ;;  %v9609_v36 = vperm.slane %v3888_v31, %v10496_v47 }
 0x60c   : > { %v4994_v8 = vsel %vm4985_vm12, %v4925_v35, %v4993_v34  ;;  %v9599_v35 = vperm.slane %v3864_v2, %v10489_v18  ;;  %v9613_v34 = vperm.slane %v3986_v41, %v10489_v18  ;;  %v4634_v15 = vsel %vm621_vm1, %v3724_v45, -inf }
 0x60d   : > { %v4926_v49 = vperm.slane %v4796_v30, %v9161_v53  ;;  %v9557_v24 = vpop.xlane.xlu1 %4524  ;;  %v3974_v30 = vsel %vm660_vm0, %v3973_v55, %v10617_v20  ;;  %v3938_v57 = vsel %vm660_vm0, %v3937_v38, %v9609_v36  ;;  %v3833_v13 = vrot.slane %v9535_v29, 4 }
 0x60e   : > { %v3922_v1 = vsel %vm660_vm0, %v3921_v46, %v9599_v35  ;;  %v4021_v2 = vrot.slane %v9613_v34, 4  ;;  %v3886_v29 = vsel %vm660_vm0, %v3885_v28, %v9461_v16 }
 0x60f   : > { %v4995_v19 = vsel %vm4987_vm13, %v4926_v49, %v4994_v8  ;;  %4626 = vmax.xlane.f32.xlu2 %v4625_v33  ;;  %v3808_v33 = vperm.slane %v3800_v14, %v10496_v47  ;;  %v3898_v14 = vsel %vm660_vm0, %v3897_v37, %v3848_v62  ;;  %v10618_v8 = vld [vmem:[#allocation64_spill] sm:$0xff]  ;;  %v4667_v37 = vsel %vm621_vm1, %v3938_v57, -inf }
 0x610   : > { %5048 = vst.msk [vmem:[%s9248_s27 + $0x8] sm:$0xff] %vm5046_vm14, %v4995_v19  ;;  %4638 = vmax.xlane.f32.xlu0 %v4637_v9  ;;  %v3962_v6 = vsel %vm660_vm0, %v3961_v4, %v10618_v8  ;;  %v9624_v19 = vperm.slane %v3974_v30, %v10489_v18  ;;  %v9631_v5 = vperm.slane %v3898_v14, %v10496_v47  ;;  %v3899_v4 = vrot.slane %v3848_v62, 4 }
 0x611   : > { %v3828_v22 = vsel %vm660_vm0, %v3808_v33, %v3827_v32  ;;  %v3825_v44 = vrot.slane %v3808_v33, 4  ;;  %v3968_v55 = vperm.slane %v3962_v6, %v10489_v18  ;;  %v9640_v33 = vperm.slane %v3922_v1, %v10496_v47 }
 0x612   : > { %v9593_v23 = vpop.xlane.xlu2 %4500  ;;  %4659 = vmax.xlane.f32.xlu1 %v4658_v54  ;;  %v4646_v9 = vsel %vm621_vm1, %v3828_v22, -inf  ;;  %v10619_v54 = vld [vmem:[#allocation54_spill] sm:$0xff]  ;;  %v3909_v32 = vrot.slane %v9522_v60, 4  ;;  %v4022_v30 = vsel %vm660_vm0, %v4021_v2, %v9624_v19  ;;  %v10620_v22 = vld [vmem:[#allocation72_spill] sm:$0xff]  ;;  %v3834_v14 = vsel %vm660_vm0, %v3833_v13, %v9517_v26 }
 0x613   : > { %v9601_v21 = vpop.xlane.xlu0 %4512  ;;  %v3949_v31 = vrot.slane %v10619_v54, 4  ;;  %v3826_v45 = vsel %vm660_vm0, %v3825_v44, %v9552_v25  ;;  %v3943_v6 = vrot.slane %v9631_v5, 4  ;;  %v3900_v16 = vsel %vm660_vm0, %v9546_v58, %v3899_v4 }
 0x614   : > { %v3997_v60 = vrot.slane %v3968_v55, 4  ;;  %v3892_v28 = vperm.slane %v3886_v29, %v10496_v47  ;;  %v3910_v25 = vsel %vm660_vm0, %v3909_v32, %v9482_v40  ;;  %v4643_v57 = vsel %vm621_vm1, %v3826_v45, -inf }
 0x615   : > { %v9615_v49 = vpop.xlane.xlu1 %4533  ;;  %v3950_v46 = vsel %vm660_vm0, %v3949_v31, %v10620_v22  ;;  %v3944_v26 = vsel %vm660_vm0, %v9640_v33, %v3943_v6  ;;  %v4655_v44 = vsel %vm621_vm1, %v3834_v14, -inf  ;;  %v3951_v1 = vrot.slane %v10620_v22, 4 }
 0x616   : > { %v3956_v58 = vperm.slane %v3950_v46, %v10489_v18  ;;  %v4676_v13 = vsel %vm621_vm1, %v3944_v26, -inf  ;;  %v3831_v2 = vrot.slane %v9492_v61, 4  ;;  %v9680_v31 = vperm.slane %v3900_v16, %v10496_v47 }
 0x617   : > { %4635 = vmax.xlane.f32.xlu2 %v4634_v15  ;;  %v3975_v15 = vrot.slane %v10617_v20, 4  ;;  %v3916_v20 = vperm.slane %v3910_v25, %v10496_v47  ;;  %v3963_v29 = vrot.slane %v10618_v8, 4  ;;  %v3923_v4 = vrot.slane %v9599_v35, 4 }
 0x618   : > { %4647 = vmax.xlane.f32.xlu0 %v4646_v9  ;;  %v9668_v9 = vperm.slane %v4022_v30, %v10496_v47  ;;  %v3935_v45 = vrot.slane %v3892_v28, 4  ;;  %v3999_v30 = vrot.slane %v3956_v58, 4  ;;  %v4023_v61 = vrot.slane %v9624_v19, 4 }
 0x619   : > { %v3976_v40 = vsel %vm660_vm0, %v10614_v10, %v3975_v15  ;;  %v3832_v14 = vsel %vm660_vm0, %v9458_v39, %v3831_v2  ;;  %v3952_v8 = vsel %vm660_vm0, %v10619_v54, %v3951_v1  ;;  %v3987_v35 = vrot.slane %v10615_v27, 4 }
 0x61a   : > { %v9637_v41 = vpop.xlane.xlu2 %4509  ;;  %4668 = vmax.xlane.f32.xlu1 %v4667_v37  ;;  %v3998_v37 = vsel %vm660_vm0, %v3997_v60, %v3956_v58  ;;  %v4045_v10 = vrot.slane %v9668_v9, 4  ;;  %v9686_v22 = vperm.slane %v3976_v40, %v10489_v18  ;;  %v3936_v6 = vsel %vm660_vm0, %v3916_v20, %v3935_v45  ;;  %v10621_v60 = vld [vmem:[#allocation20_spill] sm:$0xff] }
 0x61b   : > { %v9645_v38 = vpop.xlane.xlu0 %4521  ;;  %v9698_v16 = vperm.slane %v3998_v37, %v10496_v47  ;;  %v4073_v25 = vrot.slane %v10621_v60, 4  ;;  %v4798_v19 = vmax.f32 %v9593_v23, %v9541_v42  ;;  %v4000_v39 = vsel %vm660_vm0, %v3968_v55, %v3999_v30 }
 0x61c   : > { %v3988_v54 = vsel %vm660_vm0, %v10612_v52, %v3987_v35  ;;  %v4799_v27 = vmax.f32 %v9449_v59, %v9637_v41  ;;  %v4652_v26 = vsel %vm621_vm1, %v3832_v14, -inf  ;;  %v4797_v42 = vmax.f32 %v9485_v0, %v9394_v51  ;;  %v10622_v59 = vld [vmem:[#allocation67_spill] sm:$0xff] }
 0x61d   : > { %v9658_v62 = vpop.xlane.xlu1 %4542  ;;  %v4046_v58 = vsel %vm660_vm0, %v4045_v10, %v9698_v16  ;;  %v4664_v23 = vsel %vm621_vm1, %v3936_v6, -inf  ;;  %v4024_v55 = vsel %vm660_vm0, %v9613_v34, %v4023_v61  ;;  %v9720_v52 = vperm.slane %v3952_v8, %v10489_v18 }
 0x61e   : > { %v4074_v41 = vsel %vm660_vm0, %v4073_v25, %v10622_v59  ;;  %v3941_v1 = vrot.slane %v9640_v33, 4  ;;  %v9726_v40 = vperm.slane %v4000_v39, %v10496_v47  ;;  %v9729_v51 = vperm.slane %v3988_v54, %v10489_v18 }
 0x61f   : > { %4644 = vmax.xlane.f32.xlu2 %v4643_v57  ;;  %v3933_v57 = vrot.slane %v3916_v20, 4  ;;  %v4928_v0 = vperm.slane %v4798_v19, %v9161_v53  ;;  %v4685_v20 = vsel %vm621_vm1, %v4046_v58, -inf  ;;  %v4929_v2 = vperm.slane %v4799_v27, %v9161_v53  ;;  %v10624_v27 = vld [vmem:[#allocation97_spill] sm:$0xff] }
 0x620   : > { %4656 = vmax.xlane.f32.xlu0 %v4655_v44  ;;  %v4035_v44 = vrot.slane %v9686_v22, 4  ;;  %v9739_v45 = vperm.slane %v4024_v55, %v10496_v47  ;;  %v4927_v30 = vperm.slane %v4797_v42, %v9161_v53  ;;  %v3924_v8 = vsel %vm660_vm0, %v9585_v43, %v3923_v4 }
 0x621   : > { %v3934_v34 = vsel %vm660_vm0, %v3933_v57, %v3892_v28  ;;  %v4800_v28 = vmax.f32 %v9601_v21, %v9501_v48  ;;  %v9754_v35 = vperm.slane %v4074_v41, %v10489_v18  ;;  %v4011_v4 = vrot.slane %v9720_v52, 4 }
 0x622   : > { %v4519_v32 = vpop.xlane.xlu2 %4518  ;;  %4677 = vmax.xlane.f32.xlu1 %v4676_v13  ;;  %v3964_v13 = vsel %vm660_vm0, %v10616_v63, %v3963_v29  ;;  %v4036_v10 = vsel %vm660_vm0, %v9729_v51, %v4035_v44  ;;  %v10623_v29 = vld [vmem:[#allocation23_spill] sm:$0xff]  ;;  %v4996_v48 = vsel %vm4975_vm7, %v4928_v0, %v4927_v30  ;;  %v4661_v21 = vsel %vm621_vm1, %v3934_v34, -inf }
 0x623   : > { %v9689_v46 = vpop.xlane.xlu0 %4530  ;;  %v4801_v37 = vmax.f32 %v4519_v32, %v9645_v38  ;;  %v4061_v14 = vrot.slane %v10623_v29, 4  ;;  %v3942_v38 = vsel %vm660_vm0, %v3941_v1, %v9631_v5  ;;  %v4051_v32 = vrot.slane %v9726_v40, 4 }
 0x624   : > { %v9757_v6 = vperm.slane %v3964_v13, %v10489_v18  ;;  %v4997_v25 = vsel %vm4977_vm8, %v4929_v2, %v4996_v48  ;;  %v9768_v43 = vperm.slane %v4036_v10, %v10496_v47  ;;  %v4930_v57 = vperm.slane %v4800_v28, %v9161_v53 }
 0x625   : > { %v9703_v15 = vpop.xlane.xlu1 %4551  ;;  %v4931_v5 = vperm.slane %v4801_v37, %v9161_v53  ;;  %v4052_v19 = vsel %vm660_vm0, %v9739_v45, %v4051_v32  ;;  %v4673_v54 = vsel %vm621_vm1, %v3942_v38, -inf  ;;  %v4803_v58 = vmax.f32 %v9689_v46, %v9615_v49 }
 0x626   : > { %v3939_v44 = vrot.slane %v9609_v36, 4  ;;  %v3932_v42 = vperm.slane %v3924_v8, %v10496_v47  ;;  %v4998_v55 = vsel %vm4979_vm9, %v4930_v57, %v4997_v25  ;;  %v4694_v41 = vsel %vm621_vm1, %v4052_v19, -inf }
 0x627   : > { %4653 = vmax.xlane.f32.xlu2 %v4652_v26  ;;  %v4062_v26 = vsel %vm660_vm0, %v4061_v14, %v10624_v27  ;;  %v4012_v1 = vsel %vm660_vm0, %v9757_v6, %v4011_v4  ;;  %v4075_v0 = vrot.slane %v10622_v59, 4  ;;  %v3947_v49 = vrot.slane %v9680_v31, 4 }
 0x628   : > { %4665 = vmax.xlane.f32.xlu0 %v4664_v23  ;;  %v4109_v23 = vrot.slane %v9754_v35, 4  ;;  %v4057_v36 = vrot.slane %v9768_v43, 4  ;;  %v9790_v46 = vperm.slane %v4062_v26, %v10489_v18  ;;  %v4933_v59 = vperm.slane %v4803_v58, %v9161_v53 }
 0x629   : > { %v3948_v10 = vsel %vm660_vm0, %v3932_v42, %v3947_v49  ;;  %v9800_v30 = vperm.slane %v4012_v1, %v10496_v47  ;;  %v4076_v14 = vsel %vm660_vm0, %v10621_v60, %v4075_v0  ;;  %v4009_v8 = vrot.slane %v9757_v6, 4 }
 0x62a   : > { %v4528_v33 = vpop.xlane.xlu2 %4527  ;;  %4686 = vmax.xlane.f32.xlu1 %v4685_v20  ;;  %v4999_v20 = vsel %vm4981_vm10, %v4931_v5, %v4998_v55  ;;  %v3945_v25 = vrot.slane %v3932_v42, 4  ;;  %v4049_v60 = vrot.slane %v9739_v45, 4  ;;  %v9821_v19 = vperm.slane %v4076_v14, %v10489_v18 }
 0x62b   : > { %v4802_v61 = vmax.f32 %v9557_v24, %v4528_v33  ;;  %v4540_v63 = vpop.xlane.xlu0 %4539  ;;  %v3940_v33 = vsel %vm660_vm0, %v9566_v3, %v3939_v44  ;;  %v4058_v32 = vsel %vm660_vm0, %v4057_v36, %v9800_v30  ;;  %v4063_v6 = vrot.slane %v10624_v27, 4 }
 0x62c   : > { %v4670_v38 = vsel %vm621_vm1, %v3940_v33, -inf  ;;  %v4703_v4 = vsel %vm621_vm1, %v4058_v32, -inf  ;;  %v3946_v45 = vsel %vm660_vm0, %v3945_v25, %v9680_v31  ;;  %v4010_v58 = vsel %vm660_vm0, %v4009_v8, %v9720_v52 }
 0x62d   : > { %v9760_v24 = vpop.xlane.xlu1 %4560  ;;  %v4932_v39 = vperm.slane %v4802_v61, %v9161_v53  ;;  %v4064_v44 = vsel %vm660_vm0, %v10623_v29, %v4063_v6  ;;  %v4050_v27 = vsel %vm660_vm0, %v4049_v60, %v9726_v40  ;;  %v4679_v55 = vsel %vm621_vm1, %v3946_v45, -inf }
 0x62e   : > { %v4016_v52 = vperm.slane %v4010_v58, %v10496_v47  ;;  %v9853_v40 = vperm.slane %v4064_v44, %v10489_v18  ;;  %v4691_v1 = vsel %vm621_vm1, %v4050_v27, -inf  ;;  %v4059_v58 = vrot.slane %v9800_v30, 4 }
 0x62f   : > { %4662 = vmax.xlane.f32.xlu2 %v4661_v21  ;;  %v5000_v13 = vsel %vm4983_vm11, %v4932_v39, %v4999_v20  ;;  %v4682_v21 = vsel %vm621_vm1, %v3948_v10, -inf  ;;  %v4140_v39 = vperm.slane %v8474_v17, %v10496_v47  ;;  %v4047_v20 = vrot.slane %v9698_v16, 4 }
 0x630   : > { %4674 = vmax.xlane.f32.xlu0 %v4673_v54  ;;  %v5001_v3 = vsel %vm4985_vm12, %v4933_v59, %v5000_v13  ;;  %v4033_v54 = vrot.slane %v9729_v51, 4  ;;  %v4055_v36 = vrot.slane %v4016_v52, 4 }
 0x632   : > { %v4537_v34 = vpop.xlane.xlu2 %4536  ;;  %4695 = vmax.xlane.f32.xlu1 %v4694_v41  ;;  %v4034_v17 = vsel %vm660_vm0, %v4033_v54, %v9686_v22  ;;  %v10625_v41 = vld [vmem:[#allocation49_spill] sm:$0xff] }
 0x633   : > { %v4804_v2 = vmax.f32 %v4537_v34, %v4540_v63  ;;  %v9793_v37 = vpop.xlane.xlu0 %4548  ;;  %v4110_v63 = vsel %vm660_vm0, %v4109_v23, %v9790_v46  ;;  %v4121_v23 = vrot.slane %v9821_v19, 4  ;;  %v9850_v29 = vperm.slane %v10625_v41, %v10496_v47 }
 0x634   : > { %v4116_v5 = vperm.slane %v4110_v63, %v10496_v47  ;;  %v4040_v22 = vperm.slane %v4034_v17, %v10496_v47  ;;  %v4806_v44 = vmax.f32 %v9793_v37, %v9703_v15  ;;  %v10627_v17 = vld [vmem:[#allocation99_spill] sm:$0xff] }
 0x635   : > { %v4934_v28 = vperm.slane %v4804_v2, %v9161_v53  ;;  %v9803_v61 = vpop.xlane.xlu1 %4569  ;;  %v4122_v34 = vsel %vm660_vm0, %v4121_v23, %v9853_v40  ;;  %v4165_v13 = vrot.slane %v9850_v29, 4  ;;  %v4048_v2 = vsel %vm660_vm0, %v9668_v9, %v4047_v20 }
 0x636   : > { %v4159_v42 = vrot.slane %v4116_v5, 4  ;;  %v4056_v33 = vsel %vm660_vm0, %v4040_v22, %v4055_v36  ;;  %v9868_v59 = vperm.slane %v4122_v34, %v10496_v47  ;;  %v4688_v16 = vsel %vm621_vm1, %v4048_v2, -inf }
 0x637   : > { %v5002_v48 = vsel %vm4987_vm13, %v4934_v28, %v5001_v3  ;;  %4671 = vmax.xlane.f32.xlu2 %v4670_v38  ;;  %v4700_v63 = vsel %vm621_vm1, %v4056_v33, -inf  ;;  %v4053_v14 = vrot.slane %v4040_v22, 4  ;;  %v4157_v3 = vrot.slane %v4140_v39, 4 }
 0x638   : > { %5049 = vst.msk [vmem:[%s9248_s27 + $0x10] sm:$0xff] %vm5046_vm14, %v5002_v48  ;;  %4683 = vmax.xlane.f32.xlu0 %v4682_v21  ;;  %v4160_v31 = vsel %vm660_vm0, %v4140_v39, %v4159_v42  ;;  %v4166_v28 = vsel %vm660_vm0, %v4165_v13, %v9868_v59  ;;  %v4111_v9 = vrot.slane %v9790_v46, 4  ;;  %v4936_v37 = vperm.slane %v4806_v44, %v9161_v53  ;;  %v10630_v44 = vld [vmem:[#allocation12_spill] sm:$0xff] }
 0x639   : > { %v4712_v0 = vsel %vm621_vm1, %v4160_v31, -inf  ;;  %v4721_v38 = vsel %vm621_vm1, %v4166_v28, -inf  ;;  %v4054_v21 = vsel %vm660_vm0, %v4053_v14, %v4016_v52  ;;  %v4158_v25 = vsel %vm660_vm0, %v4157_v3, %v4116_v5 }
 0x63a   : > { %v9825_v57 = vpop.xlane.xlu2 %4545  ;;  %4704 = vmax.xlane.f32.xlu1 %v4703_v4  ;;  %v4112_v8 = vsel %vm660_vm0, %v9754_v35, %v4111_v9  ;;  %v4697_v4 = vsel %vm621_vm1, %v4054_v21, -inf  ;;  %v4709_v46 = vsel %vm621_vm1, %v4158_v25, -inf  ;;  %v10626_v35 = vld [vmem:[#allocation65_spill] sm:$0xff]  ;;  %v4733_v5 = vsel %vm621_vm1, %v8772_v7, -inf }
 0x63b   : > { %v9830_v26 = vpop.xlane.xlu0 %4557  ;;  %v4120_v6 = vperm.slane %v4112_v8, %v10496_v47  ;;  %v4805_v39 = vmax.f32 %v9658_v62, %v9825_v57  ;;  %v4144_v54 = vperm.slane %v10626_v35, %v10496_v47  ;;  %v4060_v57 = vsel %vm660_vm0, %v9768_v43, %v4059_v58 }
 0x63c   : > { %v4706_v43 = vsel %vm621_vm1, %v4060_v57, -inf  ;;  %v4751_v8 = vsel %vm621_vm1, %v8734_v12, -inf  ;;  %v4760_v35 = vsel %vm621_vm1, %v8688_v50, -inf  ;;  %v10631_v50 = vld [vmem:[#allocation34_spill] sm:$0xff]  ;;  %v10632_v57 = vld [vmem:[#allocation15_spill] sm:$0xff] }
 0x63d   : > { %v9843_v51 = vpop.xlane.xlu1 %4578  ;;  %v4163_v23 = vrot.slane %v4120_v6, 4  ;;  %v4935_v7 = vperm.slane %v4805_v39, %v9161_v53  ;;  %v4161_v22 = vrot.slane %v4144_v54, 4  ;;  %v4739_v39 = vsel %vm621_vm1, %v8748_v56, -inf }
 0x63f   : > { %4680 = vmax.xlane.f32.xlu2 %v4679_v55  ;;  %v4164_v30 = vsel %vm660_vm0, %v4144_v54, %v4163_v23  ;;  %v4123_v55 = vrot.slane %v9853_v40, 4  ;;  %v4162_v28 = vsel %vm660_vm0, %v4161_v22, %v4120_v6 }
 0x640   : > { %4692 = vmax.xlane.f32.xlu0 %v4691_v1  ;;  %v4718_v1 = vsel %vm621_vm1, %v4164_v30, -inf  ;;  %v4715_v9 = vsel %vm621_vm1, %v4162_v28, -inf  ;;  %v10636_v28 = vld [vmem:[#allocation82_spill] sm:$0xff] }
 0x641   : > { %v4124_v40 = vsel %vm660_vm0, %v9821_v19, %v4123_v55 }
 0x642   : > { %v4555_v49 = vpop.xlane.xlu2 %4554  ;;  %4713 = vmax.xlane.f32.xlu1 %v4712_v0  ;;  %v5003_v0 = vsel %vm4975_vm7, %v4936_v37, %v4935_v7  ;;  %v9927_v19 = vperm.slane %v4124_v40, %v10496_v47  ;;  %v10633_v7 = vld [vmem:[#allocation40_spill] sm:$0xff] }
 0x643   : > { %v9862_v18 = vpop.xlane.xlu0 %4566  ;;  %v4807_v45 = vmax.f32 %v4555_v49, %v9830_v26  ;;  %v9902_v26 = vperm.slane %v10627_v17, %v10496_v47  ;;  %v4742_v49 = vsel %vm621_vm1, %v8730_v11, -inf  ;;  %v4757_v17 = vsel %vm621_vm1, %v10632_v57, -inf }
 0x644   : > { %v4809_v41 = vmax.f32 %v9862_v18, %v9803_v61  ;;  %v4775_v30 = vsel %vm621_vm1, %v10633_v7, -inf }
 0x645   : > { %v9870_v10 = vpop.xlane.xlu1 %4587  ;;  %v4937_v15 = vperm.slane %v4807_v45, %v9161_v53  ;;  %v4169_v20 = vrot.slane %v9902_v26, 4  ;;  %v10628_v45 = vld [vmem:[#allocation74_spill] sm:$0xff] }
 0x646   : > { %v4939_v2 = vperm.slane %v4809_v41, %v9161_v53 }
 0x647   : > { %4689 = vmax.xlane.f32.xlu2 %v4688_v16  ;;  %v5004_v34 = vsel %vm4977_vm8, %v4937_v15, %v5003_v0  ;;  %v4170_v11 = vsel %vm660_vm0, %v4169_v20, %v9927_v19 }
 0x648   : > { %4701 = vmax.xlane.f32.xlu0 %v4700_v63 }
 0x64a   : > { %v4564_v32 = vpop.xlane.xlu2 %4563  ;;  %4722 = vmax.xlane.f32.xlu1 %v4721_v38  ;;  %v4727_v38 = vsel %vm621_vm1, %v4170_v11, -inf  ;;  %v4763_v11 = vsel %vm621_vm1, %v10636_v28, -inf }
 0x64b   : > { %v4576_v48 = vpop.xlane.xlu0 %4575  ;;  %v4808_v27 = vmax.f32 %v9760_v24, %v4564_v32 }
 0x64d   : > { %v9882_v60 = vpop.xlane.xlu1 %4596  ;;  %v4938_v31 = vperm.slane %v4808_v27, %v9161_v53  ;;  %v4769_v27 = vsel %vm621_vm1, %v10630_v44, -inf }
 0x64f   : > { %4698 = vmax.xlane.f32.xlu2 %v4697_v4  ;;  %v5005_v36 = vsel %vm4979_vm9, %v4938_v31, %v5004_v34 }
 0x650   : > { %4710 = vmax.xlane.f32.xlu0 %v4709_v46  ;;  %v5006_v63 = vsel %vm4981_vm10, %v4939_v2, %v5005_v36 }
 0x652   : > { %v4573_v42 = vpop.xlane.xlu2 %4572  ;;  %4734 = vmax.xlane.f32.xlu1 %v4733_v5  ;;  %v4736_v5 = vsel %vm621_vm1, %v10628_v45, -inf }
 0x653   : > { %v4585_v62 = vpop.xlane.xlu0 %4584  ;;  %v4810_v52 = vmax.f32 %v4573_v42, %v4576_v48  ;;  %v4167_v48 = vrot.slane %v9868_v59, 4 }
 0x654   : > { %v4812_v13 = vmax.f32 %v4585_v62, %v9870_v10  ;;  %v4745_v62 = vsel %vm621_vm1, %v10631_v50, -inf }
 0x655   : > { %v9908_v24 = vpop.xlane.xlu1 %4605  ;;  %v4940_v61 = vperm.slane %v4810_v52, %v9161_v53  ;;  %v4168_v4 = vsel %vm660_vm0, %v9850_v29, %v4167_v48  ;;  %v10629_v29 = vld [vmem:[#allocation36_spill] sm:$0xff] }
 0x656   : > { %v4942_v3 = vperm.slane %v4812_v13, %v9161_v53  ;;  %v4724_v46 = vsel %vm621_vm1, %v4168_v4, -inf  ;;  %v4748_v58 = vsel %vm621_vm1, %v10629_v29, -inf  ;;  %v10634_v52 = vld [vmem:[#allocation100_spill] sm:$0xff] }
 0x657   : > { %4707 = vmax.xlane.f32.xlu2 %v4706_v43  ;;  %v5007_v47 = vsel %vm4983_vm11, %v4940_v61, %v5006_v63  ;;  %v4754_v43 = vsel %vm621_vm1, %v10634_v52, -inf }
 0x658   : > { %4719 = vmax.xlane.f32.xlu0 %v4718_v1  ;;  %v10635_v1 = vld [vmem:[#allocation89_spill] sm:$0xff] }
 0x659   : > { %v4766_v22 = vsel %vm621_vm1, %v10635_v1, -inf }
 0x65a   : > { %v4582_v18 = vpop.xlane.xlu2 %4581  ;;  %4743 = vmax.xlane.f32.xlu1 %v4742_v49 }
 0x65b   : > { %v4811_v33 = vmax.f32 %v9843_v51, %v4582_v18  ;;  %v4594_v16 = vpop.xlane.xlu0 %4593 }
 0x65d   : > { %v4941_v10 = vperm.slane %v4811_v33, %v9161_v53  ;;  %v9936_v14 = vpop.xlane.xlu1 %4614 }
 0x65f   : > { %v5008_v51 = vsel %vm4985_vm12, %v4941_v10, %v5007_v47  ;;  %4716 = vmax.xlane.f32.xlu2 %v4715_v9 }
 0x660   : > { %v5009_v32 = vsel %vm4987_vm13, %v4942_v3, %v5008_v51  ;;  %4728 = vmax.xlane.f32.xlu0 %v4727_v38 }
 0x661   : > { %5050 = vst.msk [vmem:[%s9248_s27 + $0x18] sm:$0xff] %vm5046_vm14, %v5009_v32 }
 0x662   : > { %v4591_v21 = vpop.xlane.xlu2 %4590  ;;  %4752 = vmax.xlane.f32.xlu1 %v4751_v8 }
 0x663   : > { %v4603_v25 = vpop.xlane.xlu0 %4602  ;;  %v4813_v41 = vmax.f32 %v4591_v21, %v4594_v16 }
 0x664   : > { %v4815_v20 = vmax.f32 %v4603_v25, %v9908_v24  ;;  %v10637_v25 = vld [vmem:[#allocation84_spill] sm:$0xff] }
 0x665   : > { %v4624_v6 = vpop.xlane.xlu1 %4623  ;;  %v4943_v36 = vperm.slane %v4813_v41, %v9161_v53  ;;  %v4772_v4 = vsel %vm621_vm1, %v10637_v25, -inf }
 0x666   : > { %v4945_v33 = vperm.slane %v4815_v20, %v9161_v53 }
 0x667   : > { %4725 = vmax.xlane.f32.xlu2 %v4724_v46 }
 0x668   : > { %4740 = vmax.xlane.f32.xlu0 %v4739_v39 }
 0x66a   : > { %v4600_v12 = vpop.xlane.xlu2 %4599  ;;  %4761 = vmax.xlane.f32.xlu1 %v4760_v35 }
 0x66b   : > { %v4612_v59 = vpop.xlane.xlu0 %4611  ;;  %v4814_v37 = vmax.f32 %v9882_v60, %v4600_v12  ;;  %v4171_v60 = vrot.slane %v9927_v19, 4  ;;  %v10638_v12 = vld [vmem:[#allocation68_spill] sm:$0xff] }
 0x66d   : > { %v4633_v54 = vpop.xlane.xlu1 %4632  ;;  %v4944_v40 = vperm.slane %v4814_v37, %v9161_v53  ;;  %v4172_v13 = vsel %vm660_vm0, %v9902_v26, %v4171_v60 }
 0x66e   : > { %v4730_v19 = vsel %vm621_vm1, %v4172_v13, -inf }
 0x66f   : > { %4737 = vmax.xlane.f32.xlu2 %v4736_v5  ;;  %v5010_v18 = vsel %vm4975_vm7, %v4944_v40, %v4943_v36 }
 0x670   : > { %4749 = vmax.xlane.f32.xlu0 %v4748_v58  ;;  %v5011_v10 = vsel %vm4977_vm8, %v4945_v33, %v5010_v18 }
 0x672   : > { %v4609_v56 = vpop.xlane.xlu2 %4608  ;;  %4770 = vmax.xlane.f32.xlu1 %v4769_v27 }
 0x673   : > { %v4621_v42 = vpop.xlane.xlu0 %4620  ;;  %v4816_v0 = vmax.f32 %v4609_v56, %v4612_v59  ;;  %v4778_v59 = vsel %vm621_vm1, %v10638_v12, -inf }
 0x674   : > { %v4818_v63 = vmax.f32 %v4621_v42, %v4624_v6 }
 0x675   : > { %v9962_v23 = vpop.xlane.xlu1 %4641  ;;  %v4946_v2 = vperm.slane %v4816_v0, %v9161_v53 }
 0x676   : > { %v4948_v51 = vperm.slane %v4818_v63, %v9161_v53 }
 0x677   : > { %4746 = vmax.xlane.f32.xlu2 %v4745_v62 }
 0x678   : > { %4758 = vmax.xlane.f32.xlu0 %v4757_v17 }
 0x67a   : > { %v4618_v55 = vpop.xlane.xlu2 %4617  ;;  %4776 = vmax.xlane.f32.xlu1 %v4775_v30 }
 0x67b   : > { %v4630_v15 = vpop.xlane.xlu0 %4629  ;;  %v4817_v34 = vmax.f32 %v9936_v14, %v4618_v55  ;;  %v5012_v14 = vsel %vm4979_vm9, %v4946_v2, %v5011_v10 }
 0x67d   : > { %v4651_v31 = vpop.xlane.xlu1 %4650  ;;  %v4947_v16 = vperm.slane %v4817_v34, %v9161_v53 }
 0x67f   : > { %4755 = vmax.xlane.f32.xlu2 %v4754_v43  ;;  %v5013_v47 = vsel %vm4981_vm10, %v4947_v16, %v5012_v14 }
 0x680   : > { %4767 = vmax.xlane.f32.xlu0 %v4766_v22  ;;  %v5014_v8 = vsel %vm4983_vm11, %v4948_v51, %v5013_v47 }
 0x682   : > { %v4627_v49 = vpop.xlane.xlu2 %4626 }
 0x683   : > { %v4639_v61 = vpop.xlane.xlu0 %4638  ;;  %v4819_v24 = vmax.f32 %v4627_v49, %v4630_v15 }
 0x684   : > { %v4821_v42 = vmax.f32 %v4639_v61, %v9962_v23 }
 0x685   : > { %v4660_v26 = vpop.xlane.xlu1 %4659  ;;  %v4949_v3 = vperm.slane %v4819_v24, %v9161_v53 }
 0x686   : > { %v4951_v7 = vperm.slane %v4821_v42, %v9161_v53 }
 0x687   : > { %4764 = vmax.xlane.f32.xlu2 %v4763_v11  ;;  %v5015_v21 = vsel %vm4985_vm12, %v4949_v3, %v5014_v8 }
 0x688   : > { %4731 = vmax.xlane.f32.xlu0 %v4730_v19 }
 0x68a   : > { %v4636_v9 = vpop.xlane.xlu2 %4635 }
 0x68b   : > { %v4820_v38 = vmax.f32 %v4633_v54, %v4636_v9  ;;  %v4648_v32 = vpop.xlane.xlu0 %4647 }
 0x68d   : > { %v4950_v48 = vperm.slane %v4820_v38, %v9161_v53  ;;  %v4669_v46 = vpop.xlane.xlu1 %4668 }
 0x68f   : > { %v5016_v6 = vsel %vm4987_vm13, %v4950_v48, %v5015_v21  ;;  %4773 = vmax.xlane.f32.xlu2 %v4772_v4 }
 0x690   : > { %5051 = vst.msk [vmem:[%s9248_s27 + $0x20] sm:$0xff] %vm5046_vm14, %v5016_v6 }
 0x692   : > { %v4645_v39 = vpop.xlane.xlu2 %4644 }
 0x693   : > { %v4657_v35 = vpop.xlane.xlu0 %4656  ;;  %v4822_v44 = vmax.f32 %v4645_v39, %v4648_v32 }
 0x694   : > { %v4824_v30 = vmax.f32 %v4657_v35, %v4660_v26 }
 0x695   : > { %v4678_v5 = vpop.xlane.xlu1 %4677  ;;  %v4952_v50 = vperm.slane %v4822_v44, %v9161_v53 }
 0x696   : > { %v4954_v23 = vperm.slane %v4824_v30, %v9161_v53 }
 0x697   : > { %4779 = vmax.xlane.f32.xlu2 %v4778_v59  ;;  %v5017_v37 = vsel %vm4975_vm7, %v4952_v50, %v4951_v7 }
 0x69a   : > { %v4654_v54 = vpop.xlane.xlu2 %4653 }
 0x69b   : > { %v4666_v45 = vpop.xlane.xlu0 %4665  ;;  %v4823_v27 = vmax.f32 %v4651_v31, %v4654_v54 }
 0x69d   : > { %v4687_v56 = vpop.xlane.xlu1 %4686  ;;  %v4953_v62 = vperm.slane %v4823_v27, %v9161_v53 }
 0x69f   : > { %v5018_v52 = vsel %vm4977_vm8, %v4953_v62, %v5017_v37 }
 0x6a0   : > { %v5019_v22 = vsel %vm4979_vm9, %v4954_v23, %v5018_v52 }
 0x6a2   : > { %v4663_v29 = vpop.xlane.xlu2 %4662 }
 0x6a3   : > { %v4675_v58 = vpop.xlane.xlu0 %4674  ;;  %v4825_v57 = vmax.f32 %v4663_v29, %v4666_v45 }
 0x6a4   : > { %v4827_v41 = vmax.f32 %v4675_v58, %v4678_v5 }
 0x6a5   : > { %v4955_v31 = vperm.slane %v4825_v57, %v9161_v53  ;;  %v4696_v1 = vpop.xlane.xlu1 %4695 }
 0x6a6   : > { %v4957_v60 = vperm.slane %v4827_v41, %v9161_v53 }
 0x6a7   : > { %v5020_v40 = vsel %vm4981_vm10, %v4955_v31, %v5019_v22 }
 0x6aa   : > { %v4672_v17 = vpop.xlane.xlu2 %4671 }
 0x6ab   : > { %v4826_v55 = vmax.f32 %v4669_v46, %v4672_v17  ;;  %v4684_v15 = vpop.xlane.xlu0 %4683 }
 0x6ad   : > { %v4956_v43 = vperm.slane %v4826_v55, %v9161_v53  ;;  %v4705_v18 = vpop.xlane.xlu1 %4704 }
 0x6af   : > { %v5021_v20 = vsel %vm4983_vm11, %v4956_v43, %v5020_v40 }
 0x6b0   : > { %v5022_v61 = vsel %vm4985_vm12, %v4957_v60, %v5021_v20 }
 0x6b2   : > { %v4681_v0 = vpop.xlane.xlu2 %4680 }
 0x6b3   : > { %v4828_v34 = vmax.f32 %v4681_v0, %v4684_v15  ;;  %v4693_v49 = vpop.xlane.xlu0 %4692 }
 0x6b4   : > { %v4830_v4 = vmax.f32 %v4693_v49, %v4696_v1 }
 0x6b5   : > { %v4958_v36 = vperm.slane %v4828_v34, %v9161_v53  ;;  %v4714_v28 = vpop.xlane.xlu1 %4713 }
 0x6b6   : > { %v4960_v59 = vperm.slane %v4830_v4, %v9161_v53 }
 0x6b7   : > { %v5023_v13 = vsel %vm4987_vm13, %v4958_v36, %v5022_v61 }
 0x6b8   : > { %5052 = vst.msk [vmem:[%s9248_s27 + $0x28] sm:$0xff] %vm5046_vm14, %v5023_v13 }
 0x6ba   : > { %v4690_v2 = vpop.xlane.xlu2 %4689 }
 0x6bb   : > { %v4702_v33 = vpop.xlane.xlu0 %4701  ;;  %v4829_v21 = vmax.f32 %v4687_v56, %v4690_v2 }
 0x6bd   : > { %v4723_v19 = vpop.xlane.xlu1 %4722  ;;  %v4959_v35 = vperm.slane %v4829_v21, %v9161_v53 }
 0x6bf   : > { %v5024_v44 = vsel %vm4975_vm7, %v4960_v59, %v4959_v35 }
 0x6c2   : > { %v4699_v16 = vpop.xlane.xlu2 %4698 }
 0x6c3   : > { %v4711_v24 = vpop.xlane.xlu0 %4710  ;;  %v4831_v25 = vmax.f32 %v4699_v16, %v4702_v33 }
 0x6c4   : > { %v4833_v29 = vmax.f32 %v4711_v24, %v4714_v28 }
 0x6c5   : > { %v4735_v14 = vpop.xlane.xlu1 %4734  ;;  %v4961_v12 = vperm.slane %v4831_v25, %v9161_v53 }
 0x6c6   : > { %v4963_v62 = vperm.slane %v4833_v29, %v9161_v53 }
 0x6c7   : > { %v5025_v27 = vsel %vm4977_vm8, %v4961_v12, %v5024_v44 }
 0x6ca   : > { %v4708_v11 = vpop.xlane.xlu2 %4707 }
 0x6cb   : > { %v4720_v63 = vpop.xlane.xlu0 %4719  ;;  %v4832_v6 = vmax.f32 %v4705_v18, %v4708_v11 }
 0x6cd   : > { %v4744_v9 = vpop.xlane.xlu1 %4743  ;;  %v4962_v54 = vperm.slane %v4832_v6, %v9161_v53 }
 0x6cf   : > { %v5026_v56 = vsel %vm4979_vm9, %v4962_v54, %v5025_v27 }
 0x6d0   : > { %v5027_v30 = vsel %vm4981_vm10, %v4963_v62, %v5026_v56 }
 0x6d2   : > { %v4717_v10 = vpop.xlane.xlu2 %4716 }
 0x6d3   : > { %v4729_v26 = vpop.xlane.xlu0 %4728  ;;  %v4834_v45 = vmax.f32 %v4717_v10, %v4720_v63 }
 0x6d5   : > { %v4753_v48 = vpop.xlane.xlu1 %4752  ;;  %v4964_v42 = vperm.slane %v4834_v45, %v9161_v53 }
 0x6d7   : > { %v5028_v55 = vsel %vm4983_vm11, %v4964_v42, %v5027_v30 }
 0x6da   : > { %v4726_v47 = vpop.xlane.xlu2 %4725 }
 0x6db   : > { %v4741_v3 = vpop.xlane.xlu0 %4740  ;;  %v4835_v58 = vmax.f32 %v4723_v19, %v4726_v47 }
 0x6dc   : > { %v4838_v41 = vmax.f32 %v4741_v3, %v4744_v9 }
 0x6dd   : > { %v4762_v5 = vpop.xlane.xlu1 %4761  ;;  %v4965_v57 = vperm.slane %v4835_v58, %v9161_v53 }
 0x6de   : > { %v4968_v20 = vperm.slane %v4838_v41, %v9161_v53 }
 0x6df   : > { %v5029_v37 = vsel %vm4985_vm12, %v4965_v57, %v5028_v55 }
 0x6e2   : > { %v4738_v51 = vpop.xlane.xlu2 %4737 }
 0x6e3   : > { %v4750_v38 = vpop.xlane.xlu0 %4749  ;;  %v4837_v52 = vmax.f32 %v4735_v14, %v4738_v51 }
 0x6e5   : > { %v4771_v31 = vpop.xlane.xlu1 %4770  ;;  %v4967_v40 = vperm.slane %v4837_v52, %v9161_v53 }
 0x6e7   : > { %v5031_v61 = vsel %vm4975_vm7, %v4968_v20, %v4967_v40 }
 0x6ea   : > { %v4747_v32 = vpop.xlane.xlu2 %4746 }
 0x6eb   : > { %v4759_v8 = vpop.xlane.xlu0 %4758  ;;  %v4839_v23 = vmax.f32 %v4747_v32, %v4750_v38 }
 0x6ec   : > { %v4841_v60 = vmax.f32 %v4759_v8, %v4762_v5 }
 0x6ed   : > { %v4969_v0 = vperm.slane %v4839_v23, %v9161_v53  ;;  %v4777_v16 = vpop.xlane.xlu1 %4776 }
 0x6ee   : > { %v4971_v33 = vperm.slane %v4841_v60, %v9161_v53 }
 0x6ef   : > { %v5032_v13 = vsel %vm4977_vm8, %v4969_v0, %v5031_v61 }
 0x6f2   : > { %v4756_v46 = vpop.xlane.xlu2 %4755 }
 0x6f3   : > { %v4768_v39 = vpop.xlane.xlu0 %4767  ;;  %v4840_v1 = vmax.f32 %v4753_v48, %v4756_v46 }
 0x6f5   : > { %v4970_v34 = vperm.slane %v4840_v1, %v9161_v53 }
 0x6f7   : > { %v5033_v18 = vsel %vm4979_vm9, %v4970_v34, %v5032_v13 }
 0x6f8   : > { %v5034_v63 = vsel %vm4981_vm10, %v4971_v33, %v5033_v18 }
 0x6fa   : > { %v4765_v50 = vpop.xlane.xlu2 %4764 }
 0x6fb   : > { %v4732_v17 = vpop.xlane.xlu0 %4731  ;;  %v4842_v49 = vmax.f32 %v4765_v50, %v4768_v39 }
 0x6fc   : > { %v4836_v7 = vmax.f32 %v4729_v26, %v4732_v17 }
 0x6fd   : > { %v4972_v2 = vperm.slane %v4842_v49, %v9161_v53 }
 0x6fe   : > { %v4966_v15 = vperm.slane %v4836_v7, %v9161_v53 }
 0x6ff   : > { %v5035_v19 = vsel %vm4983_vm11, %v4972_v2, %v5034_v63 }
 0x700   : > { %v5030_v43 = vsel %vm4987_vm13, %v4966_v15, %v5029_v37 }
 0x701   : > { %5053 = vst.msk [vmem:[%s9248_s27 + $0x30] sm:$0xff] %vm5046_vm14, %v5030_v43 }
 0x702   : > { %v4774_v22 = vpop.xlane.xlu2 %4773 }
 0x703   : > { %v4843_v36 = vmax.f32 %v4771_v31, %v4774_v22 }
 0x705   : > { %v4973_v24 = vperm.slane %v4843_v36, %v9161_v53 }
 0x707   : > { %v5036_v26 = vsel %vm4985_vm12, %v4973_v24, %v5035_v19 }
 0x70a   : > { %v4780_v28 = vpop.xlane.xlu2 %4779 }
 0x70b   : > { %v4844_v11 = vmax.f32 %v4777_v16, %v4780_v28 }
 0x70d   : > { %v4974_v10 = vperm.slane %v4844_v11, %v9161_v53 }
 0x70f   : > { %v5037_v14 = vsel %vm4987_vm13, %v4974_v10, %v5036_v26 }
 0x710   : > { %5054 = vst.msk [vmem:[%s9248_s27 + $0x38] sm:$0xff] %vm5046_vm14, %v5037_v14 }
 0x711   : > { %s5336_s13 = sshll.u32 %s5544_s21, 2  ;;  %s5330_s8 = sshll.u32 %s5548_s22, 8 }
 0x712   : > { %s5073_s9 = sadd.s32 %s5336_s13, %s5330_s8  ;;  %s5086_s15 = sshll.u32 %s6418_s14, 4  ;;  %s5087_s15 = int_to_ptr.vmem [resolvable:$true] %s5086_s15 }
 0x713   : > { %s5331_s17 = sshll.u32 %s5073_s9, 3  ;;  %s10639_s4 = sld [smem:[#allocation112_spill]] }
 0x714   : > { %s5589_s1 = smov 512   ;;  %s5590_s2 = smov 4096  }
 0x715   : > { %5340 = sst [smem:[#allocation7]] (%p5680_p3), %s5589_s1  ;;  %s5591_s3 = smov 4  }
 0x716   : > { %5341 = sst [smem:[#allocation7 + $0x1]] (%p5680_p3), %s5590_s2  ;;  %s5592_s14 = smov 128  }
 0x717   : > { %5342 = sst [smem:[#allocation7 + $0x2]] (%p5680_p3), %s5591_s3  ;;  %s5593_s13 = smov 8  }
 0x718   : > { %5343 = sst [smem:[#allocation7 + $0x3]] (%p5680_p3), %s5592_s14  ;;  %s5594_s8 = smov [#allocation6]  }
 0x719   : > { %s5075_s0 = scalar_lea.hbm %s10639_s4, %s5331_s17  ;;  %5344 = sst [smem:[#allocation7 + $0x4]] (%p5680_p3), %s5592_s14 }
 0x71a   : > { %s5088_s10 = sshll.u32 %s5075_s0, 4  ;;  %5345 = sst [smem:[#allocation7 + $0x5]] (%p5680_p3), %s5593_s13  ;;  %s5089_s10 = int_to_ptr.hbm [resolvable:$true] %s5088_s10 }
 0x71b   : > { %s5595_s0 = smov 0   ;;  %s5332_s1 = sshll.u32 %s5548_s22, 6 }
 0x71c   : > { %5346 = dma.general (%p5680_p3), %s5087_s15, 4096, %s5089_s10, %s5056_s16, %s5594_s8, [#allocation7], %s5595_s0, 0  }
 0x71d   : > { %s5117_s2 = sshll.u32 %s9248_s27, 4  ;;  %s5114_s9 = sadd.s32 %s5544_s21, %s5332_s1  ;;  %s5118_s2 = int_to_ptr.vmem [resolvable:$true] %s5117_s2 }
 0x71e   : > { %s5333_s3 = sshll.u32 %s5114_s9, 3  ;;  %s5482_s22 = scalar_lea.hbm %s10129_s5, 1024 }
 0x71f   : > { %s5116_s12 = scalar_lea.hbm %s10129_s5, %s5333_s3 }
 0x720   : > { %s5119_s14 = sshll.u32 %s5116_s12, 4  ;;  %s5120_s14 = int_to_ptr.hbm [resolvable:$true] %s5119_s14 }
 0x721   : > { %s5476_s13 = sshra.s32 %s5120_s14, 4  ;;  %s5477_s13 = int_to_ptr.hbm [resolvable:$true] %s5476_s13 }
 0x722   : > { %s5478_s4 = scalar_lea.hbm %s5477_s13, 64  ;;  %p5483_p5 = scmp.lt.s32.totalorder %s5477_s13, %s10129_s5 }
 0x723   : > { %p5479_p1 = scmp.ne.s32.totalorder %s5477_s13, %s5478_s4  ;;  %p5484_p6 = scmp.lt.s32.totalorder %s5482_s22, %s5478_s4 }
 0x725   : > { %p5480_p2 = pnand %p5479_p1, %p5680_p3  ;;  %p5485_p7 = por %p5484_p6, %p5483_p5 }
 0x727   : > { %p5481_p4 = pneg %p5480_p2 }
 0x729   : > { %p5486_p9 = pnand %p5485_p7, %p5481_p4 }
 0x72b   : > { %5489 = shalt.err (!%p5486_p9)
}
 0x72c   : > { %s5596_s15 = smov 128   ;;  %s5597_s8 = smov 1024  }
 0x72d   : > { %s5598_s0 = smov 8   ;;  %s10640_s1 = scalar_lea.sflag [#allocation5], %s5886_s30 }
 0x72e   : > { %5347 = dma.vmem_to_hbm [thread:$0]  (%p5680_p3), %s5118_s2, 1024, %s5120_s14, %s10640_s1, %s5596_s15, %s5597_s8, %s5598_s0  }
 0x72f PF: > { %p5357_p10 = scmp.ge.s32.totalorder %s5560_s25, 2  ;;  %s5134_s9 = sand.u32 1, %s5532_s18  }
 0x730   : > { %s5135_s4 = scalar_lea.sflag [#allocation3], %s5134_s9 }
 0x731   : > { %p5351_p11 = pnand %p5357_p10, %p5689_p8 }
 0x733   : > { %p5352_p12 = pneg %p5351_p11 }
 0x735   : > { %5523 = dma.done.wait (%p5352_p12), %s5135_s4, 4096  }
 0x736   : > { %5525 = vsyncadd (%p5352_p12), %s5135_s4, 4294963200  ;;  %s5145_s3 = scalar_lea.sflag [#allocation5], %s5134_s9 }
 0x737   : > { %5527 = dma.done.wait (%p5352_p12), %s5145_s3, 1024  }
 0x738   : > { %5529 = vsyncadd (%p5352_p12), %s5145_s3, 4294966272  ;;  %s22_s25 = sadd.s32 1, %s5560_s25   ;;  %s10641_s18 = smov %s5536_s19 }
 0x739   : > { %p19_p13 = scmp.ge.s32.totalorder %s22_s25, 18   ;;  %s10642_s19 = smov %s5540_s20 }
 0x73a   : > { %s10643_s20 = smov %s5698_s11  ;;  %s10644_s21 = smov %s5552_s23 }
 0x73b   : > { %s10645_s22 = smov %s5556_s24  ;;  %s10646_s23 = smov %s10649_s28 }
 0x73c   : > { %s10647_s24 = smov %s10653_s29  ;;  %21 = sbr.rel (!%p19_p13) target bundleno = 13 (0xd), region = 131 }
 0x741   :  { %5151 = vsyncpa [#allocation3], 1 }
 0x742   :  { %5153 = vsyncpa [#allocation3 + $0x1], 1 }
 0x743   :  { %5154 = vsyncpa [#allocation5], 1 }
 0x744   :  { %5156 = vsyncpa [#allocation5 + $0x1], 1 }

</bundles_post_ra>
